<compile_context>
chip_gen: v6e
topology: v6e:2x2x1
jax: 0.10.0
libtpu: 0.0.40
codegen_flags: <defaults>
</compile_context>

<pallas_src>
import jax
import jax.numpy as jnp
import numpy as np
from jax.experimental import pallas as pl
from jax.experimental.pallas import tpu as pltpu

IN_D = 3                 # input coordinate dims
L = 10                   # number of frequency bands
HIDDEN = 128             # hidden width
ENC_D = IN_D * 2 * L     # 60
ENC_PAD = 64             # ENC_D padded to a sublane-friendly multiple


def nerf_kernel(xt_ref, pe_ref, w1_ref, w2_ref, w3_ref, w4_ref, b_ref, b4_ref,
                o_ref):
    xt = xt_ref[...]                         # (8, tile_n) f32, rows 0..2 = coords
    pe = pe_ref[...]                         # (ENC_PAD, IN_D + 1) f32

    # --- Positional encoding, feature-major (lane-dense): ------------------
    # arg[k, :] = freq_k * x[dim(k), :] + phase_k ; cos rows use phase = pi/2
    # so enc = sin(arg) reproduces torch's [sin | cos] ordering per coordinate.
    # Lane-broadcast operand is the tiny (64,1) freq/phase column; the x rows
    # are already lane-dense, so this stays cheap on the VPU and off the MXU.
    arg = pe[:, IN_D:IN_D + 1]               # phase column, (ENC_PAD, 1)
    for d in range(IN_D):
        arg = arg + pe[:, d:d + 1] * xt[d:d + 1, :]
    enc = jnp.sin(arg)                       # (ENC_PAD, tile_n) f32, lane-dense
    # TODO(synk): if a bundle dump shows the VPU saturated by the sin
    # polynomial, replace the higher bands with a double-angle recurrence.

    mm = w1_ref.dtype                        # bf16 (default) or f32 operands
    b = b_ref[...]                           # (HIDDEN, 3) f32 bias columns

    h = jnp.dot(w1_ref[...], enc.astype(mm), preferred_element_type=jnp.float32)
    h = jnp.maximum(h + b[:, 0:1], 0.0)
    h = jnp.dot(w2_ref[...], h.astype(mm), preferred_element_type=jnp.float32)
    h = jnp.maximum(h + b[:, 1:2], 0.0)
    h = jnp.dot(w3_ref[...], h.astype(mm), preferred_element_type=jnp.float32)
    h = jnp.maximum(h + b[:, 2:3], 0.0)

    # --- Layer 4 (HIDDEN -> 1): one lane-dense MXU dot, no cross-lane repack.
    logit = jnp.dot(w4_ref[...], h.astype(mm),
                    preferred_element_type=jnp.float32) + b4_ref[0]
    out = jax.nn.sigmoid(logit)              # (1, tile_n) f32, lane-dense
    o_ref[...] = out.reshape(o_ref.shape)    # (1, 1, tile_n)


def _chip_defaults():
    """(max_tile_rows, vmem_limit_bytes, min_grid_steps) per TPU generation."""
    kind = ""
    try:
        kind = jax.devices()[0].device_kind.lower()
    except Exception:
        pass
    if "v7" in kind:
        # 2 TensorCores but only 64 MiB VMEM/core: moderate tiles, prefer an
        # even number of grid steps so the "parallel" axis shards evenly.
        return 8192, 48 * 1024 * 1024, 2
    # v5e / v6e (single TensorCore, 128 MiB VMEM): fewer, bigger steps.
    return 16384, 80 * 1024 * 1024, 1


def _pick_tile_n(n, max_tile, min_steps):
    """Largest divisor of n that is a multiple of 128, <= max_tile, and gives
    at least `min_steps` grid steps; prefers an even step count (v7x balance)
    unless that would shrink the tile by more than 2x.  Falls back to a single
    block when no such split exists."""
    best, best_even = None, None
    t = 128
    limit = min(max_tile, n)
    while t <= limit:
        if n % t == 0 and (n // t) >= min_steps:
            best = t
            if (n // t) % 2 == 0:
                best_even = t
        t += 128
    if best is None:
        return n
    steps = n // best
    if steps > 1 and steps % 2 == 1 and best_even is not None and 2 * best_even >= best:
        return best_even
    return best


def _pack_params(params, matmul_dtype):
    freqs, w1, b1, w2, b2, w3, b3, w4, b4 = params
    # Transposed PE matrix (ENC_PAD, IN_D+1): column d holds the frequency of
    # every encoding row that reads coordinate d; column IN_D is the constant
    # phase column (+pi/2 turns sin into cos); pad rows / columns stay zero.
    pe = jnp.zeros((ENC_PAD, IN_D + 1), jnp.float32)
    for d in range(IN_D):
        base = 2 * L * d
        pe = pe.at[base:base + L, d].set(freqs)                # sin rows
        pe = pe.at[base + L:base + 2 * L, d].set(freqs)        # cos rows
        pe = pe.at[base + L:base + 2 * L, IN_D].set(jnp.pi / 2)
    # W1^T padded 60 -> 64 with zero columns (padded enc rows are sin(0) = 0).
    w1t = jnp.zeros((HIDDEN, ENC_PAD), jnp.float32).at[:, :ENC_D].set(w1.T)
    b_cols = jnp.concatenate([b1.T, b2.T, b3.T], axis=1)       # (HIDDEN, 3)
    return (pe,
            w1t.astype(matmul_dtype),
            w2.T.astype(matmul_dtype),
            w3.T.astype(matmul_dtype),
            w4.T.astype(matmul_dtype),                          # (1, HIDDEN)
            b_cols.astype(jnp.float32),
            jnp.reshape(b4, (1,)).astype(jnp.float32))


def nerf_forward(x, params, *, tile_n=None, matmul_dtype=jnp.bfloat16):
    n = x.shape[0]
    assert x.shape[1] == IN_D
    assert n % 128 == 0, "N must be a multiple of 128"
    max_tile, vmem_limit, min_steps = _chip_defaults()
    if tile_n is None:
        tile_n = _pick_tile_n(n, max_tile, min_steps)
    assert n % tile_n == 0 and tile_n % 128 == 0
    steps = n // tile_n

    pe, w1t, w2t, w3t, w4t, b_cols, b4 = _pack_params(params, matmul_dtype)

    # Feature-major coordinates: rows 0..IN_D-1 hold x^T (lane-dense), rest 0.
    xt = jnp.zeros((8, n), jnp.float32).at[:IN_D, :].set(x.T.astype(jnp.float32))

    full = lambda i: (0, 0)
    out3 = pl.pallas_call(
        nerf_kernel,
        out_shape=jax.ShapeDtypeStruct((steps, 1, tile_n), jnp.float32),
        grid_spec=pltpu.PrefetchScalarGridSpec(
            num_scalar_prefetch=0,
            grid=(steps,),
            in_specs=[
                pl.BlockSpec((8, tile_n), lambda i: (0, i)),         # x^T block
                pl.BlockSpec((ENC_PAD, IN_D + 1), full),             # PE freqs + phase
                pl.BlockSpec((HIDDEN, ENC_PAD), full),               # W1^T (padded)
                pl.BlockSpec((HIDDEN, HIDDEN), full),                # W2^T
                pl.BlockSpec((HIDDEN, HIDDEN), full),                # W3^T
                pl.BlockSpec((1, HIDDEN), full),                     # w4^T row
                pl.BlockSpec((HIDDEN, 3), full),                     # b1..b3 columns
                pl.BlockSpec(memory_space=pltpu.MemorySpace.SMEM),   # b4 scalar
            ],
            out_specs=pl.BlockSpec((1, 1, tile_n), lambda i: (i, 0, 0)),
        ),
        compiler_params=pltpu.CompilerParams(
            dimension_semantics=("parallel",),
            vmem_limit_bytes=vmem_limit),
    )(xt, pe, w1t, w2t, w3t, w4t, b_cols, b4)

    return out3.reshape(n, 1)


def nerf_reference(x, params):
    """Pure-JAX reference replicating the PyTorch forward semantics."""
    freqs, w1, b1, w2, b2, w3, b3, w4, b4 = params
    xe = x[..., None]                        # (N, IN_D, 1)
    sin_x = jnp.sin(freqs * xe)              # (N, IN_D, L)
    cos_x = jnp.cos(freqs * xe)              # (N, IN_D, L)
    enc = jnp.concatenate([sin_x, cos_x], axis=-1).reshape(x.shape[0], -1)
    hp = jax.lax.Precision.HIGHEST
    h = jax.nn.relu(jnp.dot(enc, w1, precision=hp) + b1)
    h = jax.nn.relu(jnp.dot(h, w2, precision=hp) + b2)
    h = jax.nn.relu(jnp.dot(h, w3, precision=hp) + b3)
    return jax.nn.sigmoid(jnp.dot(h, w4, precision=hp) + b4)


def init_params(key):
    ks = jax.random.split(key, 8)

    def lin(kw, kb, fan_in, fan_out):
        bound = 1.0 / np.sqrt(fan_in)
        w = jax.random.uniform(kw, (fan_in, fan_out), jnp.float32, -bound, bound)
        b = jax.random.uniform(kb, (1, fan_out), jnp.float32, -bound, bound)
        return w, b

    freqs = 2.0 ** jnp.arange(L, dtype=jnp.float32) * jnp.pi   # (L,)
    w1, b1 = lin(ks[0], ks[1], ENC_D, HIDDEN)
    w2, b2 = lin(ks[2], ks[3], HIDDEN, HIDDEN)
    w3, b3 = lin(ks[4], ks[5], HIDDEN, HIDDEN)
    w4, b4 = lin(ks[6], ks[7], HIDDEN, 1)
    return (freqs, w1, b1, w2, b2, w3, b3, w4, b4)


if __name__ == "__main__":
    key = jax.random.PRNGKey(0)
    kx, kp = jax.random.split(key)
    N = 512
    # coordinates in [-0.5, 0.5] like the original script's linspace grid
    x = jax.random.uniform(kx, (N, IN_D), jnp.float32, -0.5, 0.5)
    params = init_params(kp)

    ref = nerf_reference(x, params)

    # Default path: bf16 matmul operands (f32 accumulation), single block.
    out = jax.block_until_ready(nerf_forward(x, params))
    assert out.shape == (N, 1)
    np.testing.assert_allclose(np.asarray(out), np.asarray(ref), rtol=0.0, atol=3e-2)

    # Multi-step grid path (exercises the tiled index maps), still bf16.
    out_tiled = jax.block_until_ready(nerf_forward(x, params, tile_n=128))
    np.testing.assert_allclose(np.asarray(out_tiled), np.asarray(ref),
                               rtol=0.0, atol=3e-2)

    # f32 matmul operands: tight check (only f32 matmul emulation and the
    # cos = sin(+pi/2) phase trick differ from the HIGHEST-precision reference).
    out_f32 = jax.block_until_ready(
        nerf_forward(x, params, matmul_dtype=jnp.float32))
    np.testing.assert_allclose(np.asarray(out_f32), np.asarray(ref),
                               rtol=0.0, atol=5e-4)

    print("KERNEL_OK")
</pallas_src>

<mosaic_0001>
module attributes {stable_mosaic.version = 11 : i64} {
  func.func @nerf_kernel(%arg0: i32, %arg1: memref<8x512xf32, #tpu.memory_space<vmem>>, %arg2: memref<64x4xf32, #tpu.memory_space<vmem>>, %arg3: memref<128x64xbf16, #tpu.memory_space<vmem>>, %arg4: memref<128x128xbf16, #tpu.memory_space<vmem>>, %arg5: memref<128x128xbf16, #tpu.memory_space<vmem>>, %arg6: memref<1x128xbf16, #tpu.memory_space<vmem>>, %arg7: memref<128x3xf32, #tpu.memory_space<vmem>>, %arg8: memref<1xf32, #tpu.memory_space<smem>>, %arg9: memref<1x1x512xf32, #tpu.memory_space<vmem>>) attributes {dimension_semantics = [#tpu.dimension_semantics<parallel>], iteration_bounds = array<i64: 1>, scalar_prefetch = 0 : i64, scratch_operands = 0 : i64, tpu.core_type = #tpu.core_type<tc>, window_params = [{transform_indices = @transform_0, window_bounds = array<i64: 8, 512>}, {pipeline_mode = #tpu.pipeline_mode<synchronous>, transform_indices = @transform_1, window_bounds = array<i64: 64, 4>}, {pipeline_mode = #tpu.pipeline_mode<synchronous>, transform_indices = @transform_2, window_bounds = array<i64: 128, 64>}, {pipeline_mode = #tpu.pipeline_mode<synchronous>, transform_indices = @transform_3, window_bounds = array<i64: 128, 128>}, {pipeline_mode = #tpu.pipeline_mode<synchronous>, transform_indices = @transform_4, window_bounds = array<i64: 128, 128>}, {pipeline_mode = #tpu.pipeline_mode<synchronous>, transform_indices = @transform_5, window_bounds = array<i64: 1, 128>}, {pipeline_mode = #tpu.pipeline_mode<synchronous>, transform_indices = @transform_6, window_bounds = array<i64: 128, 3>}, {transform_indices = @transform_7, window_bounds = array<i64: 1>}, {transform_indices = @transform_8, window_bounds = array<i64: 1, 1, 512>}]} {
    %c0 = arith.constant 0 : index
    %c0_0 = arith.constant 0 : index
    %0 = vector.load %arg1[%c0, %c0_0] : memref<8x512xf32, #tpu.memory_space<vmem>>, vector<8x512xf32>
    %c0_1 = arith.constant 0 : index
    %c0_2 = arith.constant 0 : index
    %1 = vector.load %arg2[%c0_1, %c0_2] : memref<64x4xf32, #tpu.memory_space<vmem>>, vector<64x4xf32>
    %2 = vector.extract_strided_slice %1 {offsets = [0, 3], sizes = [64, 1], strides = [1, 1]} : vector<64x4xf32> to vector<64x1xf32>
    %3 = vector.extract_strided_slice %1 {offsets = [0, 0], sizes = [64, 1], strides = [1, 1]} : vector<64x4xf32> to vector<64x1xf32>
    %4 = vector.extract_strided_slice %0 {offsets = [0, 0], sizes = [1, 512], strides = [1, 1]} : vector<8x512xf32> to vector<1x512xf32>
    %5 = vector.broadcast %3 : vector<64x1xf32> to vector<64x512xf32>
    %6 = vector.broadcast %4 : vector<1x512xf32> to vector<64x512xf32>
    %7 = arith.mulf %5, %6 : vector<64x512xf32>
    %8 = vector.broadcast %2 : vector<64x1xf32> to vector<64x512xf32>
    %9 = arith.addf %8, %7 : vector<64x512xf32>
    %10 = vector.extract_strided_slice %1 {offsets = [0, 1], sizes = [64, 1], strides = [1, 1]} : vector<64x4xf32> to vector<64x1xf32>
    %11 = vector.extract_strided_slice %0 {offsets = [1, 0], sizes = [1, 512], strides = [1, 1]} : vector<8x512xf32> to vector<1x512xf32>
    %12 = vector.broadcast %10 : vector<64x1xf32> to vector<64x512xf32>
    %13 = vector.broadcast %11 : vector<1x512xf32> to vector<64x512xf32>
    %14 = arith.mulf %12, %13 : vector<64x512xf32>
    %15 = arith.addf %9, %14 : vector<64x512xf32>
    %16 = vector.extract_strided_slice %1 {offsets = [0, 2], sizes = [64, 1], strides = [1, 1]} : vector<64x4xf32> to vector<64x1xf32>
    %17 = vector.extract_strided_slice %0 {offsets = [2, 0], sizes = [1, 512], strides = [1, 1]} : vector<8x512xf32> to vector<1x512xf32>
    %18 = vector.broadcast %16 : vector<64x1xf32> to vector<64x512xf32>
    %19 = vector.broadcast %17 : vector<1x512xf32> to vector<64x512xf32>
    %20 = arith.mulf %18, %19 : vector<64x512xf32>
    %21 = arith.addf %15, %20 : vector<64x512xf32>
    %22 = math.sin %21 : vector<64x512xf32>
    %c0_3 = arith.constant 0 : index
    %c0_4 = arith.constant 0 : index
    %23 = vector.load %arg7[%c0_3, %c0_4] : memref<128x3xf32, #tpu.memory_space<vmem>>, vector<128x3xf32>
    %c0_5 = arith.constant 0 : index
    %c0_6 = arith.constant 0 : index
    %24 = vector.load %arg3[%c0_5, %c0_6] : memref<128x64xbf16, #tpu.memory_space<vmem>>, vector<128x64xbf16>
    %25 = arith.truncf %22 : vector<64x512xf32> to vector<64x512xbf16>
    %cst = arith.constant dense<0.000000e+00> : vector<128x512xf32>
    %26 = tpu.matmul %24, %25, %cst {dimension_numbers = #tpu.dot_dimension_numbers<[1], [0], [0], [1], [0, 0, 1, 1], [], []>} : vector<128x64xbf16>, vector<64x512xbf16>, vector<128x512xf32> -> vector<128x512xf32>
    %27 = vector.extract_strided_slice %23 {offsets = [0, 0], sizes = [128, 1], strides = [1, 1]} : vector<128x3xf32> to vector<128x1xf32>
    %28 = vector.broadcast %27 : vector<128x1xf32> to vector<128x512xf32>
    %29 = arith.addf %26, %28 : vector<128x512xf32>
    %cst_7 = arith.constant 0.000000e+00 : f32
    %30 = vector.broadcast %cst_7 : f32 to vector<128x512xf32>
    %31 = arith.maximumf %29, %30 : vector<128x512xf32>
    %c0_8 = arith.constant 0 : index
    %c0_9 = arith.constant 0 : index
    %32 = vector.load %arg4[%c0_8, %c0_9] : memref<128x128xbf16, #tpu.memory_space<vmem>>, vector<128x128xbf16>
    %33 = arith.truncf %31 : vector<128x512xf32> to vector<128x512xbf16>
    %cst_10 = arith.constant dense<0.000000e+00> : vector<128x512xf32>
    %34 = tpu.matmul %32, %33, %cst_10 {dimension_numbers = #tpu.dot_dimension_numbers<[1], [0], [0], [1], [0, 0, 1, 1], [], []>} : vector<128x128xbf16>, vector<128x512xbf16>, vector<128x512xf32> -> vector<128x512xf32>
    %35 = vector.extract_strided_slice %23 {offsets = [0, 1], sizes = [128, 1], strides = [1, 1]} : vector<128x3xf32> to vector<128x1xf32>
    %36 = vector.broadcast %35 : vector<128x1xf32> to vector<128x512xf32>
    %37 = arith.addf %34, %36 : vector<128x512xf32>
    %cst_11 = arith.constant 0.000000e+00 : f32
    %38 = vector.broadcast %cst_11 : f32 to vector<128x512xf32>
    %39 = arith.maximumf %37, %38 : vector<128x512xf32>
    %c0_12 = arith.constant 0 : index
    %c0_13 = arith.constant 0 : index
    %40 = vector.load %arg5[%c0_12, %c0_13] : memref<128x128xbf16, #tpu.memory_space<vmem>>, vector<128x128xbf16>
    %41 = arith.truncf %39 : vector<128x512xf32> to vector<128x512xbf16>
    %cst_14 = arith.constant dense<0.000000e+00> : vector<128x512xf32>
    %42 = tpu.matmul %40, %41, %cst_14 {dimension_numbers = #tpu.dot_dimension_numbers<[1], [0], [0], [1], [0, 0, 1, 1], [], []>} : vector<128x128xbf16>, vector<128x512xbf16>, vector<128x512xf32> -> vector<128x512xf32>
    %43 = vector.extract_strided_slice %23 {offsets = [0, 2], sizes = [128, 1], strides = [1, 1]} : vector<128x3xf32> to vector<128x1xf32>
    %44 = vector.broadcast %43 : vector<128x1xf32> to vector<128x512xf32>
    %45 = arith.addf %42, %44 : vector<128x512xf32>
    %cst_15 = arith.constant 0.000000e+00 : f32
    %46 = vector.broadcast %cst_15 : f32 to vector<128x512xf32>
    %47 = arith.maximumf %45, %46 : vector<128x512xf32>
    %c0_16 = arith.constant 0 : index
    %c0_17 = arith.constant 0 : index
    %48 = vector.load %arg6[%c0_16, %c0_17] : memref<1x128xbf16, #tpu.memory_space<vmem>>, vector<1x128xbf16>
    %49 = arith.truncf %47 : vector<128x512xf32> to vector<128x512xbf16>
    %cst_18 = arith.constant dense<0.000000e+00> : vector<1x512xf32>
    %50 = tpu.matmul %48, %49, %cst_18 {dimension_numbers = #tpu.dot_dimension_numbers<[1], [0], [0], [1], [0, 0, 1, 1], [], []>} : vector<1x128xbf16>, vector<128x512xbf16>, vector<1x512xf32> -> vector<1x512xf32>
    %c0_19 = arith.constant 0 : index
    %51 = memref.load %arg8[%c0_19] : memref<1xf32, #tpu.memory_space<smem>>
    %52 = vector.broadcast %51 : f32 to vector<1x512xf32>
    %53 = arith.addf %50, %52 : vector<1x512xf32>
    %54 = arith.negf %53 : vector<1x512xf32>
    %55 = math.exp %54 : vector<1x512xf32>
    %cst_20 = arith.constant 1.000000e+00 : f32
    %56 = vector.broadcast %cst_20 : f32 to vector<1x512xf32>
    %57 = arith.addf %56, %55 : vector<1x512xf32>
    %58 = arith.divf %56, %57 : vector<1x512xf32>
    %59 = vector.shape_cast %58 : vector<1x512xf32> to vector<1x1x512xf32>
    %c0_21 = arith.constant 0 : index
    %c0_22 = arith.constant 0 : index
    %c0_23 = arith.constant 0 : index
    %60 = vector.load %arg9[%c0_21, %c0_22, %c0_23] : memref<1x1x512xf32, #tpu.memory_space<vmem>>, vector<1x1x512xf32>
    tpu.vector_store %arg9[%c0_21, %c0_22, %c0_23], %59 {strides = array<i32>} : memref<1x1x512xf32, #tpu.memory_space<vmem>>, vector<1x1x512xf32>,
    return
  }
  func.func @transform_0(%arg0: i32) -> (i32, i32) {
    %c0_i32 = arith.constant 0 : i32
    %c0_i32_0 = arith.constant 0 : i32
    return %c0_i32, %arg0 : i32, i32
  }
  func.func @transform_1(%arg0: i32) -> (i32, i32) {
    %c0_i32 = arith.constant 0 : i32
    %c0_i32_0 = arith.constant 0 : i32
    %c0_i32_1 = arith.constant 0 : i32
    return %c0_i32, %c0_i32_0 : i32, i32
  }
  func.func @transform_2(%arg0: i32) -> (i32, i32) {
    %c0_i32 = arith.constant 0 : i32
    %c0_i32_0 = arith.constant 0 : i32
    %c0_i32_1 = arith.constant 0 : i32
    return %c0_i32, %c0_i32_0 : i32, i32
  }
  func.func @transform_3(%arg0: i32) -> (i32, i32) {
    %c0_i32 = arith.constant 0 : i32
    %c0_i32_0 = arith.constant 0 : i32
    %c0_i32_1 = arith.constant 0 : i32
    return %c0_i32, %c0_i32_0 : i32, i32
  }
  func.func @transform_4(%arg0: i32) -> (i32, i32) {
    %c0_i32 = arith.constant 0 : i32
    %c0_i32_0 = arith.constant 0 : i32
    %c0_i32_1 = arith.constant 0 : i32
    return %c0_i32, %c0_i32_0 : i32, i32
  }
  func.func @transform_5(%arg0: i32) -> (i32, i32) {
    %c0_i32 = arith.constant 0 : i32
    %c0_i32_0 = arith.constant 0 : i32
    %c0_i32_1 = arith.constant 0 : i32
    return %c0_i32, %c0_i32_0 : i32, i32
  }
  func.func @transform_6(%arg0: i32) -> (i32, i32) {
    %c0_i32 = arith.constant 0 : i32
    %c0_i32_0 = arith.constant 0 : i32
    %c0_i32_1 = arith.constant 0 : i32
    return %c0_i32, %c0_i32_0 : i32, i32
  }
  func.func @transform_7(%arg0: i32) -> i32 {
    %c0_i32 = arith.constant 0 : i32
    %c0_i32_0 = arith.constant 0 : i32
    return %c0_i32 : i32
  }
  func.func @transform_8(%arg0: i32) -> (i32, i32, i32) {
    %c0_i32 = arith.constant 0 : i32
    %c0_i32_0 = arith.constant 0 : i32
    %c0_i32_1 = arith.constant 0 : i32
    return %arg0, %c0_i32, %c0_i32_0 : i32, i32, i32
  }
}

</mosaic_0001>

<bundles_post_ra>
// kernel: tpu_custom_call.1
= control target key start
LH: loop header
LB: loop body
LE: loop exit
PB: predicated region body
PF: predicated region fallthrough
CT: control target
= control target key end

     0   :  { %v5847_v2 = vmov 3   ;;  %v10887_v5 = vmov 0   ;;  %v10889_v6 = vmov 1   ;;  %v10885_v8 = vmov 2   ;;  %s10875_s0 = inlined_call_operand.vmem [shape: f32[8,512], index: 0, kind: input, shape index: {}]   ;;  %s10876_s1 = inlined_call_operand.vmem [shape: f32[64,4], index: 1, kind: input, shape index: {}]   ;;  %s10877_s2 = inlined_call_operand.vmem [shape: bf16[128,64], index: 2, kind: input, shape index: {}]   ;;  %s10878_s3 = inlined_call_operand.vmem [shape: bf16[128,128], index: 3, kind: input, shape index: {}]   ;;  %s10879_s4 = inlined_call_operand.vmem [shape: bf16[128,128], index: 4, kind: input, shape index: {}]   ;;  %s10880_s5 = inlined_call_operand.vmem [shape: bf16[1,128], index: 5, kind: input, shape index: {}]   ;;  %s10881_s6 = inlined_call_operand.vmem [shape: f32[128,3], index: 6, kind: input, shape index: {}]   ;;  %s10882_s7 = inlined_call_operand.<no memory space> [shape: f32[1], index: 7, kind: input, shape index: {}]   ;;  %s10883_s8 = inlined_call_operand.hbm [shape: f32[1,1,512], index: 8, kind: output, shape index: {}]  }
   0x1   :  { %v42_v0 = vld [vmem:[%s10876_s1 + $0x30] sm:$0xff]  ;;  %v40_v1 = vld [vmem:[%s10876_s1 + $0x20] sm:$0xff]  ;;  %5636 = vset.pattern.permute.xlu0 %v5847_v2  ;;  %5632 = vset.pattern.permute.xlu1 %v5847_v2  ;;  %v43_v3 = vld [vmem:[%s10876_s1 + $0x38] sm:$0xff] }
   0x2   :  { %157 = vperm.xlu1 %5632, %v42_v0   ;;  %149 = vperm.xlu0 %5636, %v40_v1   ;;  %v39_v4 = vld [vmem:[%s10876_s1 + $0x18] sm:$0xff]  ;;  %v41_v7 = vld [vmem:[%s10876_s1 + $0x28] sm:$0xff]  ;;  %v36_v9 = vld [vmem:[%s10876_s1] sm:$0xff] }
   0x3   :  { %3973 = vmatprep.mubr.bf16.mxu0 %v10887_v5  ;;  %4086 = vmatprep.mubr.bf16.mxu1 %v10887_v5 }
   0x6   :  { %161 = vperm.xlu1 %5632, %v43_v3   ;;  %145 = vperm.xlu0 %5636, %v39_v4  }
   0xa   :  { %5633 = vset.pattern.permute.xlu1 %v10889_v6  ;;  %5642 = vset.pattern.permute.xlu0 %v10887_v5 }
   0xb   :  { %225 = vperm.xlu1 %5633, %v43_v3   ;;  %76 = vperm.xlu0 %5642, %v42_v0  }
   0xf   :  { %5634 = vset.pattern.permute.xlu1 %v10887_v5  ;;  %81 = vperm.xlu0 %5642, %v43_v3  }
  0x10   :  { %66 = vperm.xlu1 %5634, %v40_v1  }
  0x13   :  { %71 = vperm.xlu0 %5642, %v41_v7  }
  0x14   :  { %5635 = vset.pattern.permute.xlu1 %v10885_v8 }
  0x15   :  { %14 = vsyncpa [#allocation4], 0  ;;  %333 = vperm.xlu1 %5635, %v42_v0   ;;  %v38_v10 = vld [vmem:[%s10876_s1 + $0x10] sm:$0xff]  ;;  %v37_v11 = vld [vmem:[%s10876_s1 + $0x8] sm:$0xff]  ;;  %v10884_v12 = vlaneseq }
  0x16   :  { %v32_v19 = vld [vmem:[%s10875_s0] sm:$0xff]  ;;  %v34_v20 = vld [vmem:[%s10875_s0 + $0x10] sm:$0xff]  ;;  %v5976_v26 = vld [vmem:[%s10875_s0 + $0x8] sm:$0xff] }
  0x17   :  { %46 = vperm.xlu0 %5642, %v36_v9   ;;  %v5947_v13 = vshrl.u32 %v10884_v12, 7  ;;  %v5981_v27 = vld [vmem:[%s10875_s0 + $0x18] sm:$0xff] }
  0x19   :  { %337 = vperm.xlu1 %5635, %v43_v3   ;;  %11049 = vst [vmem:[#allocation6_spill] sm:$0xff] %v5947_v13  ;;  %v86_v16 = vsub.s32 0, %v5947_v13  ;;  %v5967_v23 = vsub.s32 1, %v5947_v13  ;;  %v342_v53 = vsub.s32 2, %v5947_v13 }
  0x1b   :  { %5644 = vset.pattern.permute.xlu0 %v10889_v6  ;;  %v5962_v21 = vrot.slane %v32_v19, %v86_v16  ;;  %v5964_v22 = vrot.slane %v34_v20, %v86_v16  ;;  %v5988_v30 = vrot.slane %v32_v19, %v5967_v23  ;;  %v5991_v31 = vrot.slane %v34_v20, %v5967_v23 }
  0x1c   :  { %221 = vperm.xlu0 %5644, %v42_v0   ;;  %v5994_v32 = vrot.slane %v5976_v26, %v86_v16  ;;  %v5997_v33 = vrot.slane %v5981_v27, %v86_v16  ;;  %v6024_v58 = vrot.slane %v32_v19, %v342_v53  ;;  %v6026_v59 = vrot.slane %v34_v20, %v342_v53 }
  0x1d   :  { %5637 = vset.pattern.permute.xlu1 %v5847_v2 }
  0x1e   :  { %153 = vperm.xlu1 %5637, %v41_v7   ;;  %11050 = vst [vmem:[#allocation7_spill] sm:$0xff] %v5997_v33  ;;  %11051 = vst [vmem:[#allocation8_spill] sm:$0xff] %v6024_v58 }
  0x1f   :  { %11052 = vst [vmem:[#allocation9_spill] sm:$0xff] %v6026_v59 }
  0x20   :  { %217 = vperm.xlu0 %5644, %v41_v7  }
  0x22   :  { %5638 = vset.pattern.permute.xlu1 %v10889_v6 }
  0x23   :  { %213 = vperm.xlu1 %5638, %v40_v1  }
  0x24   :  { %197 = vperm.xlu0 %5644, %v36_v9  }
  0x27   :  { %5639 = vset.pattern.permute.xlu1 %v10887_v5 }
  0x28   :  { %56 = vperm.xlu1 %5639, %v38_v10   ;;  %5648 = vset.pattern.permute.xlu0 %v10885_v8 }
  0x29   :  { %325 = vperm.xlu0 %5648, %v40_v1  }
  0x2c   :  { %61 = vperm.xlu1 %5639, %v39_v4  }
  0x2d   :  { %321 = vperm.xlu0 %5648, %v39_v4  }
  0x30   :  { %5640 = vset.pattern.permute.xlu1 %v10885_v8 }
  0x31   :  { %329 = vperm.xlu1 %5640, %v41_v7   ;;  %313 = vperm.xlu0 %5648, %v37_v11  }
  0x35   :  { %5641 = vset.pattern.permute.xlu1 %v5847_v2  ;;  %5652 = vset.pattern.permute.xlu0 %v10887_v5 }
  0x36   :  { %141 = vperm.xlu1 %5641, %v38_v10  }
  0x3a   :  { %5643 = vset.pattern.permute.xlu1 %v10889_v6 }
  0x3b   :  { %205 = vperm.xlu1 %5643, %v38_v10  }
  0x3f   :  { %209 = vperm.xlu1 %5643, %v39_v4  }
  0x43   :  { %5645 = vset.pattern.permute.xlu1 %v10887_v5 }
  0x44   :  { %51 = vperm.xlu1 %5645, %v37_v11  }
  0x48   :  { %5646 = vset.pattern.permute.xlu1 %v10885_v8 }
  0x49   :  { %317 = vperm.xlu1 %5646, %v38_v10  }
  0x4d   :  { %5647 = vset.pattern.permute.xlu1 %v5847_v2 }
  0x4e   :  { %133 = vperm.xlu1 %5647, %v36_v9  }
  0x52   :  { %137 = vperm.xlu1 %5647, %v37_v11  }
  0x56   :  { %5649 = vset.pattern.permute.xlu1 %v10889_v6 }
  0x57   :  { %201 = vperm.xlu1 %5649, %v37_v11  }
  0x5b   :  { %5650 = vset.pattern.permute.xlu1 %v10885_v8 }
  0x5c   :  { %309 = vperm.xlu1 %5650, %v36_v9  }
  0x60   :  { %5651 = vset.pattern.permute.xlu1 %v10887_v5 }
  0x7d   :  { %v5949_v14 = vpop.permute.xlu1 %157  ;;  %v150_v15 = vpop.permute.xlu0 %149 }
  0x81   :  { %v5952_v17 = vpop.permute.xlu1 %161  ;;  %v5954_v18 = vpop.permute.xlu0 %145 }
  0x86   :  { %v5969_v24 = vpop.permute.xlu1 %225  ;;  %v5971_v25 = vpop.permute.xlu0 %76 }
  0x87   :  { %v124_v28 = vmul.f32 %v5962_v21, %v5971_v25  ;;  %v126_v29 = vmul.f32 %v5964_v22, %v5971_v25  ;;  %v272_v44 = vmul.f32 %v5988_v30, %v5969_v24  ;;  %v274_v45 = vmul.f32 %v5991_v31, %v5969_v24 }
  0x89   :  { %v188_v34 = vadd.f32 %v5949_v14, %v124_v28  ;;  %v190_v35 = vadd.f32 %v5949_v14, %v126_v29 }
  0x8a   :  { %v82_v36 = vpop.permute.xlu0 %81 }
  0x8b   :  { %v128_v37 = vmul.f32 %v5962_v21, %v82_v36  ;;  %v130_v38 = vmul.f32 %v5964_v22, %v82_v36  ;;  %v67_v39 = vpop.permute.xlu1 %66 }
  0x8c   :  { %v116_v40 = vmul.f32 %v5962_v21, %v67_v39  ;;  %v117_v41 = vmul.f32 %v5994_v32, %v67_v39  ;;  %v118_v42 = vmul.f32 %v5964_v22, %v67_v39  ;;  %v119_v43 = vmul.f32 %v5997_v33, %v67_v39 }
  0x8d   :  { %v192_v46 = vadd.f32 %v5952_v17, %v128_v37  ;;  %v194_v47 = vadd.f32 %v5952_v17, %v130_v38  ;;  %v129_v38 = vmul.f32 %v5994_v32, %v82_v36 }
  0x8e   :  { %v180_v48 = vadd.f32 %v150_v15, %v116_v40  ;;  %v6013_v49 = vadd.f32 %v150_v15, %v117_v41  ;;  %v182_v50 = vadd.f32 %v150_v15, %v118_v42  ;;  %v6015_v51 = vadd.f32 %v150_v15, %v119_v43  ;;  %v6017_v52 = vpop.permute.xlu0 %71 }
  0x8f   :  { %v304_v55 = vadd.f32 %v272_v44, %v192_v46  ;;  %v306_v56 = vadd.f32 %v274_v45, %v194_v47  ;;  %v120_v20 = vmul.f32 %v5962_v21, %v6017_v52  ;;  %v122_v28 = vmul.f32 %v5964_v22, %v6017_v52 }
  0x90   :  { %v6020_v54 = vpop.permute.xlu1 %333  ;;  %v6069_v41 = vrot.slane %v5976_v26, %v5967_v23  ;;  %v131_v42 = vmul.f32 %v5997_v33, %v82_v36  ;;  %v6076_v45 = vrot.slane %v5981_v27, %v5967_v23  ;;  %v193_v46 = vadd.f32 %v5952_v17, %v129_v38 }
  0x91   :  { %v380_v4 = vmul.f32 %v6024_v58, %v6020_v54  ;;  %v382_v7 = vmul.f32 %v6026_v59, %v6020_v54  ;;  %v6080_v47 = vrot.slane %v5976_v26, %v342_v53 }
  0x92   :  { %v6022_v57 = vpop.permute.xlu0 %46  ;;  %11057 = vst [vmem:[#allocation14_spill] sm:$0xff] %v6069_v41  ;;  %11058 = vst [vmem:[#allocation15_spill] sm:$0xff] %v6076_v45 }
  0x93   :  { %11059 = vst [vmem:[#allocation16_spill] sm:$0xff] %v6080_v47 }
  0x94   :  { %v338_v60 = vpop.permute.xlu1 %337 }
  0x95   :  { %v384_v61 = vmul.f32 %v6024_v58, %v338_v60  ;;  %v386_v62 = vmul.f32 %v6026_v59, %v338_v60  ;;  %v385_v23 = vmul.f32 %v6080_v47, %v338_v60 }
  0x97   :  { %v6030_v63 = vadd.f32 %v384_v61, %v304_v55  ;;  %v6032_v0 = vadd.f32 %v386_v62, %v306_v56  ;;  %v6034_v1 = vpop.permute.xlu0 %221  ;;  %v6083_v56 = vrot.slane %v5981_v27, %v342_v53  ;;  %v273_v62 = vmul.f32 %v6069_v41, %v5969_v24 }
  0x98   :  { %v268_v2 = vmul.f32 %v5988_v30, %v6034_v1  ;;  %v270_v3 = vmul.f32 %v5991_v31, %v6034_v1  ;;  %v275_v27 = vmul.f32 %v6076_v45, %v5969_v24 }
  0x99   :  { %11053 = vst [vmem:[#allocation10_spill] sm:$0xff] %v6030_v63  ;;  %11054 = vst [vmem:[#allocation11_spill] sm:$0xff] %v6032_v0  ;;  %v6044_v11 = vpop.permute.xlu1 %153  ;;  %v305_v53 = vadd.f32 %v273_v62, %v193_v46  ;;  %v3335_v62 = vand.u32 2139095040, %v6030_v63 }
  0x9a   :  { %v300_v9 = vadd.f32 %v268_v2, %v188_v34  ;;  %v302_v10 = vadd.f32 %v270_v3, %v190_v35  ;;  %v184_v37 = vadd.f32 %v6044_v11, %v120_v20  ;;  %v186_v35 = vadd.f32 %v6044_v11, %v122_v28  ;;  %11060 = vst [vmem:[#allocation17_spill] sm:$0xff] %v6083_v56 }
  0x9b   :  { %v6056_v29 = vpop.permute.xlu0 %217  ;;  %v195_v2 = vadd.f32 %v5952_v17, %v131_v42  ;;  %v6100_v28 = vadd.f32 %v385_v23, %v305_v53 }
  0x9c   :  { %v6046_v15 = vadd.f32 %v380_v4, %v300_v9  ;;  %v6048_v16 = vadd.f32 %v382_v7, %v302_v10  ;;  %v264_v39 = vmul.f32 %v5988_v30, %v6056_v29  ;;  %v266_v43 = vmul.f32 %v5991_v31, %v6056_v29 }
  0x9d   :  { %v387_v7 = vmul.f32 %v6083_v56, %v338_v60  ;;  %v307_v20 = vadd.f32 %v275_v27, %v195_v2  ;;  %11061 = vst [vmem:[#allocation18_spill] sm:$0xff] %v6100_v28  ;;  %v3439_v2 = vand.u32 2139095040, %v6100_v28  ;;  %v127_v27 = vmul.f32 %v5997_v33, %v5971_v25 }
  0x9e   :  { %11055 = vst [vmem:[#allocation12_spill] sm:$0xff] %v6046_v15  ;;  %11056 = vst [vmem:[#allocation13_spill] sm:$0xff] %v6048_v16  ;;  %v6050_v19 = vpop.permute.xlu1 %213  ;;  %v296_v55 = vadd.f32 %v264_v39, %v184_v37  ;;  %v298_v61 = vadd.f32 %v266_v43, %v186_v35 }
  0x9f   :  { %v6065_v40 = vpop.permute.xlu0 %197  ;;  %v260_v36 = vmul.f32 %v5988_v30, %v6050_v19  ;;  %v262_v3 = vmul.f32 %v5991_v31, %v6050_v19 }
  0xa1   :  { %v292_v26 = vadd.f32 %v260_v36, %v180_v48  ;;  %v294_v9 = vadd.f32 %v262_v3, %v182_v50  ;;  %v6110_v50 = vadd.f32 %v387_v7, %v307_v20  ;;  %v269_v7 = vmul.f32 %v6069_v41, %v6034_v1 }
  0xa3   :  { %v6059_v34 = vpop.permute.xlu1 %56  ;;  %11062 = vst [vmem:[#allocation19_spill] sm:$0xff] %v6110_v50  ;;  %v3647_v53 = vand.u32 2139095040, %v6110_v50 }
  0xa4   :  { %v6093_v4 = vpop.permute.xlu0 %325 }
  0xa5   :  { %v372_v17 = vmul.f32 %v6024_v58, %v6093_v4  ;;  %v374_v48 = vmul.f32 %v6026_v59, %v6093_v4 }
  0xa7   :  { %v62_v44 = vpop.permute.xlu1 %61  ;;  %v6112_v38 = vadd.f32 %v372_v17, %v292_v26  ;;  %v6114_v39 = vadd.f32 %v374_v48, %v294_v9  ;;  %v271_v48 = vmul.f32 %v6076_v45, %v6034_v1 }
  0xa8   :  { %v112_v37 = vmul.f32 %v5962_v21, %v62_v44  ;;  %v113_v35 = vmul.f32 %v5994_v32, %v62_v44  ;;  %v114_v24 = vmul.f32 %v5964_v22, %v62_v44  ;;  %v115_v60 = vmul.f32 %v5997_v33, %v62_v44  ;;  %v6204_v50 = vpop.permute.xlu0 %321 }
  0xa9   :  { %11063 = vst [vmem:[#allocation20_spill] sm:$0xff] %v6112_v38  ;;  %11064 = vst [vmem:[#allocation21_spill] sm:$0xff] %v6114_v39  ;;  %v125_v44 = vmul.f32 %v5994_v32, %v5971_v25  ;;  %v191_v25 = vadd.f32 %v5949_v14, %v127_v27 }
  0xaa   :  { %v6117_v42 = vadd.f32 %v5954_v18, %v112_v37  ;;  %v6120_v43 = vadd.f32 %v5954_v18, %v113_v35  ;;  %v6123_v46 = vadd.f32 %v5954_v18, %v114_v24  ;;  %v6126_v36 = vadd.f32 %v5954_v18, %v115_v60 }
  0xab   :  { %v3543_v18 = vand.u32 2139095040, %v6032_v0  ;;  %v189_v17 = vadd.f32 %v5949_v14, %v125_v44  ;;  %v3336_v37 = vshrl.u32 %v3335_v62, 23  ;;  %v3440_v35 = vshrl.u32 %v3439_v2, 23 }
  0xac   :  { %v6098_v10 = vpop.permute.xlu1 %329  ;;  %v3648_v60 = vshrl.u32 %v3647_v53, 23  ;;  %v383_v44 = vmul.f32 %v6083_v56, %v6020_v54  ;;  %v108_v14 = vmul.f32 %v5962_v21, %v6059_v34  ;;  %v2919_v53 = vand.u32 2139095040, %v6046_v15 }
  0xad   :  { %v376_v23 = vmul.f32 %v6024_v58, %v6098_v10  ;;  %v378_v3 = vmul.f32 %v6026_v59, %v6098_v10  ;;  %v3544_v24 = vshrl.u32 %v3543_v18, 23  ;;  %v301_v12 = vadd.f32 %v269_v7, %v189_v17 }
  0xae   :  { %v5444_v1 = vadd.s32 4294967169, %v3648_v60  ;;  %v110_v7 = vmul.f32 %v5964_v22, %v6059_v34  ;;  %v3127_v60 = vand.u32 2139095040, %v6048_v16 }
  0xaf   :  { %v6144_v9 = vadd.f32 %v376_v23, %v296_v55  ;;  %v6146_v20 = vadd.f32 %v378_v3, %v298_v61  ;;  %v381_v55 = vmul.f32 %v6080_v47, %v6020_v54  ;;  %v303_v23 = vadd.f32 %v271_v48, %v191_v25 }
  0xb0   :  { %v5432_v61 = vadd.s32 4294967169, %v3336_v37  ;;  %v5436_v3 = vadd.s32 4294967169, %v3440_v35  ;;  %v5440_v5 = vadd.s32 4294967169, %v3544_v24  ;;  %v3654_v54 = vadd.s32 1, %v5444_v1 }
  0xb1   :  { %v6136_v26 = vpop.permute.xlu1 %141  ;;  %11066 = vst [vmem:[#allocation23_spill] sm:$0xff] %v6144_v9  ;;  %11067 = vst [vmem:[#allocation24_spill] sm:$0xff] %v6146_v20  ;;  %v6158_v62 = vadd.f32 %v381_v55, %v301_v12  ;;  %v6160_v2 = vadd.f32 %v383_v44, %v303_v23  ;;  %v6174_v25 = vmul.f32 %v5994_v32, %v6017_v52 }
  0xb2   :  { %11065 = vst [vmem:[#allocation22_spill] sm:$0xff] %v6136_v26  ;;  %v3342_v27 = vadd.s32 1, %v5432_v61  ;;  %v3446_v18 = vadd.s32 1, %v5436_v3  ;;  %v3550_v48 = vadd.s32 1, %v5440_v5  ;;  %v172_v12 = vadd.f32 %v6136_v26, %v108_v14 }
  0xb3   :  { %11069 = vst [vmem:[#allocation26_spill] sm:$0xff] %v6158_v62  ;;  %11070 = vst [vmem:[#allocation27_spill] sm:$0xff] %v6160_v2  ;;  %v3023_v37 = vand.u32 2139095040, %v6158_v62  ;;  %v174_v35 = vadd.f32 %v6136_v26, %v110_v7  ;;  %v6178_v24 = vmul.f32 %v5997_v33, %v6017_v52  ;;  %v3231_v55 = vand.u32 2139095040, %v6160_v2 }
  0xb4   :  { %vm3343_vm0 = vcmp.gt.s32.totalorder %v3342_v27, 0  ;;  %vm3447_vm1 = vcmp.gt.s32.totalorder %v3446_v18, 0  ;;  %v2920_v5 = vshrl.u32 %v2919_v53, 23  ;;  %v6186_v61 = vmul.f32 %v5962_v21, %v6022_v57 }
  0xb5   :  { %vm3551_vm2 = vcmp.gt.s32.totalorder %v3550_v48, 0  ;;  %vm3655_vm3 = vcmp.gt.s32.totalorder %v3654_v54, 0  ;;  %v3024_v3 = vshrl.u32 %v3023_v37, 23  ;;  %v6190_v52 = vmul.f32 %v5994_v32, %v6022_v57 }
  0xb6   :  { %v6152_v8 = vpop.permute.xlu1 %205  ;;  %v6194_v44 = vmul.f32 %v5964_v22, %v6022_v57  ;;  %v6198_v1 = vmul.f32 %v5997_v33, %v6022_v57  ;;  %v3344_v7 = vsel %vm3343_vm0, %v3342_v27, 0  ;;  %v3448_v6 = vsel %vm3447_vm1, %v3446_v18, 0 }
  0xb7   :  { %11068 = vst [vmem:[#allocation25_spill] sm:$0xff] %v6152_v8  ;;  %v252_v23 = vmul.f32 %v5988_v30, %v6152_v8  ;;  %v254_v14 = vmul.f32 %v5991_v31, %v6152_v8  ;;  %v3128_v37 = vshrl.u32 %v3127_v60, 23  ;;  %v3232_v13 = vshrl.u32 %v3231_v55, 23 }
  0xb8   :  { %v3552_v0 = vsel %vm3551_vm2, %v3550_v48, 0  ;;  %v3656_v16 = vsel %vm3655_vm3, %v3654_v54, 0  ;;  %v5416_v63 = vadd.s32 4294967169, %v2920_v5  ;;  %v5420_v2 = vadd.s32 4294967169, %v3024_v3 }
  0xb9   :  { %v284_v15 = vadd.f32 %v252_v23, %v172_v12  ;;  %v261_v57 = vmul.f32 %v6069_v41, %v6050_v19  ;;  %v286_v28 = vadd.f32 %v254_v14, %v174_v35  ;;  %v6210_v26 = vshrl.u32 %v3344_v7, 5 }
  0xba   :  { %v6167_v17 = vpop.permute.xlu1 %209  ;;  %v6212_v27 = vand.u32 31, %v3344_v7  ;;  %v263_v18 = vmul.f32 %v6076_v45, %v6050_v19  ;;  %v373_v54 = vmul.f32 %v6080_v47, %v6093_v4  ;;  %v368_v35 = vmul.f32 %v6024_v58, %v6204_v50 }
  0xbb   :  { %v256_v62 = vmul.f32 %v5988_v30, %v6167_v17  ;;  %11071 = vst [vmem:[#allocation28_spill] sm:$0xff] %v6210_v26  ;;  %v258_v48 = vmul.f32 %v5991_v31, %v6167_v17  ;;  %v370_v60 = vmul.f32 %v6026_v59, %v6204_v50  ;;  %v6225_v55 = vshrl.u32 %v3448_v6, 5 }
  0xbc   :  { %11072 = vst [vmem:[#allocation29_spill] sm:$0xff] %v6212_v27  ;;  %v2926_v5 = vadd.s32 1, %v5416_v63  ;;  %v375_v19 = vmul.f32 %v6083_v56, %v6093_v4  ;;  %v3030_v14 = vadd.s32 1, %v5420_v2  ;;  %v5424_v7 = vadd.s32 4294967169, %v3128_v37 }
  0xbd   :  { %v288_v12 = vadd.f32 %v256_v62, %v6117_v42  ;;  %11073 = vst [vmem:[#allocation30_spill] sm:$0xff] %v6225_v55  ;;  %v290_v23 = vadd.f32 %v258_v48, %v6123_v46  ;;  %v293_v42 = vadd.f32 %v261_v57, %v6013_v49  ;;  %v6235_v26 = vand.u32 31, %v3448_v6 }
  0xbe   :  { %v5428_v8 = vadd.s32 4294967169, %v3232_v13  ;;  %v295_v33 = vadd.f32 %v263_v18, %v6015_v51  ;;  %v6240_v63 = vshrl.u32 %v3552_v0, 5  ;;  %v6248_v49 = vand.u32 31, %v3552_v0 }
  0xbf   :  { %v6202_v53 = vpop.permute.xlu1 %51  ;;  %v6233_v62 = vadd.f32 %v368_v35, %v288_v12  ;;  %v6238_v55 = vadd.f32 %v370_v60, %v290_v23  ;;  %v6242_v4 = vadd.f32 %v373_v54, %v293_v42  ;;  %v6250_v37 = vshrl.u32 %v3656_v16, 5 }
  0xc0   :  { %11076 = vst [vmem:[#allocation33_spill] sm:$0xff] %v6240_v63  ;;  %11078 = vst [vmem:[#allocation35_spill] sm:$0xff] %v6248_v49  ;;  %vm2927_vm4 = vcmp.gt.s32.totalorder %v2926_v5, 0  ;;  %v6252_v6 = vadd.f32 %v375_v19, %v295_v33  ;;  %vm3031_vm5 = vcmp.gt.s32.totalorder %v3030_v14, 0  ;;  %v3134_v13 = vadd.s32 1, %v5424_v7 }
  0xc1   :  { %11074 = vst [vmem:[#allocation31_spill] sm:$0xff] %v6233_v62  ;;  %11075 = vst [vmem:[#allocation32_spill] sm:$0xff] %v6238_v55  ;;  %v6259_v18 = vsub.s32 32, %v6212_v27  ;;  %v6261_v48 = vand.u32 31, %v3656_v16  ;;  %v3238_v54 = vadd.s32 1, %v5428_v8  ;;  %v2087_v0 = vand.u32 2139095040, %v6112_v38 }
  0xc2   :  { %11077 = vst [vmem:[#allocation34_spill] sm:$0xff] %v6242_v4  ;;  %11079 = vst [vmem:[#allocation36_spill] sm:$0xff] %v6252_v6  ;;  %v2928_v12 = vsel %vm2927_vm4, %v2926_v5, 0  ;;  %v265_v35 = vmul.f32 %v6069_v41, %v6056_v29  ;;  %v2191_v33 = vand.u32 2139095040, %v6242_v4  ;;  %v2295_v60 = vand.u32 2139095040, %v6114_v39 }
  0xc3   :  { %11082 = vst [vmem:[#allocation39_spill] sm:$0xff] %v6259_v18  ;;  %v267_v19 = vmul.f32 %v6076_v45, %v6056_v29  ;;  %v2399_v16 = vand.u32 2139095040, %v6252_v6  ;;  %vm3135_vm6 = vcmp.gt.s32.totalorder %v3134_v13, 0  ;;  %v185_v8 = vadd.f32 %v6044_v11, %v6174_v25 }
  0xc4   :  { %v6230_v3 = vpop.permute.xlu1 %317  ;;  %v187_v5 = vadd.f32 %v6044_v11, %v6178_v24  ;;  %v377_v23 = vmul.f32 %v6080_v47, %v6098_v10  ;;  %v6280_v7 = vand.u32 31, %v2928_v12  ;;  %vm3239_vm7 = vcmp.gt.s32.totalorder %v3238_v54, 0 }
  0xc5   :  { %v364_v46 = vmul.f32 %v6024_v58, %v6230_v3  ;;  %v366_v2 = vmul.f32 %v6026_v59, %v6230_v3  ;;  %v2088_v42 = vshrl.u32 %v2087_v0, 23  ;;  %v2296_v39 = vshrl.u32 %v2295_v60, 23 }
  0xc6   :  { %v6287_v25 = vsub.s32 32, %v6248_v49  ;;  %v3136_v38 = vsel %vm3135_vm6, %v3134_v13, 0  ;;  %v299_v11 = vadd.f32 %v267_v19, %v187_v5  ;;  %v2400_v24 = vshrl.u32 %v2399_v16, 23 }
  0xc7   :  { %v6254_v51 = vadd.f32 %v364_v46, %v284_v15  ;;  %v6256_v57 = vadd.f32 %v366_v2, %v286_v28  ;;  %v6269_v15 = vsub.s32 32, %v6235_v26  ;;  %v3032_v28 = vsel %vm3031_vm5, %v3030_v14, 0 }
  0xc8   :  { %v379_v14 = vmul.f32 %v6083_v56, %v6098_v10  ;;  %v6284_v29 = vand.u32 31, %v3032_v28  ;;  %v297_v46 = vadd.f32 %v265_v35, %v185_v8  ;;  %v2192_v2 = vshrl.u32 %v2191_v33, 23  ;;  %11083 = vst [vmem:[#allocation40_spill] sm:$0xff] %v6287_v25 }
  0xc9   :  { %11080 = vst [vmem:[#allocation37_spill] sm:$0xff] %v6254_v51  ;;  %11081 = vst [vmem:[#allocation38_spill] sm:$0xff] %v6256_v57  ;;  %v134_v6 = vpop.permute.xlu1 %133  ;;  %v6290_v59 = vsub.s32 32, %v6261_v48  ;;  %v6292_v58 = vshrl.u32 %v2928_v12, 5  ;;  %v3240_v0 = vsel %vm3239_vm7, %v3238_v54, 0  ;;  %v6297_v10 = vsub.s32 32, %v6280_v7 }
  0xca   :  { %v6294_v4 = vadd.f32 %v377_v23, %v297_v46  ;;  %v6299_v35 = vshrl.u32 %v3032_v28, 5  ;;  %v5384_v33 = vadd.s32 4294967169, %v2088_v42  ;;  %v6301_v60 = vadd.f32 %v379_v14, %v299_v11 }
  0xcb   :  { %v6304_v13 = vsub.s32 32, %v6284_v29  ;;  %v6306_v19 = vshrl.u32 %v3136_v38, 5  ;;  %v5388_v16 = vadd.s32 4294967169, %v2192_v2  ;;  %v5392_v8 = vadd.s32 4294967169, %v2296_v39 }
  0xcc   :  { %11084 = vst [vmem:[#allocation41_spill] sm:$0xff] %v6294_v4  ;;  %11085 = vst [vmem:[#allocation42_spill] sm:$0xff] %v6301_v60  ;;  %v6308_v12 = vand.u32 31, %v3136_v38  ;;  %v6310_v54 = vshrl.u32 %v3240_v0, 5  ;;  %v6312_v5 = vand.u32 31, %v3240_v0  ;;  %v5396_v23 = vadd.s32 4294967169, %v2400_v24 }
  0xcd   :  { %11086 = vst [vmem:[#allocation43_spill] sm:$0xff] %v6306_v19  ;;  %v244_v28 = vmul.f32 %v5988_v30, %v6065_v40  ;;  %v2503_v42 = vand.u32 2139095040, %v6144_v9  ;;  %v2607_v14 = vand.u32 2139095040, %v6294_v4  ;;  %v2711_v46 = vand.u32 2139095040, %v6146_v20  ;;  %v6323_v0 = vpop.permute.xlu1 %137 }
  0xce   :  { %v245_v2 = vmul.f32 %v6069_v41, %v6065_v40  ;;  %v2094_v39 = vadd.s32 1, %v5384_v33  ;;  %v2815_v38 = vand.u32 2139095040, %v6301_v60  ;;  %v164_v11 = vadd.f32 %v134_v6, %v6186_v61 }
  0xcf   :  { %v246_v24 = vmul.f32 %v5991_v31, %v6065_v40  ;;  %v247_v9 = vmul.f32 %v6076_v45, %v6065_v40  ;;  %v2198_v63 = vadd.s32 1, %v5388_v16  ;;  %v2302_v4 = vadd.s32 1, %v5392_v8 }
  0xd0   :  { %v2406_v49 = vadd.s32 1, %v5396_v23  ;;  %v257_v20 = vmul.f32 %v6069_v41, %v6167_v17  ;;  %v165_v33 = vadd.f32 %v134_v6, %v6190_v52  ;;  %v166_v60 = vadd.f32 %v134_v6, %v6194_v44 }
  0xd1   :  { %v2504_v25 = vshrl.u32 %v2503_v42, 23  ;;  %v2608_v61 = vshrl.u32 %v2607_v14, 23  ;;  %v2712_v19 = vshrl.u32 %v2711_v46, 23  ;;  %v167_v18 = vadd.f32 %v134_v6, %v6198_v1 }
  0xd2   :  { %vm2095_vm8 = vcmp.gt.s32.totalorder %v2094_v39, 0  ;;  %v2816_v27 = vshrl.u32 %v2815_v38, 23  ;;  %v104_v40 = vmul.f32 %v5962_v21, %v6202_v53  ;;  %v6336_v16 = vadd.f32 %v244_v28, %v164_v11  ;;  %v6350_v21 = vpop.permute.xlu1 %201 }
  0xd3   :  { %v106_v8 = vmul.f32 %v5964_v22, %v6202_v53  ;;  %v6340_v23 = vadd.f32 %v245_v2, %v165_v33  ;;  %v6342_v52 = vadd.f32 %v246_v24, %v166_v60  ;;  %v6344_v44 = vadd.f32 %v247_v9, %v167_v18  ;;  %11091 = vst [vmem:[#allocation48_spill] sm:$0xff] %v6350_v21 }
  0xd4   :  { %11087 = vst [vmem:[#allocation44_spill] sm:$0xff] %v6336_v16  ;;  %vm2199_vm9 = vcmp.gt.s32.totalorder %v2198_v63, 0  ;;  %v289_v42 = vadd.f32 %v257_v20, %v6120_v43  ;;  %v369_v1 = vmul.f32 %v6080_v47, %v6204_v50  ;;  %v168_v6 = vadd.f32 %v6323_v0, %v104_v40 }
  0xd5   :  { %11088 = vst [vmem:[#allocation45_spill] sm:$0xff] %v6340_v23  ;;  %11089 = vst [vmem:[#allocation46_spill] sm:$0xff] %v6342_v52  ;;  %v6353_v28 = vsub.s32 32, %v6308_v12  ;;  %v6356_v22 = vsub.s32 32, %v6312_v5  ;;  %v259_v9 = vmul.f32 %v6076_v45, %v6167_v17  ;;  %v170_v18 = vadd.f32 %v6323_v0, %v106_v8 }
  0xd6   :  { %11090 = vst [vmem:[#allocation47_spill] sm:$0xff] %v6344_v44  ;;  %v109_v43 = vmul.f32 %v5994_v32, %v6059_v34  ;;  %v2096_v20 = vsel %vm2095_vm8, %v2094_v39, 0  ;;  %vm2303_vm10 = vcmp.gt.s32.totalorder %v2302_v4, 0  ;;  %vm2407_vm11 = vcmp.gt.s32.totalorder %v2406_v49, 0 }
  0xd7   :  { %v2200_v60 = vsel %vm2199_vm9, %v2198_v63, 0  ;;  %v5400_v14 = vadd.s32 4294967169, %v2504_v25  ;;  %v248_v46 = vmul.f32 %v5988_v30, %v6350_v21  ;;  %v250_v2 = vmul.f32 %v5991_v31, %v6350_v21  ;;  %v11095_v25 = vld [vmem:[#allocation7_spill] sm:$0xff] }
  0xd8   :  { %v5404_v38 = vadd.s32 4294967169, %v2608_v61  ;;  %v5408_v11 = vadd.s32 4294967169, %v2712_v19  ;;  %v5412_v17 = vadd.s32 4294967169, %v2816_v27  ;;  %v6368_v24 = vadd.f32 %v369_v1, %v289_v42 }
  0xd9   :  { %v291_v33 = vadd.f32 %v259_v9, %v6126_v36  ;;  %v371_v39 = vmul.f32 %v6083_v56, %v6204_v50  ;;  %v6373_v40 = vadd.f32 %v248_v46, %v168_v6  ;;  %v6375_v63 = vadd.f32 %v250_v2, %v170_v18  ;;  %v11098_v6 = vld [vmem:[#allocation25_spill] sm:$0xff] }
  0xda   :  { %11092 = vst [vmem:[#allocation49_spill] sm:$0xff] %v6368_v24  ;;  %v111_v30 = vmul.f32 %v11095_v25, %v6059_v34  ;;  %v6379_v8 = vshrl.u32 %v2096_v20, 5  ;;  %v2304_v31 = vsel %vm2303_vm10, %v2302_v4, 0  ;;  %v2408_v27 = vsel %vm2407_vm11, %v2406_v49, 0 }
  0xdb   :  { %11093 = vst [vmem:[#allocation50_spill] sm:$0xff] %v6373_v40  ;;  %11094 = vst [vmem:[#allocation51_spill] sm:$0xff] %v6375_v63  ;;  %v6383_v19 = vand.u32 31, %v2096_v20  ;;  %v6385_v61 = vshrl.u32 %v2200_v60, 5  ;;  %v2510_v36 = vadd.s32 1, %v5400_v14  ;;  %v1671_v50 = vand.u32 2139095040, %v6233_v62 }
  0xdc   :  { %11096 = vst [vmem:[#allocation7_spill] sm:$0xff] %v6379_v8  ;;  %v6388_v42 = vand.u32 31, %v2200_v60  ;;  %v2614_v1 = vadd.s32 1, %v5404_v38  ;;  %v253_v9 = vmul.f32 %v6069_v41, %v11098_v6  ;;  %v1775_v34 = vand.u32 2139095040, %v6368_v24  ;;  %v11103_v14 = vld [vmem:[#allocation22_spill] sm:$0xff] }
  0xdd   :  { %11097 = vst [vmem:[#allocation52_spill] sm:$0xff] %v6383_v19  ;;  %v6393_v18 = vshrl.u32 %v2304_v31, 5  ;;  %v2718_v4 = vadd.s32 1, %v5408_v11  ;;  %v2822_v46 = vadd.s32 1, %v5412_v17  ;;  %v6395_v49 = vadd.f32 %v371_v39, %v291_v33  ;;  %v11132_v41 = vld [vmem:[#allocation30_spill] sm:$0xff] }
  0xde   :  { %v6397_v20 = vand.u32 31, %v2304_v31  ;;  %v6399_v2 = vshrl.u32 %v2408_v27, 5  ;;  %v173_v62 = vadd.f32 %v11103_v14, %v109_v43  ;;  %v365_v60 = vmul.f32 %v6080_v47, %v6230_v3 }
  0xdf   :  { %11099 = vst [vmem:[#allocation25_spill] sm:$0xff] %v6393_v18  ;;  %11100 = vst [vmem:[#allocation53_spill] sm:$0xff] %v6395_v49  ;;  %vm2511_vm12 = vcmp.gt.s32.totalorder %v2510_v36, 0  ;;  %v255_v38 = vmul.f32 %v6076_v45, %v11098_v6  ;;  %v1672_v24 = vshrl.u32 %v1671_v50, 23  ;;  %v1879_v18 = vand.u32 2139095040, %v6238_v55 }
  0xe0   :  { %11101 = vst [vmem:[#allocation54_spill] sm:$0xff] %v6397_v20  ;;  %11102 = vst [vmem:[#allocation55_spill] sm:$0xff] %v6399_v2  ;;  %vm2615_vm13 = vcmp.gt.s32.totalorder %v2614_v1, 0  ;;  %v175_v11 = vadd.f32 %v11103_v14, %v111_v30  ;;  %v285_v17 = vadd.f32 %v253_v9, %v173_v62  ;;  %v1776_v33 = vshrl.u32 %v1775_v34, 23 }
  0xe1   :  { %vm2719_vm14 = vcmp.gt.s32.totalorder %v2718_v4, 0  ;;  %vm2823_vm15 = vcmp.gt.s32.totalorder %v2822_v46, 0  ;;  %v1983_v39 = vand.u32 2139095040, %v6395_v49  ;;  %v367_v43 = vmul.f32 %v6083_v56, %v6230_v3 }
  0xe2   :  { %v6412_v31 = vsub.s32 32, %v6383_v19  ;;  %v6414_v63 = vand.u32 31, %v2408_v27  ;;  %v2512_v50 = vsel %vm2511_vm12, %v2510_v36, 0  ;;  %v6416_v6 = vadd.f32 %v365_v60, %v285_v17 }
  0xe3   :  { %v2616_v55 = vsel %vm2615_vm13, %v2614_v1, 0  ;;  %v287_v40 = vadd.f32 %v255_v38, %v175_v11  ;;  %v5368_v30 = vadd.s32 4294967169, %v1672_v24  ;;  %v1880_v62 = vshrl.u32 %v1879_v18, 23 }
  0xe4   :  { %11104 = vst [vmem:[#allocation22_spill] sm:$0xff] %v6412_v31  ;;  %11105 = vst [vmem:[#allocation56_spill] sm:$0xff] %v6414_v63  ;;  %v6419_v9 = vsub.s32 32, %v6388_v42  ;;  %v2720_v34 = vsel %vm2719_vm14, %v2718_v4, 0  ;;  %v2824_v14 = vsel %vm2823_vm15, %v2822_v46, 0  ;;  %v5372_v49 = vadd.s32 4294967169, %v1776_v33 }
  0xe5   :  { %11106 = vst [vmem:[#allocation57_spill] sm:$0xff] %v6416_v6  ;;  %v6421_v44 = vand.u32 31, %v2512_v50  ;;  %v1984_v3 = vshrl.u32 %v1983_v39, 23  ;;  %v6423_v52 = vadd.f32 %v367_v43, %v287_v40  ;;  %v1255_v27 = vand.u32 2139095040, %v6254_v51 }
  0xe6   :  { %v6427_v36 = vsub.s32 32, %v6397_v20  ;;  %v6430_v1 = vsub.s32 32, %v6414_v63  ;;  %v6432_v24 = vand.u32 31, %v2616_v55  ;;  %v1359_v18 = vand.u32 2139095040, %v6416_v6 }
  0xe7   :  { %11107 = vst [vmem:[#allocation58_spill] sm:$0xff] %v6421_v44  ;;  %11108 = vst [vmem:[#allocation59_spill] sm:$0xff] %v6423_v52  ;;  %v6435_v4 = vand.u32 31, %v2720_v34  ;;  %v6437_v46 = vand.u32 31, %v2824_v14  ;;  %v1678_v60 = vadd.s32 1, %v5368_v30  ;;  %v5376_v38 = vadd.s32 4294967169, %v1880_v62 }
  0xe8   :  { %11109 = vst [vmem:[#allocation60_spill] sm:$0xff] %v6427_v36  ;;  %11110 = vst [vmem:[#allocation61_spill] sm:$0xff] %v6430_v1  ;;  %v6439_v40 = vshrl.u32 %v2512_v50, 5  ;;  %v6441_v11 = vshrl.u32 %v2616_v55, 5  ;;  %v1782_v17 = vadd.s32 1, %v5372_v49  ;;  %v1463_v33 = vand.u32 2139095040, %v6256_v57 }
  0xe9   :  { %11111 = vst [vmem:[#allocation62_spill] sm:$0xff] %v6432_v24  ;;  %11112 = vst [vmem:[#allocation63_spill] sm:$0xff] %v6435_v4  ;;  %v6445_v39 = vsub.s32 32, %v6421_v44  ;;  %v5380_v43 = vadd.s32 4294967169, %v1984_v3  ;;  %v1256_v51 = vshrl.u32 %v1255_v27, 23  ;;  %v1567_v6 = vand.u32 2139095040, %v6423_v52 }
  0xea   :  { %11113 = vst [vmem:[#allocation64_spill] sm:$0xff] %v6437_v46  ;;  %11114 = vst [vmem:[#allocation65_spill] sm:$0xff] %v6439_v40  ;;  %v6449_v20 = vsub.s32 32, %v6432_v24  ;;  %v6451_v36 = vshrl.u32 %v2720_v34, 5  ;;  %v6453_v30 = vshrl.u32 %v2824_v14, 5  ;;  %v1360_v50 = vshrl.u32 %v1359_v18, 23 }
  0xeb   :  { %11115 = vst [vmem:[#allocation66_spill] sm:$0xff] %v6441_v11  ;;  %11116 = vst [vmem:[#allocation67_spill] sm:$0xff] %v6445_v39  ;;  %v6456_v55 = vsub.s32 32, %v6435_v4  ;;  %v6459_v49 = vsub.s32 32, %v6437_v46  ;;  %vm1679_vm0 = vcmp.gt.s32.totalorder %v1678_v60, 0  ;;  %v1886_v62 = vadd.s32 1, %v5376_v38 }
  0xec   :  { %11117 = vst [vmem:[#allocation68_spill] sm:$0xff] %v6449_v20  ;;  %11118 = vst [vmem:[#allocation69_spill] sm:$0xff] %v6451_v36  ;;  %vm1783_vm1 = vcmp.gt.s32.totalorder %v1782_v17, 0  ;;  %v6463_v3 = vmul.f32 %v5994_v32, %v6202_v53  ;;  %v6467_v34 = vmul.f32 %v11095_v25, %v6202_v53  ;;  %v6469_v14 = vshrl.u32 %v1463_v33, 23  ;;  %v11122_v52 = vld [vmem:[#allocation26_spill] sm:$0xff] }
  0xed   :  { %11119 = vst [vmem:[#allocation70_spill] sm:$0xff] %v6453_v30  ;;  %11120 = vst [vmem:[#allocation71_spill] sm:$0xff] %v6456_v55  ;;  %v6471_v27 = vadd.s32 1, %v5380_v43  ;;  %v6473_v18 = vadd.s32 4294967169, %v1256_v51  ;;  %v6475_v57 = vshrl.u32 %v1567_v6, 23  ;;  %v6478_v38 = vsel %vm1679_vm0, %v1678_v60, 0 }
  0xee   :  { %11121 = vst [vmem:[#allocation72_spill] sm:$0xff] %v6459_v49  ;;  %v10975_v36 = vand.u32 2147483647, %v11122_v52  ;;  %v6480_v4 = vadd.s32 4294967169, %v1360_v50  ;;  %v10968_v32 = vmov 683565275  }
  0xef   :  { %v3037_v55 = vshll.u32 %v10968_v32, %v6284_v29  ;;  %v10976_v53 = vmov 2475754826   ;;  %v6486_v33 = vsel %vm1783_vm1, %v1782_v17, 0  ;;  %vm1887_vm2 = vcmp.gt.s32.totalorder %v1886_v62, 0 }
  0xf0   :  { %v3038_v25 = vshrl.u32 %v10976_v53, %v6304_v13  ;;  %v3027_v51 = vand.u32 8388607, %v10975_v36  ;;  %v3040_v6 = vshll.u32 %v10976_v53, %v6284_v29  ;;  %v10980_v43 = vmov 2131351028  }
  0xf1   :  { %v3041_v50 = vshrl.u32 %v10980_v43, %v6304_v13  ;;  %v3043_v32 = vshll.u32 %v10980_v43, %v6284_v29  ;;  %v10983_v40 = vmov 2102212464   ;;  %v11123_v39 = vmov 683565275  }
  0xf2   :  { %v3039_v60 = vor.u32 %v3038_v25, %v3037_v55  ;;  %v3044_v17 = vshrl.u32 %v10983_v40, %v6304_v13  ;;  %v3028_v44 = vor.u32 8388608, %v3027_v51  ;;  %v3036_v8 = vshrl.u32 %v11123_v39, %v6304_v13 }
  0xf3   :  { %v3046_v36 = vshll.u32 %v10983_v40, %v6284_v29  ;;  %v10990_v53 = vmov 920167782   ;;  %v3042_v25 = vor.u32 %v3041_v50, %v3040_v6  ;;  %v10988_v31 = vmov 1326507024  }
  0xf4   :  { %v3047_v55 = vshrl.u32 %v10990_v53, %v6304_v13  ;;  %v3045_v19 = vor.u32 %v3044_v17, %v3043_v32  ;;  %v3049_v43 = vshll.u32 %v10990_v53, %v6284_v29  ;;  %v3050_v23 = vshrl.u32 %v10988_v31, %v6304_v13 }
  0xf5   :  { %vm3052_vm3 = vcmp.lt.s32.totalorder %v6299_v35, 1  ;;  %vm3054_vm4 = vcmp.lt.s32.totalorder %v6299_v35, 3  ;;  %vm3055_vm5 = vcmp.lt.s32.totalorder %v6299_v35, 4  ;;  %v6512_v32 = vsel %vm1887_vm2, %v1886_v62, 0 }
  0xf6   :  { %v3048_v51 = vor.u32 %v3047_v55, %v3046_v36  ;;  %v3051_v40 = vor.u32 %v3050_v23, %v3049_v43  ;;  %v3056_v16 = vsel %vm3052_vm3, %v3036_v8, %v3039_v60  ;;  %v3057_v30 = vsel %vm3055_vm5, %v3045_v19, 2102212464 }
  0xf7   :  { %v3060_v46 = vsel %vm3052_vm3, %v3039_v60, %v3042_v25  ;;  %v3058_v29 = vsel %vm3054_vm4, %v3042_v25, %v3057_v30  ;;  %v3064_v50 = vsel %vm3052_vm3, %v3042_v25, %v3045_v19  ;;  %vm3053_vm6 = vcmp.lt.s32.totalorder %v6299_v35, 2  ;;  %v11124_v60 = vld [vmem:[#allocation18_spill] sm:$0xff] }
  0xf8   :  { %v3061_v6 = vsel %vm3055_vm5, %v3048_v51, 920167782  ;;  %v3065_v36 = vsel %vm3055_vm5, %v3051_v40, 1326507024  ;;  %v3068_v17 = vshll.u32 %v3028_v44, 8  ;;  %v3059_v55 = vsel %vm3053_vm6, %v3056_v16, %v3058_v29 }
  0xf9   :  { %v3062_v13 = vsel %vm3054_vm4, %v3045_v19, %v3061_v6  ;;  %v3066_v8 = vsel %vm3054_vm4, %v3048_v51, %v3065_v36  ;;  %v10992_v62 = vand.u32 2147483647, %v11124_v60  ;;  %v6523_v43 = vand.u32 31, %v6478_v38 }
  0xfa   :  { %v3063_v23 = vsel %vm3053_vm6, %v3060_v46, %v3062_v13  ;;  %v3067_v30 = vsel %vm3053_vm6, %v3064_v50, %v3066_v8  ;;  %v6530_v53 = vand.u32 31, %v6486_v33  ;;  %vm1991_vm7 = vcmp.gt.s32.totalorder %v6471_v27, 0 }
  0xfb   :  { %11125 = vst [vmem:[#allocation26_spill] sm:$0xff] %v6523_v43  ;;  %v6525_v31 = vmul.u32.u64.low %v3068_v17, %v3063_v23  ;;  %v6526_v25 = vmul.u32.u64.high %v3068_v17, %v3063_v23, %v6525_v31  ;;  %v6533_v16 = vmul.u32.u64.low %v3068_v17, %v3067_v30  ;;  %v6534_v44 = vmul.u32.u64.high %v3068_v17, %v3067_v30, %v6533_v16 }
  0xfc   :  { %v3443_v35 = vand.u32 8388607, %v10992_v62  ;;  %v6539_v19 = vand.u32 31, %v6512_v32  ;;  %v3075_v46 = vmul.u32 %v3068_v17, %v3059_v55  ;;  %v3453_v40 = vshll.u32 %v11123_v39, %v6235_v26 }
  0xfd   :  { %v11127_v51 = vmov 2475754826   ;;  %v11128_v50 = vmov 2131351028   ;;  %v11129_v23 = vmov 2102212464   ;;  %vm3077_vm8 = vc.u32 %v6534_v44, %v6525_v31 }
  0xfe   :  { %11126 = vst [vmem:[#allocation18_spill] sm:$0xff] %v6539_v19  ;;  %v3454_v29 = vshrl.u32 %v11127_v51, %v6269_v15  ;;  %v3456_v6 = vshll.u32 %v11127_v51, %v6235_v26  ;;  %v3457_v13 = vshrl.u32 %v11128_v50, %v6269_v15  ;;  %v3459_v36 = vshll.u32 %v11128_v50, %v6235_v26 }
  0xff   :  { %v3460_v8 = vshrl.u32 %v11129_v23, %v6269_v15  ;;  %v3078_v17 = vadd.s32 1, %v6526_v25  ;;  %v3462_v30 = vshll.u32 %v11129_v23, %v6235_v26  ;;  %v11130_v16 = vmov 920167782  }
 0x100   :  { %v3455_v55 = vor.u32 %v3454_v29, %v3453_v40  ;;  %v3463_v62 = vshrl.u32 %v11130_v16, %v6269_v15  ;;  %v3444_v49 = vor.u32 8388608, %v3443_v35  ;;  %v3458_v2 = vor.u32 %v3457_v13, %v3456_v6 }
 0x101   :  { %v3461_v63 = vor.u32 %v3460_v8, %v3459_v36  ;;  %v3079_v1 = vsel %vm3077_vm8, %v3078_v17, %v6526_v25  ;;  %v3465_v11 = vshll.u32 %v11130_v16, %v6235_v26  ;;  %v11131_v40 = vmov 1326507024  }
 0x102   :  { %v3464_v45 = vor.u32 %v3463_v62, %v3462_v30  ;;  %v3466_v29 = vshrl.u32 %v11131_v40, %v6269_v15  ;;  %v3080_v24 = vadd.s32 %v3079_v1, %v3075_v46  ;;  %v3452_v20 = vshrl.u32 %v11123_v39, %v6269_v15 }
 0x103   :  { %vm3468_vm9 = vcmp.lt.s32.totalorder %v11132_v41, 1  ;;  %vm3469_vm10 = vcmp.lt.s32.totalorder %v11132_v41, 2  ;;  %vm3470_vm11 = vcmp.lt.s32.totalorder %v11132_v41, 3  ;;  %vm3471_vm12 = vcmp.lt.s32.totalorder %v11132_v41, 4 }
 0x104   :  { %v3467_v35 = vor.u32 %v3466_v29, %v3465_v11  ;;  %v3476_v62 = vsel %vm3468_vm9, %v3455_v55, %v3458_v2  ;;  %v3081_v25 = vadd.s32 536870912, %v3080_v24  ;;  %v3473_v6 = vsel %vm3471_vm12, %v3461_v63, 2102212464 }
 0x105   :  { %v3477_v26 = vsel %vm3471_vm12, %v3464_v45, 920167782  ;;  %v3480_v13 = vsel %vm3468_vm9, %v3458_v2, %v3461_v63  ;;  %v3472_v36 = vsel %vm3468_vm9, %v3452_v20, %v3455_v55  ;;  %v3484_v46 = vshll.u32 %v3444_v49, 8 }
 0x106   :  { %v3478_v8 = vsel %vm3470_vm11, %v3461_v63, %v3477_v26  ;;  %v3481_v1 = vsel %vm3471_vm12, %v3467_v35, 1326507024  ;;  %v3082_v17 = vshrl.u32 %v3081_v25, 30  ;;  %v3474_v15 = vsel %vm3470_vm11, %v3458_v2, %v3473_v6 }
 0x107   :  { %v3479_v30 = vsel %vm3469_vm10, %v3476_v62, %v3478_v8  ;;  %v3482_v21 = vsel %vm3470_vm11, %v3464_v45, %v3481_v1  ;;  %v1992_v11 = vsel %vm1991_vm7, %v6471_v27, 0  ;;  %v1262_v63 = vadd.s32 1, %v6473_v18 }
 0x108   :  { %v3483_v29 = vsel %vm3469_vm10, %v3480_v13, %v3482_v21  ;;  %v6578_v56 = vmul.u32.u64.low %v3484_v46, %v3479_v30  ;;  %v6579_v47 = vmul.u32.u64.high %v3484_v46, %v3479_v30, %v6578_v56  ;;  %v3083_v20 = vshll.u32 %v3082_v17, 30 }
 0x109   :  { %v6583_v49 = vmul.u32.u64.low %v3484_v46, %v3483_v29  ;;  %v6584_v2 = vmul.u32.u64.high %v3484_v46, %v3483_v29, %v6583_v49  ;;  %v6587_v55 = vshrl.u32 %v6478_v38, 5  ;;  %v6590_v45 = vshrl.u32 %v6486_v33, 5 }
 0x10a   :  { %v5360_v27 = vadd.s32 4294967169, %v6469_v14  ;;  %v3475_v21 = vsel %vm3469_vm10, %v3472_v36, %v3474_v15  ;;  %v6596_v35 = vsub.s32 32, %v6523_v43  ;;  %v6599_v18 = vshrl.u32 %v6512_v32, 5  ;;  %v11141_v15 = vld [vmem:[#allocation27_spill] sm:$0xff] }
 0x10b   :  { %11133 = vst [vmem:[#allocation30_spill] sm:$0xff] %v6587_v55  ;;  %11134 = vst [vmem:[#allocation73_spill] sm:$0xff] %v6590_v45  ;;  %v6601_v62 = vand.u32 31, %v1992_v11  ;;  %v6603_v25 = vsub.s32 %v3080_v24, %v3083_v20  ;;  %v6606_v38 = vsub.s32 32, %v6530_v53  ;;  %v6609_v33 = vsub.s32 32, %v6539_v19 }
 0x10c   :  { %11135 = vst [vmem:[#allocation74_spill] sm:$0xff] %v6596_v35  ;;  %11136 = vst [vmem:[#allocation75_spill] sm:$0xff] %v6599_v18  ;;  %v6612_v14 = vadd.s32 1, %v6480_v4  ;;  %v3494_v41 = vadd.s32 1, %v6579_v47  ;;  %vm1263_vm13 = vcmp.gt.s32.totalorder %v1262_v63, 0  ;;  %v3491_v32 = vmul.u32 %v3484_v46, %v3475_v21 }
 0x10d   :  { %11137 = vst [vmem:[#allocation76_spill] sm:$0xff] %v6601_v62  ;;  %11138 = vst [vmem:[#allocation77_spill] sm:$0xff] %v6609_v33  ;;  %v3086_v6 = vsub.s32 0, %v6603_v25  ;;  %vm3493_vm14 = vc.u32 %v6584_v2, %v6578_v56  ;;  %v6618_v24 = vshrl.u32 %v1992_v11, 5  ;;  %v6620_v26 = vadd.s32 1, %v5360_v27 }
 0x10e   :  { %v6623_v13 = vadd.s32 4294967169, %v6475_v57  ;;  %v3495_v36 = vsel %vm3493_vm14, %v3494_v41, %v6579_v47  ;;  %v6627_v4 = vsub.s32 32, %v6601_v62  ;;  %v11015_v46 = vand.u32 2147483647, %v11141_v15 }
 0x10f   :  { %11139 = vst [vmem:[#allocation78_spill] sm:$0xff] %v6618_v24  ;;  %v5421_v8 = vmin.u32 %v3086_v6, %v6603_v25  ;;  %v3496_v1 = vadd.s32 %v3495_v36, %v3491_v32  ;;  %v6631_v30 = vsel %vm1263_vm13, %v1262_v63, 0  ;;  %vm3022_vm15 = vcmp.lt.s32.totalorder %v11122_v52, 0 }
 0x110   :  { %11140 = vst [vmem:[#allocation79_spill] sm:$0xff] %v6627_v4  ;;  %v3076_v11 = vadd.s32 %v6525_v31, %v6534_v44  ;;  %v3255_v57 = vshrl.u32 %v11130_v16, %v6356_v22  ;;  %v3106_v47 = vsub.s32 4, %v3082_v17  ;;  %v3244_v20 = vshrl.u32 %v11123_v39, %v6356_v22 }
 0x111   :  { %v3088_v29 = vclz %v5421_v8  ;;  %v3246_v49 = vshrl.u32 %v11127_v51, %v6356_v22  ;;  %v3497_v27 = vadd.s32 536870912, %v3496_v1  ;;  %v3249_v63 = vshrl.u32 %v11128_v50, %v6356_v22 }
 0x112   :  { %v3252_v21 = vshrl.u32 %v11129_v23, %v6356_v22  ;;  %v3254_v31 = vshll.u32 %v11129_v23, %v6312_v5  ;;  %v11142_v44 = vand.u32 2147483647, %v11122_v52  ;;  %v3235_v32 = vand.u32 8388607, %v11015_v46 }
 0x113   :  { %v5422_v6 = vadd.s32 4294967294, %v3088_v29  ;;  %v3245_v36 = vshll.u32 %v11123_v39, %v6312_v5  ;;  %v3258_v8 = vshrl.u32 %v11131_v40, %v6356_v22  ;;  %v3498_v18 = vshrl.u32 %v3497_v27, 30 }
 0x114   :  { %vm6650_vm0 = vcmp.le.f32.partialorder %v11142_v44, 0.7853982  ;;  %v3248_v19 = vshll.u32 %v11127_v51, %v6312_v5  ;;  %v3251_v44 = vshll.u32 %v11128_v50, %v6312_v5  ;;  %v3256_v33 = vor.u32 %v3255_v57, %v3254_v31 }
 0x115   :  { %vm5423_vm1 = vcmp.lt.s32.totalorder %v5422_v6, 0  ;;  %v3107_v29 = vsel %vm3022_vm15, %v3106_v47, %v3082_v17  ;;  %v3247_v55 = vor.u32 %v3246_v49, %v3245_v36  ;;  %v3257_v46 = vshll.u32 %v11130_v16, %v6312_v5 }
 0x116   :  { %vm1367_vm2 = vcmp.gt.s32.totalorder %v6612_v14, 0  ;;  %v3091_v43 = vsel %vm5423_vm1, 0, %v5422_v6  ;;  %v3499_v22 = vshll.u32 %v3498_v18, 30  ;;  %v3250_v27 = vor.u32 %v3249_v63, %v3248_v19 }
 0x117   :  { %v3253_v35 = vor.u32 %v3252_v21, %v3251_v44  ;;  %v3092_v24 = vsub.s32 32, %v3091_v43  ;;  %v3096_v4 = vsub.s32 4294967266, %v3091_v43  ;;  %v3259_v62 = vor.u32 %v3258_v8, %v3257_v46 }
 0x118   :  { %vm3263_vm3 = vcmp.lt.s32.totalorder %v6310_v54, 4  ;;  %v6670_v57 = vsub.s32 %v3496_v1, %v3499_v22  ;;  %v3236_v31 = vor.u32 8388608, %v3235_v32  ;;  %vm3260_vm4 = vcmp.lt.s32.totalorder %v6310_v54, 1 }
 0x119   :  { %v3269_v17 = vsel %vm3263_vm3, %v3256_v33, 920167782  ;;  %v3093_v5 = vshll.u32 %v6603_v25, %v3091_v43  ;;  %v3094_v47 = vshrl.u32 %v3076_v11, %v3092_v24  ;;  %v3097_v49 = vadd.s32 127, %v3096_v4 }
 0x11a   :  { %vm3262_vm5 = vcmp.lt.s32.totalorder %v6310_v54, 3  ;;  %v3502_v19 = vsub.s32 0, %v6670_v57  ;;  %v3268_v46 = vsel %vm3260_vm4, %v3247_v55, %v3250_v27  ;;  %v3272_v63 = vsel %vm3260_vm4, %v3250_v27, %v3253_v35 }
 0x11b   :  { %v3270_v1 = vsel %vm3262_vm5, %v3253_v35, %v3269_v17  ;;  %v3095_v21 = vor.u32 %v3094_v47, %v3093_v5  ;;  %v3098_v6 = vshll.u32 %v3097_v49, 23  ;;  %v3265_v43 = vsel %vm3263_vm3, %v3253_v35, 2102212464 }
 0x11c   :  { %v3273_v25 = vsel %vm3263_vm3, %v3259_v62, 1326507024  ;;  %v3109_v24 = vsel %vm6650_vm0, 0, %v3107_v29  ;;  %v5437_v4 = vmin.u32 %v3502_v19, %v6670_v57  ;;  %vm3261_vm6 = vcmp.lt.s32.totalorder %v6310_v54, 2 }
 0x11d   :  { %v3274_v11 = vsel %vm3262_vm5, %v3256_v33, %v3273_v25  ;;  %v3099_v32 = vor.u32 4788187, %v3098_v6  ;;  %v3271_v36 = vsel %vm3261_vm6, %v3268_v46, %v3270_v1  ;;  %v3276_v8 = vshll.u32 %v3236_v31, 8  ;;  %v11148_v25 = vld [vmem:[#allocation19_spill] sm:$0xff] }
 0x11e   :  { %v3275_v35 = vsel %vm3261_vm6, %v3272_v63, %v3274_v11  ;;  %v3504_v44 = vclz %v5437_v4  ;;  %v3522_v62 = vsub.s32 4, %v3498_v18  ;;  %v3264_v29 = vsel %vm3260_vm4, %v3244_v20, %v3247_v55 }
 0x11f   :  { %v3266_v22 = vsel %vm3262_vm5, %v3250_v27, %v3265_v43  ;;  %v3100_v17 = vand.u32 2147483647, %v3099_v32  ;;  %v3102_v5 = vcvt.s32.f32 %v3095_v21  ;;  %v3113_v49 = vadd.s32 3, %v3109_v24 }
 0x120   :  { %v6702_v47 = vmul.u32.u64.low %v3276_v8, %v3275_v35  ;;  %v6703_v33 = vmul.u32.u64.high %v3276_v8, %v3275_v35, %v6702_v47  ;;  %v5438_v19 = vadd.s32 4294967294, %v3504_v44  ;;  %v6712_v31 = vsel %vm1367_vm2, %v6612_v14, 0 }
 0x121   :  { %v6705_v46 = vmul.u32.u64.low %v3276_v8, %v3271_v36  ;;  %v6706_v1 = vmul.u32.u64.high %v3276_v8, %v3271_v36, %v6705_v46  ;;  %v3103_v55 = vmul.f32 %v3102_v5, %v3100_v17  ;;  %v11145_v20 = vand.u32 2147483647, %v11124_v60 }
 0x122   :  { %vm3438_vm8 = vcmp.lt.s32.totalorder %v11124_v60, 0  ;;  %v3492_v63 = vadd.s32 %v6578_v56, %v6584_v2  ;;  %vm5439_vm9 = vcmp.lt.s32.totalorder %v5438_v19, 0  ;;  %v3267_v14 = vsel %vm3261_vm6, %v3264_v29, %v3266_v22 }
 0x123   :  { %vm6716_vm7 = vcmp.le.f32.partialorder %v11145_v20, 0.7853982  ;;  %v3523_v21 = vsel %vm3438_vm8, %v3522_v62, %v3498_v18  ;;  %v3104_v6 = vxor.u32 2147483648, %v3103_v55  ;;  %v3507_v43 = vsel %vm5439_vm9, 0, %v5438_v19 }
 0x124   :  { %vm3285_vm10 = vc.u32 %v6703_v33, %v6705_v46  ;;  %v11024_v24 = vand.u32 2147483647, %v11148_v25  ;;  %v6730_v4 = vand.u32 3, %v3113_v49  ;;  %v3508_v11 = vsub.s32 32, %v3507_v43 }
 0x125   :  { %v3512_v32 = vsub.s32 4294967266, %v3507_v43  ;;  %v3286_v56 = vadd.s32 1, %v6706_v1  ;;  %v3105_v2 = vsel %vm3022_vm15, %v3104_v6, %v3103_v55  ;;  %v3509_v18 = vshll.u32 %v6670_v57, %v3507_v43 }
 0x126   :  { %v3525_v54 = vsel %vm6716_vm7, 0, %v3523_v21  ;;  %v3283_v36 = vmul.u32 %v3276_v8, %v3267_v14  ;;  %v3108_v35 = vsel %vm6650_vm0, %v11122_v52, %v3105_v2  ;;  %v3510_v44 = vshrl.u32 %v3492_v63, %v3508_v11 }
 0x127   :  { %v3513_v62 = vadd.s32 127, %v3512_v32  ;;  %v3287_v29 = vsel %vm3285_vm10, %v3286_v56, %v6706_v1  ;;  %5681 = vcosq.f32 %v3108_v35  ;;  %v3651_v17 = vand.u32 8388607, %v11024_v24 }
 0x128   :  { %v3288_v22 = vadd.s32 %v3287_v29, %v3283_v36  ;;  %v3665_v57 = vshrl.u32 %v11128_v50, %v6290_v59  ;;  %5683 = vsinq.f32 %v3108_v35  ;;  %v3511_v5 = vor.u32 %v3510_v44, %v3509_v18 }
 0x129   :  { %v3514_v47 = vshll.u32 %v3513_v62, 23  ;;  %v3668_v8 = vshrl.u32 %v11129_v23, %v6290_v59  ;;  %v3662_v49 = vshrl.u32 %v11127_v51, %v6290_v59  ;;  %v3670_v19 = vshll.u32 %v11129_v23, %v6261_v48 }
 0x12a   :  { %v3289_v41 = vadd.s32 536870912, %v3288_v22  ;;  %v3671_v1 = vshrl.u32 %v11130_v16, %v6290_v59  ;;  %v3664_v20 = vshll.u32 %v11127_v51, %v6261_v48  ;;  %v3667_v63 = vshll.u32 %v11128_v50, %v6261_v48 }
 0x12b   :  { %v3515_v55 = vor.u32 4788187, %v3514_v47  ;;  %v3674_v21 = vshrl.u32 %v11131_v40, %v6290_v59  ;;  %v3661_v6 = vshll.u32 %v11123_v39, %v6261_v48  ;;  %v3673_v11 = vshll.u32 %v11130_v16, %v6261_v48 }
 0x12c   :  { %v3290_v14 = vshrl.u32 %v3289_v41, 30  ;;  %v3672_v43 = vor.u32 %v3671_v1, %v3670_v19  ;;  %v3518_v56 = vcvt.s32.f32 %v3511_v5  ;;  %v3666_v2 = vor.u32 %v3665_v57, %v3664_v20 }
 0x12d   :  { %v3516_v32 = vand.u32 2147483647, %v3515_v55  ;;  %v3669_v18 = vor.u32 %v3668_v8, %v3667_v63  ;;  %v3663_v35 = vor.u32 %v3662_v49, %v3661_v6  ;;  %v3675_v44 = vor.u32 %v3674_v21, %v3673_v11 }
 0x12e   :  { %v3291_v36 = vshll.u32 %v3290_v14, 30  ;;  %vm3679_vm11 = vcmp.lt.s32.totalorder %v6250_v37, 4  ;;  %v6766_v62 = vshrl.u32 %v6631_v30, 5  ;;  %v3652_v47 = vor.u32 8388608, %v3651_v17 }
 0x12f   :  { %v3519_v29 = vmul.f32 %v3518_v56, %v3516_v32  ;;  %v3685_v41 = vsel %vm3679_vm11, %v3672_v43, 920167782  ;;  %vm3116_vm12 = vcmp.eq.s32.totalorder %v6730_v4, 0  ;;  %v3529_v48 = vadd.s32 3, %v3525_v54 }
 0x130   :  { %11149 = vst [vmem:[#allocation27_spill] sm:$0xff] %v6766_v62  ;;  %v6771_v19 = vsub.s32 %v3288_v22, %v3291_v36  ;;  %vm3676_vm13 = vcmp.lt.s32.totalorder %v6250_v37, 1  ;;  %vm3230_vm14 = vcmp.lt.s32.totalorder %v11141_v15, 0  ;;  %v3660_v5 = vshrl.u32 %v11123_v39, %v6290_v59 }
 0x131   :  { %v3520_v57 = vxor.u32 2147483648, %v3519_v29  ;;  %vm3678_vm15 = vcmp.lt.s32.totalorder %v6250_v37, 3  ;;  %v3688_v17 = vsel %vm3676_vm13, %v3666_v2, %v3669_v18  ;;  %v3684_v54 = vsel %vm3676_vm13, %v3663_v35, %v3666_v2 }
 0x132   :  { %v3294_v8 = vsub.s32 0, %v6771_v19  ;;  %v3686_v22 = vsel %vm3678_vm15, %v3669_v18, %v3685_v41  ;;  %v3689_v49 = vsel %vm3679_vm11, %v3675_v44, 1326507024  ;;  %vm3677_vm0 = vcmp.lt.s32.totalorder %v6250_v37, 2 }
 0x133   :  { %v3521_v1 = vsel %vm3438_vm8, %v3520_v57, %v3519_v29  ;;  %v3690_v59 = vsel %vm3678_vm15, %v3672_v43, %v3689_v49  ;;  %v3692_v55 = vshll.u32 %v3652_v47, 8  ;;  %v3681_v21 = vsel %vm3679_vm11, %v3669_v18, 2102212464  ;;  %v11150_v57 = vld [vmem:[#allocation12_spill] sm:$0xff] }
 0x134   :  { %v3524_v20 = vsel %vm6716_vm7, %v11124_v60, %v3521_v1  ;;  %v5429_v63 = vmin.u32 %v3294_v8, %v6771_v19  ;;  %v3691_v6 = vsel %vm3677_vm0, %v3688_v17, %v3690_v59  ;;  %v5682_v11 = vpop.eup %5681  ;;  %v3687_v32 = vsel %vm3677_vm0, %v3684_v54, %v3686_v22 }
 0x135   :  { %5685 = vcosq.f32 %v3524_v20  ;;  %v6802_v56 = vmul.u32.u64.low %v3692_v55, %v3691_v6  ;;  %v6803_v43 = vmul.u32.u64.high %v3692_v55, %v3691_v6, %v6802_v56  ;;  %v5684_v36 = vpop.eup %5683  ;;  %vm3112_vm1 = vweird.f32 %v11122_v52 }
 0x136   :  { %v3120_v27 = vxor.u32 2147483648, %v5682_v11  ;;  %5687 = vsinq.f32 %v3524_v20  ;;  %v3296_v44 = vclz %v5429_v63  ;;  %v3314_v29 = vsub.s32 4, %v3290_v14 }
 0x137   :  { %v3117_v47 = vxor.u32 2147483648, %v5684_v36  ;;  %v3680_v18 = vsel %vm3676_vm13, %v3660_v5, %v3663_v35  ;;  %v3682_v41 = vsel %vm3678_vm15, %v3666_v2, %v3681_v21  ;;  %v11023_v17 = vand.u32 2147483647, %v11150_v57 }
 0x138   :  { %vm3119_vm2 = vcmp.eq.s32.totalorder %v6730_v4, 2  ;;  %v5430_v8 = vadd.s32 4294967294, %v3296_v44  ;;  %v6812_v54 = vmul.u32.u64.low %v3692_v55, %v3687_v32  ;;  %v6813_v22 = vmul.u32.u64.high %v3692_v55, %v3687_v32, %v6812_v54 }
 0x139   :  { %v3118_v49 = vsel %vm3116_vm12, %v5682_v11, %v3117_v47  ;;  %v3121_v1 = vsel %vm3119_vm2, %v3120_v27, %v5684_v36  ;;  %v6818_v59 = vand.u32 3, %v3529_v48  ;;  %v11151_v35 = vand.u32 2147483647, %v11141_v15 }
 0x13a   :  { %vm3115_vm4 = vcmp.lt.s32.totalorder %v6730_v4, 2  ;;  %vm5431_vm5 = vcmp.lt.s32.totalorder %v5430_v8, 0  ;;  %v6829_v2 = vsel %vm3230_vm14, %v3314_v29, %v3290_v14  ;;  %v3683_v20 = vsel %vm3677_vm0, %v3680_v18, %v3682_v41 }
 0x13b   :  { %vm6822_vm3 = vcmp.le.f32.partialorder %v11151_v35, 0.7853982  ;;  %v3284_v48 = vadd.s32 %v6705_v46, %v6703_v33  ;;  %v3299_v63 = vsel %vm5431_vm5, 0, %v5430_v8  ;;  %vm3701_vm6 = vc.u32 %v6803_v43, %v6812_v54 }
 0x13c   :  { %v6839_v21 = vand.u32 8388607, %v11023_v17  ;;  %v3122_v4 = vsel %vm3115_vm4, %v3118_v49, %v3121_v1  ;;  %v3300_v6 = vsub.s32 32, %v3299_v63  ;;  %v3304_v11 = vsub.s32 4294967266, %v3299_v63 }
 0x13d   :  { %v3702_v14 = vadd.s32 1, %v6813_v22  ;;  %vm3532_vm7 = vcmp.eq.s32.totalorder %v6818_v59, 0  ;;  %vm3535_vm8 = vcmp.eq.s32.totalorder %v6818_v59, 2  ;;  %v3699_v33 = vmul.u32 %v3692_v55, %v3683_v20 }
 0x13e   :  { %v6849_v46 = vshrl.u32 %v11123_v39, %v6297_v10  ;;  %vm3531_vm9 = vcmp.lt.s32.totalorder %v6818_v59, 2  ;;  %v3301_v32 = vshll.u32 %v6771_v19, %v3299_v63  ;;  %v3302_v56 = vshrl.u32 %v3284_v48, %v3300_v6 }
 0x13f   :  { %v3305_v36 = vadd.s32 127, %v3304_v11  ;;  %v3703_v27 = vsel %vm3701_vm6, %v3702_v14, %v6813_v22  ;;  %v3123_v44 = vsel %vm3112_vm1, nan, %v3122_v4  ;;  %vm3528_vm10 = vweird.f32 %v11124_v60 }
 0x140   :  { %v3704_v29 = vadd.s32 %v3703_v27, %v3699_v33  ;;  %v2924_v55 = vor.u32 8388608, %v6839_v21  ;;  %v2934_v47 = vshrl.u32 %v11127_v51, %v6297_v10  ;;  %v3303_v18 = vor.u32 %v3302_v56, %v3301_v32 }
 0x141   :  { %v3306_v41 = vshll.u32 %v3305_v36, 23  ;;  %v2933_v19 = vshll.u32 %v11123_v39, %v6280_v7  ;;  %v2943_v8 = vshrl.u32 %v11130_v16, %v6297_v10  ;;  %v2936_v52 = vshll.u32 %v11127_v51, %v6280_v7 }
 0x142   :  { %v3705_v22 = vadd.s32 536870912, %v3704_v29  ;;  %v2937_v49 = vshrl.u32 %v11128_v50, %v6297_v10  ;;  %v2940_v1 = vshrl.u32 %v11129_v23, %v6297_v10  ;;  %v5686_v35 = vpop.eup %5685  ;;  %v2939_v48 = vshll.u32 %v11128_v50, %v6280_v7 }
 0x143   :  { %v3307_v20 = vor.u32 4788187, %v3306_v41  ;;  %v2942_v63 = vshll.u32 %v11129_v23, %v6280_v7  ;;  %v2946_v21 = vshrl.u32 %v11131_v40, %v6297_v10  ;;  %v5688_v4 = vpop.eup %5687  ;;  %v3536_v6 = vxor.u32 2147483648, %v5686_v35 }
 0x144   :  { %v3706_v11 = vshrl.u32 %v3705_v22, 30  ;;  %v2935_v14 = vor.u32 %v2934_v47, %v2933_v19  ;;  %v2945_v33 = vshll.u32 %v11130_v16, %v6280_v7  ;;  %v3533_v32 = vxor.u32 2147483648, %v5688_v4 }
 0x145   :  { %v3308_v56 = vand.u32 2147483647, %v3307_v20  ;;  %v3310_v36 = vcvt.s32.f32 %v3303_v18  ;;  %vm3646_vm11 = vcmp.lt.s32.totalorder %v11148_v25, 0  ;;  %v2944_v27 = vor.u32 %v2943_v8, %v2942_v63 }
 0x146   :  { %v3537_v41 = vsel %vm3535_vm8, %v3536_v6, %v5688_v4  ;;  %v3707_v17 = vshll.u32 %v3706_v11, 30  ;;  %v2938_v24 = vor.u32 %v2937_v49, %v2936_v52  ;;  %v2941_v37 = vor.u32 %v2940_v1, %v2939_v48 }
 0x147   :  { %vm1471_vm12 = vcmp.gt.s32.totalorder %v6620_v26, 0  ;;  %v3534_v10 = vsel %vm3532_vm7, %v5686_v35, %v3533_v32  ;;  %v3311_v47 = vmul.f32 %v3310_v36, %v3308_v56  ;;  %v2947_v19 = vor.u32 %v2946_v21, %v2945_v33 }
 0x148   :  { %vm2948_vm13 = vcmp.lt.s32.totalorder %v6292_v58, 1  ;;  %v3538_v7 = vsel %vm3531_vm9, %v3534_v10, %v3537_v41  ;;  %v6887_v18 = vsub.s32 %v3704_v29, %v3707_v17  ;;  %vm2950_vm15 = vcmp.lt.s32.totalorder %v6292_v58, 3 }
 0x149   :  { %vm2951_vm0 = vcmp.lt.s32.totalorder %v6292_v58, 4  ;;  %v3539_v8 = vsel %vm3528_vm10, nan, %v3538_v7  ;;  %v3312_v22 = vxor.u32 2147483648, %v3311_v47  ;;  %v3730_v52 = vsub.s32 4, %v3706_v11 }
 0x14a   :  { %v2957_v49 = vsel %vm2951_vm0, %v2944_v27, 920167782  ;;  %v3793_v1 = vpack.c.bf16 %v3539_v8, %v3123_v44  ;;  %v3710_v35 = vsub.s32 0, %v6887_v18  ;;  %v2956_v59 = vsel %vm2948_vm13, %v2935_v14, %v2938_v24 }
 0x14b   :  { %v2958_v17 = vsel %vm2950_vm15, %v2941_v37, %v2957_v49  ;;  %v3313_v29 = vsel %vm3230_vm14, %v3312_v22, %v3311_v47  ;;  %vm2949_vm1 = vcmp.lt.s32.totalorder %v6292_v58, 2  ;;  %v2960_v60 = vsel %vm2948_vm13, %v2938_v24, %v2941_v37  ;;  %v11160_v58 = vld [vmem:[#allocation29_spill] sm:$0xff] }
 0x14c   :  { %v2961_v20 = vsel %vm2951_vm0, %v2947_v19, 1326507024  ;;  %3949 = vmatprep.subr.bf16.mxu0 %v3793_v1  ;;  %v3316_v44 = vsel %vm6822_vm3, %v11141_v15, %v3313_v29  ;;  %v5445_v48 = vmin.u32 %v3710_v35, %v6887_v18  ;;  %v2953_v63 = vsel %vm2951_vm0, %v2941_v37, 2102212464 }
 0x14d   :  { %v2962_v21 = vsel %vm2950_vm15, %v2944_v27, %v2961_v20  ;;  %5689 = vcosq.f32 %v3316_v44  ;;  %v2959_v4 = vsel %vm2949_vm1, %v2956_v59, %v2958_v17  ;;  %v2964_v33 = vshll.u32 %v2924_v55, 8 }
 0x14e   :  { %v2963_v6 = vsel %vm2949_vm1, %v2960_v60, %v2962_v21  ;;  %5691 = vsinq.f32 %v3316_v44  ;;  %v11154_v32 = vsel %vm6822_vm3, 0, %v6829_v2  ;;  %v3712_v36 = vclz %v5445_v48  ;;  %v11161_v44 = vld [vmem:[#allocation39_spill] sm:$0xff] }
 0x14f   :  { %v3321_v56 = vadd.s32 3, %v11154_v32  ;;  %v3731_v37 = vsel %vm3646_vm11, %v3730_v52, %v3706_v11  ;;  %v2952_v27 = vsel %vm2948_vm13, %v6849_v46, %v2935_v14  ;;  %v2954_v41 = vsel %vm2950_vm15, %v2938_v24, %v2953_v63 }
 0x150   :  { %v6930_v10 = vmul.u32.u64.low %v2964_v33, %v2963_v6  ;;  %v6931_v47 = vmul.u32.u64.high %v2964_v33, %v2963_v6, %v6930_v10  ;;  %v11155_v55 = vand.u32 2147483647, %v11148_v25  ;;  %v5446_v2 = vadd.s32 4294967294, %v3712_v36 }
 0x151   :  { %v6939_v19 = vmul.u32.u64.low %v2964_v33, %v2959_v4  ;;  %v6940_v7 = vmul.u32.u64.high %v2964_v33, %v2959_v4, %v6939_v19  ;;  %v6944_v11 = vand.u32 31, %v6631_v30  ;;  %v6947_v46 = vshrl.u32 %v6712_v31, 5 }
 0x152   :  { %vm6935_vm14 = vcmp.le.f32.partialorder %v11155_v55, 0.7853982  ;;  %v6950_v24 = vand.u32 31, %v6712_v31  ;;  %v6957_v8 = vsel %vm1471_vm12, %v6620_v26, 0  ;;  %v6959_v22 = vand.u32 3, %v3321_v56  ;;  %v11159_v31 = vld [vmem:[#allocation10_spill] sm:$0xff] }
 0x153   :  { %11158 = vst [vmem:[#allocation19_spill] sm:$0xff] %v6944_v11  ;;  %v3733_v14 = vsel %vm6935_vm14, 0, %v3731_v37  ;;  %vm5447_vm2 = vcmp.lt.s32.totalorder %v5446_v2, 0  ;;  %v2955_v30 = vsel %vm2949_vm1, %v2952_v27, %v2954_v41  ;;  %v3700_v52 = vadd.s32 %v6812_v54, %v6803_v43 }
 0x154   :  { %v3715_v49 = vsel %vm5447_vm2, 0, %v5446_v2  ;;  %vm2973_vm3 = vc.u32 %v6931_v47, %v6939_v19  ;;  %v11025_v1 = vand.u32 2147483647, %v11159_v31  ;;  %v6968_v17 = vadd.s32 3, %v3733_v14 }
 0x155   :  { %v3716_v35 = vsub.s32 32, %v3715_v49  ;;  %v3720_v59 = vsub.s32 4294967266, %v3715_v49  ;;  %v2974_v26 = vadd.s32 1, %v6940_v7  ;;  %v3717_v29 = vshll.u32 %v6887_v18, %v3715_v49 }
 0x156   :  { %v2971_v60 = vmul.u32 %v2964_v33, %v2955_v30  ;;  %v3349_v20 = vshll.u32 %v11123_v39, %v11160_v58  ;;  %v3350_v43 = vshrl.u32 %v11127_v51, %v11161_v44  ;;  %v3356_v21 = vshrl.u32 %v11129_v23, %v11161_v44 }
 0x157   :  { %v3718_v54 = vshrl.u32 %v3700_v52, %v3716_v35  ;;  %v3721_v48 = vadd.s32 127, %v3720_v59  ;;  %v2975_v63 = vsel %vm2973_vm3, %v2974_v26, %v6940_v7  ;;  %vm3327_vm4 = vcmp.eq.s32.totalorder %v6959_v22, 2 }
 0x158   :  { %v2976_v4 = vadd.s32 %v2975_v63, %v2971_v60  ;;  %v3339_v18 = vand.u32 8388607, %v11025_v1  ;;  %v3353_v6 = vshrl.u32 %v11128_v50, %v11161_v44  ;;  %v3359_v33 = vshrl.u32 %v11130_v16, %v11161_v44  ;;  %v11162_v63 = vld [vmem:[#allocation28_spill] sm:$0xff] }
 0x159   :  { %v3719_v32 = vor.u32 %v3718_v54, %v3717_v29  ;;  %v3722_v56 = vshll.u32 %v3721_v48, 23  ;;  %v3355_v36 = vshll.u32 %v11128_v50, %v11160_v58  ;;  %v3358_v37 = vshll.u32 %v11129_v23, %v11160_v58 }
 0x15a   :  { %vm3324_vm5 = vcmp.eq.s32.totalorder %v6959_v22, 0  ;;  %v2977_v27 = vadd.s32 536870912, %v2976_v4  ;;  %v3348_v41 = vshrl.u32 %v11123_v39, %v11161_v44  ;;  %v3352_v10 = vshll.u32 %v11127_v51, %v11160_v58  ;;  %v5690_v2 = vpop.eup %5689 }
 0x15b   :  { %v3362_v55 = vshrl.u32 %v11131_v40, %v11161_v44  ;;  %v3723_v7 = vor.u32 4788187, %v3722_v56  ;;  %v3351_v14 = vor.u32 %v3350_v43, %v3349_v20  ;;  %v3357_v30 = vor.u32 %v3356_v21, %v3355_v36  ;;  %v5692_v49 = vpop.eup %5691 }
 0x15c   :  { %v3360_v52 = vor.u32 %v3359_v33, %v3358_v37  ;;  %v2978_v35 = vshrl.u32 %v2977_v27, 30  ;;  %v3340_v59 = vor.u32 8388608, %v3339_v18  ;;  %v3354_v26 = vor.u32 %v3353_v6, %v3352_v10 }
 0x15d   :  { %v3361_v29 = vshll.u32 %v11130_v16, %v11160_v58  ;;  %vm3323_vm6 = vcmp.lt.s32.totalorder %v6959_v22, 2  ;;  %v3328_v60 = vxor.u32 2147483648, %v5690_v2  ;;  %v3724_v54 = vand.u32 2147483647, %v3723_v7 }
 0x15e   :  { %v3726_v48 = vcvt.s32.f32 %v3719_v32  ;;  %vm3364_vm7 = vcmp.lt.s32.totalorder %v11162_v63, 1  ;;  %v2979_v44 = vshll.u32 %v2978_v35, 30  ;;  %vm3365_vm8 = vcmp.lt.s32.totalorder %v11162_v63, 2 }
 0x15f   :  { %v3363_v1 = vor.u32 %v3362_v55, %v3361_v29  ;;  %vm3367_vm9 = vcmp.lt.s32.totalorder %v11162_v63, 4  ;;  %v3325_v20 = vxor.u32 2147483648, %v5692_v49  ;;  %vm3366_vm10 = vcmp.lt.s32.totalorder %v11162_v63, 3 }
 0x160   :  { %v3727_v43 = vmul.f32 %v3726_v48, %v3724_v54  ;;  %v3369_v21 = vsel %vm3367_vm9, %v3357_v30, 2102212464  ;;  %v3373_v58 = vsel %vm3367_vm9, %v3360_v52, 920167782  ;;  %v7007_v18 = vsub.s32 %v2976_v4, %v2979_v44 }
 0x161   :  { %v3368_v6 = vsel %vm3364_vm7, %v3348_v41, %v3351_v14  ;;  %v3372_v33 = vsel %vm3364_vm7, %v3351_v14, %v3354_v26  ;;  %v3329_v32 = vsel %vm3327_vm4, %v3328_v60, %v5692_v49  ;;  %v3002_v36 = vsub.s32 4, %v2978_v35 }
 0x162   :  { %v3728_v56 = vxor.u32 2147483648, %v3727_v43  ;;  %v3374_v37 = vsel %vm3366_vm10, %v3357_v30, %v3373_v58  ;;  %v2982_v27 = vsub.s32 0, %v7007_v18  ;;  %v3370_v10 = vsel %vm3366_vm10, %v3354_v26, %v3369_v21 }
 0x163   :  { %v3376_v4 = vsel %vm3364_vm7, %v3354_v26, %v3357_v30  ;;  %v3377_v55 = vsel %vm3367_vm9, %v3363_v1, 1326507024  ;;  %v3326_v41 = vsel %vm3324_vm5, %v5690_v2, %v3325_v20  ;;  %v3380_v49 = vshll.u32 %v3340_v59, 8  ;;  %v11163_v20 = vld [vmem:[#allocation13_spill] sm:$0xff] }
 0x164   :  { %v3729_v7 = vsel %vm3646_vm11, %v3728_v56, %v3727_v43  ;;  %v3378_v14 = vsel %vm3366_vm10, %v3360_v52, %v3377_v55  ;;  %v5417_v60 = vmin.u32 %v2982_v27, %v7007_v18  ;;  %v3375_v30 = vsel %vm3365_vm8, %v3372_v33, %v3374_v37 }
 0x165   :  { %v3732_v29 = vsel %vm6935_vm14, %v11148_v25, %v3729_v7  ;;  %v3379_v1 = vsel %vm3365_vm8, %v3376_v4, %v3378_v14  ;;  %vm2918_vm12 = vcmp.lt.s32.totalorder %v11150_v57, 0  ;;  %v3330_v52 = vsel %vm3323_vm6, %v3326_v41, %v3329_v32 }
 0x166   :  { %5693 = vcosq.f32 %v3732_v29  ;;  %v7034_v2 = vmul.u32.u64.low %v3380_v49, %v3379_v1  ;;  %v7035_v26 = vmul.u32.u64.high %v3380_v49, %v3379_v1, %v7034_v2  ;;  %v2984_v5 = vclz %v5417_v60 }
 0x167   :  { %5695 = vsinq.f32 %v3732_v29  ;;  %v3371_v59 = vsel %vm3365_vm8, %v3368_v6, %v3370_v10  ;;  %v7043_v54 = vsel %vm2918_vm12, %v3002_v36, %v2978_v35  ;;  %v11026_v43 = vand.u32 2147483647, %v11163_v20 }
 0x168   :  { %v7045_v48 = vmul.u32.u64.low %v3380_v49, %v3375_v30  ;;  %v7046_v44 = vmul.u32.u64.high %v3380_v49, %v3375_v30, %v7045_v48  ;;  %v7051_v21 = vadd.s32 1, %v6623_v13  ;;  %vm3320_vm11 = vweird.f32 %v11141_v15 }
 0x169   :  { %v7055_v22 = vand.u32 3, %v6968_v17  ;;  %v5418_v63 = vadd.s32 4294967294, %v2984_v5  ;;  %v7058_v58 = vand.u32 31, %v6957_v8  ;;  %v7060_v35 = vsel %vm3320_vm11, nan, %v3330_v52 }
 0x16a   :  { %v11165_v6 = vand.u32 2147483647, %v11150_v57  ;;  %v2972_v13 = vadd.s32 %v6939_v19, %v6931_v47  ;;  %v3387_v17 = vmul.u32 %v3380_v49, %v3371_v59  ;;  %vm3389_vm0 = vc.u32 %v7035_v26, %v7045_v48 }
 0x16b   :  { %11164 = vst [vmem:[#allocation12_spill] sm:$0xff] %v7058_v58  ;;  %vm5419_vm15 = vcmp.lt.s32.totalorder %v5418_v63, 0  ;;  %v3390_v56 = vadd.s32 1, %v7046_v44  ;;  %v7078_v36 = vand.u32 8388607, %v11026_v43  ;;  %v3140_v37 = vshrl.u32 %v11123_v39, %v6353_v28 }
 0x16c   :  { %vm7064_vm13 = vcmp.le.f32.partialorder %v11165_v6, 0.7853982  ;;  %v2987_v32 = vsel %vm5419_vm15, 0, %v5418_v63  ;;  %vm3743_vm1 = vcmp.eq.s32.totalorder %v7055_v22, 2  ;;  %v3142_v27 = vshrl.u32 %v11127_v51, %v6353_v28 }
 0x16d   :  { %v3005_v15 = vsel %vm7064_vm13, 0, %v7043_v54  ;;  %v2988_v47 = vsub.s32 32, %v2987_v32  ;;  %v2992_v19 = vsub.s32 4294967266, %v2987_v32  ;;  %v3145_v10 = vshrl.u32 %v11128_v50, %v6353_v28 }
 0x16e   :  { %vm3740_vm14 = vcmp.eq.s32.totalorder %v7055_v22, 0  ;;  %v2989_v4 = vshll.u32 %v7007_v18, %v2987_v32  ;;  %v3391_v55 = vsel %vm3389_vm0, %v3390_v56, %v7046_v44  ;;  %v3148_v41 = vshrl.u32 %v11129_v23, %v6353_v28 }
 0x16f   :  { %v3150_v7 = vshll.u32 %v11129_v23, %v6308_v12  ;;  %vm3739_vm2 = vcmp.lt.s32.totalorder %v7055_v22, 2  ;;  %v2990_v14 = vshrl.u32 %v2972_v13, %v2988_v47  ;;  %v2993_v49 = vadd.s32 127, %v2992_v19  ;;  %v11168_v19 = vld [vmem:[#allocation43_spill] sm:$0xff] }
 0x170   :  { %v3392_v29 = vadd.s32 %v3391_v55, %v3387_v17  ;;  %v3151_v60 = vshrl.u32 %v11130_v16, %v6353_v28  ;;  %vm3736_vm3 = vweird.f32 %v11148_v25  ;;  %v3132_v18 = vor.u32 8388608, %v7078_v36 }
 0x171   :  { %v3141_v30 = vshll.u32 %v11123_v39, %v6308_v12  ;;  %v3144_v1 = vshll.u32 %v11127_v51, %v6308_v12  ;;  %v3147_v2 = vshll.u32 %v11128_v50, %v6308_v12  ;;  %v2991_v52 = vor.u32 %v2990_v14, %v2989_v4 }
 0x172   :  { %v2994_v5 = vshll.u32 %v2993_v49, 23  ;;  %v3393_v59 = vadd.s32 536870912, %v3392_v29  ;;  %v3152_v44 = vor.u32 %v3151_v60, %v3150_v7  ;;  %v3154_v17 = vshrl.u32 %v11131_v40, %v6353_v28 }
 0x173   :  { %v3143_v63 = vor.u32 %v3142_v27, %v3141_v30  ;;  %v3146_v6 = vor.u32 %v3145_v10, %v3144_v1  ;;  %v3149_v13 = vor.u32 %v3148_v41, %v3147_v2  ;;  %v5694_v32 = vpop.eup %5693  ;;  %v3153_v47 = vshll.u32 %v11130_v16, %v6308_v12 }
 0x174   :  { %v2995_v56 = vor.u32 4788187, %v2994_v5  ;;  %v3394_v36 = vshrl.u32 %v3393_v59, 30  ;;  %vm3159_vm4 = vcmp.lt.s32.totalorder %v11168_v19, 4  ;;  %v5696_v55 = vpop.eup %5695  ;;  %v3744_v43 = vxor.u32 2147483648, %v5694_v32 }
 0x175   :  { %vm3156_vm5 = vcmp.lt.s32.totalorder %v11168_v19, 1  ;;  %vm3158_vm6 = vcmp.lt.s32.totalorder %v11168_v19, 3  ;;  %v3165_v27 = vsel %vm3159_vm4, %v3152_v44, 920167782  ;;  %vm1575_vm7 = vcmp.gt.s32.totalorder %v7051_v21, 0 }
 0x176   :  { %v3741_v28 = vxor.u32 2147483648, %v5696_v55  ;;  %v2996_v10 = vand.u32 2147483647, %v2995_v56  ;;  %v2998_v4 = vcvt.s32.f32 %v2991_v52  ;;  %v3395_v41 = vshll.u32 %v3394_v36, 30 }
 0x177   :  { %v3745_v12 = vsel %vm3743_vm1, %v3744_v43, %v5696_v55  ;;  %v3155_v7 = vor.u32 %v3154_v17, %v3153_v47  ;;  %v3164_v14 = vsel %vm3156_vm5, %v3143_v63, %v3146_v6  ;;  %v3166_v49 = vsel %vm3158_vm6, %v3149_v13, %v3165_v27 }
 0x178   :  { %v3742_v60 = vsel %vm3740_vm14, %v5694_v32, %v3741_v28  ;;  %v2999_v30 = vmul.f32 %v2998_v4, %v2996_v10  ;;  %v7123_v1 = vsub.s32 %v3392_v29, %v3395_v41  ;;  %vm3157_vm8 = vcmp.lt.s32.totalorder %v11168_v19, 2 }
 0x179   :  { %v3746_v2 = vsel %vm3739_vm2, %v3742_v60, %v3745_v12  ;;  %v3160_v43 = vsel %vm3156_vm5, %v3140_v37, %v3143_v63  ;;  %v3161_v52 = vsel %vm3159_vm4, %v3149_v13, 2102212464  ;;  %v3168_v5 = vsel %vm3156_vm5, %v3146_v6, %v3149_v13 }
 0x17a   :  { %v3747_v59 = vsel %vm3736_vm3, nan, %v3746_v2  ;;  %v3000_v17 = vxor.u32 2147483648, %v2999_v30  ;;  %v3398_v29 = vsub.s32 0, %v7123_v1  ;;  %v3167_v32 = vsel %vm3157_vm8, %v3164_v14, %v3166_v49 }
 0x17b   :  { %v3795_v22 = vpack.c.bf16 %v3747_v59, %v7060_v35  ;;  %v3418_v56 = vsub.s32 4, %v3394_v36  ;;  %v3169_v37 = vsel %vm3159_vm4, %v3155_v7, 1326507024  ;;  %v3172_v63 = vshll.u32 %v3132_v18, 8 }
 0x17c   :  { %v3001_v47 = vsel %vm2918_vm12, %v3000_v17, %v2999_v30  ;;  %v5433_v13 = vmin.u32 %v3398_v29, %v7123_v1  ;;  %v3162_v25 = vsel %vm3158_vm6, %v3146_v6, %v3161_v52  ;;  %v3170_v55 = vsel %vm3158_vm6, %v3152_v44, %v3169_v37 }
 0x17d   :  { %4062 = vmatprep.subr.bf16.mxu1 %v3795_v22  ;;  %v3004_v35 = vsel %vm7064_vm13, %v11150_v57, %v3001_v47  ;;  %v3171_v27 = vsel %vm3157_vm8, %v3168_v5, %v3170_v55  ;;  %v7154_v18 = vmul.u32.u64.low %v3172_v63, %v3167_v32  ;;  %v7155_v28 = vmul.u32.u64.high %v3172_v63, %v3167_v32, %v7154_v18 }
 0x17e   :  { %5697 = vcosq.f32 %v3004_v35  ;;  %v3009_v6 = vadd.s32 3, %v3005_v15  ;;  %vm3334_vm9 = vcmp.lt.s32.totalorder %v11159_v31, 0  ;;  %v3400_v44 = vclz %v5433_v13 }
 0x17f   :  { %5699 = vsinq.f32 %v3004_v35  ;;  %v3419_v10 = vsel %vm3334_vm9, %v3418_v56, %v3394_v36  ;;  %v7165_v4 = vmul.u32.u64.low %v3172_v63, %v3171_v27  ;;  %v7166_v41 = vmul.u32.u64.high %v3172_v63, %v3171_v27, %v7165_v4 }
 0x180   :  { %v7169_v12 = vsub.s32 32, %v6944_v11  ;;  %v7172_v7 = vsub.s32 32, %v6950_v24  ;;  %v5434_v33 = vadd.s32 4294967294, %v3400_v44  ;;  %v3163_v54 = vsel %vm3157_vm8, %v3160_v43, %v3162_v25  ;;  %v11178_v25 = vld [vmem:[#allocation40_spill] sm:$0xff] }
 0x181   :  { %v7177_v15 = vshrl.u32 %v6957_v8, 5  ;;  %v1576_v36 = vsel %vm1575_vm7, %v7051_v21, 0  ;;  %v11171_v14 = vand.u32 2147483647, %v11159_v31  ;;  %v3182_v60 = vadd.s32 1, %v7155_v28  ;;  %v11175_v21 = vld [vmem:[#allocation11_spill] sm:$0xff] }
 0x182   :  { %11169 = vst [vmem:[#allocation10_spill] sm:$0xff] %v7169_v12  ;;  %v7190_v30 = vsub.s32 32, %v7058_v58  ;;  %v7192_v19 = vand.u32 3, %v3009_v6  ;;  %vm5435_vm12 = vcmp.lt.s32.totalorder %v5434_v33, 0  ;;  %v3179_v43 = vmul.u32 %v3172_v63, %v3163_v54  ;;  %v11179_v6 = vld [vmem:[#allocation35_spill] sm:$0xff] }
 0x183   :  { %11170 = vst [vmem:[#allocation29_spill] sm:$0xff] %v7177_v15  ;;  %vm7184_vm10 = vcmp.le.f32.partialorder %v11171_v14, 0.7853982  ;;  %v3403_v2 = vsel %vm5435_vm12, 0, %v5434_v33  ;;  %vm3181_vm11 = vc.u32 %v7166_v41, %v7154_v18  ;;  %v11027_v52 = vand.u32 2147483647, %v11175_v21 }
 0x184   :  { %11174 = vst [vmem:[#allocation39_spill] sm:$0xff] %v7190_v30  ;;  %v3421_v8 = vsel %vm7184_vm10, 0, %v3419_v10  ;;  %v3388_v5 = vadd.s32 %v7045_v48, %v7035_v26  ;;  %v3404_v59 = vsub.s32 32, %v3403_v2  ;;  %v3408_v17 = vsub.s32 4294967266, %v3403_v2  ;;  %v11180_v15 = vld [vmem:[#allocation33_spill] sm:$0xff] }
 0x185   :  { %v3183_v29 = vsel %vm3181_vm11, %v3182_v60, %v7155_v28  ;;  %v7202_v32 = vshrl.u32 %v1576_v36, 5  ;;  %v7204_v22 = vand.u32 31, %v1576_v36  ;;  %v7206_v56 = vadd.s32 3, %v3421_v8 }
 0x186   :  { %v3184_v37 = vadd.s32 %v3183_v29, %v3179_v43  ;;  %v3405_v63 = vshll.u32 %v7123_v1, %v3403_v2  ;;  %v3406_v47 = vshrl.u32 %v3388_v5, %v3404_v59  ;;  %v3409_v13 = vadd.s32 127, %v3408_v17 }
 0x187   :  { %11176 = vst [vmem:[#allocation28_spill] sm:$0xff] %v7202_v32  ;;  %11177 = vst [vmem:[#allocation13_spill] sm:$0xff] %v7204_v22  ;;  %v3558_v55 = vshrl.u32 %v11127_v51, %v11178_v25  ;;  %v3547_v26 = vand.u32 8388607, %v11027_v52  ;;  %v3561_v48 = vshrl.u32 %v11128_v50, %v11178_v25  ;;  %v3567_v27 = vshrl.u32 %v11130_v16, %v11178_v25 }
 0x188   :  { %v3185_v35 = vadd.s32 536870912, %v3184_v37  ;;  %vm3012_vm13 = vcmp.eq.s32.totalorder %v7192_v19, 0  ;;  %vm3015_vm15 = vcmp.eq.s32.totalorder %v7192_v19, 2  ;;  %v3407_v1 = vor.u32 %v3406_v47, %v3405_v63 }
 0x189   :  { %v3410_v28 = vshll.u32 %v3409_v13, 23  ;;  %v3557_v44 = vshll.u32 %v11123_v39, %v11179_v6  ;;  %v3564_v10 = vshrl.u32 %v11129_v23, %v11178_v25  ;;  %vm3126_vm0 = vcmp.lt.s32.totalorder %v11163_v20, 0 }
 0x18a   :  { %v3186_v4 = vshrl.u32 %v3185_v35, 30  ;;  %v3556_v33 = vshrl.u32 %v11123_v39, %v11178_v25  ;;  %v3560_v54 = vshll.u32 %v11127_v51, %v11179_v6  ;;  %v3566_v36 = vshll.u32 %v11129_v23, %v11179_v6 }
 0x18b   :  { %v3411_v14 = vor.u32 4788187, %v3410_v28  ;;  %v3559_v60 = vor.u32 %v3558_v55, %v3557_v44  ;;  %v3563_v8 = vshll.u32 %v11128_v50, %v11179_v6  ;;  %v3570_v2 = vshrl.u32 %v11131_v40, %v11178_v25  ;;  %v5698_v43 = vpop.eup %5697 }
 0x18c   :  { %vm3011_vm1 = vcmp.lt.s32.totalorder %v7192_v19, 2  ;;  %v3187_v5 = vshll.u32 %v3186_v4, 30  ;;  %v3548_v59 = vor.u32 8388608, %v3547_v26  ;;  %v3562_v17 = vor.u32 %v3561_v48, %v3560_v54  ;;  %v5700_v63 = vpop.eup %5699 }
 0x18d   :  { %v3568_v29 = vor.u32 %v3567_v27, %v3566_v36  ;;  %v3412_v47 = vand.u32 2147483647, %v3411_v14  ;;  %v3414_v13 = vcvt.s32.f32 %v3407_v1  ;;  %v3565_v35 = vor.u32 %v3564_v10, %v3563_v8 }
 0x18e   :  { %v3569_v55 = vshll.u32 %v11130_v16, %v11179_v6  ;;  %v3013_v28 = vxor.u32 2147483648, %v5700_v63  ;;  %v3016_v44 = vxor.u32 2147483648, %v5698_v43  ;;  %v7237_v52 = vsub.s32 %v3184_v37, %v3187_v5 }
 0x18f   :  { %vm3572_vm14 = vcmp.lt.s32.totalorder %v11180_v15, 1  ;;  %v3415_v25 = vmul.f32 %v3414_v13, %v3412_v47  ;;  %v3210_v58 = vsub.s32 4, %v3186_v4  ;;  %vm3575_vm2 = vcmp.lt.s32.totalorder %v11180_v15, 4 }
 0x190   :  { %v3571_v30 = vor.u32 %v3570_v2, %v3569_v55  ;;  %v3190_v26 = vsub.s32 0, %v7237_v52  ;;  %vm3573_vm3 = vcmp.lt.s32.totalorder %v11180_v15, 2  ;;  %vm3574_vm4 = vcmp.lt.s32.totalorder %v11180_v15, 3 }
 0x191   :  { %v3581_v48 = vsel %vm3575_vm2, %v3568_v29, 920167782  ;;  %v3416_v27 = vxor.u32 2147483648, %v3415_v25  ;;  %v3577_v37 = vsel %vm3575_vm2, %v3565_v35, 2102212464  ;;  %v3580_v1 = vsel %vm3572_vm14, %v3559_v60, %v3562_v17 }
 0x192   :  { %v3582_v6 = vsel %vm3574_vm4, %v3565_v35, %v3581_v48  ;;  %v3014_v10 = vsel %vm3012_vm13, %v5698_v43, %v3013_v28  ;;  %v3017_v54 = vsel %vm3015_vm15, %v3016_v44, %v5700_v63  ;;  %v5425_v36 = vmin.u32 %v3190_v26, %v7237_v52  ;;  %v11186_v48 = vld [vmem:[#allocation8_spill] sm:$0xff] }
 0x193   :  { %v3576_v14 = vsel %vm3572_vm14, %v3556_v33, %v3559_v60  ;;  %v3417_v8 = vsel %vm3334_vm9, %v3416_v27, %v3415_v25  ;;  %v7263_v2 = vsel %vm3126_vm0, %v3210_v58, %v3186_v4  ;;  %v3584_v5 = vsel %vm3572_vm14, %v3562_v17, %v3565_v35  ;;  %v11181_v35 = vld [vmem:[#allocation34_spill] sm:$0xff] }
 0x194   :  { %v3585_v43 = vsel %vm3575_vm2, %v3571_v30, 1326507024  ;;  %v3420_v63 = vsel %vm7184_vm10, %v11159_v31, %v3417_v8  ;;  %v3192_v47 = vclz %v5425_v36  ;;  %v3578_v33 = vsel %vm3574_vm4, %v3562_v17, %v3577_v37 }
 0x195   :  { %v3583_v60 = vsel %vm3573_vm3, %v3580_v1, %v3582_v6  ;;  %v3018_v58 = vsel %vm3011_vm1, %v3014_v10, %v3017_v54  ;;  %5701 = vcosq.f32 %v3420_v63  ;;  %v3586_v4 = vsel %vm3574_vm4, %v3568_v29, %v3585_v43 }
 0x196   :  { %v3588_v13 = vshll.u32 %v3548_v59, 8  ;;  %5703 = vsinq.f32 %v3420_v63  ;;  %v5426_v30 = vadd.s32 4294967294, %v3192_v47  ;;  %v3587_v49 = vsel %vm3573_vm3, %v3584_v5, %v3586_v4 }
 0x197   :  { %v11033_v55 = vand.u32 2147483647, %v11181_v35  ;;  %v7292_v19 = vadd.f32 %v6323_v0, %v6463_v3  ;;  %v7295_v59 = vand.u32 3, %v7206_v56  ;;  %v3579_v29 = vsel %vm3573_vm3, %v3576_v14, %v3578_v33 }
 0x198   :  { %v7283_v28 = vmul.u32.u64.low %v3588_v13, %v3587_v49  ;;  %v7284_v17 = vmul.u32.u64.high %v3588_v13, %v3587_v49, %v7283_v28  ;;  %v7286_v44 = vmul.u32.u64.low %v3588_v13, %v3583_v60  ;;  %v7287_v25 = vmul.u32.u64.high %v3588_v13, %v3583_v60, %v7286_v44 }
 0x199   :  { %vm5427_vm5 = vcmp.lt.s32.totalorder %v5426_v30, 0  ;;  %vm3008_vm6 = vweird.f32 %v11150_v57  ;;  %v11182_v26 = vand.u32 2147483647, %v11163_v20  ;;  %v3180_v27 = vadd.s32 %v7154_v18, %v7166_v41 }
 0x19a   :  { %v3195_v3 = vsel %vm5427_vm5, 0, %v5426_v30  ;;  %v7308_v37 = vsel %vm3008_vm6, nan, %v3018_v58  ;;  %v3595_v6 = vmul.u32 %v3588_v13, %v3579_v29  ;;  %vm3597_vm8 = vc.u32 %v7284_v17, %v7286_v44 }
 0x19b   :  { %vm7302_vm7 = vcmp.le.f32.partialorder %v11182_v26, 0.7853982  ;;  %v3196_v56 = vsub.s32 32, %v3195_v3  ;;  %v3200_v1 = vsub.s32 4294967266, %v3195_v3  ;;  %v3598_v57 = vadd.s32 1, %v7287_v25 }
 0x19c   :  { %v3213_v15 = vsel %vm7302_vm7, 0, %v7263_v2  ;;  %v2195_v10 = vand.u32 8388607, %v11033_v55  ;;  %vm3431_vm9 = vcmp.eq.s32.totalorder %v7295_v59, 2  ;;  %v3197_v18 = vshll.u32 %v7237_v52, %v3195_v3 }
 0x19d   :  { %v3198_v41 = vshrl.u32 %v3180_v27, %v3196_v56  ;;  %v3201_v54 = vadd.s32 127, %v3200_v1  ;;  %v2206_v36 = vshrl.u32 %v11127_v51, %v6419_v9  ;;  %vm3428_vm10 = vcmp.eq.s32.totalorder %v7295_v59, 0 }
 0x19e   :  { %v3599_v14 = vsel %vm3597_vm8, %v3598_v57, %v7287_v25  ;;  %v2204_v8 = vshrl.u32 %v11123_v39, %v6419_v9  ;;  %v2209_v5 = vshrl.u32 %v11128_v50, %v6419_v9  ;;  %v2212_v43 = vshrl.u32 %v11129_v23, %v6419_v9 }
 0x19f   :  { %vm3427_vm12 = vcmp.lt.s32.totalorder %v7295_v59, 2  ;;  %v3199_v52 = vor.u32 %v3198_v41, %v3197_v18  ;;  %v3202_v63 = vshll.u32 %v3201_v54, 23  ;;  %v3600_v47 = vadd.s32 %v3599_v14, %v3595_v6 }
 0x1a0   :  { %v2205_v33 = vshll.u32 %v11123_v39, %v6388_v42  ;;  %vm3424_vm11 = vweird.f32 %v11159_v31  ;;  %v2208_v60 = vshll.u32 %v11127_v51, %v6388_v42  ;;  %v2211_v58 = vshll.u32 %v11128_v50, %v6388_v42 }
 0x1a1   :  { %v2214_v4 = vshll.u32 %v11129_v23, %v6388_v42  ;;  %v2215_v13 = vshrl.u32 %v11130_v16, %v6419_v9  ;;  %v3203_v30 = vor.u32 4788187, %v3202_v63  ;;  %v3601_v49 = vadd.s32 536870912, %v3600_v47 }
 0x1a2   :  { %v2196_v28 = vor.u32 8388608, %v2195_v10  ;;  %v2207_v25 = vor.u32 %v2206_v36, %v2205_v33  ;;  %v2210_v29 = vor.u32 %v2209_v5, %v2208_v60  ;;  %v2213_v26 = vor.u32 %v2212_v43, %v2211_v58  ;;  %v5702_v56 = vpop.eup %5701 }
 0x1a3   :  { %v2216_v27 = vor.u32 %v2215_v13, %v2214_v4  ;;  %v2218_v3 = vshrl.u32 %v11131_v40, %v6419_v9  ;;  %v3204_v1 = vand.u32 2147483647, %v3203_v30  ;;  %v3206_v6 = vcvt.s32.f32 %v3199_v52  ;;  %v5704_v18 = vpop.eup %5703 }
 0x1a4   :  { %v3602_v57 = vshrl.u32 %v3601_v49, 30  ;;  %vm2223_vm13 = vcmp.lt.s32.totalorder %v6385_v61, 4  ;;  %v3432_v41 = vxor.u32 2147483648, %v5702_v56  ;;  %v2217_v54 = vshll.u32 %v11130_v16, %v6388_v42 }
 0x1a5   :  { %vm2220_vm15 = vcmp.lt.s32.totalorder %v6385_v61, 1  ;;  %v2229_v10 = vsel %vm2223_vm13, %v2216_v27, 920167782  ;;  %v3429_v36 = vxor.u32 2147483648, %v5704_v18  ;;  %v3207_v14 = vmul.f32 %v3206_v6, %v3204_v1 }
 0x1a6   :  { %v3603_v5 = vshll.u32 %v3602_v57, 30  ;;  %vm2222_vm1 = vcmp.lt.s32.totalorder %v6385_v61, 3  ;;  %v3433_v9 = vsel %vm3431_vm9, %v3432_v41, %v5704_v18  ;;  %v2219_v43 = vor.u32 %v2218_v3, %v2217_v54  ;;  %v314_v54 = vpop.permute.xlu0 %313 }
 0x1a7   :  { %v2228_v52 = vsel %vm2220_vm15, %v2207_v25, %v2210_v29  ;;  %v2230_v42 = vsel %vm2222_vm1, %v2213_v26, %v2229_v10  ;;  %v3430_v63 = vsel %vm3428_vm10, %v5702_v56, %v3429_v36  ;;  %v3208_v33 = vxor.u32 2147483648, %v3207_v14 }
 0x1a8   :  { %v7359_v60 = vsub.s32 %v3600_v47, %v3603_v5  ;;  %vm2221_vm14 = vcmp.lt.s32.totalorder %v6385_v61, 2  ;;  %v3434_v58 = vsel %vm3427_vm12, %v3430_v63, %v3433_v9  ;;  %v3626_v4 = vsub.s32 4, %v3602_v57  ;;  %v11199_v63 = vld [vmem:[#allocation15_spill] sm:$0xff] }
 0x1a9   :  { %v2225_v13 = vsel %vm2223_vm13, %v2213_v26, 2102212464  ;;  %v2232_v30 = vsel %vm2220_vm15, %v2210_v29, %v2213_v26  ;;  %v3435_v49 = vsel %vm3424_vm11, nan, %v3434_v58  ;;  %v3209_v3 = vsel %vm3126_vm0, %v3208_v33, %v3207_v14  ;;  %v11192_v58 = vld [vmem:[#allocation17_spill] sm:$0xff] }
 0x1aa   :  { %v3606_v47 = vsub.s32 0, %v7359_v60  ;;  %v2231_v56 = vsel %vm2221_vm14, %v2228_v52, %v2230_v42  ;;  %v3792_v59 = vpack.c.bf16 %v3435_v49, %v7308_v37  ;;  %v3212_v1 = vsel %vm7302_vm7, %v11163_v20, %v3209_v3  ;;  %v11187_v52 = vld [vmem:[#allocation16_spill] sm:$0xff]  ;;  %v11194_v49 = vld [vmem:[#allocation14_spill] sm:$0xff] }
 0x1ab   :  { %v2233_v26 = vsel %vm2223_vm13, %v2219_v43, 1326507024  ;;  %v2236_v6 = vshll.u32 %v2196_v28, 8  ;;  %5705 = vcosq.f32 %v3212_v1  ;;  %v2224_v18 = vsel %vm2220_vm15, %v2204_v8, %v2207_v25 }
 0x1ac   :  { %v5441_v31 = vmin.u32 %v3606_v47, %v7359_v60  ;;  %v2234_v41 = vsel %vm2222_vm1, %v2216_v27, %v2233_v26  ;;  %3950 = vmatpush1.bf16.msra.mxu0 %v3792_v59  ;;  %v2226_v37 = vsel %vm2222_vm1, %v2210_v29, %v2225_v13  ;;  %5707 = vsinq.f32 %v3212_v1 }
 0x1ad   :  { %v2235_v10 = vsel %vm2221_vm14, %v2232_v30, %v2234_v41  ;;  %v7390_v36 = vmul.u32.u64.low %v2236_v6, %v2231_v56  ;;  %v7391_v14 = vmul.u32.u64.high %v2236_v6, %v2231_v56, %v7390_v36  ;;  %v3217_v8 = vadd.s32 3, %v3213_v15  ;;  %v11193_v30 = vld [vmem:[#allocation48_spill] sm:$0xff] }
 0x1ae   :  { %vm3542_vm0 = vcmp.lt.s32.totalorder %v11175_v21, 0  ;;  %v3608_v28 = vclz %v5441_v31  ;;  %v7401_v25 = vadd.f32 %v6323_v0, %v6467_v34  ;;  %v7409_v9 = vsub.s32 32, %v7204_v22  ;;  %v11188_v0 = vld [vmem:[#allocation9_spill] sm:$0xff] }
 0x1af   :  { %v3627_v29 = vsel %vm3542_vm0, %v3626_v4, %v3602_v57  ;;  %v7405_v27 = vmul.u32.u64.low %v2236_v6, %v2235_v10  ;;  %v7406_v5 = vmul.u32.u64.high %v2236_v6, %v2235_v10, %v7405_v27  ;;  %v7412_v43 = vmul.f32 %v11186_v48, %v314_v54  ;;  %v11196_v10 = vld [vmem:[#allocation68_spill] sm:$0xff] }
 0x1b0   :  { %11185 = vst [vmem:[#allocation43_spill] sm:$0xff] %v7409_v9  ;;  %v5442_v2 = vadd.s32 4294967294, %v3608_v28  ;;  %v2227_v15 = vsel %vm2221_vm14, %v2224_v18, %v2226_v37  ;;  %v7417_v42 = vmul.f32 %v11187_v52, %v314_v54  ;;  %v7420_v34 = vmul.f32 %v11188_v0, %v314_v54  ;;  %v11197_v27 = vld [vmem:[#allocation62_spill] sm:$0xff] }
 0x1b1   :  { %v11189_v57 = vand.u32 2147483647, %v11175_v21  ;;  %v2246_v33 = vadd.s32 1, %v7391_v14  ;;  %v7430_v4 = vmul.f32 %v11192_v58, %v314_v54  ;;  %v7432_v13 = vand.u32 3, %v3217_v8  ;;  %v11195_v54 = vld [vmem:[#allocation41_spill] sm:$0xff] }
 0x1b2   :  { %vm5443_vm3 = vcmp.lt.s32.totalorder %v5442_v2, 0  ;;  %v7438_v3 = vmul.f32 %v11194_v49, %v11193_v30  ;;  %v2243_v56 = vmul.u32 %v2236_v6, %v2227_v15  ;;  %vm2245_vm4 = vc.u32 %v7406_v5, %v7390_v36 }
 0x1b3   :  { %vm7424_vm2 = vcmp.le.f32.partialorder %v11189_v57, 0.7853982  ;;  %v3611_v47 = vsel %vm5443_vm3, 0, %v5442_v2  ;;  %v3596_v59 = vadd.s32 %v7286_v44, %v7284_v17  ;;  %v2247_v31 = vsel %vm2245_vm4, %v2246_v33, %v7391_v14 }
 0x1b4   :  { %v3629_v61 = vsel %vm7424_vm2, 0, %v3627_v29  ;;  %v3612_v1 = vsub.s32 32, %v3611_v47  ;;  %v3616_v26 = vsub.s32 4294967266, %v3611_v47  ;;  %v2248_v41 = vadd.s32 %v2247_v31, %v2243_v56 }
 0x1b5   :  { %v7445_v18 = vadd.s32 3, %v3629_v61  ;;  %v11032_v37 = vand.u32 2147483647, %v11195_v54  ;;  %v2620_v8 = vshrl.u32 %v11123_v39, %v11196_v10  ;;  %vm3223_vm5 = vcmp.eq.s32.totalorder %v7432_v13, 2 }
 0x1b6   :  { %v3613_v6 = vshll.u32 %v7359_v60, %v3611_v47  ;;  %v3614_v28 = vshrl.u32 %v3596_v59, %v3612_v1  ;;  %v3617_v29 = vadd.s32 127, %v3616_v26  ;;  %v2622_v17 = vshrl.u32 %v11127_v51, %v11196_v10 }
 0x1b7   :  { %v2249_v44 = vadd.s32 536870912, %v2248_v41  ;;  %v2621_v14 = vshll.u32 %v11123_v39, %v11197_v27  ;;  %v2625_v2 = vshrl.u32 %v11128_v50, %v11196_v10  ;;  %v2628_v15 = vshrl.u32 %v11129_v23, %v11196_v10 }
 0x1b8   :  { %v3615_v57 = vor.u32 %v3614_v28, %v3613_v6  ;;  %v3618_v33 = vshll.u32 %v3617_v29, 23  ;;  %v2631_v60 = vshrl.u32 %v11130_v16, %v11196_v10  ;;  %v2634_v61 = vshrl.u32 %v11131_v40, %v11196_v10  ;;  %v5706_v49 = vpop.eup %5705 }
 0x1b9   :  { %v2250_v47 = vshrl.u32 %v2249_v44, 30  ;;  %v2611_v56 = vand.u32 8388607, %v11032_v37  ;;  %v2624_v59 = vshll.u32 %v11127_v51, %v11197_v27  ;;  %v2627_v1 = vshll.u32 %v11128_v50, %v11197_v27  ;;  %v5708_v28 = vpop.eup %5707 }
 0x1ba   :  { %vm3220_vm6 = vcmp.eq.s32.totalorder %v7432_v13, 0  ;;  %v3619_v26 = vor.u32 4788187, %v3618_v33  ;;  %v2623_v31 = vor.u32 %v2622_v17, %v2621_v14  ;;  %v2630_v6 = vshll.u32 %v11129_v23, %v11197_v27  ;;  %v11198_v33 = vld [vmem:[#allocation66_spill] sm:$0xff] }
 0x1bb   :  { %v2633_v10 = vshll.u32 %v11130_v16, %v11197_v27  ;;  %v3224_v29 = vxor.u32 2147483648, %v5706_v49  ;;  %v2251_v44 = vshll.u32 %v2250_v47, 30  ;;  %v2626_v37 = vor.u32 %v2625_v2, %v2624_v59 }
 0x1bc   :  { %v2629_v55 = vor.u32 %v2628_v15, %v2627_v1  ;;  %v3620_v62 = vand.u32 2147483647, %v3619_v26  ;;  %v3622_v11 = vcvt.s32.f32 %v3615_v57  ;;  %v2632_v12 = vor.u32 %v2631_v60, %v2630_v6 }
 0x1bd   :  { %v2635_v32 = vor.u32 %v2634_v61, %v2633_v10  ;;  %v7475_v22 = vsub.s32 %v2248_v41, %v2251_v44  ;;  %v2612_v9 = vor.u32 8388608, %v2611_v56  ;;  %vm2636_vm7 = vcmp.lt.s32.totalorder %v11198_v33, 1 }
 0x1be   :  { %vm2637_vm8 = vcmp.lt.s32.totalorder %v11198_v33, 2  ;;  %v3221_v17 = vxor.u32 2147483648, %v5708_v28  ;;  %v3623_v14 = vmul.f32 %v3622_v11, %v3620_v62  ;;  %v2274_v45 = vsub.s32 4, %v2250_v47 }
 0x1bf   :  { %vm2638_vm9 = vcmp.lt.s32.totalorder %v11198_v33, 3  ;;  %v3225_v27 = vsel %vm3223_vm5, %v3224_v29, %v5708_v28  ;;  %v2254_v2 = vsub.s32 0, %v7475_v22  ;;  %vm2639_vm10 = vcmp.lt.s32.totalorder %v11198_v33, 4 }
 0x1c0   :  { %v2644_v41 = vsel %vm2636_vm7, %v2623_v31, %v2626_v37  ;;  %v3624_v15 = vxor.u32 2147483648, %v3623_v14  ;;  %v2645_v57 = vsel %vm2639_vm10, %v2632_v12, 920167782  ;;  %v2648_v60 = vsel %vm2636_vm7, %v2626_v37, %v2629_v55 }
 0x1c1   :  { %v2649_v61 = vsel %vm2639_vm10, %v2635_v32, 1326507024  ;;  %v5389_v62 = vmin.u32 %v2254_v2, %v7475_v22  ;;  %v2641_v11 = vsel %vm2639_vm10, %v2629_v55, 2102212464  ;;  %v2646_v56 = vsel %vm2638_vm9, %v2629_v55, %v2645_v57 }
 0x1c2   :  { %v2650_v59 = vsel %vm2638_vm9, %v2632_v12, %v2649_v61  ;;  %v3625_v1 = vsel %vm3542_vm0, %v3624_v15, %v3623_v14  ;;  %v2647_v26 = vsel %vm2637_vm8, %v2644_v41, %v2646_v56  ;;  %v2652_v10 = vshll.u32 %v2612_v9, 8 }
 0x1c3   :  { %v2651_v6 = vsel %vm2637_vm8, %v2648_v60, %v2650_v59  ;;  %v3222_v32 = vsel %vm3220_vm6, %v5706_v49, %v3221_v17  ;;  %v3628_v55 = vsel %vm7424_vm2, %v11175_v21, %v3625_v1  ;;  %v2256_v28 = vclz %v5389_v62  ;;  %v11203_v60 = vld [vmem:[#allocation36_spill] sm:$0xff]  ;;  %v11204_v59 = vld [vmem:[#allocation61_spill] sm:$0xff] }
 0x1c4   :  { %v2640_v12 = vsel %vm2636_vm7, %v2620_v8, %v2623_v31  ;;  %5709 = vcosq.f32 %v3628_v55  ;;  %v2642_v29 = vsel %vm2638_vm9, %v2626_v37, %v2641_v11  ;;  %v7517_v49 = vmul.f32 %v11199_v63, %v11193_v30 }
 0x1c5   :  { %v7508_v44 = vmul.u32.u64.low %v2652_v10, %v2651_v6  ;;  %v7509_v14 = vmul.u32.u64.high %v2652_v10, %v2651_v6, %v7508_v44  ;;  %5711 = vsinq.f32 %v3628_v55  ;;  %v5390_v9 = vadd.s32 4294967294, %v2256_v28 }
 0x1c6   :  { %v7511_v2 = vmul.u32.u64.low %v2652_v10, %v2647_v26  ;;  %v7512_v41 = vmul.u32.u64.high %v2652_v10, %v2647_v26, %v7511_v2  ;;  %vm3219_vm12 = vcmp.lt.s32.totalorder %v7432_v13, 2  ;;  %v7521_v8 = vand.u32 3, %v7445_v18 }
 0x1c7   :  { %vm2190_vm11 = vcmp.lt.s32.totalorder %v11181_v35, 0  ;;  %v3226_v37 = vsel %vm3219_vm12, %v3222_v32, %v3225_v27  ;;  %vm5391_vm13 = vcmp.lt.s32.totalorder %v5390_v9, 0  ;;  %v2643_v17 = vsel %vm2637_vm8, %v2640_v12, %v2642_v29  ;;  %v11205_v32 = vld [vmem:[#allocation56_spill] sm:$0xff] }
 0x1c8   :  { %v7526_v31 = vsel %vm2190_vm11, %v2274_v45, %v2250_v47  ;;  %vm3216_vm15 = vweird.f32 %v11163_v20  ;;  %v11200_v30 = vand.u32 2147483647, %v11181_v35  ;;  %v2259_v18 = vsel %vm5391_vm13, 0, %v5390_v9 }
 0x1c9   :  { %vm2661_vm14 = vc.u32 %v7509_v14, %v7511_v2  ;;  %v2244_v27 = vadd.s32 %v7390_v36, %v7406_v5  ;;  %v2260_v45 = vsub.s32 32, %v2259_v18  ;;  %v2264_v47 = vsub.s32 4294967266, %v2259_v18 }
 0x1ca   :  { %vm7533_vm1 = vcmp.le.f32.partialorder %v11200_v30, 0.7853982  ;;  %v2662_v33 = vadd.s32 1, %v7512_v41  ;;  %v7542_v15 = vsel %vm3216_vm15, nan, %v3226_v37  ;;  %v2659_v57 = vmul.u32 %v2652_v10, %v2643_v17 }
 0x1cb   :  { %v2277_v20 = vsel %vm7533_vm1, 0, %v7526_v31  ;;  %v2396_v61 = vand.u32 2147483647, %v11203_v60  ;;  %vm3639_vm0 = vcmp.eq.s32.totalorder %v7521_v8, 2  ;;  %v2261_v62 = vshll.u32 %v7475_v22, %v2259_v18 }
 0x1cc   :  { %v2262_v11 = vshrl.u32 %v2244_v27, %v2260_v45  ;;  %v2265_v56 = vadd.s32 127, %v2264_v47  ;;  %v2663_v36 = vsel %vm2661_vm14, %v2662_v33, %v7512_v41  ;;  %vm3636_vm2 = vcmp.eq.s32.totalorder %v7521_v8, 0 }
 0x1cd   :  { %v2664_v5 = vadd.s32 %v2663_v36, %v2659_v57  ;;  %v2414_v1 = vshrl.u32 %v11127_v51, %v11204_v59  ;;  %v2417_v26 = vshrl.u32 %v11128_v50, %v11204_v59  ;;  %v2420_v6 = vshrl.u32 %v11129_v23, %v11204_v59 }
 0x1ce   :  { %vm3635_vm3 = vcmp.lt.s32.totalorder %v7521_v8, 2  ;;  %v2263_v10 = vor.u32 %v2262_v11, %v2261_v62  ;;  %v2266_v22 = vshll.u32 %v2265_v56, 23  ;;  %v2422_v55 = vshll.u32 %v11129_v23, %v11205_v32 }
 0x1cf   :  { %v2423_v28 = vshrl.u32 %v11130_v16, %v11204_v59  ;;  %vm3632_vm4 = vweird.f32 %v11175_v21  ;;  %v2665_v12 = vadd.s32 536870912, %v2664_v5  ;;  %v2412_v29 = vshrl.u32 %v11123_v39, %v11204_v59 }
 0x1d0   :  { %v2413_v44 = vshll.u32 %v11123_v39, %v11205_v32  ;;  %v2416_v9 = vshll.u32 %v11127_v51, %v11205_v32  ;;  %v2267_v41 = vor.u32 4788187, %v2266_v22  ;;  %v2419_v63 = vshll.u32 %v11128_v50, %v11205_v32 }
 0x1d1   :  { %v2424_v37 = vor.u32 %v2423_v28, %v2422_v55  ;;  %v2426_v17 = vshrl.u32 %v11131_v40, %v11204_v59  ;;  %v7574_v30 = vshrl.u32 %v2665_v12, 30  ;;  %v2403_v18 = vand.u32 8388607, %v2396_v61  ;;  %v5710_v47 = vpop.eup %5709  ;;  %v11206_v55 = vld [vmem:[#allocation55_spill] sm:$0xff] }
 0x1d2   :  { %v2415_v27 = vor.u32 %v2414_v1, %v2413_v44  ;;  %v2418_v45 = vor.u32 %v2417_v26, %v2416_v9  ;;  %v2268_v33 = vand.u32 2147483647, %v2267_v41  ;;  %v2270_v57 = vcvt.s32.f32 %v2263_v10  ;;  %v5712_v56 = vpop.eup %5711 }
 0x1d3   :  { %v2421_v62 = vor.u32 %v2420_v6, %v2419_v63  ;;  %v2425_v11 = vshll.u32 %v11130_v16, %v11205_v32  ;;  %v3640_v36 = vxor.u32 2147483648, %v5710_v47  ;;  %v2667_v22 = vshll.u32 %v7574_v30, 30  ;;  %v310_v63 = vpop.permute.xlu1 %309 }
 0x1d4   :  { %vm2428_vm5 = vcmp.lt.s32.totalorder %v11206_v55, 1  ;;  %vm2431_vm6 = vcmp.lt.s32.totalorder %v11206_v55, 4  ;;  %v3637_v59 = vxor.u32 2147483648, %v5712_v56  ;;  %v2271_v28 = vmul.f32 %v2270_v57, %v2268_v33 }
 0x1d5   :  { %v2427_v12 = vor.u32 %v2426_v17, %v2425_v11  ;;  %v2437_v1 = vsel %vm2431_vm6, %v2424_v37, 920167782  ;;  %v3641_v26 = vsel %vm3639_vm0, %v3640_v36, %v5712_v56  ;;  %v7587_v6 = vsub.s32 %v2664_v5, %v2667_v22 }
 0x1d6   :  { %vm2430_vm7 = vcmp.lt.s32.totalorder %v11206_v55, 3  ;;  %v2436_v10 = vsel %vm2428_vm5, %v2415_v27, %v2418_v45  ;;  %v3638_v32 = vsel %vm3636_vm2, %v5710_v47, %v3637_v59  ;;  %v2272_v44 = vxor.u32 2147483648, %v2271_v28 }
 0x1d7   :  { %v2404_v9 = vor.u32 8388608, %v2403_v18  ;;  %v2438_v41 = vsel %vm2430_vm7, %v2421_v62, %v2437_v1  ;;  %v3642_v17 = vsel %vm3635_vm3, %v3638_v32, %v3641_v26  ;;  %v2670_v5 = vsub.s32 0, %v7587_v6 }
 0x1d8   :  { %vm2429_vm8 = vcmp.lt.s32.totalorder %v11206_v55, 2  ;;  %v2433_v33 = vsel %vm2431_vm6, %v2421_v62, 2102212464  ;;  %v3643_v57 = vsel %vm3632_vm4, nan, %v3642_v17  ;;  %v2273_v18 = vsel %vm2190_vm11, %v2272_v44, %v2271_v28 }
 0x1d9   :  { %v2439_v47 = vsel %vm2429_vm8, %v2436_v10, %v2438_v41  ;;  %v2441_v8 = vsel %vm2431_vm6, %v2427_v12, 1326507024  ;;  %v3794_v11 = vpack.c.bf16 %v3643_v57, %v7542_v15  ;;  %v2276_v56 = vsel %vm7533_vm1, %v11181_v35, %v2273_v18  ;;  %v11211_v57 = vld [vmem:[#allocation72_spill] sm:$0xff] }
 0x1da   :  { %v5405_v36 = vmin.u32 %v2670_v5, %v7587_v6  ;;  %v2440_v21 = vsel %vm2428_vm5, %v2418_v45, %v2421_v62  ;;  %v7618_v22 = vmul.f32 %v11186_v48, %v310_v63  ;;  %v2281_v59 = vadd.s32 3, %v2277_v20  ;;  %v11210_v5 = vld [vmem:[#allocation42_spill] sm:$0xff] }
 0x1db   :  { %v2442_v15 = vsel %vm2430_vm7, %v2424_v37, %v2441_v8  ;;  %v2444_v28 = vshll.u32 %v2404_v9, 8  ;;  %4063 = vmatpush1.bf16.msra.mxu1 %v3794_v11  ;;  %v2690_v1 = vsub.s32 4, %v7574_v30  ;;  %v2432_v26 = vsel %vm2428_vm5, %v2412_v29, %v2415_v27 }
 0x1dc   :  { %v2672_v12 = vclz %v5405_v36  ;;  %v2434_v48 = vsel %vm2430_vm7, %v2418_v45, %v2433_v33  ;;  %5713 = vcosq.f32 %v2276_v56  ;;  %v2443_v13 = vsel %vm2429_vm8, %v2440_v21, %v2442_v15  ;;  %v11212_v36 = vld [vmem:[#allocation64_spill] sm:$0xff] }
 0x1dd   :  { %v7633_v31 = vmul.u32.u64.low %v2444_v28, %v2439_v47  ;;  %v7634_v20 = vmul.u32.u64.high %v2444_v28, %v2439_v47, %v7633_v31  ;;  %5715 = vsinq.f32 %v2276_v56  ;;  %v7641_v32 = vmul.f32 %v11187_v52, %v310_v63 }
 0x1de   :  { %v5406_v37 = vadd.s32 4294967294, %v2672_v12  ;;  %v7637_v62 = vmul.u32.u64.low %v2444_v28, %v2443_v13  ;;  %v7638_v10 = vmul.u32.u64.high %v2444_v28, %v2443_v13, %v7637_v62  ;;  %v7644_v29 = vmul.f32 %v11188_v0, %v310_v63 }
 0x1df   :  { %v7647_v27 = vmul.f32 %v11192_v58, %v310_v63  ;;  %v2435_v45 = vsel %vm2429_vm8, %v2432_v26, %v2434_v48  ;;  %v7653_v44 = vadd.f32 %v7438_v3, %v7292_v19  ;;  %v11207_v9 = vand.u32 2147483647, %v11195_v54 }
 0x1e0   :  { %vm2606_vm10 = vcmp.lt.s32.totalorder %v11195_v54, 0  ;;  %vm5407_vm12 = vcmp.lt.s32.totalorder %v5406_v37, 0  ;;  %v7662_v52 = vand.u32 3, %v2281_v59  ;;  %v2660_v0 = vadd.s32 %v7511_v2, %v7509_v14 }
 0x1e1   :  { %vm7657_vm9 = vcmp.le.f32.partialorder %v11207_v9, 0.7853982  ;;  %v2675_v58 = vsel %vm5407_vm12, 0, %v5406_v37  ;;  %v2454_v55 = vadd.s32 1, %v7634_v20  ;;  %v2691_v3 = vsel %vm2606_vm10, %v2690_v1, %v7574_v30 }
 0x1e2   :  { %v2676_v63 = vsub.s32 32, %v2675_v58  ;;  %v2680_v19 = vsub.s32 4294967266, %v2675_v58  ;;  %v2451_v17 = vmul.u32 %v2444_v28, %v2435_v45  ;;  %vm2453_vm11 = vc.u32 %v7638_v10, %v7633_v31 }
 0x1e3   :  { %v2812_v33 = vand.u32 2147483647, %v11210_v5  ;;  %v2830_v18 = vshrl.u32 %v11127_v51, %v11211_v57  ;;  %v2833_v14 = vshrl.u32 %v11128_v50, %v11211_v57  ;;  %v2677_v2 = vshll.u32 %v7587_v6, %v2675_v58 }
 0x1e4   :  { %v2678_v47 = vshrl.u32 %v2660_v0, %v2676_v63  ;;  %v2681_v8 = vadd.s32 127, %v2680_v19  ;;  %v2455_v11 = vsel %vm2453_vm11, %v2454_v55, %v7634_v20  ;;  %v2693_v30 = vsel %vm7657_vm9, 0, %v2691_v3 }
 0x1e5   :  { %v2456_v56 = vadd.s32 %v2455_v11, %v2451_v17  ;;  %v2829_v21 = vshll.u32 %v11123_v39, %v11212_v36  ;;  %v2839_v59 = vshrl.u32 %v11130_v16, %v11211_v57  ;;  %v2832_v12 = vshll.u32 %v11127_v51, %v11212_v36  ;;  %v11213_v11 = vld [vmem:[#allocation70_spill] sm:$0xff] }
 0x1e6   :  { %v2679_v15 = vor.u32 %v2678_v47, %v2677_v2  ;;  %v2682_v28 = vshll.u32 %v2681_v8, 23  ;;  %v2836_v6 = vshrl.u32 %v11129_v23, %v11211_v57  ;;  %v2819_v26 = vand.u32 8388607, %v2812_v33 }
 0x1e7   :  { %v2457_v1 = vadd.s32 536870912, %v2456_v56  ;;  %v2838_v48 = vshll.u32 %v11129_v23, %v11212_v36  ;;  %v2842_v13 = vshrl.u32 %v11131_v40, %v11211_v57  ;;  %v2831_v37 = vor.u32 %v2830_v18, %v2829_v21 }
 0x1e8   :  { %v2683_v20 = vor.u32 4788187, %v2682_v28  ;;  %v2834_v62 = vor.u32 %v2833_v14, %v2832_v12  ;;  %v2835_v45 = vshll.u32 %v11128_v50, %v11212_v36  ;;  %v2697_v9 = vadd.s32 3, %v2693_v30 }
 0x1e9   :  { %v2458_v0 = vshrl.u32 %v2457_v1, 30  ;;  %v2840_v58 = vor.u32 %v2839_v59, %v2838_v48  ;;  %v2841_v55 = vshll.u32 %v11130_v16, %v11212_v36  ;;  %v5714_v63 = vpop.eup %5713  ;;  %vm2284_vm13 = vcmp.eq.s32.totalorder %v7662_v52, 0 }
 0x1ea   :  { %vm2287_vm15 = vcmp.eq.s32.totalorder %v7662_v52, 2  ;;  %v2684_v19 = vand.u32 2147483647, %v2683_v20  ;;  %v2686_v3 = vcvt.s32.f32 %v2679_v15  ;;  %v2828_v17 = vshrl.u32 %v11123_v39, %v11211_v57  ;;  %v5716_v14 = vpop.eup %5715 }
 0x1eb   :  { %v2837_v18 = vor.u32 %v2836_v6, %v2835_v45  ;;  %vm2398_vm1 = vcmp.lt.s32.totalorder %v11203_v60, 0  ;;  %v2459_v2 = vshll.u32 %v2458_v0, 30  ;;  %v2820_v47 = vor.u32 8388608, %v2819_v26 }
 0x1ec   :  { %v2843_v8 = vor.u32 %v2842_v13, %v2841_v55  ;;  %vm2844_vm14 = vcmp.lt.s32.totalorder %v11213_v11, 1  ;;  %v2687_v30 = vmul.f32 %v2686_v3, %v2684_v19  ;;  %vm2845_vm0 = vcmp.lt.s32.totalorder %v11213_v11, 2 }
 0x1ed   :  { %vm2847_vm2 = vcmp.lt.s32.totalorder %v11213_v11, 4  ;;  %v2852_v36 = vsel %vm2844_vm14, %v2831_v37, %v2834_v62  ;;  %v2288_v21 = vxor.u32 2147483648, %v5714_v63  ;;  %v7709_v59 = vsub.s32 %v2456_v56, %v2459_v2 }
 0x1ee   :  { %vm2846_vm3 = vcmp.lt.s32.totalorder %v11213_v11, 3  ;;  %v2853_v57 = vsel %vm2847_vm2, %v2840_v58, 920167782  ;;  %v2285_v15 = vxor.u32 2147483648, %v5716_v14  ;;  %v2688_v28 = vxor.u32 2147483648, %v2687_v30 }
 0x1ef   :  { %v2849_v12 = vsel %vm2847_vm2, %v2837_v18, 2102212464  ;;  %v2854_v6 = vsel %vm2846_vm3, %v2837_v18, %v2853_v57  ;;  %v2462_v1 = vsub.s32 0, %v7709_v59  ;;  %v2848_v26 = vsel %vm2844_vm14, %v2828_v17, %v2831_v37 }
 0x1f0   :  { %v2855_v56 = vsel %vm2845_vm0, %v2852_v36, %v2854_v6  ;;  %v2856_v48 = vsel %vm2844_vm14, %v2834_v62, %v2837_v18  ;;  %v2689_v13 = vsel %vm2606_vm10, %v2688_v28, %v2687_v30  ;;  %v2482_v20 = vsub.s32 4, %v2458_v0 }
 0x1f1   :  { %v2857_v45 = vsel %vm2847_vm2, %v2843_v8, 1326507024  ;;  %v2860_v55 = vshll.u32 %v2820_v47, 8  ;;  %v2692_v19 = vsel %vm7657_vm9, %v11195_v54, %v2689_v13  ;;  %v5397_v37 = vmin.u32 %v2462_v1, %v7709_v59 }
 0x1f2   :  { %v2850_v3 = vsel %vm2846_vm3, %v2834_v62, %v2849_v12  ;;  %v2858_v17 = vsel %vm2846_vm3, %v2840_v58, %v2857_v45  ;;  %5717 = vcosq.f32 %v2692_v19  ;;  %v2286_v41 = vsel %vm2284_vm13, %v5714_v63, %v2285_v15 }
 0x1f3   :  { %v2859_v18 = vsel %vm2845_vm0, %v2856_v48, %v2858_v17  ;;  %v7739_v2 = vmul.u32.u64.low %v2860_v55, %v2855_v56  ;;  %v7740_v30 = vmul.u32.u64.high %v2860_v55, %v2855_v56, %v7739_v2  ;;  %v2289_v47 = vsel %vm2287_vm15, %v2288_v21, %v5716_v14  ;;  %v11214_v21 = vld [vmem:[#allocation44_spill] sm:$0xff] }
 0x1f4   :  { %5719 = vsinq.f32 %v2692_v19  ;;  %v2464_v8 = vclz %v5397_v37  ;;  %v7749_v62 = vadd.f32 %v7517_v49, %v7401_v25  ;;  %v2483_v58 = vsel %vm2398_vm1, %v2482_v20, %v2458_v0  ;;  %v11218_v48 = vld [vmem:[#allocation20_spill] sm:$0xff] }
 0x1f5   :  { %v7753_v36 = vmul.u32.u64.low %v2860_v55, %v2859_v18  ;;  %v7754_v57 = vmul.u32.u64.high %v2860_v55, %v2859_v18, %v7753_v36  ;;  %vm2283_vm4 = vcmp.lt.s32.totalorder %v7662_v52, 2  ;;  %v7757_v28 = vand.u32 3, %v2697_v9  ;;  %v11217_v52 = vld [vmem:[#allocation45_spill] sm:$0xff]  ;;  %v11220_v17 = vld [vmem:[#allocation52_spill] sm:$0xff] }
 0x1f6   :  { %v5398_v63 = vadd.s32 4294967294, %v2464_v8  ;;  %v2851_v14 = vsel %vm2845_vm0, %v2848_v26, %v2850_v3  ;;  %v7763_v15 = vadd.f32 %v7618_v22, %v11214_v21  ;;  %v2290_v25 = vsel %vm2283_vm4, %v2286_v41, %v2289_v47 }
 0x1f7   :  { %vm7767_vm5 = vcmp.le.f32.partialorder %v2396_v61, 0.7853982  ;;  %v2870_v0 = vadd.s32 1, %v7740_v30  ;;  %v7774_v9 = vadd.f32 %v7641_v32, %v11217_v52  ;;  %vm2280_vm6 = vweird.f32 %v11181_v35 }
 0x1f8   :  { %vm5399_vm7 = vcmp.lt.s32.totalorder %v5398_v63, 0  ;;  %v2485_v22 = vsel %vm7767_vm5, 0, %v2483_v58  ;;  %v2452_v11 = vadd.s32 %v7633_v31, %v7638_v10  ;;  %v2867_v61 = vmul.u32 %v2860_v55, %v2851_v14  ;;  %v11219_v10 = vld [vmem:[#allocation22_spill] sm:$0xff] }
 0x1f9   :  { %v2467_v12 = vsel %vm5399_vm7, 0, %v5398_v63  ;;  %vm2869_vm8 = vc.u32 %v7754_v57, %v7739_v2  ;;  %v7783_v6 = vsel %vm2280_vm6, nan, %v2290_v25  ;;  %vm2703_vm9 = vcmp.eq.s32.totalorder %v7757_v28, 2 }
 0x1fa   :  { %v2468_v32 = vsub.s32 32, %v2467_v12  ;;  %v2472_v1 = vsub.s32 4294967266, %v2467_v12  ;;  %v2871_v35 = vsel %vm2869_vm8, %v2870_v0, %v7740_v30  ;;  %vm2700_vm10 = vcmp.eq.s32.totalorder %v7757_v28, 0 }
 0x1fb   :  { %v7788_v26 = vadd.s32 3, %v2485_v22  ;;  %v2872_v56 = vadd.s32 %v2871_v35, %v2867_v61  ;;  %v2084_v31 = vand.u32 2147483647, %v11218_v48  ;;  %v2102_v13 = vshrl.u32 %v11127_v51, %v11219_v10 }
 0x1fc   :  { %vm2699_vm12 = vcmp.lt.s32.totalorder %v7757_v28, 2  ;;  %v2469_v20 = vshll.u32 %v7709_v59, %v2467_v12  ;;  %v2470_v45 = vshrl.u32 %v2452_v11, %v2468_v32  ;;  %v2473_v55 = vadd.s32 127, %v2472_v1 }
 0x1fd   :  { %v2105_v19 = vshrl.u32 %v11128_v50, %v11219_v10  ;;  %vm2696_vm11 = vweird.f32 %v11195_v54  ;;  %v2873_v37 = vadd.s32 536870912, %v2872_v56  ;;  %v2100_v3 = vshrl.u32 %v11123_v39, %v11219_v10 }
 0x1fe   :  { %v2101_v18 = vshll.u32 %v11123_v39, %v11220_v17  ;;  %v2111_v30 = vshrl.u32 %v11130_v16, %v11219_v10  ;;  %v2471_v41 = vor.u32 %v2470_v45, %v2469_v20  ;;  %v2474_v47 = vshll.u32 %v2473_v55, 23 }
 0x1ff   :  { %v2104_v59 = vshll.u32 %v11127_v51, %v11220_v17  ;;  %v2108_v8 = vshrl.u32 %v11129_v23, %v11219_v10  ;;  %v2874_v58 = vshrl.u32 %v2873_v37, 30  ;;  %v2091_v36 = vand.u32 8388607, %v2084_v31  ;;  %v5718_v21 = vpop.eup %5717 }
 0x200   :  { %v2103_v63 = vor.u32 %v2102_v13, %v2101_v18  ;;  %v2110_v14 = vshll.u32 %v11129_v23, %v11220_v17  ;;  %v2475_v25 = vor.u32 4788187, %v2474_v47  ;;  %v2107_v52 = vshll.u32 %v11128_v50, %v11220_v17 }
 0x201   :  { %v2106_v0 = vor.u32 %v2105_v19, %v2104_v59  ;;  %v2114_v22 = vshrl.u32 %v11131_v40, %v11219_v10  ;;  %v5720_v11 = vpop.eup %5719  ;;  %v2704_v12 = vxor.u32 2147483648, %v5718_v21  ;;  %v2875_v61 = vshll.u32 %v2874_v58, 30  ;;  %v11221_v10 = vld [vmem:[#allocation7_spill] sm:$0xff] }
 0x202   :  { %v2112_v32 = vor.u32 %v2111_v30, %v2110_v14  ;;  %v2113_v1 = vshll.u32 %v11130_v16, %v11220_v17  ;;  %v2701_v35 = vxor.u32 2147483648, %v5720_v11  ;;  %v2476_v13 = vand.u32 2147483647, %v2475_v25 }
 0x203   :  { %v2478_v20 = vcvt.s32.f32 %v2471_v41  ;;  %vm2814_vm13 = vcmp.lt.s32.totalorder %v11210_v5, 0  ;;  %v2109_v45 = vor.u32 %v2108_v8, %v2107_v52  ;;  %v2705_v55 = vsel %vm2703_vm9, %v2704_v12, %v5720_v11 }
 0x204   :  { %v7821_v19 = vsub.s32 %v2872_v56, %v2875_v61  ;;  %v2092_v37 = vor.u32 8388608, %v2091_v36  ;;  %vm2116_vm15 = vcmp.lt.s32.totalorder %v11221_v10, 1  ;;  %v2702_v18 = vsel %vm2700_vm10, %v5718_v21, %v2701_v35 }
 0x205   :  { %v2479_v30 = vmul.f32 %v2478_v20, %v2476_v13  ;;  %v2115_v47 = vor.u32 %v2114_v22, %v2113_v1  ;;  %vm2119_vm14 = vcmp.lt.s32.totalorder %v11221_v10, 4  ;;  %v2706_v17 = vsel %vm2699_vm12, %v2702_v18, %v2705_v55 }
 0x206   :  { %v2878_v41 = vsub.s32 0, %v7821_v19  ;;  %vm2118_vm0 = vcmp.lt.s32.totalorder %v11221_v10, 3  ;;  %v2125_v56 = vsel %vm2119_vm14, %v2112_v32, 920167782  ;;  %v2707_v59 = vsel %vm2696_vm11, nan, %v2706_v17  ;;  %v11224_v17 = vld [vmem:[#allocation50_spill] sm:$0xff] }
 0x207   :  { %v2480_v8 = vxor.u32 2147483648, %v2479_v30  ;;  %v2124_v36 = vsel %vm2116_vm15, %v2103_v63, %v2106_v0  ;;  %v2126_v14 = vsel %vm2118_vm0, %v2109_v45, %v2125_v56  ;;  %v3789_v28 = vpack.c.bf16 %v2707_v59, %v7783_v6 }
 0x208   :  { %v5413_v21 = vmin.u32 %v2878_v41, %v7821_v19  ;;  %v2898_v25 = vsub.s32 4, %v2874_v58  ;;  %v2121_v52 = vsel %vm2119_vm14, %v2109_v45, 2102212464  ;;  %vm2117_vm2 = vcmp.lt.s32.totalorder %v11221_v10, 2 }
 0x209   :  { %v2481_v22 = vsel %vm2398_vm1, %v2480_v8, %v2479_v30  ;;  %v2128_v54 = vsel %vm2116_vm15, %v2106_v0, %v2109_v45  ;;  %v2129_v11 = vsel %vm2119_vm14, %v2115_v47, 1326507024  ;;  %3951 = vmatprep.subr.bf16.mxu0 %v3789_v28  ;;  %v2120_v61 = vsel %vm2116_vm15, %v2100_v3, %v2103_v63 }
 0x20a   :  { %v2484_v6 = vsel %vm7767_vm5, %v11203_v60, %v2481_v22  ;;  %v2880_v12 = vclz %v5413_v21  ;;  %v2127_v1 = vsel %vm2117_vm2, %v2124_v36, %v2126_v14  ;;  %v2122_v35 = vsel %vm2118_vm0, %v2106_v0, %v2121_v52  ;;  %v11222_v0 = vld [vmem:[#allocation46_spill] sm:$0xff]  ;;  %v11227_v14 = vld [vmem:[#allocation23_spill] sm:$0xff] }
 0x20b   :  { %5721 = vcosq.f32 %v2484_v6  ;;  %v2130_v13 = vsel %vm2118_vm0, %v2112_v32, %v2129_v11  ;;  %v2132_v20 = vshll.u32 %v2092_v37, 8  ;;  %v2899_v49 = vsel %vm2814_vm13, %v2898_v25, %v2874_v58  ;;  %v11223_v32 = vld [vmem:[#allocation47_spill] sm:$0xff] }
 0x20c   :  { %5723 = vsinq.f32 %v2484_v6  ;;  %v5414_v45 = vadd.s32 4294967294, %v2880_v12  ;;  %v2131_v55 = vsel %vm2117_vm2, %v2128_v54, %v2130_v13  ;;  %v7874_v47 = vadd.f32 %v7644_v29, %v11222_v0  ;;  %v11228_v52 = vld [vmem:[#allocation67_spill] sm:$0xff] }
 0x20d   :  { %v7865_v3 = vmul.u32.u64.low %v2132_v20, %v2131_v55  ;;  %v7866_v63 = vmul.u32.u64.high %v2132_v20, %v2131_v55, %v7865_v3  ;;  %v7868_v18 = vmul.u32.u64.low %v2132_v20, %v2127_v1  ;;  %v7869_v30 = vmul.u32.u64.high %v2132_v20, %v2127_v1, %v7868_v18 }
 0x20e   :  { %v7878_v37 = vadd.f32 %v7647_v27, %v11223_v32  ;;  %vm5415_vm1 = vcmp.lt.s32.totalorder %v5414_v45, 0  ;;  %v2123_v58 = vsel %vm2117_vm2, %v2120_v61, %v2122_v35  ;;  %v7884_v41 = vadd.f32 %v7412_v43, %v11224_v17  ;;  %v11229_v61 = vld [vmem:[#allocation58_spill] sm:$0xff] }
 0x20f   :  { %v7887_v56 = vand.u32 3, %v7788_v26  ;;  %vm7891_vm3 = vcmp.le.f32.partialorder %v2812_v33, 0.7853982  ;;  %v2883_v59 = vsel %vm5415_vm1, 0, %v5414_v45  ;;  %v2868_v27 = vadd.s32 %v7739_v2, %v7754_v57 }
 0x210   :  { %v2884_v8 = vsub.s32 32, %v2883_v59  ;;  %v2888_v10 = vsub.s32 4294967266, %v2883_v59  ;;  %v2901_v36 = vsel %vm7891_vm3, 0, %v2899_v49  ;;  %v2139_v43 = vmul.u32 %v2132_v20, %v2123_v58 }
 0x211   :  { %vm2141_vm4 = vc.u32 %v7866_v63, %v7868_v18  ;;  %v2142_v26 = vadd.s32 1, %v7869_v30  ;;  %v2500_v33 = vand.u32 2147483647, %v11227_v14  ;;  %v2885_v28 = vshll.u32 %v7821_v19, %v2883_v59 }
 0x212   :  { %v2886_v21 = vshrl.u32 %v2868_v27, %v2884_v8  ;;  %v2889_v25 = vadd.s32 127, %v2888_v10  ;;  %v2518_v2 = vshrl.u32 %v11127_v51, %v11228_v52  ;;  %v7906_v57 = vadd.s32 3, %v2901_v36  ;;  %v11230_v36 = vld [vmem:[#allocation65_spill] sm:$0xff] }
 0x213   :  { %v2143_v22 = vsel %vm2141_vm4, %v2142_v26, %v7869_v30  ;;  %v2521_v54 = vshrl.u32 %v11128_v50, %v11228_v52  ;;  %v2524_v11 = vshrl.u32 %v11129_v23, %v11228_v52  ;;  %vm2495_vm5 = vcmp.eq.s32.totalorder %v7887_v56, 2 }
 0x214   :  { %v2887_v6 = vor.u32 %v2886_v21, %v2885_v28  ;;  %v2890_v12 = vshll.u32 %v2889_v25, 23  ;;  %v2144_v19 = vadd.s32 %v2143_v22, %v2139_v43  ;;  %v2517_v1 = vshll.u32 %v11123_v39, %v11229_v61 }
 0x215   :  { %v2520_v35 = vshll.u32 %v11127_v51, %v11229_v61  ;;  %v2523_v13 = vshll.u32 %v11128_v50, %v11229_v61  ;;  %v2526_v20 = vshll.u32 %v11129_v23, %v11229_v61  ;;  %v2527_v45 = vshrl.u32 %v11130_v16, %v11228_v52 }
 0x216   :  { %v2891_v49 = vor.u32 4788187, %v2890_v12  ;;  %v2145_v55 = vadd.s32 536870912, %v2144_v19  ;;  %v2507_v3 = vand.u32 8388607, %v2500_v33  ;;  %v2519_v30 = vor.u32 %v2518_v2, %v2517_v1 }
 0x217   :  { %vm2492_vm6 = vcmp.eq.s32.totalorder %v7887_v56, 0  ;;  %v2522_v0 = vor.u32 %v2521_v54, %v2520_v35  ;;  %v2525_v32 = vor.u32 %v2524_v11, %v2523_v13  ;;  %v2528_v58 = vor.u32 %v2527_v45, %v2526_v20 }
 0x218   :  { %v2530_v17 = vshrl.u32 %v11131_v40, %v11228_v52  ;;  %v5722_v59 = vpop.eup %5721  ;;  %v2892_v27 = vand.u32 2147483647, %v2891_v49  ;;  %v2894_v8 = vcvt.s32.f32 %v2887_v6  ;;  %v2146_v10 = vshrl.u32 %v2145_v55, 30 }
 0x219   :  { %vm2535_vm7 = vcmp.lt.s32.totalorder %v11230_v36, 4  ;;  %v5724_v43 = vpop.eup %5723  ;;  %v2496_v26 = vxor.u32 2147483648, %v5722_v59  ;;  %vm2086_vm8 = vcmp.lt.s32.totalorder %v11218_v48, 0  ;;  %v2516_v28 = vshrl.u32 %v11123_v39, %v11228_v52 }
 0x21a   :  { %v2529_v21 = vshll.u32 %v11130_v16, %v11229_v61  ;;  %v2541_v25 = vsel %vm2535_vm7, %v2528_v58, 920167782  ;;  %v2895_v2 = vmul.f32 %v2894_v8, %v2892_v27  ;;  %v2147_v22 = vshll.u32 %v2146_v10, 30 }
 0x21b   :  { %vm2532_vm9 = vcmp.lt.s32.totalorder %v11230_v36, 1  ;;  %vm2534_vm10 = vcmp.lt.s32.totalorder %v11230_v36, 3  ;;  %v2508_v54 = vor.u32 8388608, %v2507_v3  ;;  %v2493_v12 = vxor.u32 2147483648, %v5724_v43 }
 0x21c   :  { %v2531_v11 = vor.u32 %v2530_v17, %v2529_v21  ;;  %v2540_v6 = vsel %vm2532_vm9, %v2519_v30, %v2522_v0  ;;  %v2542_v52 = vsel %vm2534_vm10, %v2525_v32, %v2541_v25  ;;  %v2896_v1 = vxor.u32 2147483648, %v2895_v2  ;;  %v11231_v25 = vld [vmem:[#allocation51_spill] sm:$0xff] }
 0x21d   :  { %v7943_v61 = vsub.s32 %v2144_v19, %v2147_v22  ;;  %v2537_v35 = vsel %vm2535_vm7, %v2525_v32, 2102212464  ;;  %v2497_v13 = vsel %vm2495_vm5, %v2496_v26, %v5724_v43  ;;  %v2170_v20 = vsub.s32 4, %v2146_v10 }
 0x21e   :  { %vm2533_vm12 = vcmp.lt.s32.totalorder %v11230_v36, 2  ;;  %v2536_v45 = vsel %vm2532_vm9, %v2516_v28, %v2519_v30  ;;  %v2897_v49 = vsel %vm2814_vm13, %v2896_v1, %v2895_v2  ;;  %v2544_v3 = vsel %vm2532_vm9, %v2522_v0, %v2525_v32 }
 0x21f   :  { %v2150_v55 = vsub.s32 0, %v7943_v61  ;;  %v2543_v19 = vsel %vm2533_vm12, %v2540_v6, %v2542_v52  ;;  %v2900_v17 = vsel %vm7891_vm3, %v11210_v5, %v2897_v49  ;;  %v2538_v27 = vsel %vm2534_vm10, %v2522_v0, %v2537_v35  ;;  %v11234_v52 = vld [vmem:[#allocation21_spill] sm:$0xff] }
 0x220   :  { %v2545_v30 = vsel %vm2535_vm7, %v2531_v11, 1326507024  ;;  %v2548_v8 = vshll.u32 %v2508_v54, 8  ;;  %v2494_v43 = vsel %vm2492_vm6, %v5722_v59, %v2493_v12  ;;  %5725 = vcosq.f32 %v2900_v17 }
 0x221   :  { %v5385_v26 = vmin.u32 %v2150_v55, %v7943_v61  ;;  %v2546_v32 = vsel %vm2534_vm10, %v2528_v58, %v2545_v30  ;;  %5727 = vsinq.f32 %v2900_v17  ;;  %v7979_v0 = vadd.f32 %v7417_v42, %v7653_v44 }
 0x222   :  { %v2547_v29 = vsel %vm2533_vm12, %v2544_v3, %v2546_v32  ;;  %v7973_v28 = vmul.u32.u64.low %v2548_v8, %v2543_v19  ;;  %v7974_v21 = vmul.u32.u64.high %v2548_v8, %v2543_v19, %v7973_v28  ;;  %v7983_v59 = vadd.f32 %v7420_v34, %v11231_v25 }
 0x223   :  { %v2152_v2 = vclz %v5385_v26  ;;  %v2171_v58 = vsel %vm2086_vm8, %v2170_v20, %v2146_v10  ;;  %vm2491_vm11 = vcmp.lt.s32.totalorder %v7887_v56, 2  ;;  %v7989_v22 = vand.u32 3, %v7906_v57 }
 0x224   :  { %v7991_v54 = vmul.u32.u64.low %v2548_v8, %v2547_v29  ;;  %v7992_v11 = vmul.u32.u64.high %v2548_v8, %v2547_v29, %v7991_v54  ;;  %v2498_v6 = vsel %vm2491_vm11, %v2494_v43, %v2497_v13  ;;  %vm7996_vm13 = vcmp.le.f32.partialorder %v2084_v31, 0.7853982 }
 0x225   :  { %v5386_v34 = vadd.s32 4294967294, %v2152_v2  ;;  %v2539_v44 = vsel %vm2533_vm12, %v2536_v45, %v2538_v27  ;;  %v8004_v56 = vadd.f32 %v7430_v4, %v7749_v62  ;;  %v2173_v57 = vsel %vm7996_vm13, 0, %v2171_v58  ;;  %v11235_v45 = vld [vmem:[#allocation60_spill] sm:$0xff] }
 0x226   :  { %v2558_v10 = vadd.s32 1, %v7974_v21  ;;  %v2292_v12 = vand.u32 2147483647, %v11234_v52  ;;  %v423_v31 = vand.u32 2139095040, %v7763_v15  ;;  %vm2488_vm15 = vweird.f32 %v11203_v60 }
 0x227   :  { %v2140_v1 = vadd.s32 %v7868_v18, %v7866_v63  ;;  %vm5387_vm14 = vcmp.lt.s32.totalorder %v5386_v34, 0  ;;  %v8014_v36 = vsel %vm2488_vm15, nan, %v2498_v6  ;;  %vm2911_vm0 = vcmp.eq.s32.totalorder %v7989_v22, 2 }
 0x228   :  { %v2155_v4 = vsel %vm5387_vm14, 0, %v5386_v34  ;;  %v2555_v62 = vmul.u32 %v2548_v8, %v2539_v44  ;;  %vm2557_vm2 = vc.u32 %v7992_v11, %v7973_v28  ;;  %vm2908_vm1 = vcmp.eq.s32.totalorder %v7989_v22, 0  ;;  %v11236_v8 = vld [vmem:[#allocation54_spill] sm:$0xff] }
 0x229   :  { %v2156_v35 = vsub.s32 32, %v2155_v4  ;;  %v2160_v13 = vsub.s32 4294967266, %v2155_v4  ;;  %v8020_v20 = vadd.s32 3, %v2173_v57  ;;  %v2559_v60 = vsel %vm2557_vm2, %v2558_v10, %v7974_v21 }
 0x22a   :  { %vm2907_vm3 = vcmp.lt.s32.totalorder %v7989_v22, 2  ;;  %v2560_v63 = vadd.s32 %v2559_v60, %v2555_v62  ;;  %v8026_v18 = vand.u32 8388607, %v2292_v12  ;;  %v2308_v49 = vshrl.u32 %v11123_v39, %v11235_v45 }
 0x22b   :  { %v2310_v55 = vshrl.u32 %v11127_v51, %v11235_v45  ;;  %vm2904_vm4 = vweird.f32 %v11210_v5  ;;  %v2157_v19 = vshll.u32 %v7943_v61, %v2155_v4  ;;  %v2158_v3 = vshrl.u32 %v2140_v1, %v2156_v35 }
 0x22c   :  { %v2161_v17 = vadd.s32 127, %v2160_v13  ;;  %v2313_v27 = vshrl.u32 %v11128_v50, %v11235_v45  ;;  %v2561_v30 = vadd.s32 536870912, %v2560_v63  ;;  %v2309_v43 = vshll.u32 %v11123_v39, %v11236_v8 }
 0x22d   :  { %v2312_v26 = vshll.u32 %v11127_v51, %v11236_v8  ;;  %v2319_v32 = vshrl.u32 %v11130_v16, %v11235_v45  ;;  %v2159_v29 = vor.u32 %v2158_v3, %v2157_v19  ;;  %v2315_v61 = vshll.u32 %v11128_v50, %v11236_v8  ;;  %v5726_v2 = vpop.eup %5725 }
 0x22e   :  { %v2162_v21 = vshll.u32 %v2161_v17, 23  ;;  %v2316_v25 = vshrl.u32 %v11129_v23, %v11235_v45  ;;  %v2562_v58 = vshrl.u32 %v2561_v30, 30  ;;  %v2300_v54 = vor.u32 8388608, %v8026_v18  ;;  %v5728_v44 = vpop.eup %5727 }
 0x22f   :  { %v2318_v6 = vshll.u32 %v11129_v23, %v11236_v8  ;;  %v2322_v34 = vshrl.u32 %v11131_v40, %v11235_v45  ;;  %v2912_v57 = vxor.u32 2147483648, %v5726_v2  ;;  %v2311_v1 = vor.u32 %v2310_v55, %v2309_v43 }
 0x230   :  { %v2163_v10 = vor.u32 4788187, %v2162_v21  ;;  %v2314_v4 = vor.u32 %v2313_v27, %v2312_v26  ;;  %v2909_v62 = vxor.u32 2147483648, %v5728_v44  ;;  %vm2502_vm5 = vcmp.lt.s32.totalorder %v11227_v14, 0  ;;  %v11237_v27 = vld [vmem:[#allocation25_spill] sm:$0xff] }
 0x231   :  { %v2563_v35 = vshll.u32 %v2562_v58, 30  ;;  %v2320_v13 = vor.u32 %v2319_v32, %v2318_v6  ;;  %v2321_v60 = vshll.u32 %v11130_v16, %v11236_v8  ;;  %v2913_v18 = vsel %vm2911_vm0, %v2912_v57, %v5728_v44 }
 0x232   :  { %v2164_v19 = vand.u32 2147483647, %v2163_v10  ;;  %v2166_v3 = vcvt.s32.f32 %v2159_v29  ;;  %v2317_v17 = vor.u32 %v2316_v25, %v2315_v61  ;;  %v2910_v45 = vsel %vm2908_vm1, %v5726_v2, %v2909_v62 }
 0x233   :  { %v8058_v30 = vsub.s32 %v2560_v63, %v2563_v35  ;;  %v2323_v55 = vor.u32 %v2322_v34, %v2321_v60  ;;  %vm2324_vm6 = vcmp.lt.s32.totalorder %v11237_v27, 1  ;;  %v2914_v43 = vsel %vm2907_vm3, %v2910_v45, %v2913_v18 }
 0x234   :  { %v2167_v26 = vmul.f32 %v2166_v3, %v2164_v19  ;;  %vm2326_vm7 = vcmp.lt.s32.totalorder %v11237_v27, 3  ;;  %vm2327_vm9 = vcmp.lt.s32.totalorder %v11237_v27, 4  ;;  %v2915_v8 = vsel %vm2904_vm4, nan, %v2914_v43 }
 0x235   :  { %v2566_v32 = vsub.s32 0, %v8058_v30  ;;  %v2586_v29 = vsub.s32 4, %v2562_v58  ;;  %v2333_v21 = vsel %vm2327_vm9, %v2320_v13, 920167782  ;;  %v3791_v63 = vpack.c.bf16 %v2915_v8, %v8014_v36 }
 0x236   :  { %v2168_v61 = vxor.u32 2147483648, %v2167_v26  ;;  %v2332_v25 = vsel %vm2324_vm6, %v2311_v1, %v2314_v4  ;;  %v2334_v22 = vsel %vm2326_vm7, %v2317_v17, %v2333_v21  ;;  %v2329_v6 = vsel %vm2327_vm9, %v2317_v17, 2102212464 }
 0x237   :  { %v5401_v2 = vmin.u32 %v2566_v32, %v8058_v30  ;;  %v2336_v5 = vsel %vm2324_vm6, %v2314_v4, %v2317_v17  ;;  %v2337_v34 = vsel %vm2327_vm9, %v2323_v55, 1326507024  ;;  %4064 = vmatprep.subr.bf16.mxu1 %v3791_v63  ;;  %vm2325_vm10 = vcmp.lt.s32.totalorder %v11237_v27, 2 }
 0x238   :  { %v2169_v44 = vsel %vm2086_vm8, %v2168_v61, %v2167_v26  ;;  %v2328_v36 = vsel %vm2324_vm6, %v2308_v49, %v2311_v1  ;;  %v2338_v57 = vsel %vm2326_vm7, %v2320_v13, %v2337_v34  ;;  %v2335_v35 = vsel %vm2325_vm10, %v2332_v25, %v2334_v22  ;;  %v11240_v22 = vld [vmem:[#allocation24_spill] sm:$0xff] }
 0x239   :  { %v2172_v10 = vsel %vm7996_vm13, %v11218_v48, %v2169_v44  ;;  %v2568_v62 = vclz %v5401_v2  ;;  %v2340_v60 = vshll.u32 %v2300_v54, 8  ;;  %v2587_v18 = vsel %vm2502_vm5, %v2586_v29, %v2562_v58  ;;  %v11241_v44 = vld [vmem:[#allocation71_spill] sm:$0xff] }
 0x23a   :  { %5729 = vcosq.f32 %v2172_v10  ;;  %v2330_v19 = vsel %vm2326_vm7, %v2314_v4, %v2329_v6  ;;  %v2339_v49 = vsel %vm2325_vm10, %v2336_v5, %v2338_v57  ;;  %v527_v3 = vand.u32 2139095040, %v7774_v9 }
 0x23b   :  { %5731 = vsinq.f32 %v2172_v10  ;;  %v5402_v1 = vadd.s32 4294967294, %v2568_v62  ;;  %v8094_v13 = vmul.u32.u64.low %v2340_v60, %v2339_v49  ;;  %v8095_v42 = vmul.u32.u64.high %v2340_v60, %v2339_v49, %v8094_v13 }
 0x23c   :  { %vm8100_vm8 = vcmp.le.f32.partialorder %v2500_v33, 0.7853982  ;;  %v8104_v58 = vmul.u32.u64.low %v2340_v60, %v2335_v35  ;;  %v8105_v17 = vmul.u32.u64.high %v2340_v60, %v2335_v35, %v8104_v58  ;;  %v631_v4 = vand.u32 2139095040, %v7874_v47  ;;  %v11242_v35 = vld [vmem:[#allocation63_spill] sm:$0xff] }
 0x23d   :  { %v735_v45 = vand.u32 2139095040, %v7878_v37  ;;  %vm5403_vm12 = vcmp.lt.s32.totalorder %v5402_v1, 0  ;;  %v2589_v55 = vsel %vm8100_vm8, 0, %v2587_v18  ;;  %v839_v43 = vand.u32 2139095040, %v7884_v41 }
 0x23e   :  { %v2571_v33 = vsel %vm5403_vm12, 0, %v5402_v1  ;;  %v2331_v8 = vsel %vm2325_vm10, %v2328_v36, %v2330_v19  ;;  %v8117_v32 = vand.u32 3, %v8020_v20  ;;  %v2556_v29 = vadd.s32 %v7973_v28, %v7992_v11 }
 0x23f   :  { %v2572_v21 = vsub.s32 32, %v2571_v33  ;;  %v2576_v63 = vsub.s32 4294967266, %v2571_v33  ;;  %v8121_v61 = vadd.s32 3, %v2589_v55  ;;  %vm2349_vm11 = vc.u32 %v8095_v42, %v8104_v58 }
 0x240   :  { %v2350_v25 = vadd.s32 1, %v8105_v17  ;;  %v11043_v2 = vand.u32 2147483647, %v11240_v22  ;;  %v2573_v27 = vshll.u32 %v8058_v30, %v2571_v33  ;;  %v2347_v20 = vmul.u32 %v2340_v60, %v2331_v8 }
 0x241   :  { %v2574_v6 = vshrl.u32 %v2556_v29, %v2572_v21  ;;  %v2577_v5 = vadd.s32 127, %v2576_v63  ;;  %v2726_v28 = vshrl.u32 %v11127_v51, %v11241_v44  ;;  %v2732_v11 = vshrl.u32 %v11129_v23, %v11241_v44 }
 0x242   :  { %v2351_v34 = vsel %vm2349_vm11, %v2350_v25, %v8105_v17  ;;  %v2735_v36 = vshrl.u32 %v11130_v16, %v11241_v44  ;;  %v2734_v30 = vshll.u32 %v11129_v23, %v11242_v35  ;;  %vm2183_vm13 = vcmp.eq.s32.totalorder %v8117_v32, 2 }
 0x243   :  { %v2575_v57 = vor.u32 %v2574_v6, %v2573_v27  ;;  %v2578_v10 = vshll.u32 %v2577_v5, 23  ;;  %v2352_v62 = vadd.s32 %v2351_v34, %v2347_v20  ;;  %v2715_v60 = vand.u32 8388607, %v11043_v2 }
 0x244   :  { %v2729_v18 = vshrl.u32 %v11128_v50, %v11241_v44  ;;  %v2731_v19 = vshll.u32 %v11128_v50, %v11242_v35  ;;  %v2738_v49 = vshrl.u32 %v11131_v40, %v11241_v44  ;;  %vm2180_vm15 = vcmp.eq.s32.totalorder %v8117_v32, 0 }
 0x245   :  { %v2579_v1 = vor.u32 4788187, %v2578_v10  ;;  %v2353_v13 = vadd.s32 536870912, %v2352_v62  ;;  %v2725_v17 = vshll.u32 %v11123_v39, %v11242_v35  ;;  %v2736_v55 = vor.u32 %v2735_v36, %v2734_v30  ;;  %v11243_v36 = vld [vmem:[#allocation69_spill] sm:$0xff] }
 0x246   :  { %v2724_v33 = vshrl.u32 %v11123_v39, %v11241_v44  ;;  %v2728_v8 = vshll.u32 %v11127_v51, %v11242_v35  ;;  %v2733_v29 = vor.u32 %v2732_v11, %v2731_v19  ;;  %v2737_v21 = vshll.u32 %v11130_v16, %v11242_v35 }
 0x247   :  { %v5730_v63 = vpop.eup %5729  ;;  %v2580_v25 = vand.u32 2147483647, %v2579_v1  ;;  %v2582_v27 = vcvt.s32.f32 %v2575_v57  ;;  %v2354_v6 = vshrl.u32 %v2353_v13, 30  ;;  %v2727_v5 = vor.u32 %v2726_v28, %v2725_v17 }
 0x248   :  { %v5732_v20 = vpop.eup %5731  ;;  %v2716_v34 = vor.u32 8388608, %v2715_v60  ;;  %v2730_v10 = vor.u32 %v2729_v18, %v2728_v8  ;;  %v2739_v2 = vor.u32 %v2738_v49, %v2737_v21  ;;  %vm2743_vm14 = vcmp.lt.s32.totalorder %v11243_v36, 4 }
 0x249   :  { %v2184_v30 = vxor.u32 2147483648, %v5730_v63  ;;  %v2583_v44 = vmul.f32 %v2582_v27, %v2580_v25  ;;  %v2355_v26 = vshll.u32 %v2354_v6, 30  ;;  %v2749_v11 = vsel %vm2743_vm14, %v2736_v55, 920167782 }
 0x24a   :  { %v2181_v19 = vxor.u32 2147483648, %v5732_v20  ;;  %vm2740_vm0 = vcmp.lt.s32.totalorder %v11243_v36, 1  ;;  %vm2741_vm2 = vcmp.lt.s32.totalorder %v11243_v36, 2  ;;  %v2745_v28 = vsel %vm2743_vm14, %v2733_v29, 2102212464 }
 0x24b   :  { %v2584_v57 = vxor.u32 2147483648, %v2583_v44  ;;  %v8162_v35 = vsub.s32 %v2352_v62, %v2355_v26  ;;  %vm2742_vm1 = vcmp.lt.s32.totalorder %v11243_v36, 3  ;;  %v2744_v60 = vsel %vm2740_vm0, %v2724_v33, %v2727_v5 }
 0x24c   :  { %v2748_v18 = vsel %vm2740_vm0, %v2727_v5, %v2730_v10  ;;  %v2750_v49 = vsel %vm2742_vm1, %v2733_v29, %v2749_v11  ;;  %v2752_v1 = vsel %vm2740_vm0, %v2730_v10, %v2733_v29  ;;  %v2753_v13 = vsel %vm2743_vm14, %v2739_v2, 1326507024 }
 0x24d   :  { %v2185_v17 = vsel %vm2183_vm13, %v2184_v30, %v5732_v20  ;;  %v2585_v8 = vsel %vm2502_vm5, %v2584_v57, %v2583_v44  ;;  %v2358_v21 = vsub.s32 0, %v8162_v35  ;;  %v2746_v25 = vsel %vm2742_vm1, %v2730_v10, %v2745_v28 }
 0x24e   :  { %v2182_v26 = vsel %vm2180_vm15, %v5730_v63, %v2181_v19  ;;  %v2588_v62 = vsel %vm8100_vm8, %v11227_v14, %v2585_v8  ;;  %v2754_v33 = vsel %vm2742_vm1, %v2736_v55, %v2753_v13  ;;  %v2756_v29 = vshll.u32 %v2716_v34, 8 }
 0x24f   :  { %5733 = vcosq.f32 %v2588_v62  ;;  %v5393_v2 = vmin.u32 %v2358_v21, %v8162_v35  ;;  %v2751_v27 = vsel %vm2741_vm2, %v2748_v18, %v2750_v49  ;;  %v2755_v5 = vsel %vm2741_vm2, %v2752_v1, %v2754_v33  ;;  %v11244_v18 = vld [vmem:[#allocation57_spill] sm:$0xff] }
 0x250   :  { %5735 = vsinq.f32 %v2588_v62  ;;  %v2378_v20 = vsub.s32 4, %v2354_v6  ;;  %v8182_v10 = vmul.u32.u64.low %v2756_v29, %v2755_v5  ;;  %v8183_v30 = vmul.u32.u64.high %v2756_v29, %v2755_v5, %v8182_v10 }
 0x251   :  { %v1047_v63 = vand.u32 2139095040, %v7983_v59  ;;  %vm2179_vm3 = vcmp.lt.s32.totalorder %v8117_v32, 2  ;;  %v8188_v54 = vand.u32 3, %v8121_v61  ;;  %v2360_v55 = vclz %v5393_v2 }
 0x252   :  { %v2186_v34 = vsel %vm2179_vm3, %v2182_v26, %v2185_v17  ;;  %v2747_v44 = vsel %vm2741_vm2, %v2744_v60, %v2746_v25  ;;  %v8192_v11 = vmul.u32.u64.low %v2756_v29, %v2751_v27  ;;  %v8193_v19 = vmul.u32.u64.high %v2756_v29, %v2751_v27, %v8192_v11 }
 0x253   :  { %vm2294_vm4 = vcmp.lt.s32.totalorder %v11234_v52, 0  ;;  %v5394_v57 = vadd.s32 4294967294, %v2360_v55  ;;  %v11044_v49 = vand.u32 2147483647, %v11244_v18  ;;  %v8201_v32 = vshrl.u32 %v423_v31, 23 }
 0x254   :  { %vm2176_vm5 = vweird.f32 %v11218_v48  ;;  %v2348_v61 = vadd.s32 %v8104_v58, %v8095_v42  ;;  %v8208_v36 = vsel %vm2294_vm4, %v2378_v20, %v2354_v6  ;;  %v2763_v1 = vmul.u32 %v2756_v29, %v2747_v44 }
 0x255   :  { %v8210_v60 = vsel %vm2176_vm5, nan, %v2186_v34  ;;  %vm5395_vm6 = vcmp.lt.s32.totalorder %v5394_v57, 0  ;;  %vm2765_vm7 = vc.u32 %v8183_v30, %v8192_v11  ;;  %vm2599_vm9 = vcmp.eq.s32.totalorder %v8188_v54, 2 }
 0x256   :  { %v2363_v31 = vsel %vm5395_vm6, 0, %v5394_v57  ;;  %v2766_v13 = vadd.s32 1, %v8193_v19  ;;  %v1373_v48 = vshll.u32 %v11123_v39, %v6950_v24  ;;  %v1374_v42 = vshrl.u32 %v11127_v51, %v7172_v7 }
 0x257   :  { %vm2596_vm10 = vcmp.eq.s32.totalorder %v8188_v54, 0  ;;  %v2364_v58 = vsub.s32 32, %v2363_v31  ;;  %v2368_v6 = vsub.s32 4294967266, %v2363_v31  ;;  %v1363_v17 = vand.u32 8388607, %v11044_v49 }
 0x258   :  { %v1377_v8 = vshrl.u32 %v11128_v50, %v7172_v7  ;;  %vm2595_vm8 = vcmp.lt.s32.totalorder %v8188_v54, 2  ;;  %v2767_v21 = vsel %vm2765_vm7, %v2766_v13, %v8193_v19  ;;  %v1380_v25 = vshrl.u32 %v11129_v23, %v7172_v7 }
 0x259   :  { %v1382_v26 = vshll.u32 %v11129_v23, %v6950_v24  ;;  %v1383_v62 = vshrl.u32 %v11130_v16, %v7172_v7  ;;  %vm2592_vm12 = vweird.f32 %v11227_v14  ;;  %v2365_v33 = vshll.u32 %v8162_v35, %v2363_v31 }
 0x25a   :  { %v2366_v29 = vshrl.u32 %v2348_v61, %v2364_v58  ;;  %v2369_v2 = vadd.s32 127, %v2368_v6  ;;  %v2768_v27 = vadd.s32 %v2767_v21, %v2763_v1  ;;  %v1375_v5 = vor.u32 %v1374_v42, %v1373_v48 }
 0x25b   :  { %v1376_v20 = vshll.u32 %v11127_v51, %v6950_v24  ;;  %v1379_v10 = vshll.u32 %v11128_v50, %v6950_v24  ;;  %v1384_v55 = vor.u32 %v1383_v62, %v1382_v26  ;;  %v1364_v57 = vor.u32 8388608, %v1363_v17 }
 0x25c   :  { %v2367_v34 = vor.u32 %v2366_v29, %v2365_v33  ;;  %v2370_v44 = vshll.u32 %v2369_v2, 23  ;;  %v2769_v19 = vadd.s32 536870912, %v2768_v27  ;;  %v5734_v13 = vpop.eup %5733  ;;  %v1385_v35 = vshll.u32 %v11130_v16, %v6950_v24 }
 0x25d   :  { %v1378_v49 = vor.u32 %v1377_v8, %v1376_v20  ;;  %v1381_v28 = vor.u32 %v1380_v25, %v1379_v10  ;;  %v1386_v61 = vshrl.u32 %v11131_v40, %v7172_v7  ;;  %v5736_v1 = vpop.eup %5735  ;;  %v2600_v31 = vxor.u32 2147483648, %v5734_v13 }
 0x25e   :  { %vm8245_vm11 = vcmp.le.f32.partialorder %v2292_v12, 0.7853982  ;;  %v2371_v42 = vor.u32 4788187, %v2370_v44  ;;  %v2770_v58 = vshrl.u32 %v2769_v19, 30  ;;  %vm1391_vm13 = vcmp.lt.s32.totalorder %v6947_v46, 4 }
 0x25f   :  { %v2597_v6 = vxor.u32 2147483648, %v5736_v1  ;;  %vm1388_vm15 = vcmp.lt.s32.totalorder %v6947_v46, 1  ;;  %vm1390_vm14 = vcmp.lt.s32.totalorder %v6947_v46, 3  ;;  %v1397_v24 = vsel %vm1391_vm13, %v1384_v55, 920167782 }
 0x260   :  { %v2601_v17 = vsel %vm2599_vm9, %v2600_v31, %v5736_v1  ;;  %v2372_v8 = vand.u32 2147483647, %v2371_v42  ;;  %v2374_v12 = vcvt.s32.f32 %v2367_v34  ;;  %v2771_v21 = vshll.u32 %v2770_v58, 30 }
 0x261   :  { %v2598_v25 = vsel %vm2596_vm10, %v5734_v13, %v2597_v6  ;;  %v1387_v26 = vor.u32 %v1386_v61, %v1385_v35  ;;  %v1396_v62 = vsel %vm1388_vm15, %v1375_v5, %v1378_v49  ;;  %v1398_v33 = vsel %vm1390_vm14, %v1381_v28, %v1397_v24 }
 0x262   :  { %v2602_v29 = vsel %vm2595_vm8, %v2598_v25, %v2601_v17  ;;  %v2375_v2 = vmul.f32 %v2374_v12, %v2372_v8  ;;  %v8264_v20 = vsub.s32 %v2768_v27, %v2771_v21  ;;  %v1372_v10 = vshrl.u32 %v11123_v39, %v7172_v7 }
 0x263   :  { %v2603_v34 = vsel %vm2592_vm12, nan, %v2602_v29  ;;  %vm1389_vm0 = vcmp.lt.s32.totalorder %v6947_v46, 2  ;;  %v1393_v44 = vsel %vm1391_vm13, %v1381_v28, 2102212464  ;;  %v1400_v19 = vsel %vm1388_vm15, %v1378_v49, %v1381_v28 }
 0x264   :  { %v3788_v54 = vpack.c.bf16 %v2603_v34, %v8210_v60  ;;  %v2376_v13 = vxor.u32 2147483648, %v2375_v2  ;;  %v2774_v27 = vsub.s32 0, %v8264_v20  ;;  %v1399_v35 = vsel %vm1389_vm0, %v1396_v62, %v1398_v33 }
 0x265   :  { %v2794_v7 = vsub.s32 4, %v2770_v58  ;;  %v1392_v14 = vsel %vm1388_vm15, %v1372_v10, %v1375_v5  ;;  %v1401_v61 = vsel %vm1391_vm13, %v1387_v26, 1326507024  ;;  %v1404_v1 = vshll.u32 %v1364_v57, 8 }
 0x266   :  { %3952 = vmatpush1.bf16.msra.mxu0 %v3788_v54  ;;  %v2377_v28 = vsel %vm2294_vm4, %v2376_v13, %v2375_v2  ;;  %v5409_v60 = vmin.u32 %v2774_v27, %v8264_v20  ;;  %v1394_v31 = vsel %vm1390_vm14, %v1378_v49, %v1393_v44  ;;  %v1402_v42 = vsel %vm1390_vm14, %v1384_v55, %v1401_v61 }
 0x267   :  { %v2380_v5 = vsel %vm8245_vm11, %v11234_v52, %v2377_v28  ;;  %v1403_v6 = vsel %vm1389_vm0, %v1400_v19, %v1402_v42  ;;  %v8295_v57 = vmul.u32.u64.low %v1404_v1, %v1399_v35  ;;  %v8296_v24 = vmul.u32.u64.high %v1404_v1, %v1399_v35, %v8295_v57 }
 0x268   :  { %v8301_v17 = vshrl.u32 %v527_v3, 23  ;;  %v8305_v49 = vshrl.u32 %v631_v4, 23  ;;  %v2381_v55 = vsel %vm8245_vm11, 0, %v8208_v36  ;;  %v2776_v8 = vclz %v5409_v60 }
 0x269   :  { %5737 = vcosq.f32 %v2380_v5  ;;  %vm2710_vm2 = vcmp.lt.s32.totalorder %v11240_v22, 0  ;;  %v8311_v12 = vmul.u32.u64.low %v1404_v1, %v1403_v6  ;;  %v8312_v21 = vmul.u32.u64.high %v1404_v1, %v1403_v6, %v8311_v12 }
 0x26a   :  { %5739 = vsinq.f32 %v2380_v5  ;;  %v5410_v25 = vadd.s32 4294967294, %v2776_v8  ;;  %v2795_v3 = vsel %vm2710_vm2, %v2794_v7, %v2770_v58  ;;  %v1395_v4 = vsel %vm1389_vm0, %v1392_v14, %v1394_v31  ;;  %v11252_v7 = vld [vmem:[#allocation49_spill] sm:$0xff] }
 0x26b   :  { %v8320_v26 = vshrl.u32 %v839_v43, 23  ;;  %v8324_v36 = vshrl.u32 %v735_v45, 23  ;;  %v2385_v48 = vadd.s32 3, %v2381_v55  ;;  %v1414_v62 = vadd.s32 1, %v8296_v24 }
 0x26c   :  { %v11247_v33 = vand.u32 2139095040, %v7979_v0  ;;  %v8333_v58 = vshrl.u32 %v1047_v63, 23  ;;  %v11248_v46 = vand.u32 2147483647, %v11240_v22  ;;  %vm5411_vm3 = vcmp.lt.s32.totalorder %v5410_v25, 0 }
 0x26d   :  { %v2779_v45 = vsel %vm5411_vm3, 0, %v5410_v25  ;;  %v1411_v10 = vmul.u32 %v1404_v1, %v1395_v4  ;;  %vm1413_vm4 = vc.u32 %v8312_v21, %v8295_v57  ;;  %v2764_v34 = vadd.s32 %v8192_v11, %v8183_v30 }
 0x26e   :  { %v8329_v29 = vshrl.u32 %v11247_v33, 23  ;;  %vm8337_vm1 = vcmp.le.f32.partialorder %v11248_v46, 0.7853982  ;;  %v2780_v63 = vsub.s32 32, %v2779_v45  ;;  %v2784_v44 = vsub.s32 4294967266, %v2779_v45 }
 0x26f   :  { %v2797_v2 = vsel %vm8337_vm1, 0, %v2795_v3  ;;  %v1415_v19 = vsel %vm1413_vm4, %v1414_v62, %v8296_v24  ;;  %v11251_v54 = vand.u32 2139095040, %v8004_v56  ;;  %v8352_v27 = vand.u32 3, %v2385_v48 }
 0x270   :  { %v1416_v35 = vadd.s32 %v1415_v19, %v1411_v10  ;;  %v1772_v14 = vand.u32 2147483647, %v11252_v7  ;;  %v2781_v61 = vshll.u32 %v8264_v20, %v2779_v45  ;;  %v2782_v1 = vshrl.u32 %v2764_v34, %v2780_v63 }
 0x271   :  { %v8350_v13 = vshrl.u32 %v11251_v54, 23  ;;  %v2785_v28 = vadd.s32 127, %v2784_v44  ;;  %v8356_v60 = vadd.s32 3, %v2797_v2  ;;  %v1790_v11 = vshrl.u32 %v11127_v51, %v6606_v38 }
 0x272   :  { %v1417_v30 = vadd.s32 536870912, %v1416_v35  ;;  %v1796_v31 = vshrl.u32 %v11129_v23, %v6606_v38  ;;  %v1799_v42 = vshrl.u32 %v11130_v16, %v6606_v38  ;;  %v2783_v5 = vor.u32 %v2782_v1, %v2781_v61 }
 0x273   :  { %v2786_v6 = vshll.u32 %v2785_v28, 23  ;;  %v1793_v24 = vshrl.u32 %v11128_v50, %v6606_v38  ;;  %v1798_v20 = vshll.u32 %v11129_v23, %v6530_v53  ;;  %v1779_v8 = vand.u32 8388607, %v1772_v14 }
 0x274   :  { %v1418_v55 = vshrl.u32 %v1417_v30, 30  ;;  %v1795_v12 = vshll.u32 %v11128_v50, %v6530_v53  ;;  %v1802_v25 = vshrl.u32 %v11131_v40, %v6606_v38  ;;  %v1789_v4 = vshll.u32 %v11123_v39, %v6530_v53  ;;  %v11253_v30 = vld [vmem:[#allocation73_spill] sm:$0xff] }
 0x275   :  { %v2787_v3 = vor.u32 4788187, %v2786_v6  ;;  %v1792_v48 = vshll.u32 %v11127_v51, %v6530_v53  ;;  %v1800_v62 = vor.u32 %v1799_v42, %v1798_v20  ;;  %vm2388_vm5 = vcmp.eq.s32.totalorder %v8352_v27, 0 }
 0x276   :  { %vm2391_vm6 = vcmp.eq.s32.totalorder %v8352_v27, 2  ;;  %v1419_v33 = vshll.u32 %v1418_v55, 30  ;;  %v1788_v46 = vshrl.u32 %v11123_v39, %v6606_v38  ;;  %v1797_v45 = vor.u32 %v1796_v31, %v1795_v12  ;;  %v5738_v10 = vpop.eup %5737 }
 0x277   :  { %v1801_v2 = vshll.u32 %v11130_v16, %v6530_v53  ;;  %v2788_v34 = vand.u32 2147483647, %v2787_v3  ;;  %v2790_v63 = vcvt.s32.f32 %v2783_v5  ;;  %v1791_v44 = vor.u32 %v1790_v11, %v1789_v4  ;;  %v5740_v54 = vpop.eup %5739 }
 0x278   :  { %v1794_v19 = vor.u32 %v1793_v24, %v1792_v48  ;;  %vm1358_vm7 = vcmp.lt.s32.totalorder %v11244_v18, 0  ;;  %v8385_v61 = vsub.s32 %v1416_v35, %v1419_v33  ;;  %v1780_v1 = vor.u32 8388608, %v1779_v8 }
 0x279   :  { %v1803_v28 = vor.u32 %v1802_v25, %v1801_v2  ;;  %vm1807_vm9 = vcmp.lt.s32.totalorder %v11253_v30, 4  ;;  %v2791_v42 = vmul.f32 %v2790_v63, %v2788_v34  ;;  %vm1804_vm10 = vcmp.lt.s32.totalorder %v11253_v30, 1 }
 0x27a   :  { %vm1805_vm8 = vcmp.lt.s32.totalorder %v11253_v30, 2  ;;  %v1813_v53 = vsel %vm1807_vm9, %v1800_v62, 920167782  ;;  %v2392_v38 = vxor.u32 2147483648, %v5738_v10  ;;  %v1422_v11 = vsub.s32 0, %v8385_v61 }
 0x27b   :  { %vm1806_vm12 = vcmp.lt.s32.totalorder %v11253_v30, 3  ;;  %v1809_v35 = vsel %vm1807_vm9, %v1797_v45, 2102212464  ;;  %v2389_v31 = vxor.u32 2147483648, %v5740_v54  ;;  %v2792_v5 = vxor.u32 2147483648, %v2791_v42 }
 0x27c   :  { %v1812_v6 = vsel %vm1804_vm10, %v1791_v44, %v1794_v19  ;;  %v1814_v24 = vsel %vm1806_vm12, %v1797_v45, %v1813_v53  ;;  %v5357_v20 = vmin.u32 %v1422_v11, %v8385_v61  ;;  %v1442_v8 = vsub.s32 4, %v1418_v55 }
 0x27d   :  { %v1816_v12 = vsel %vm1804_vm10, %v1794_v19, %v1797_v45  ;;  %v1817_v25 = vsel %vm1807_vm9, %v1803_v28, 1326507024  ;;  %v2793_v3 = vsel %vm2710_vm2, %v2792_v5, %v2791_v42  ;;  %v1808_v4 = vsel %vm1804_vm10, %v1788_v46, %v1791_v44 }
 0x27e   :  { %v1810_v48 = vsel %vm1806_vm12, %v1794_v19, %v1809_v35  ;;  %v1818_v33 = vsel %vm1806_vm12, %v1800_v62, %v1817_v25  ;;  %v2796_v2 = vsel %vm8337_vm1, %v11240_v22, %v2793_v3  ;;  %v1424_v34 = vclz %v5357_v20  ;;  %v11257_v35 = vld [vmem:[#allocation59_spill] sm:$0xff] }
 0x27f   :  { %v1815_v63 = vsel %vm1805_vm8, %v1812_v6, %v1814_v24  ;;  %v1820_v45 = vshll.u32 %v1780_v1, 8  ;;  %v2390_v28 = vsel %vm2388_vm5, %v5738_v10, %v2389_v31  ;;  %v2393_v42 = vsel %vm2391_vm6, %v2392_v38, %v5740_v54 }
 0x280   :  { %5741 = vcosq.f32 %v2796_v2  ;;  %v1819_v46 = vsel %vm1805_vm8, %v1816_v12, %v1818_v33  ;;  %v5358_v62 = vadd.s32 4294967294, %v1424_v34  ;;  %vm2387_vm11 = vcmp.lt.s32.totalorder %v8352_v27, 2 }
 0x281   :  { %5743 = vsinq.f32 %v2796_v2  ;;  %v8418_v44 = vmul.u32.u64.low %v1820_v45, %v1819_v46  ;;  %v8419_v43 = vmul.u32.u64.high %v1820_v45, %v1819_v46, %v8418_v44  ;;  %v8424_v19 = vsel %vm1358_vm7, %v1442_v8, %v1418_v55 }
 0x282   :  { %v8426_v1 = vmul.u32.u64.low %v1820_v45, %v1815_v63  ;;  %v8427_v10 = vmul.u32.u64.high %v1820_v45, %v1815_v63, %v8426_v1  ;;  %v2394_v54 = vsel %vm2387_vm11, %v2390_v28, %v2393_v42  ;;  %v8431_v53 = vand.u32 3, %v8356_v60  ;;  %v11259_v63 = vld [vmem:[#allocation13_spill] sm:$0xff] }
 0x283   :  { %vm5359_vm13 = vcmp.lt.s32.totalorder %v5358_v62, 0  ;;  %v1811_v38 = vsel %vm1805_vm8, %v1808_v4, %v1810_v48  ;;  %vm2384_vm15 = vweird.f32 %v11234_v52  ;;  %v11254_v27 = vand.u32 2147483647, %v11244_v18 }
 0x284   :  { %v1427_v55 = vsel %vm5359_vm13, 0, %v5358_v62  ;;  %v11045_v31 = vand.u32 2147483647, %v11257_v35  ;;  %v1412_v5 = vadd.s32 %v8295_v57, %v8312_v21  ;;  %v8448_v24 = vsel %vm2384_vm15, nan, %v2394_v54  ;;  %v11258_v21 = vld [vmem:[#allocation43_spill] sm:$0xff] }
 0x285   :  { %vm8438_vm14 = vcmp.le.f32.partialorder %v11254_v27, 0.7853982  ;;  %v1428_v60 = vsub.s32 32, %v1427_v55  ;;  %v1432_v6 = vsub.s32 4294967266, %v1427_v55  ;;  %v1827_v52 = vmul.u32 %v1820_v45, %v1811_v38 }
 0x286   :  { %v1445_v30 = vsel %vm8438_vm14, 0, %v8424_v19  ;;  %vm1829_vm0 = vc.u32 %v8419_v43, %v8426_v1  ;;  %v1830_v20 = vadd.s32 1, %v8427_v10  ;;  %vm2807_vm2 = vcmp.eq.s32.totalorder %v8431_v53, 2 }
 0x287   :  { %v1429_v8 = vshll.u32 %v8385_v61, %v1427_v55  ;;  %v1430_v12 = vshrl.u32 %v1412_v5, %v1428_v60  ;;  %v1433_v57 = vadd.s32 127, %v1432_v6  ;;  %v1582_v25 = vshrl.u32 %v11127_v51, %v11258_v21 }
 0x288   :  { %vm2804_vm1 = vcmp.eq.s32.totalorder %v8431_v53, 0  ;;  %v1831_v3 = vsel %vm1829_vm0, %v1830_v20, %v8427_v10  ;;  %v1571_v4 = vand.u32 8388607, %v11045_v31  ;;  %v1585_v48 = vshrl.u32 %v11128_v50, %v11258_v21  ;;  %v11260_v31 = vld [vmem:[#allocation28_spill] sm:$0xff] }
 0x289   :  { %v1591_v33 = vshrl.u32 %v11130_v16, %v11258_v21  ;;  %vm2803_vm3 = vcmp.lt.s32.totalorder %v8431_v53, 2  ;;  %v1431_v61 = vor.u32 %v1430_v12, %v1429_v8  ;;  %v1434_v2 = vshll.u32 %v1433_v57, 23 }
 0x28a   :  { %v1832_v34 = vadd.s32 %v1831_v3, %v1827_v52  ;;  %v1590_v45 = vshll.u32 %v11129_v23, %v11259_v63  ;;  %vm2800_vm4 = vweird.f32 %v11240_v22  ;;  %v1580_v28 = vshrl.u32 %v11123_v39, %v11258_v21 }
 0x28b   :  { %v1581_v42 = vshll.u32 %v11123_v39, %v11259_v63  ;;  %v1588_v46 = vshrl.u32 %v11129_v23, %v11258_v21  ;;  %v1594_v62 = vshrl.u32 %v11131_v40, %v11258_v21  ;;  %v1435_v44 = vor.u32 4788187, %v1434_v2 }
 0x28c   :  { %v1833_v10 = vadd.s32 536870912, %v1832_v34  ;;  %v1584_v54 = vshll.u32 %v11127_v51, %v11259_v63  ;;  %v1592_v38 = vor.u32 %v1591_v33, %v1590_v45  ;;  %v1572_v27 = vor.u32 8388608, %v1571_v4 }
 0x28d   :  { %v1583_v55 = vor.u32 %v1582_v25, %v1581_v42  ;;  %v1587_v5 = vshll.u32 %v11128_v50, %v11259_v63  ;;  %v1593_v60 = vshll.u32 %v11130_v16, %v11259_v63  ;;  %v5742_v6 = vpop.eup %5741  ;;  %v1436_v52 = vand.u32 2147483647, %v1435_v44 }
 0x28e   :  { %v1438_v20 = vcvt.s32.f32 %v1431_v61  ;;  %v1834_v8 = vshrl.u32 %v1833_v10, 30  ;;  %v1586_v12 = vor.u32 %v1585_v48, %v1584_v54  ;;  %v5744_v57 = vpop.eup %5743  ;;  %v2808_v21 = vxor.u32 2147483648, %v5742_v6 }
 0x28f   :  { %v1589_v3 = vor.u32 %v1588_v46, %v1587_v5  ;;  %v1595_v2 = vor.u32 %v1594_v62, %v1593_v60  ;;  %vm1599_vm5 = vcmp.lt.s32.totalorder %v11260_v31, 4  ;;  %v2805_v33 = vxor.u32 2147483648, %v5744_v57 }
 0x290   :  { %v1439_v4 = vmul.f32 %v1438_v20, %v1436_v52  ;;  %v1835_v25 = vshll.u32 %v1834_v8, 30  ;;  %v1605_v45 = vsel %vm1599_vm5, %v1592_v38, 920167782  ;;  %v2809_v63 = vsel %vm2807_vm2, %v2808_v21, %v5744_v57 }
 0x291   :  { %vm1596_vm6 = vcmp.lt.s32.totalorder %v11260_v31, 1  ;;  %vm1597_vm9 = vcmp.lt.s32.totalorder %v11260_v31, 2  ;;  %vm1598_vm10 = vcmp.lt.s32.totalorder %v11260_v31, 3  ;;  %v2806_v48 = vsel %vm2804_vm1, %v5742_v6, %v2805_v33 }
 0x292   :  { %v1440_v61 = vxor.u32 2147483648, %v1439_v4  ;;  %v8493_v42 = vsub.s32 %v1832_v34, %v1835_v25  ;;  %v1604_v46 = vsel %vm1596_vm6, %v1583_v55, %v1586_v12  ;;  %v2810_v62 = vsel %vm2803_vm3, %v2806_v48, %v2809_v63 }
 0x293   :  { %v1606_v44 = vsel %vm1598_vm10, %v1589_v3, %v1605_v45  ;;  %v1608_v10 = vsel %vm1596_vm6, %v1586_v12, %v1589_v3  ;;  %v1609_v54 = vsel %vm1599_vm5, %v1595_v2, 1326507024  ;;  %v2811_v5 = vsel %vm2800_vm4, nan, %v2810_v62 }
 0x294   :  { %v1441_v34 = vsel %vm1358_vm7, %v1440_v61, %v1439_v4  ;;  %v1838_v60 = vsub.s32 0, %v8493_v42  ;;  %v1601_v53 = vsel %vm1599_vm5, %v1589_v3, 2102212464  ;;  %v3790_v6 = vpack.c.bf16 %v2811_v5, %v8448_v24  ;;  %v11263_v61 = vld [vmem:[#allocation53_spill] sm:$0xff]  ;;  %v11265_v5 = vld [vmem:[#allocation79_spill] sm:$0xff] }
 0x295   :  { %v1444_v52 = vsel %vm8438_vm14, %v11244_v18, %v1441_v34  ;;  %v1610_v20 = vsel %vm1598_vm10, %v1592_v38, %v1609_v54  ;;  %v1612_v57 = vshll.u32 %v1572_v27, 8  ;;  %v1858_v21 = vsub.s32 4, %v1834_v8 }
 0x296   :  { %v5373_v22 = vmin.u32 %v1838_v60, %v8493_v42  ;;  %v1607_v2 = vsel %vm1597_vm9, %v1604_v46, %v1606_v44  ;;  %v1611_v33 = vsel %vm1597_vm9, %v1608_v10, %v1610_v20  ;;  %v8524_v3 = vadd.s32 4294967169, %v8201_v32  ;;  %4065 = vmatpush1.bf16.msra.mxu1 %v3790_v6  ;;  %v11264_v10 = vld [vmem:[#allocation76_spill] sm:$0xff] }
 0x297   :  { %v1449_v24 = vadd.s32 3, %v1445_v30  ;;  %v8530_v38 = vmul.u32.u64.low %v1612_v57, %v1611_v33  ;;  %v8531_v27 = vmul.u32.u64.high %v1612_v57, %v1611_v33, %v8530_v38  ;;  %5745 = vcosq.f32 %v1444_v52 }
 0x298   :  { %v1840_v4 = vclz %v5373_v22  ;;  %v1600_v25 = vsel %vm1596_vm6, %v1580_v28, %v1583_v55  ;;  %v1602_v45 = vsel %vm1598_vm10, %v1586_v12, %v1601_v53  ;;  %5747 = vsinq.f32 %v1444_v52 }
 0x299   :  { %vm1774_vm7 = vcmp.lt.s32.totalorder %v11252_v7, 0  ;;  %v8538_v32 = vmul.u32.u64.low %v1612_v57, %v1607_v2  ;;  %v8539_v63 = vmul.u32.u64.high %v1612_v57, %v1607_v2, %v8538_v32  ;;  %v8543_v19 = vadd.s32 4294967169, %v8301_v17 }
 0x29a   :  { %v8546_v11 = vadd.s32 4294967169, %v8305_v49  ;;  %v5374_v30 = vadd.s32 4294967294, %v1840_v4  ;;  %v1859_v28 = vsel %vm1774_vm7, %v1858_v21, %v1834_v8  ;;  %v8551_v55 = vadd.s32 4294967169, %v8320_v26 }
 0x29b   :  { %v8554_v12 = vadd.s32 4294967169, %v8324_v36  ;;  %vm8558_vm8 = vcmp.le.f32.partialorder %v1772_v14, 0.7853982  ;;  %v1603_v17 = vsel %vm1597_vm9, %v1600_v25, %v1602_v45  ;;  %v8564_v49 = vand.u32 3, %v1449_v24 }
 0x29c   :  { %v1828_v8 = vadd.s32 %v8426_v1, %v8419_v43  ;;  %vm5375_vm12 = vcmp.lt.s32.totalorder %v5374_v30, 0  ;;  %vm1621_vm11 = vc.u32 %v8531_v27, %v8538_v32  ;;  %v1861_v36 = vsel %vm8558_vm8, 0, %v1859_v28 }
 0x29d   :  { %v1843_v26 = vsel %vm5375_vm12, 0, %v5374_v30  ;;  %v1622_v14 = vadd.s32 1, %v8539_v63  ;;  %v11047_v46 = vand.u32 2147483647, %v11263_v61  ;;  %v1619_v44 = vmul.u32 %v1612_v57, %v1603_v17 }
 0x29e   :  { %v1844_v62 = vsub.s32 32, %v1843_v26  ;;  %v1848_v31 = vsub.s32 4294967266, %v1843_v26  ;;  %v1997_v54 = vshll.u32 %v11123_v39, %v11264_v10  ;;  %v1845_v43 = vshll.u32 %v8493_v42, %v1843_v26 }
 0x29f   :  { %v1623_v1 = vsel %vm1621_vm11, %v1622_v14, %v8539_v63  ;;  %v1998_v34 = vshrl.u32 %v11127_v51, %v11265_v5  ;;  %v2001_v60 = vshrl.u32 %v11128_v50, %v11265_v5  ;;  %v2007_v20 = vshrl.u32 %v11130_v16, %v11265_v5 }
 0x2a0   :  { %v1846_v53 = vshrl.u32 %v1828_v8, %v1844_v62  ;;  %v1849_v6 = vadd.s32 127, %v1848_v31  ;;  %v1624_v52 = vadd.s32 %v1623_v1, %v1619_v44  ;;  %v1987_v57 = vand.u32 8388607, %v11047_v46  ;;  %v11266_v44 = vld [vmem:[#allocation78_spill] sm:$0xff] }
 0x2a1   :  { %v2000_v42 = vshll.u32 %v11127_v51, %v11264_v10  ;;  %v2004_v22 = vshrl.u32 %v11129_v23, %v11265_v5  ;;  %v2006_v21 = vshll.u32 %v11129_v23, %v11264_v10  ;;  %v2003_v38 = vshll.u32 %v11128_v50, %v11264_v10 }
 0x2a2   :  { %v1847_v2 = vor.u32 %v1846_v53, %v1845_v43  ;;  %v1850_v33 = vshll.u32 %v1849_v6, 23  ;;  %v1625_v24 = vadd.s32 536870912, %v1624_v52  ;;  %v1999_v4 = vor.u32 %v1998_v34, %v1997_v54 }
 0x2a3   :  { %v2002_v25 = vor.u32 %v2001_v60, %v2000_v42  ;;  %v2008_v45 = vor.u32 %v2007_v20, %v2006_v21  ;;  %v2010_v63 = vshrl.u32 %v11131_v40, %v11265_v5  ;;  %v8597_v30 = vadd.s32 4294967169, %v8329_v29 }
 0x2a4   :  { %v1851_v28 = vor.u32 4788187, %v1850_v33  ;;  %v1865_v17 = vadd.s32 3, %v1861_v36  ;;  %v1626_v8 = vshrl.u32 %v1625_v24, 30  ;;  %v5746_v26 = vpop.eup %5745  ;;  %vm1452_vm13 = vcmp.eq.s32.totalorder %v8564_v49, 0 }
 0x2a5   :  { %vm1455_vm15 = vcmp.eq.s32.totalorder %v8564_v49, 2  ;;  %v1996_v14 = vshrl.u32 %v11123_v39, %v11265_v5  ;;  %v2005_v62 = vor.u32 %v2004_v22, %v2003_v38  ;;  %v2009_v31 = vshll.u32 %v11130_v16, %v11264_v10  ;;  %v5748_v54 = vpop.eup %5747 }
 0x2a6   :  { %vm2012_vm14 = vcmp.lt.s32.totalorder %v11266_v44, 1  ;;  %v1852_v29 = vand.u32 2147483647, %v1851_v28  ;;  %v1854_v43 = vcvt.s32.f32 %v1847_v2  ;;  %vm1566_vm0 = vcmp.lt.s32.totalorder %v11257_v35, 0 }
 0x2a7   :  { %v1627_v36 = vshll.u32 %v1626_v8, 30  ;;  %vm2015_vm2 = vcmp.lt.s32.totalorder %v11266_v44, 4  ;;  %v1988_v1 = vor.u32 8388608, %v1987_v57  ;;  %v2011_v34 = vor.u32 %v2010_v63, %v2009_v31 }
 0x2a8   :  { %v2020_v60 = vsel %vm2012_vm14, %v1999_v4, %v2002_v25  ;;  %v2021_v5 = vsel %vm2015_vm2, %v2008_v45, 920167782  ;;  %v1855_v53 = vmul.f32 %v1854_v43, %v1852_v29  ;;  %vm2013_vm1 = vcmp.lt.s32.totalorder %v11266_v44, 2 }
 0x2a9   :  { %v8612_v10 = vsub.s32 %v1624_v52, %v1627_v36  ;;  %vm2014_vm3 = vcmp.lt.s32.totalorder %v11266_v44, 3  ;;  %v1453_v6 = vxor.u32 2147483648, %v5748_v54  ;;  %v1456_v20 = vxor.u32 2147483648, %v5746_v26 }
 0x2aa   :  { %v2017_v42 = vsel %vm2015_vm2, %v2005_v62, 2102212464  ;;  %v2022_v57 = vsel %vm2014_vm3, %v2005_v62, %v2021_v5  ;;  %v1856_v22 = vxor.u32 2147483648, %v1855_v53  ;;  %v2024_v52 = vsel %vm2012_vm14, %v2002_v25, %v2005_v62 }
 0x2ab   :  { %v1630_v21 = vsub.s32 0, %v8612_v10  ;;  %v2023_v2 = vsel %vm2013_vm1, %v2020_v60, %v2022_v57  ;;  %v1650_v33 = vsub.s32 4, %v1626_v8  ;;  %v2016_v24 = vsel %vm2012_vm14, %v1996_v14, %v1999_v4 }
 0x2ac   :  { %v2025_v38 = vsel %vm2015_vm2, %v2011_v34, 1326507024  ;;  %v2028_v63 = vshll.u32 %v1988_v1, 8  ;;  %v1857_v28 = vsel %vm1774_vm7, %v1856_v22, %v1855_v53  ;;  %v2018_v29 = vsel %vm2014_vm3, %v2002_v25, %v2017_v42  ;;  %v11270_v42 = vld [vmem:[#allocation37_spill] sm:$0xff] }
 0x2ad   :  { %v5365_v31 = vmin.u32 %v1630_v21, %v8612_v10  ;;  %v2026_v43 = vsel %vm2014_vm3, %v2008_v45, %v2025_v38  ;;  %v1860_v62 = vsel %vm8558_vm8, %v11252_v7, %v1857_v28  ;;  %v1454_v1 = vsel %vm1452_vm13, %v5746_v26, %v1453_v6 }
 0x2ae   :  { %v2027_v4 = vsel %vm2013_vm1, %v2024_v52, %v2026_v43  ;;  %v8641_v14 = vmul.u32.u64.low %v2028_v63, %v2023_v2  ;;  %v8642_v36 = vmul.u32.u64.high %v2028_v63, %v2023_v2, %v8641_v14  ;;  %v1457_v25 = vsel %vm1455_vm15, %v1456_v20, %v5748_v54 }
 0x2af   :  { %5749 = vcosq.f32 %v1860_v62  ;;  %v1632_v34 = vclz %v5365_v31  ;;  %v1651_v48 = vsel %vm1566_vm0, %v1650_v33, %v1626_v8  ;;  %vm1451_vm4 = vcmp.lt.s32.totalorder %v8564_v49, 2 }
 0x2b0   :  { %5751 = vsinq.f32 %v1860_v62  ;;  %v8651_v45 = vmul.u32.u64.low %v2028_v63, %v2027_v4  ;;  %v8652_v60 = vmul.u32.u64.high %v2028_v63, %v2027_v4, %v8651_v45  ;;  %v11267_v5 = vand.u32 2147483647, %v11257_v35 }
 0x2b1   :  { %v5366_v26 = vadd.s32 4294967294, %v1632_v34  ;;  %v2019_v54 = vsel %vm2013_vm1, %v2016_v24, %v2018_v29  ;;  %v1458_v6 = vsel %vm1451_vm4, %v1454_v1, %v1457_v25  ;;  %v8663_v20 = vand.u32 3, %v1865_v17  ;;  %v11272_v25 = vld [vmem:[#allocation19_spill] sm:$0xff] }
 0x2b2   :  { %vm8657_vm5 = vcmp.le.f32.partialorder %v11267_v5, 0.7853982  ;;  %v2038_v8 = vadd.s32 1, %v8642_v36  ;;  %v11046_v57 = vand.u32 2147483647, %v11270_v42  ;;  %v8668_v22 = vadd.s32 4294967169, %v8333_v58 }
 0x2b3   :  { %vm1448_vm6 = vweird.f32 %v11244_v18  ;;  %vm5367_vm9 = vcmp.lt.s32.totalorder %v5366_v26, 0  ;;  %v1653_v49 = vsel %vm8657_vm5, 0, %v1651_v48  ;;  %v1620_v44 = vadd.s32 %v8538_v32, %v8531_v27  ;;  %v11271_v27 = vld [vmem:[#allocation10_spill] sm:$0xff] }
 0x2b4   :  { %v1635_v21 = vsel %vm5367_vm9, 0, %v5366_v26  ;;  %v2035_v2 = vmul.u32 %v2028_v63, %v2019_v54  ;;  %vm2037_vm10 = vc.u32 %v8652_v60, %v8641_v14  ;;  %v8677_v17 = vsel %vm1448_vm6, nan, %v1458_v6 }
 0x2b5   :  { %v1636_v52 = vsub.s32 32, %v1635_v21  ;;  %v1640_v33 = vsub.s32 4294967266, %v1635_v21  ;;  %v2039_v58 = vsel %vm2037_vm10, %v2038_v8, %v8642_v36  ;;  %vm1871_vm7 = vcmp.eq.s32.totalorder %v8663_v20, 2 }
 0x2b6   :  { %v8681_v18 = vadd.s32 3, %v1653_v49  ;;  %v2040_v24 = vadd.s32 %v2039_v58, %v2035_v2  ;;  %v8685_v38 = vand.u32 8388607, %v11046_v57  ;;  %v8689_v32 = vshrl.u32 %v11123_v39, %v11271_v27  ;;  %v11273_v57 = vld [vmem:[#allocation27_spill] sm:$0xff] }
 0x2b7   :  { %vm1868_vm8 = vcmp.eq.s32.totalorder %v8663_v20, 0  ;;  %v1637_v63 = vshll.u32 %v8612_v10, %v1635_v21  ;;  %v1638_v28 = vshrl.u32 %v1620_v44, %v1636_v52  ;;  %v1641_v31 = vadd.s32 127, %v1640_v33 }
 0x2b8   :  { %v1270_v29 = vshrl.u32 %v11127_v51, %v11271_v27  ;;  %vm1867_vm12 = vcmp.lt.s32.totalorder %v8663_v20, 2  ;;  %v2041_v43 = vadd.s32 536870912, %v2040_v24  ;;  %v1273_v62 = vshrl.u32 %v11128_v50, %v11271_v27 }
 0x2b9   :  { %v1276_v4 = vshrl.u32 %v11129_v23, %v11271_v27  ;;  %v1279_v36 = vshrl.u32 %v11130_v16, %v11271_v27  ;;  %vm1864_vm11 = vweird.f32 %v11252_v7  ;;  %v1639_v10 = vor.u32 %v1638_v28, %v1637_v63 }
 0x2ba   :  { %v1642_v1 = vshll.u32 %v1641_v31, 23  ;;  %v1269_v34 = vshll.u32 %v11123_v39, %v11272_v25  ;;  %v1278_v48 = vshll.u32 %v11129_v23, %v11272_v25  ;;  %v2042_v45 = vshrl.u32 %v2041_v43, 30 }
 0x2bb   :  { %v1272_v5 = vshll.u32 %v11127_v51, %v11272_v25  ;;  %v1275_v26 = vshll.u32 %v11128_v50, %v11272_v25  ;;  %v1282_v54 = vshrl.u32 %v11131_v40, %v11271_v27  ;;  %v1260_v8 = vor.u32 8388608, %v8685_v38 }
 0x2bc   :  { %v1643_v6 = vor.u32 4788187, %v1642_v1  ;;  %v1271_v49 = vor.u32 %v1270_v29, %v1269_v34  ;;  %v1280_v44 = vor.u32 %v1279_v36, %v1278_v48  ;;  %v5750_v21 = vpop.eup %5749  ;;  %v2043_v2 = vshll.u32 %v2042_v45, 30 }
 0x2bd   :  { %v1274_v52 = vor.u32 %v1273_v62, %v1272_v5  ;;  %v1277_v33 = vor.u32 %v1276_v4, %v1275_v26  ;;  %v1281_v58 = vshll.u32 %v11130_v16, %v11272_v25  ;;  %v5752_v63 = vpop.eup %5751  ;;  %v1872_v28 = vxor.u32 2147483648, %v5750_v21 }
 0x2be   :  { %v1644_v31 = vand.u32 2147483647, %v1643_v6  ;;  %v1646_v43 = vcvt.s32.f32 %v1639_v10  ;;  %vm1284_vm13 = vcmp.lt.s32.totalorder %v11273_v57, 1  ;;  %v1869_v46 = vxor.u32 2147483648, %v5752_v63 }
 0x2bf   :  { %vm1982_vm15 = vcmp.lt.s32.totalorder %v11263_v61, 0  ;;  %v8718_v27 = vsub.s32 %v2040_v24, %v2043_v2  ;;  %v1283_v38 = vor.u32 %v1282_v54, %v1281_v58  ;;  %vm1287_vm14 = vcmp.lt.s32.totalorder %v11273_v57, 4 }
 0x2c0   :  { %v1873_v29 = vsel %vm1871_vm7, %v1872_v28, %v5752_v63  ;;  %v1647_v62 = vmul.f32 %v1646_v43, %v1644_v31  ;;  %vm1285_vm2 = vcmp.lt.s32.totalorder %v11273_v57, 2  ;;  %v1293_v4 = vsel %vm1287_vm14, %v1280_v44, 920167782 }
 0x2c1   :  { %v1870_v36 = vsel %vm1868_vm8, %v5750_v21, %v1869_v46  ;;  %v2046_v10 = vsub.s32 0, %v8718_v27  ;;  %vm1286_vm1 = vcmp.lt.s32.totalorder %v11273_v57, 3  ;;  %v1289_v24 = vsel %vm1287_vm14, %v1277_v33, 2102212464 }
 0x2c2   :  { %v1874_v1 = vsel %vm1867_vm12, %v1870_v36, %v1873_v29  ;;  %v1648_v25 = vxor.u32 2147483648, %v1647_v62  ;;  %v1292_v34 = vsel %vm1284_vm13, %v1271_v49, %v1274_v52  ;;  %v1294_v48 = vsel %vm1286_vm1, %v1277_v33, %v1293_v4 }
 0x2c3   :  { %v1875_v46 = vsel %vm1864_vm11, nan, %v1874_v1  ;;  %v5381_v5 = vmin.u32 %v2046_v10, %v8718_v27  ;;  %v1296_v26 = vsel %vm1284_vm13, %v1274_v52, %v1277_v33  ;;  %v1297_v54 = vsel %vm1287_vm14, %v1283_v38, 1326507024  ;;  %v11277_v1 = vld [vmem:[#allocation31_spill] sm:$0xff] }
 0x2c4   :  { %v3785_v20 = vpack.c.bf16 %v1875_v46, %v8677_v17  ;;  %v1649_v6 = vsel %vm1566_vm0, %v1648_v25, %v1647_v62  ;;  %v2066_v21 = vsub.s32 4, %v2042_v45  ;;  %v1298_v2 = vsel %vm1286_vm1, %v1280_v44, %v1297_v54 }
 0x2c5   :  { %v1652_v7 = vsel %vm8657_vm5, %v11257_v35, %v1649_v6  ;;  %v2048_v58 = vclz %v5381_v5  ;;  %v1295_v33 = vsel %vm1285_vm2, %v1292_v34, %v1294_v48  ;;  %v1300_v63 = vshll.u32 %v1260_v8, 8  ;;  %v11278_v5 = vld [vmem:[#allocation74_spill] sm:$0xff] }
 0x2c6   :  { %3953 = vmatprep.subr.bf16.mxu0 %v3785_v20  ;;  %5753 = vcosq.f32 %v1652_v7  ;;  %v1288_v17 = vsel %vm1284_vm13, %v8689_v32, %v1271_v49  ;;  %v1290_v28 = vsel %vm1286_vm1, %v1274_v52, %v1289_v24  ;;  %v1299_v44 = vsel %vm1285_vm2, %v1296_v26, %v1298_v2  ;;  %v11279_v2 = vld [vmem:[#allocation26_spill] sm:$0xff] }
 0x2c7   :  { %5755 = vsinq.f32 %v1652_v7  ;;  %v5382_v53 = vadd.s32 4294967294, %v2048_v58  ;;  %v8762_v31 = vmul.u32.u64.low %v1300_v63, %v1299_v44  ;;  %v8763_v43 = vmul.u32.u64.high %v1300_v63, %v1299_v44, %v8762_v31 }
 0x2c8   :  { %v8766_v38 = vadd.s32 4294967169, %v8350_v13  ;;  %v2067_v8 = vsel %vm1982_vm15, %v2066_v21, %v2042_v45  ;;  %v8770_v29 = vmul.u32.u64.low %v1300_v63, %v1295_v33  ;;  %v8771_v62 = vmul.u32.u64.high %v1300_v63, %v1295_v33, %v8770_v29 }
 0x2c9   :  { %v8775_v32 = vadd.s32 1, %v8524_v3  ;;  %v8778_v49 = vadd.s32 1, %v8543_v19  ;;  %vm5383_vm0 = vcmp.lt.s32.totalorder %v5382_v53, 0  ;;  %v1291_v52 = vsel %vm1285_vm2, %v1288_v17, %v1290_v28 }
 0x2ca   :  { %v8783_v13 = vadd.s32 1, %v8546_v11  ;;  %v8786_v4 = vand.u32 3, %v8681_v18  ;;  %v11274_v45 = vand.u32 2147483647, %v11263_v61  ;;  %v2051_v3 = vsel %vm5383_vm0, 0, %v5382_v53 }
 0x2cb   :  { %v2036_v19 = vadd.s32 %v8641_v14, %v8652_v60  ;;  %v2052_v10 = vsub.s32 32, %v2051_v3  ;;  %v2056_v24 = vsub.s32 4294967266, %v2051_v3  ;;  %v1307_v11 = vmul.u32 %v1300_v63, %v1291_v52 }
 0x2cc   :  { %vm8790_vm3 = vcmp.le.f32.partialorder %v11274_v45, 0.7853982  ;;  %vm1309_vm4 = vc.u32 %v8763_v43, %v8770_v29  ;;  %v1310_v18 = vadd.s32 1, %v8771_v62  ;;  %v1668_v25 = vand.u32 2147483647, %v11277_v1 }
 0x2cd   :  { %v2069_v57 = vsel %vm8790_vm3, 0, %v2067_v8  ;;  %v2053_v34 = vshll.u32 %v8718_v27, %v2051_v3  ;;  %v2054_v48 = vshrl.u32 %v2036_v19, %v2052_v10  ;;  %v2057_v46 = vadd.s32 127, %v2056_v24 }
 0x2ce   :  { %v1686_v14 = vshrl.u32 %v11127_v51, %v11278_v5  ;;  %v8805_v60 = vadd.s32 3, %v2069_v57  ;;  %v1311_v26 = vsel %vm1309_vm4, %v1310_v18, %v8771_v62  ;;  %v1689_v54 = vshrl.u32 %v11128_v50, %v11278_v5  ;;  %v11280_v57 = vld [vmem:[#allocation30_spill] sm:$0xff] }
 0x2cf   :  { %v1692_v20 = vshrl.u32 %v11129_v23, %v11278_v5  ;;  %vm1663_vm5 = vcmp.eq.s32.totalorder %v8786_v4, 2  ;;  %v2055_v6 = vor.u32 %v2054_v48, %v2053_v34  ;;  %v2058_v21 = vshll.u32 %v2057_v46, 23 }
 0x2d0   :  { %v1312_v27 = vadd.s32 %v1311_v26, %v1307_v11  ;;  %v1685_v7 = vshll.u32 %v11123_v39, %v11279_v2  ;;  %v1688_v58 = vshll.u32 %v11127_v51, %v11279_v2  ;;  %v1691_v33 = vshll.u32 %v11128_v50, %v11279_v2 }
 0x2d1   :  { %v1694_v63 = vshll.u32 %v11129_v23, %v11279_v2  ;;  %v1695_v17 = vshrl.u32 %v11130_v16, %v11278_v5  ;;  %v2059_v28 = vor.u32 4788187, %v2058_v21  ;;  %v1675_v53 = vand.u32 8388607, %v1668_v25 }
 0x2d2   :  { %v1313_v44 = vadd.s32 536870912, %v1312_v27  ;;  %v1687_v31 = vor.u32 %v1686_v14, %v1685_v7  ;;  %vm1660_vm6 = vcmp.eq.s32.totalorder %v8786_v4, 0  ;;  %v1690_v8 = vor.u32 %v1689_v54, %v1688_v58 }
 0x2d3   :  { %v1693_v62 = vor.u32 %v1692_v20, %v1691_v33  ;;  %v1696_v52 = vor.u32 %v1695_v17, %v1694_v63  ;;  %v1698_v45 = vshrl.u32 %v11131_v40, %v11278_v5  ;;  %v5754_v3 = vpop.eup %5753  ;;  %v2060_v19 = vand.u32 2147483647, %v2059_v28 }
 0x2d4   :  { %v2062_v10 = vcvt.s32.f32 %v2055_v6  ;;  %v1314_v24 = vshrl.u32 %v1313_v44, 30  ;;  %vm1703_vm9 = vcmp.lt.s32.totalorder %v11280_v57, 4  ;;  %v5756_v11 = vpop.eup %5755  ;;  %v1664_v18 = vxor.u32 2147483648, %v5754_v3 }
 0x2d5   :  { %vm1254_vm10 = vcmp.lt.s32.totalorder %v11270_v42, 0  ;;  %v1684_v34 = vshrl.u32 %v11123_v39, %v11278_v5  ;;  %v1697_v48 = vshll.u32 %v11130_v16, %v11279_v2  ;;  %v1709_v46 = vsel %vm1703_vm9, %v1696_v52, 920167782 }
 0x2d6   :  { %v2063_v14 = vmul.f32 %v2062_v10, %v2060_v19  ;;  %v1315_v26 = vshll.u32 %v1314_v24, 30  ;;  %vm1700_vm7 = vcmp.lt.s32.totalorder %v11280_v57, 1  ;;  %vm1702_vm8 = vcmp.lt.s32.totalorder %v11280_v57, 3 }
 0x2d7   :  { %v1676_v54 = vor.u32 8388608, %v1675_v53  ;;  %v1699_v20 = vor.u32 %v1698_v45, %v1697_v48  ;;  %v1708_v6 = vsel %vm1700_vm7, %v1687_v31, %v1690_v8  ;;  %v1710_v5 = vsel %vm1702_vm8, %v1693_v62, %v1709_v46 }
 0x2d8   :  { %v1661_v21 = vxor.u32 2147483648, %v5756_v11  ;;  %v2064_v7 = vxor.u32 2147483648, %v2063_v14  ;;  %v8842_v2 = vsub.s32 %v1312_v27, %v1315_v26  ;;  %v1705_v58 = vsel %vm1703_vm9, %v1693_v62, 2102212464 }
 0x2d9   :  { %v1665_v33 = vsel %vm1663_vm5, %v1664_v18, %v5756_v11  ;;  %v1338_v63 = vsub.s32 4, %v1314_v24  ;;  %vm1701_vm12 = vcmp.lt.s32.totalorder %v11280_v57, 2  ;;  %v1704_v17 = vsel %vm1700_vm7, %v1684_v34, %v1687_v31 }
 0x2da   :  { %v2065_v28 = vsel %vm1982_vm15, %v2064_v7, %v2063_v14  ;;  %v1318_v44 = vsub.s32 0, %v8842_v2  ;;  %v1711_v27 = vsel %vm1701_vm12, %v1708_v6, %v1710_v5  ;;  %v1712_v53 = vsel %vm1700_vm7, %v1690_v8, %v1693_v62 }
 0x2db   :  { %v2068_v45 = vsel %vm8790_vm3, %v11263_v61, %v2065_v28  ;;  %v1706_v19 = vsel %vm1702_vm8, %v1690_v8, %v1705_v58  ;;  %v1713_v31 = vsel %vm1703_vm9, %v1699_v20, 1326507024  ;;  %v1716_v10 = vshll.u32 %v1676_v54, 8 }
 0x2dc   :  { %v1662_v11 = vsel %vm1660_vm6, %v5754_v3, %v1661_v21  ;;  %5757 = vcosq.f32 %v2068_v45  ;;  %v5353_v18 = vmin.u32 %v1318_v44, %v8842_v2  ;;  %v1714_v62 = vsel %vm1702_vm8, %v1696_v52, %v1713_v31  ;;  %v11284_v21 = vld [vmem:[#allocation38_spill] sm:$0xff]  ;;  %v11285_v44 = vld [vmem:[#allocation39_spill] sm:$0xff] }
 0x2dd   :  { %5759 = vsinq.f32 %v2068_v45  ;;  %v1715_v36 = vsel %vm1701_vm12, %v1712_v53, %v1714_v62  ;;  %v8872_v34 = vmul.u32.u64.low %v1716_v10, %v1711_v27  ;;  %v8873_v48 = vmul.u32.u64.high %v1716_v10, %v1711_v27, %v8872_v34 }
 0x2de   :  { %vm535_vm11 = vcmp.gt.s32.totalorder %v8778_v49, 0  ;;  %v8878_v8 = vadd.s32 1, %v8554_v12  ;;  %v1320_v3 = vclz %v5353_v18  ;;  %v1339_v46 = vsel %vm1254_vm10, %v1338_v63, %v1314_v24  ;;  %v11286_v18 = vld [vmem:[#allocation12_spill] sm:$0xff] }
 0x2df   :  { %vm1659_vm13 = vcmp.lt.s32.totalorder %v8786_v4, 2  ;;  %v8884_v52 = vand.u32 3, %v8805_v60  ;;  %v8886_v14 = vmul.u32.u64.low %v1716_v10, %v1715_v36  ;;  %v8887_v26 = vmul.u32.u64.high %v1716_v10, %v1715_v36, %v8886_v14 }
 0x2e0   :  { %v1666_v54 = vsel %vm1659_vm13, %v1662_v11, %v1665_v33  ;;  %v11281_v20 = vand.u32 2147483647, %v11270_v42  ;;  %v5354_v12 = vadd.s32 4294967294, %v1320_v3  ;;  %v1707_v5 = vsel %vm1701_vm12, %v1704_v17, %v1706_v19 }
 0x2e1   :  { %v8898_v24 = vadd.s32 1, %v8597_v30  ;;  %v1726_v60 = vadd.s32 1, %v8873_v48  ;;  %v11048_v7 = vand.u32 2147483647, %v11284_v21  ;;  %v8907_v58 = vsel %vm535_vm11, %v8778_v49, 0 }
 0x2e2   :  { %vm8891_vm15 = vcmp.le.f32.partialorder %v11281_v20, 0.7853982  ;;  %vm1656_vm14 = vweird.f32 %v11257_v35  ;;  %v1308_v57 = vadd.s32 %v8770_v29, %v8763_v43  ;;  %vm5355_vm2 = vcmp.lt.s32.totalorder %v5354_v12, 0 }
 0x2e3   :  { %v1341_v4 = vsel %vm8891_vm15, 0, %v1339_v46  ;;  %v8912_v30 = vsel %vm1656_vm14, nan, %v1666_v54  ;;  %vm2079_vm1 = vcmp.eq.s32.totalorder %v8884_v52, 2  ;;  %v1323_v33 = vsel %vm5355_vm2, 0, %v5354_v12 }
 0x2e4   :  { %v1723_v63 = vmul.u32 %v1716_v10, %v1707_v5  ;;  %vm1725_vm0 = vc.u32 %v8887_v26, %v8872_v34  ;;  %vm2076_vm3 = vcmp.eq.s32.totalorder %v8884_v52, 0  ;;  %v1324_v17 = vsub.s32 32, %v1323_v33 }
 0x2e5   :  { %v1328_v49 = vsub.s32 4294967266, %v1323_v33  ;;  %v8918_v28 = vadd.s32 3, %v1341_v4  ;;  %v1727_v35 = vsel %vm1725_vm0, %v1726_v60, %v8873_v48  ;;  %vm2075_vm4 = vcmp.lt.s32.totalorder %v8884_v52, 2 }
 0x2e6   :  { %v1728_v43 = vadd.s32 %v1727_v35, %v1723_v63  ;;  %v8924_v29 = vand.u32 8388607, %v11048_v7  ;;  %v1476_v27 = vshrl.u32 %v11123_v39, %v11285_v44  ;;  %v1478_v53 = vshrl.u32 %v11127_v51, %v11285_v44 }
 0x2e7   :  { %vm2072_vm5 = vweird.f32 %v11263_v61  ;;  %v1325_v45 = vshll.u32 %v8842_v2, %v1323_v33  ;;  %v1326_v19 = vshrl.u32 %v1308_v57, %v1324_v17  ;;  %v1329_v31 = vadd.s32 127, %v1328_v49 }
 0x2e8   :  { %v1481_v10 = vshrl.u32 %v11128_v50, %v11285_v44  ;;  %v1729_v11 = vadd.s32 536870912, %v1728_v43  ;;  %v1477_v62 = vshll.u32 %v11123_v39, %v11286_v18  ;;  %v1480_v36 = vshll.u32 %v11127_v51, %v11286_v18 }
 0x2e9   :  { %v1487_v48 = vshrl.u32 %v11130_v16, %v11285_v44  ;;  %v1327_v3 = vor.u32 %v1326_v19, %v1325_v45  ;;  %v1330_v46 = vshll.u32 %v1329_v31, 23  ;;  %v1483_v2 = vshll.u32 %v11128_v50, %v11286_v18  ;;  %v5758_v54 = vpop.eup %5757 }
 0x2ea   :  { %v1484_v14 = vshrl.u32 %v11129_v23, %v11285_v44  ;;  %v1730_v20 = vshrl.u32 %v1729_v11, 30  ;;  %v1468_v12 = vor.u32 8388608, %v8924_v29  ;;  %v1486_v5 = vshll.u32 %v11129_v23, %v11286_v18  ;;  %v5760_v60 = vpop.eup %5759 }
 0x2eb   :  { %v1490_v4 = vshrl.u32 %v11131_v40, %v11285_v44  ;;  %v2080_v57 = vxor.u32 2147483648, %v5758_v54  ;;  %v1331_v33 = vor.u32 4788187, %v1330_v46  ;;  %v1479_v63 = vor.u32 %v1478_v53, %v1477_v62  ;;  %v11287_v62 = vld [vmem:[#allocation29_spill] sm:$0xff] }
 0x2ec   :  { %v1482_v17 = vor.u32 %v1481_v10, %v1480_v36  ;;  %v2077_v49 = vxor.u32 2147483648, %v5760_v60  ;;  %vm1670_vm6 = vcmp.lt.s32.totalorder %v11277_v1, 0  ;;  %v1731_v35 = vshll.u32 %v1730_v20, 30 }
 0x2ed   :  { %v1488_v45 = vor.u32 %v1487_v48, %v1486_v5  ;;  %v1489_v19 = vshll.u32 %v11130_v16, %v11286_v18  ;;  %v2081_v29 = vsel %vm2079_vm1, %v2080_v57, %v5760_v60  ;;  %v1332_v31 = vand.u32 2147483647, %v1331_v33 }
 0x2ee   :  { %v1334_v11 = vcvt.s32.f32 %v1327_v3  ;;  %v1485_v7 = vor.u32 %v1484_v14, %v1483_v2  ;;  %vm951_vm9 = vcmp.gt.s32.totalorder %v8898_v24, 0  ;;  %v2078_v44 = vsel %vm2076_vm3, %v5758_v54, %v2077_v49 }
 0x2ef   :  { %v8957_v53 = vsub.s32 %v1728_v43, %v1731_v35  ;;  %v1491_v10 = vor.u32 %v1490_v4, %v1489_v19  ;;  %vm1492_vm7 = vcmp.lt.s32.totalorder %v11287_v62, 1  ;;  %v2082_v36 = vsel %vm2075_vm4, %v2078_v44, %v2081_v29 }
 0x2f0   :  { %v1335_v18 = vmul.f32 %v1334_v11, %v1332_v31  ;;  %vm1494_vm8 = vcmp.lt.s32.totalorder %v11287_v62, 3  ;;  %vm1495_vm12 = vcmp.lt.s32.totalorder %v11287_v62, 4  ;;  %v2083_v48 = vsel %vm2072_vm5, nan, %v2082_v36 }
 0x2f1   :  { %v1734_v3 = vsub.s32 0, %v8957_v53  ;;  %v1754_v46 = vsub.s32 4, %v1730_v20  ;;  %v1501_v2 = vsel %vm1495_vm12, %v1488_v45, 920167782  ;;  %v3787_v43 = vpack.c.bf16 %v2083_v48, %v8912_v30 }
 0x2f2   :  { %v1336_v14 = vxor.u32 2147483648, %v1335_v18  ;;  %v1500_v54 = vsel %vm1492_vm7, %v1479_v63, %v1482_v17  ;;  %v1502_v52 = vsel %vm1494_vm8, %v1485_v7, %v1501_v2  ;;  %v1497_v4 = vsel %vm1495_vm12, %v1485_v7, 2102212464 }
 0x2f3   :  { %v5369_v5 = vmin.u32 %v1734_v3, %v8957_v53  ;;  %v1504_v61 = vsel %vm1492_vm7, %v1482_v17, %v1485_v7  ;;  %v1505_v60 = vsel %vm1495_vm12, %v1491_v10, 1326507024  ;;  %4066 = vmatprep.subr.bf16.mxu1 %v3787_v43  ;;  %vm1493_vm11 = vcmp.lt.s32.totalorder %v11287_v62, 2  ;;  %v11290_v43 = vld [vmem:[#allocation32_spill] sm:$0xff] }
 0x2f4   :  { %v1337_v57 = vsel %vm1254_vm10, %v1336_v14, %v1335_v18  ;;  %v1496_v30 = vsel %vm1492_vm7, %v1476_v27, %v1479_v63  ;;  %v1506_v33 = vsel %vm1494_vm8, %v1488_v45, %v1505_v60  ;;  %v1503_v7 = vsel %vm1493_vm11, %v1500_v54, %v1502_v52 }
 0x2f5   :  { %v1340_v49 = vsel %vm8891_vm15, %v11270_v42, %v1337_v57  ;;  %v1736_v35 = vclz %v5369_v5  ;;  %v1508_v19 = vshll.u32 %v1468_v12, 8  ;;  %v1755_v29 = vsel %vm1670_vm6, %v1754_v46, %v1730_v20 }
 0x2f6   :  { %5761 = vcosq.f32 %v1340_v49  ;;  %v1498_v31 = vsel %vm1494_vm8, %v1482_v17, %v1497_v4  ;;  %v1507_v27 = vsel %vm1493_vm11, %v1504_v61, %v1506_v33  ;;  %v8997_v11 = vadd.s32 1, %v8551_v55  ;;  %v11291_v4 = vld [vmem:[#allocation77_spill] sm:$0xff]  ;;  %v11292_v33 = vld [vmem:[#allocation18_spill] sm:$0xff] }
 0x2f7   :  { %5763 = vsinq.f32 %v1340_v49  ;;  %v5370_v63 = vadd.s32 4294967294, %v1736_v35  ;;  %v8993_v45 = vmul.u32.u64.low %v1508_v19, %v1507_v27  ;;  %v8994_v6 = vmul.u32.u64.high %v1508_v19, %v1507_v27, %v8993_v45 }
 0x2f8   :  { %vm9001_vm10 = vcmp.le.f32.partialorder %v1668_v25, 0.7853982  ;;  %v9005_v20 = vmul.u32.u64.low %v1508_v19, %v1503_v7  ;;  %v9006_v44 = vmul.u32.u64.high %v1508_v19, %v1503_v7, %v9005_v20  ;;  %v9010_v17 = vadd.s32 1, %v8668_v22 }
 0x2f9   :  { %v9013_v10 = vadd.s32 1, %v8766_v38  ;;  %vm5371_vm13 = vcmp.lt.s32.totalorder %v5370_v63, 0  ;;  %v1757_v55 = vsel %vm9001_vm10, 0, %v1755_v29  ;;  %v9020_v25 = vsel %vm951_vm9, %v8898_v24, 0 }
 0x2fa   :  { %v9023_v36 = vand.u32 31, %v8907_v58  ;;  %v1739_v18 = vsel %vm5371_vm13, 0, %v5370_v63  ;;  %v1499_v22 = vsel %vm1493_vm11, %v1496_v30, %v1498_v31  ;;  %v9028_v48 = vand.u32 3, %v8918_v28 }
 0x2fb   :  { %v1724_v38 = vadd.s32 %v8872_v34, %v8887_v26  ;;  %v1740_v3 = vsub.s32 32, %v1739_v18  ;;  %v1744_v46 = vsub.s32 4294967266, %v1739_v18  ;;  %v9032_v2 = vadd.s32 3, %v1757_v55 }
 0x2fc   :  { %vm1517_vm15 = vc.u32 %v8994_v6, %v9005_v20  ;;  %v1518_v24 = vadd.s32 1, %v9006_v44  ;;  %v1876_v14 = vand.u32 2147483647, %v11290_v43  ;;  %v1741_v62 = vshll.u32 %v8957_v53, %v1739_v18 }
 0x2fd   :  { %v1742_v54 = vshrl.u32 %v1724_v38, %v1740_v3  ;;  %v1745_v52 = vadd.s32 127, %v1744_v46  ;;  %v1515_v28 = vmul.u32 %v1508_v19, %v1499_v22  ;;  %v1894_v34 = vshrl.u32 %v11127_v51, %v11291_v4 }
 0x2fe   :  { %v1519_v5 = vsel %vm1517_vm15, %v1518_v24, %v9006_v44  ;;  %v1900_v26 = vshrl.u32 %v11129_v23, %v11291_v4  ;;  %v1903_v61 = vshrl.u32 %v11130_v16, %v11291_v4  ;;  %v1902_v53 = vshll.u32 %v11129_v23, %v11292_v33 }
 0x2ff   :  { %v1743_v60 = vor.u32 %v1742_v54, %v1741_v62  ;;  %v1746_v57 = vshll.u32 %v1745_v52, 23  ;;  %v1520_v30 = vadd.s32 %v1519_v5, %v1515_v28  ;;  %vm1351_vm14 = vcmp.eq.s32.totalorder %v9028_v48, 2  ;;  %v11293_v5 = vld [vmem:[#allocation75_spill] sm:$0xff] }
 0x300   :  { %v1883_v49 = vand.u32 8388607, %v1876_v14  ;;  %v1897_v35 = vshrl.u32 %v11128_v50, %v11291_v4  ;;  %v1899_v7 = vshll.u32 %v11128_v50, %v11292_v33  ;;  %v1906_v19 = vshrl.u32 %v11131_v40, %v11291_v4 }
 0x301   :  { %vm1348_vm2 = vcmp.eq.s32.totalorder %v9028_v48, 0  ;;  %v1747_v29 = vor.u32 4788187, %v1746_v57  ;;  %v1521_v31 = vadd.s32 536870912, %v1520_v30  ;;  %v1893_v27 = vshll.u32 %v11123_v39, %v11292_v33 }
 0x302   :  { %v1904_v63 = vor.u32 %v1903_v61, %v1902_v53  ;;  %v1892_v45 = vshrl.u32 %v11123_v39, %v11291_v4  ;;  %v1896_v44 = vshll.u32 %v11127_v51, %v11292_v33  ;;  %v1901_v55 = vor.u32 %v1900_v26, %v1899_v7 }
 0x303   :  { %v1905_v18 = vshll.u32 %v11130_v16, %v11292_v33  ;;  %v5762_v22 = vpop.eup %5761  ;;  %v1748_v38 = vand.u32 2147483647, %v1747_v29  ;;  %v1750_v3 = vcvt.s32.f32 %v1743_v60  ;;  %v1522_v46 = vshrl.u32 %v1521_v31, 30 }
 0x304   :  { %v1895_v24 = vor.u32 %v1894_v34, %v1893_v27  ;;  %v5764_v62 = vpop.eup %5763  ;;  %vm1159_vm1 = vcmp.gt.s32.totalorder %v9013_v10, 0  ;;  %v1884_v54 = vor.u32 8388608, %v1883_v49  ;;  %v1898_v52 = vor.u32 %v1897_v35, %v1896_v44 }
 0x305   :  { %v1907_v28 = vor.u32 %v1906_v19, %v1905_v18  ;;  %vm1911_vm0 = vcmp.lt.s32.totalorder %v11293_v5, 4  ;;  %v1352_v4 = vxor.u32 2147483648, %v5762_v22  ;;  %v1751_v61 = vmul.f32 %v1750_v3, %v1748_v38 }
 0x306   :  { %v1523_v57 = vshll.u32 %v1522_v46, 30  ;;  %v1917_v26 = vsel %vm1911_vm0, %v1904_v63, 920167782  ;;  %v1349_v33 = vxor.u32 2147483648, %v5764_v62  ;;  %vm1908_vm3 = vcmp.lt.s32.totalorder %v11293_v5, 1 }
 0x307   :  { %vm1909_vm4 = vcmp.lt.s32.totalorder %v11293_v5, 2  ;;  %v1913_v34 = vsel %vm1911_vm0, %v1901_v55, 2102212464  ;;  %v1752_v60 = vxor.u32 2147483648, %v1751_v61  ;;  %vm1910_vm5 = vcmp.lt.s32.totalorder %v11293_v5, 3 }
 0x308   :  { %v9074_v53 = vsub.s32 %v1520_v30, %v1523_v57  ;;  %v1912_v49 = vsel %vm1908_vm3, %v1892_v45, %v1895_v24  ;;  %v1916_v35 = vsel %vm1908_vm3, %v1895_v24, %v1898_v52  ;;  %v1918_v7 = vsel %vm1910_vm5, %v1901_v55, %v1917_v26 }
 0x309   :  { %v1920_v19 = vsel %vm1908_vm3, %v1898_v52, %v1901_v55  ;;  %v1921_v29 = vsel %vm1911_vm0, %v1907_v28, 1326507024  ;;  %v1353_v31 = vsel %vm1351_vm14, %v1352_v4, %v5764_v62  ;;  %v1753_v27 = vsel %vm1670_vm6, %v1752_v60, %v1751_v61 }
 0x30a   :  { %v1526_v44 = vsub.s32 0, %v9074_v53  ;;  %v1914_v18 = vsel %vm1910_vm5, %v1898_v52, %v1913_v34  ;;  %v1350_v30 = vsel %vm1348_vm2, %v5762_v22, %v1349_v33  ;;  %v1756_v45 = vsel %vm9001_vm10, %v11277_v1, %v1753_v27 }
 0x30b   :  { %v1922_v55 = vsel %vm1910_vm5, %v1904_v63, %v1921_v29  ;;  %v1924_v38 = vshll.u32 %v1884_v54, 8  ;;  %5765 = vcosq.f32 %v1756_v45  ;;  %v1919_v24 = vsel %vm1909_vm4, %v1916_v35, %v1918_v7 }
 0x30c   :  { %v5361_v3 = vmin.u32 %v1526_v44, %v9074_v53  ;;  %v1923_v62 = vsel %vm1909_vm4, %v1920_v19, %v1922_v55  ;;  %5767 = vsinq.f32 %v1756_v45  ;;  %v1546_v52 = vsub.s32 4, %v1522_v46 }
 0x30d   :  { %v9094_v28 = vmul.u32.u64.low %v1924_v38, %v1923_v62  ;;  %v9095_v4 = vmul.u32.u64.high %v1924_v38, %v1923_v62, %v9094_v28  ;;  %v9098_v22 = vsub.s32 32, %v9023_v36  ;;  %vm1347_vm6 = vcmp.lt.s32.totalorder %v9028_v48, 2 }
 0x30e   :  { %v9102_v12 = vand.u32 3, %v9032_v2  ;;  %v1528_v63 = vclz %v5361_v3  ;;  %v1354_v54 = vsel %vm1347_vm6, %v1350_v30, %v1353_v31  ;;  %v1915_v61 = vsel %vm1909_vm4, %v1912_v49, %v1914_v18 }
 0x30f   :  { %v9106_v57 = vmul.u32.u64.low %v1924_v38, %v1919_v24  ;;  %v9107_v26 = vmul.u32.u64.high %v1924_v38, %v1919_v24, %v9106_v57  ;;  %v9113_v33 = vsel %vm1159_vm1, %v9013_v10, 0  ;;  %vm1462_vm9 = vcmp.lt.s32.totalorder %v11284_v21, 0 }
 0x310   :  { %v5362_v48 = vadd.s32 4294967294, %v1528_v63  ;;  %v524_v2 = vand.u32 2147483647, %v7774_v9  ;;  %v9118_v34 = vshrl.u32 %v8907_v58, 5  ;;  %vm1344_vm7 = vweird.f32 %v11270_v42 }
 0x311   :  { %v1516_v5 = vadd.s32 %v9005_v20, %v8994_v6  ;;  %v9125_v60 = vsel %vm1462_vm9, %v1546_v52, %v1522_v46  ;;  %v9127_v49 = vsel %vm1344_vm7, nan, %v1354_v54  ;;  %v1931_v10 = vmul.u32 %v1924_v38, %v1915_v61 }
 0x312   :  { %vm5363_vm8 = vcmp.lt.s32.totalorder %v5362_v48, 0  ;;  %vm1933_vm12 = vc.u32 %v9095_v4, %v9106_v57  ;;  %vm1767_vm11 = vcmp.eq.s32.totalorder %v9102_v12, 2  ;;  %v1934_v35 = vadd.s32 1, %v9107_v26 }
 0x313   :  { %v1531_v58 = vsel %vm5363_vm8, 0, %v5362_v48  ;;  %v541_v42 = vshll.u32 %v11123_v39, %v9023_v36  ;;  %v542_v6 = vshrl.u32 %v11127_v51, %v9098_v22  ;;  %vm1764_vm10 = vcmp.eq.s32.totalorder %v9102_v12, 0 }
 0x314   :  { %v1532_v20 = vsub.s32 32, %v1531_v58  ;;  %v1536_v46 = vsub.s32 4294967266, %v1531_v58  ;;  %v531_v7 = vand.u32 8388607, %v524_v2  ;;  %v545_v19 = vshrl.u32 %v11128_v50, %v9098_v22 }
 0x315   :  { %vm1763_vm13 = vcmp.lt.s32.totalorder %v9102_v12, 2  ;;  %v1935_v29 = vsel %vm1933_vm12, %v1934_v35, %v9107_v26  ;;  %v548_v31 = vshrl.u32 %v11129_v23, %v9098_v22  ;;  %v550_v27 = vshll.u32 %v11129_v23, %v9023_v36 }
 0x316   :  { %v551_v44 = vshrl.u32 %v11130_v16, %v9098_v22  ;;  %vm1760_vm15 = vweird.f32 %v11277_v1  ;;  %v1533_v18 = vshll.u32 %v9074_v53, %v1531_v58  ;;  %v1534_v30 = vshrl.u32 %v1516_v5, %v1532_v20 }
 0x317   :  { %v1537_v45 = vadd.s32 127, %v1536_v46  ;;  %v1936_v55 = vadd.s32 %v1935_v29, %v1931_v10  ;;  %v543_v38 = vor.u32 %v542_v6, %v541_v42  ;;  %v544_v3 = vshll.u32 %v11127_v51, %v9023_v36 }
 0x318   :  { %v547_v24 = vshll.u32 %v11128_v50, %v9023_v36  ;;  %v552_v62 = vor.u32 %v551_v44, %v550_v27  ;;  %v1535_v52 = vor.u32 %v1534_v30, %v1533_v18  ;;  %v532_v54 = vor.u32 8388608, %v531_v7  ;;  %v5766_v61 = vpop.eup %5765 }
 0x319   :  { %v1538_v28 = vshll.u32 %v1537_v45, 23  ;;  %v1937_v63 = vadd.s32 536870912, %v1936_v55  ;;  %vm743_vm14 = vcmp.gt.s32.totalorder %v8878_v8, 0  ;;  %v546_v26 = vor.u32 %v545_v19, %v544_v3  ;;  %v5768_v10 = vpop.eup %5767 }
 0x31a   :  { %v549_v53 = vor.u32 %v548_v31, %v547_v24  ;;  %v553_v48 = vshll.u32 %v11130_v16, %v9023_v36  ;;  %v554_v5 = vshrl.u32 %v11131_v40, %v9098_v22  ;;  %v1768_v58 = vxor.u32 2147483648, %v5766_v61 }
 0x31b   :  { %v11294_v35 = vand.u32 2147483647, %v11284_v21  ;;  %v1539_v6 = vor.u32 4788187, %v1538_v28  ;;  %v1938_v20 = vshrl.u32 %v1937_v63, 30  ;;  %vm559_vm1 = vcmp.lt.s32.totalorder %v9118_v34, 4 }
 0x31c   :  { %v1765_v46 = vxor.u32 2147483648, %v5768_v10  ;;  %vm556_vm0 = vcmp.lt.s32.totalorder %v9118_v34, 1  ;;  %vm558_vm3 = vcmp.lt.s32.totalorder %v9118_v34, 3  ;;  %v565_v36 = vsel %vm559_vm1, %v552_v62, 920167782 }
 0x31d   :  { %vm9163_vm2 = vcmp.le.f32.partialorder %v11294_v35, 0.7853982  ;;  %v1769_v7 = vsel %vm1767_vm11, %v1768_v58, %v5768_v10  ;;  %v1540_v19 = vand.u32 2147483647, %v1539_v6  ;;  %v1542_v29 = vcvt.s32.f32 %v1535_v52 }
 0x31e   :  { %v1939_v31 = vshll.u32 %v1938_v20, 30  ;;  %v1766_v27 = vsel %vm1764_vm10, %v5766_v61, %v1765_v46  ;;  %v555_v44 = vor.u32 %v554_v5, %v553_v48  ;;  %v564_v18 = vsel %vm556_vm0, %v543_v38, %v546_v26 }
 0x31f   :  { %v566_v30 = vsel %vm558_vm3, %v549_v53, %v565_v36  ;;  %v1770_v45 = vsel %vm1763_vm13, %v1766_v27, %v1769_v7  ;;  %v1543_v3 = vmul.f32 %v1542_v29, %v1540_v19  ;;  %v540_v52 = vshrl.u32 %v11123_v39, %v9098_v22 }
 0x320   :  { %v9182_v24 = vsub.s32 %v1936_v55, %v1939_v31  ;;  %v1771_v28 = vsel %vm1760_vm15, nan, %v1770_v45  ;;  %vm557_vm4 = vcmp.lt.s32.totalorder %v9118_v34, 2  ;;  %v561_v63 = vsel %vm559_vm1, %v549_v53, 2102212464 }
 0x321   :  { %v568_v61 = vsel %vm556_vm0, %v546_v26, %v549_v53  ;;  %v3784_v12 = vpack.c.bf16 %v1771_v28, %v9127_v49  ;;  %v1544_v48 = vxor.u32 2147483648, %v1543_v3  ;;  %v567_v5 = vsel %vm557_vm4, %v564_v18, %v566_v30 }
 0x322   :  { %v1942_v55 = vsub.s32 0, %v9182_v24  ;;  %v1962_v22 = vsub.s32 4, %v1938_v20  ;;  %v560_v1 = vsel %vm556_vm0, %v540_v52, %v543_v38  ;;  %v569_v10 = vsel %vm559_vm1, %v555_v44, 1326507024 }
 0x323   :  { %v572_v58 = vshll.u32 %v532_v54, 8  ;;  %3954 = vmatpush1.bf16.msra.mxu0 %v3784_v12  ;;  %v1545_v53 = vsel %vm1462_vm9, %v1544_v48, %v1543_v3  ;;  %v562_v35 = vsel %vm558_vm3, %v546_v26, %v561_v63  ;;  %v570_v6 = vsel %vm558_vm3, %v552_v62, %v569_v10 }
 0x324   :  { %v5377_v49 = vmin.u32 %v1942_v55, %v9182_v24  ;;  %v1548_v38 = vsel %vm9163_vm2, %v11284_v21, %v1545_v53  ;;  %v571_v46 = vsel %vm557_vm4, %v568_v61, %v570_v6  ;;  %v954_v7 = vand.u32 31, %v9020_v25 }
 0x325   :  { %v9213_v54 = vmul.u32.u64.low %v572_v58, %v567_v5  ;;  %v9214_v36 = vmul.u32.u64.high %v572_v58, %v567_v5, %v9213_v54  ;;  %v744_v26 = vsel %vm743_vm14, %v8878_v8, 0  ;;  %v1549_v62 = vsel %vm9163_vm2, 0, %v9125_v60 }
 0x326   :  { %v1944_v19 = vclz %v5377_v49  ;;  %5769 = vcosq.f32 %v1548_v38  ;;  %vm1878_vm5 = vcmp.lt.s32.totalorder %v11290_v43, 0  ;;  %v563_v18 = vsel %vm557_vm4, %v560_v1, %v562_v35 }
 0x327   :  { %v9225_v29 = vmul.u32.u64.low %v572_v58, %v571_v46  ;;  %v9226_v31 = vmul.u32.u64.high %v572_v58, %v571_v46, %v9225_v29  ;;  %5771 = vsinq.f32 %v1548_v38  ;;  %v1963_v44 = vsel %vm1878_vm5, %v1962_v22, %v1938_v20 }
 0x328   :  { %v5378_v27 = vadd.s32 4294967294, %v1944_v19  ;;  %v9233_v8 = vshrl.u32 %v9020_v25, 5  ;;  %v9235_v42 = vand.u32 31, %v744_v26  ;;  %v1553_v60 = vadd.s32 3, %v1549_v62 }
 0x329   :  { %v582_v30 = vadd.s32 1, %v9214_v36  ;;  %v955_v45 = vsub.s32 32, %v954_v7  ;;  %v9238_v3 = vshrl.u32 %v744_v26, 5  ;;  %vm9242_vm6 = vcmp.le.f32.partialorder %v1876_v14, 0.7853982 }
 0x32a   :  { %vm5379_vm9 = vcmp.lt.s32.totalorder %v5378_v27, 0  ;;  %v1965_v25 = vsel %vm9242_vm6, 0, %v1963_v44  ;;  %v579_v20 = vmul.u32 %v572_v58, %v563_v18  ;;  %vm581_vm7 = vc.u32 %v9226_v31, %v9213_v54 }
 0x32b   :  { %v1947_v34 = vsel %vm5379_vm9, 0, %v5378_v27  ;;  %v1932_v28 = vadd.s32 %v9106_v57, %v9095_v4  ;;  %v583_v12 = vsel %vm581_vm7, %v582_v30, %v9214_v36  ;;  %v9254_v14 = vsub.s32 32, %v9235_v42 }
 0x32c   :  { %v1948_v63 = vsub.s32 32, %v1947_v34  ;;  %v1952_v61 = vsub.s32 4294967266, %v1947_v34  ;;  %v9256_v48 = vand.u32 3, %v1553_v60  ;;  %v584_v55 = vadd.s32 %v583_v12, %v579_v20 }
 0x32d   :  { %v940_v5 = vand.u32 2147483647, %v7979_v0  ;;  %v1949_v22 = vshll.u32 %v9182_v24, %v1947_v34  ;;  %v9260_v58 = vadd.s32 3, %v1965_v25  ;;  %v958_v4 = vshrl.u32 %v11127_v51, %v955_v45 }
 0x32e   :  { %v1950_v1 = vshrl.u32 %v1932_v28, %v1948_v63  ;;  %v1953_v10 = vadd.s32 127, %v1952_v61  ;;  %v585_v53 = vadd.s32 536870912, %v584_v55  ;;  %v964_v57 = vshrl.u32 %v11129_v23, %v955_v45 }
 0x32f   :  { %v967_v49 = vshrl.u32 %v11130_v16, %v955_v45  ;;  %v961_v38 = vshrl.u32 %v11128_v50, %v955_v45  ;;  %v966_v46 = vshll.u32 %v11129_v23, %v954_v7  ;;  %v947_v24 = vand.u32 8388607, %v940_v5 }
 0x330   :  { %v1951_v35 = vor.u32 %v1950_v1, %v1949_v22  ;;  %v1954_v6 = vshll.u32 %v1953_v10, 23  ;;  %v586_v36 = vshrl.u32 %v585_v53, 30  ;;  %v963_v26 = vshll.u32 %v11128_v50, %v954_v7 }
 0x331   :  { %v970_v62 = vshrl.u32 %v11131_v40, %v955_v45  ;;  %v957_v29 = vshll.u32 %v11123_v39, %v954_v7  ;;  %v960_v27 = vshll.u32 %v11127_v51, %v954_v7  ;;  %v968_v44 = vor.u32 %v967_v49, %v966_v46 }
 0x332   :  { %v1955_v19 = vor.u32 4788187, %v1954_v6  ;;  %vm1556_vm8 = vcmp.eq.s32.totalorder %v9256_v48, 0  ;;  %vm1559_vm12 = vcmp.eq.s32.totalorder %v9256_v48, 2  ;;  %v587_v18 = vshll.u32 %v586_v36, 30 }
 0x333   :  { %v956_v60 = vshrl.u32 %v11123_v39, %v955_v45  ;;  %v965_v30 = vor.u32 %v964_v57, %v963_v26  ;;  %v969_v34 = vshll.u32 %v11130_v16, %v954_v7  ;;  %v5770_v25 = vpop.eup %5769  ;;  %v1958_v28 = vcvt.s32.f32 %v1951_v35 }
 0x334   :  { %v1956_v20 = vand.u32 2147483647, %v1955_v19  ;;  %v959_v63 = vor.u32 %v958_v4, %v957_v29  ;;  %v962_v61 = vor.u32 %v961_v38, %v960_v27  ;;  %v5772_v12 = vpop.eup %5771  ;;  %vm526_vm11 = vcmp.lt.s32.totalorder %v7774_v9, 0 }
 0x335   :  { %v9278_v22 = vsub.s32 %v584_v55, %v587_v18  ;;  %v948_v1 = vor.u32 8388608, %v947_v24  ;;  %v971_v10 = vor.u32 %v970_v62, %v969_v34  ;;  %vm975_vm10 = vcmp.lt.s32.totalorder %v9233_v8, 4 }
 0x336   :  { %v1959_v53 = vmul.f32 %v1958_v28, %v1956_v20  ;;  %vm972_vm13 = vcmp.lt.s32.totalorder %v9233_v8, 1  ;;  %vm973_vm15 = vcmp.lt.s32.totalorder %v9233_v8, 2  ;;  %v981_v7 = vsel %vm975_vm10, %v968_v44, 920167782 }
 0x337   :  { %v1560_v45 = vxor.u32 2147483648, %v5770_v25  ;;  %v590_v4 = vsub.s32 0, %v9278_v22  ;;  %vm974_vm14 = vcmp.lt.s32.totalorder %v9233_v8, 3  ;;  %v977_v55 = vsel %vm975_vm10, %v965_v30, 2102212464 }
 0x338   :  { %v1557_v57 = vxor.u32 2147483648, %v5772_v12  ;;  %v1960_v49 = vxor.u32 2147483648, %v1959_v53  ;;  %v980_v35 = vsel %vm972_vm13, %v959_v63, %v962_v61  ;;  %v982_v6 = vsel %vm974_vm14, %v965_v30, %v981_v7 }
 0x339   :  { %v5325_v38 = vmin.u32 %v590_v4, %v9278_v22  ;;  %v610_v46 = vsub.s32 4, %v586_v36  ;;  %v984_v24 = vsel %vm972_vm13, %v962_v61, %v965_v30  ;;  %v985_v26 = vsel %vm975_vm10, %v971_v10, 1326507024 }
 0x33a   :  { %v1961_v62 = vsel %vm1878_vm5, %v1960_v49, %v1959_v53  ;;  %v976_v19 = vsel %vm972_vm13, %v956_v60, %v959_v63  ;;  %v978_v29 = vsel %vm974_vm14, %v962_v61, %v977_v55  ;;  %v986_v27 = vsel %vm974_vm14, %v968_v44, %v985_v26 }
 0x33b   :  { %v1964_v18 = vsel %vm9242_vm6, %v11290_v43, %v1961_v62  ;;  %v592_v34 = vclz %v5325_v38  ;;  %v983_v20 = vsel %vm973_vm15, %v980_v35, %v982_v6  ;;  %v988_v30 = vshll.u32 %v948_v1, 8 }
 0x33c   :  { %v1558_v28 = vsel %vm1556_vm8, %v5770_v25, %v1557_v57  ;;  %v1561_v10 = vsel %vm1559_vm12, %v1560_v45, %v5772_v12  ;;  %5773 = vcosq.f32 %v1964_v18  ;;  %v987_v60 = vsel %vm973_vm15, %v984_v24, %v986_v27 }
 0x33d   :  { %5775 = vsinq.f32 %v1964_v18  ;;  %v5326_v44 = vadd.s32 4294967294, %v592_v34  ;;  %v9311_v63 = vmul.u32.u64.low %v988_v30, %v987_v60  ;;  %v9312_v52 = vmul.u32.u64.high %v988_v30, %v987_v60, %v9311_v63 }
 0x33e   :  { %vm1555_vm2 = vcmp.lt.s32.totalorder %v9256_v48, 2  ;;  %v9317_v61 = vsel %vm526_vm11, %v610_v46, %v586_v36  ;;  %v9319_v1 = vmul.u32.u64.low %v988_v30, %v983_v20  ;;  %v9320_v25 = vmul.u32.u64.high %v988_v30, %v983_v20, %v9319_v1 }
 0x33f   :  { %v1562_v12 = vsel %vm1555_vm2, %v1558_v28, %v1561_v10  ;;  %v9324_v53 = vand.u32 3, %v9260_v58  ;;  %vm5327_vm1 = vcmp.lt.s32.totalorder %v5326_v44, 0  ;;  %v979_v7 = vsel %vm973_vm15, %v976_v19, %v978_v29 }
 0x340   :  { %vm1552_vm0 = vweird.f32 %v11284_v21  ;;  %vm9331_vm3 = vcmp.le.f32.partialorder %v524_v2, 0.7853982  ;;  %v595_v36 = vsel %vm5327_vm1, 0, %v5326_v44  ;;  %v732_v45 = vand.u32 2147483647, %v7878_v37 }
 0x341   :  { %v580_v4 = vadd.s32 %v9213_v54, %v9226_v31  ;;  %v596_v58 = vsub.s32 32, %v595_v36  ;;  %v600_v55 = vsub.s32 4294967266, %v595_v36  ;;  %v613_v8 = vsel %vm9331_vm3, 0, %v9317_v61 }
 0x342   :  { %v9341_v57 = vsel %vm1552_vm0, nan, %v1562_v12  ;;  %v995_v21 = vmul.u32 %v988_v30, %v979_v7  ;;  %vm997_vm4 = vc.u32 %v9312_v52, %v9319_v1  ;;  %v998_v2 = vadd.s32 1, %v9320_v25 }
 0x343   :  { %vm1975_vm5 = vcmp.eq.s32.totalorder %v9324_v53, 2  ;;  %v597_v49 = vshll.u32 %v9278_v22, %v595_v36  ;;  %v598_v35 = vshrl.u32 %v580_v4, %v596_v58  ;;  %v601_v54 = vadd.s32 127, %v600_v55 }
 0x344   :  { %v750_v31 = vshrl.u32 %v11127_v51, %v9254_v14  ;;  %vm1972_vm6 = vcmp.eq.s32.totalorder %v9324_v53, 0  ;;  %v999_v6 = vsel %vm997_vm4, %v998_v2, %v9320_v25  ;;  %v739_v38 = vand.u32 8388607, %v732_v45 }
 0x345   :  { %v753_v46 = vshrl.u32 %v11128_v50, %v9254_v14  ;;  %v759_v24 = vshrl.u32 %v11130_v16, %v9254_v14  ;;  %vm1971_vm9 = vcmp.lt.s32.totalorder %v9324_v53, 2  ;;  %v599_v22 = vor.u32 %v598_v35, %v597_v49 }
 0x346   :  { %v602_v26 = vshll.u32 %v601_v54, 23  ;;  %v1000_v62 = vadd.s32 %v999_v6, %v995_v21  ;;  %v758_v19 = vshll.u32 %v11129_v23, %v9235_v42  ;;  %vm1968_vm7 = vweird.f32 %v11290_v43 }
 0x347   :  { %v748_v29 = vshrl.u32 %v11123_v39, %v9254_v14  ;;  %v749_v27 = vshll.u32 %v11123_v39, %v9235_v42  ;;  %v756_v18 = vshrl.u32 %v11129_v23, %v9254_v14  ;;  %v762_v34 = vshrl.u32 %v11131_v40, %v9254_v14 }
 0x348   :  { %vm847_vm8 = vcmp.gt.s32.totalorder %v8997_v11, 0  ;;  %v603_v20 = vor.u32 4788187, %v602_v26  ;;  %v1001_v30 = vadd.s32 536870912, %v1000_v62  ;;  %v752_v28 = vshll.u32 %v11127_v51, %v9235_v42 }
 0x349   :  { %v760_v10 = vor.u32 %v759_v24, %v758_v19  ;;  %v740_v60 = vor.u32 8388608, %v739_v38  ;;  %v751_v44 = vor.u32 %v750_v31, %v749_v27  ;;  %v755_v63 = vshll.u32 %v11128_v50, %v9235_v42  ;;  %v5774_v12 = vpop.eup %5773 }
 0x34a   :  { %v761_v25 = vshll.u32 %v11130_v16, %v9235_v42  ;;  %v604_v7 = vand.u32 2147483647, %v603_v20  ;;  %v606_v36 = vcvt.s32.f32 %v599_v22  ;;  %v1002_v14 = vshrl.u32 %v1001_v30, 30  ;;  %v5776_v58 = vpop.eup %5775 }
 0x34b   :  { %v754_v4 = vor.u32 %v753_v46, %v752_v28  ;;  %vm431_vm12 = vcmp.gt.s32.totalorder %v8775_v32, 0  ;;  %v1976_v55 = vxor.u32 2147483648, %v5774_v12  ;;  %v757_v21 = vor.u32 %v756_v18, %v755_v63 }
 0x34c   :  { %v763_v2 = vor.u32 %v762_v34, %v761_v25  ;;  %vm767_vm10 = vcmp.lt.s32.totalorder %v9238_v3, 4  ;;  %v1973_v49 = vxor.u32 2147483648, %v5776_v58  ;;  %v607_v35 = vmul.f32 %v606_v36, %v604_v7 }
 0x34d   :  { %v1003_v54 = vshll.u32 %v1002_v14, 30  ;;  %v773_v31 = vsel %vm767_vm10, %v760_v10, 920167782  ;;  %v1977_v42 = vsel %vm1975_vm5, %v1976_v55, %v5776_v58  ;;  %vm764_vm13 = vcmp.lt.s32.totalorder %v9238_v3, 1 }
 0x34e   :  { %vm765_vm15 = vcmp.lt.s32.totalorder %v9238_v3, 2  ;;  %vm766_vm14 = vcmp.lt.s32.totalorder %v9238_v3, 3  ;;  %v1974_v6 = vsel %vm1972_vm6, %v5774_v12, %v1973_v49  ;;  %v608_v38 = vxor.u32 2147483648, %v607_v35 }
 0x34f   :  { %v9388_v46 = vsub.s32 %v1000_v62, %v1003_v54  ;;  %v772_v24 = vsel %vm764_vm13, %v751_v44, %v754_v4  ;;  %v1978_v22 = vsel %vm1971_vm9, %v1974_v6, %v1977_v42  ;;  %v774_v26 = vsel %vm766_vm14, %v757_v21, %v773_v31 }
 0x350   :  { %v776_v19 = vsel %vm764_vm13, %v754_v4, %v757_v21  ;;  %v777_v27 = vsel %vm767_vm10, %v763_v2, 1326507024  ;;  %v1979_v18 = vsel %vm1968_vm7, nan, %v1978_v22  ;;  %v609_v62 = vsel %vm526_vm11, %v608_v38, %v607_v35 }
 0x351   :  { %v1006_v34 = vsub.s32 0, %v9388_v46  ;;  %v769_v53 = vsel %vm767_vm10, %v757_v21, 2102212464  ;;  %v3786_v20 = vpack.c.bf16 %v1979_v18, %v9341_v57  ;;  %v1026_v30 = vsub.s32 4, %v1002_v14 }
 0x352   :  { %v778_v28 = vsel %vm766_vm14, %v760_v10, %v777_v27  ;;  %v780_v63 = vshll.u32 %v740_v60, 8  ;;  %v612_v43 = vsel %vm9331_vm3, %v7774_v9, %v609_v62  ;;  %v775_v12 = vsel %vm765_vm15, %v772_v24, %v774_v26 }
 0x353   :  { %v5341_v25 = vmin.u32 %v1006_v34, %v9388_v46  ;;  %v779_v7 = vsel %vm765_vm15, %v776_v19, %v778_v28  ;;  %v9421_v57 = vsel %vm847_vm8, %v8997_v11, 0  ;;  %v1162_v10 = vand.u32 31, %v9113_v33  ;;  %4067 = vmatpush1.bf16.msra.mxu1 %v3786_v20 }
 0x354   :  { %v9424_v60 = vmul.u32.u64.low %v780_v63, %v779_v7  ;;  %v9425_v36 = vmul.u32.u64.high %v780_v63, %v779_v7, %v9424_v60  ;;  %v617_v58 = vadd.s32 3, %v613_v8  ;;  %v768_v21 = vsel %vm764_vm13, %v748_v29, %v751_v44 }
 0x355   :  { %v1008_v55 = vclz %v5341_v25  ;;  %v770_v2 = vsel %vm766_vm14, %v754_v4, %v769_v53  ;;  %5777 = vcosq.f32 %v612_v43  ;;  %vm942_vm11 = vcmp.lt.s32.totalorder %v7979_v0, 0 }
 0x356   :  { %v9436_v11 = vmul.u32.u64.low %v780_v63, %v775_v12  ;;  %v9437_v49 = vmul.u32.u64.high %v780_v63, %v775_v12, %v9436_v11  ;;  %v9441_v35 = vshrl.u32 %v9113_v33, 5  ;;  %v9446_v61 = vsel %vm431_vm12, %v8775_v32, 0 }
 0x357   :  { %v5342_v48 = vadd.s32 4294967294, %v1008_v55  ;;  %v1027_v8 = vsel %vm942_vm11, %v1026_v30, %v1002_v14  ;;  %v1163_v29 = vsub.s32 32, %v1162_v10  ;;  %5779 = vsinq.f32 %v612_v43 }
 0x358   :  { %vm9452_vm2 = vcmp.le.f32.partialorder %v940_v5, 0.7853982  ;;  %v771_v33 = vsel %vm765_vm15, %v768_v21, %v770_v2  ;;  %v9458_v4 = vand.u32 3, %v617_v58  ;;  %v996_v32 = vadd.s32 %v9319_v1, %v9312_v52 }
 0x359   :  { %vm5343_vm1 = vcmp.lt.s32.totalorder %v5342_v48, 0  ;;  %vm789_vm0 = vc.u32 %v9425_v36, %v9436_v11  ;;  %v1029_v54 = vsel %vm9452_vm2, 0, %v1027_v8  ;;  %v790_v5 = vadd.s32 1, %v9437_v49 }
 0x35a   :  { %v1011_v14 = vsel %vm5343_vm1, 0, %v5342_v48  ;;  %v1148_v31 = vand.u32 2147483647, %v8004_v56  ;;  %v787_v6 = vmul.u32 %v780_v63, %v771_v33  ;;  %v1165_v38 = vshll.u32 %v11123_v39, %v1162_v10 }
 0x35b   :  { %v1012_v42 = vsub.s32 32, %v1011_v14  ;;  %v1016_v3 = vsub.s32 4294967266, %v1011_v14  ;;  %v1013_v24 = vshll.u32 %v9388_v46, %v1011_v14  ;;  %v791_v52 = vsel %vm789_vm0, %v790_v5, %v9437_v49 }
 0x35c   :  { %v1166_v1 = vshrl.u32 %v11127_v51, %v1163_v29  ;;  %v1169_v22 = vshrl.u32 %v11128_v50, %v1163_v29  ;;  %v792_v27 = vadd.s32 %v791_v52, %v787_v6  ;;  %v1175_v18 = vshrl.u32 %v11130_v16, %v1163_v29 }
 0x35d   :  { %v1014_v26 = vshrl.u32 %v996_v32, %v1012_v42  ;;  %v1017_v19 = vadd.s32 127, %v1016_v3  ;;  %v1155_v62 = vand.u32 8388607, %v1148_v31  ;;  %v1168_v34 = vshll.u32 %v11127_v51, %v1162_v10 }
 0x35e   :  { %v1172_v53 = vshrl.u32 %v11129_v23, %v1163_v29  ;;  %v1174_v46 = vshll.u32 %v11129_v23, %v1162_v10  ;;  %v793_v28 = vadd.s32 536870912, %v792_v27  ;;  %v1171_v63 = vshll.u32 %v11128_v50, %v1162_v10 }
 0x35f   :  { %v1015_v20 = vor.u32 %v1014_v26, %v1013_v24  ;;  %v1018_v30 = vshll.u32 %v1017_v19, 23  ;;  %v1167_v43 = vor.u32 %v1166_v1, %v1165_v38  ;;  %v1170_v25 = vor.u32 %v1169_v22, %v1168_v34 }
 0x360   :  { %v1176_v12 = vor.u32 %v1175_v18, %v1174_v46  ;;  %v1178_v7 = vshrl.u32 %v11131_v40, %v1163_v29  ;;  %v9482_v60 = vand.u32 31, %v9421_v57  ;;  %v9485_v58 = vand.u32 31, %v9446_v61 }
 0x361   :  { %v1019_v55 = vor.u32 4788187, %v1018_v30  ;;  %v9487_v21 = vshrl.u32 %v793_v28, 30  ;;  %vm623_vm3 = vcmp.eq.s32.totalorder %v9458_v4, 2  ;;  %v1033_v2 = vadd.s32 3, %v1029_v54 }
 0x362   :  { %v1173_v49 = vor.u32 %v1172_v53, %v1171_v63  ;;  %v1177_v48 = vshll.u32 %v11130_v16, %v1162_v10  ;;  %vm1180_vm4 = vcmp.lt.s32.totalorder %v9441_v35, 1  ;;  %v5778_v8 = vpop.eup %5777  ;;  %v1022_v32 = vcvt.s32.f32 %v1015_v20 }
 0x363   :  { %v1020_v33 = vand.u32 2147483647, %v1019_v55  ;;  %v795_v14 = vshll.u32 %v9487_v21, 30  ;;  %vm1183_vm5 = vcmp.lt.s32.totalorder %v9441_v35, 4  ;;  %v1156_v5 = vor.u32 8388608, %v1155_v62 }
 0x364   :  { %v1179_v42 = vor.u32 %v1178_v7, %v1177_v48  ;;  %v1188_v3 = vsel %vm1180_vm4, %v1167_v43, %v1170_v25  ;;  %v1189_v54 = vsel %vm1183_vm5, %v1176_v12, 920167782  ;;  %v5780_v6 = vpop.eup %5779  ;;  %v1164_v24 = vshrl.u32 %v11123_v39, %v1163_v29 }
 0x365   :  { %v1023_v38 = vmul.f32 %v1022_v32, %v1020_v33  ;;  %v9498_v10 = vsub.s32 %v792_v27, %v795_v14  ;;  %vm1182_vm6 = vcmp.lt.s32.totalorder %v9441_v35, 3  ;;  %v624_v52 = vxor.u32 2147483648, %v5778_v8 }
 0x366   :  { %vm1181_vm9 = vcmp.lt.s32.totalorder %v9441_v35, 2  ;;  %v1185_v1 = vsel %vm1183_vm5, %v1173_v49, 2102212464  ;;  %v1190_v22 = vsel %vm1182_vm6, %v1173_v49, %v1189_v54  ;;  %v1192_v29 = vsel %vm1180_vm4, %v1170_v25, %v1173_v49 }
 0x367   :  { %v1024_v26 = vxor.u32 2147483648, %v1023_v38  ;;  %v798_v19 = vsub.s32 0, %v9498_v10  ;;  %v1191_v27 = vsel %vm1181_vm9, %v1188_v3, %v1190_v22  ;;  %v621_v18 = vxor.u32 2147483648, %v5780_v6 }
 0x368   :  { %v1184_v62 = vsel %vm1180_vm4, %v1164_v24, %v1167_v43  ;;  %v1193_v34 = vsel %vm1183_vm5, %v1179_v42, 1326507024  ;;  %v1196_v53 = vshll.u32 %v1156_v5, 8  ;;  %v1186_v30 = vsel %vm1182_vm6, %v1170_v25, %v1185_v1 }
 0x369   :  { %v1025_v46 = vsel %vm942_vm11, %v1024_v26, %v1023_v38  ;;  %v5333_v20 = vmin.u32 %v798_v19, %v9498_v10  ;;  %v1194_v28 = vsel %vm1182_vm6, %v1176_v12, %v1193_v34  ;;  %vm620_vm7 = vcmp.eq.s32.totalorder %v9458_v4, 0 }
 0x36a   :  { %v1028_v63 = vsel %vm9452_vm2, %v7979_v0, %v1025_v46  ;;  %v1195_v43 = vsel %vm1181_vm9, %v1192_v29, %v1194_v28  ;;  %v9528_v7 = vmul.u32.u64.low %v1196_v53, %v1191_v27  ;;  %v9529_v55 = vmul.u32.u64.high %v1196_v53, %v1191_v27, %v9528_v7 }
 0x36b   :  { %v625_v49 = vsel %vm623_vm3, %v624_v52, %v5780_v6  ;;  %5781 = vcosq.f32 %v1028_v63  ;;  %v800_v25 = vclz %v5333_v20  ;;  %v622_v48 = vsel %vm620_vm7, %v5778_v8, %v621_v18 }
 0x36c   :  { %5783 = vsinq.f32 %v1028_v63  ;;  %v9535_v12 = vmul.u32.u64.low %v1196_v53, %v1195_v43  ;;  %v9536_v33 = vmul.u32.u64.high %v1196_v53, %v1195_v43, %v9535_v12  ;;  %v9539_v44 = vshrl.u32 %v9446_v61, 5 }
 0x36d   :  { %vm619_vm8 = vcmp.lt.s32.totalorder %v9458_v4, 2  ;;  %v5334_v32 = vadd.s32 4294967294, %v800_v25  ;;  %v1187_v14 = vsel %vm1181_vm9, %v1184_v62, %v1186_v30  ;;  %v9544_v5 = vand.u32 3, %v1033_v2 }
 0x36e   :  { %v818_v42 = vsub.s32 4, %v9487_v21  ;;  %v1206_v3 = vadd.s32 1, %v9529_v55  ;;  %v420_v8 = vand.u32 2147483647, %v7763_v15  ;;  %v435_v54 = vsub.s32 32, %v9485_v58 }
 0x36f   :  { %vm616_vm12 = vweird.f32 %v7774_v9  ;;  %v626_v61 = vsel %vm619_vm8, %v622_v48, %v625_v49  ;;  %vm5335_vm10 = vcmp.lt.s32.totalorder %v5334_v32, 0  ;;  %vm734_vm13 = vcmp.lt.s32.totalorder %v7878_v37, 0 }
 0x370   :  { %v803_v4 = vsel %vm5335_vm10, 0, %v5334_v32  ;;  %v1203_v6 = vmul.u32 %v1196_v53, %v1187_v14  ;;  %vm1205_vm15 = vc.u32 %v9536_v33, %v9528_v7  ;;  %v788_v35 = vadd.s32 %v9436_v11, %v9425_v36 }
 0x371   :  { %v804_v2 = vsub.s32 32, %v803_v4  ;;  %v808_v38 = vsub.s32 4294967266, %v803_v4  ;;  %v1207_v24 = vsel %vm1205_vm15, %v1206_v3, %v9529_v55  ;;  %v9557_v52 = vsel %vm616_vm12, nan, %v626_v61 }
 0x372   :  { %vm1039_vm14 = vcmp.eq.s32.totalorder %v9544_v5, 2  ;;  %v9563_v9 = vsel %vm734_vm13, %v818_v42, %v9487_v21  ;;  %v1208_v1 = vadd.s32 %v1207_v24, %v1203_v6  ;;  %v9567_v22 = vand.u32 8388607, %v420_v8 }
 0x373   :  { %vm1036_vm11 = vcmp.eq.s32.totalorder %v9544_v5, 0  ;;  %v805_v36 = vshll.u32 %v9498_v10, %v803_v4  ;;  %v806_v11 = vshrl.u32 %v788_v35, %v804_v2  ;;  %v809_v26 = vadd.s32 127, %v808_v38 }
 0x374   :  { %v436_v19 = vshrl.u32 %v11123_v39, %v435_v54  ;;  %vm1035_vm2 = vcmp.lt.s32.totalorder %v9544_v5, 2  ;;  %v1209_v27 = vadd.s32 536870912, %v1208_v1  ;;  %v438_v29 = vshrl.u32 %v11127_v51, %v435_v54 }
 0x375   :  { %v444_v21 = vshrl.u32 %v11129_v23, %v435_v54  ;;  %v447_v18 = vshrl.u32 %v11130_v16, %v435_v54  ;;  %vm1032_vm1 = vweird.f32 %v7979_v0  ;;  %v807_v62 = vor.u32 %v806_v11, %v805_v36 }
 0x376   :  { %v810_v34 = vshll.u32 %v809_v26, 23  ;;  %v441_v53 = vshrl.u32 %v11128_v50, %v435_v54  ;;  %v446_v10 = vshll.u32 %v11129_v23, %v9485_v58  ;;  %vm639_vm0 = vcmp.gt.s32.totalorder %v8783_v13, 0 }
 0x377   :  { %v9581_v46 = vshrl.u32 %v1209_v27, 30  ;;  %v437_v20 = vshll.u32 %v11123_v39, %v9485_v58  ;;  %v443_v30 = vshll.u32 %v11128_v50, %v9485_v58  ;;  %v450_v28 = vshrl.u32 %v11131_v40, %v435_v54 }
 0x378   :  { %vm9590_vm3 = vcmp.le.f32.partialorder %v732_v45, 0.7853982  ;;  %v811_v43 = vor.u32 4788187, %v810_v34  ;;  %v428_v55 = vor.u32 8388608, %v9567_v22  ;;  %v440_v49 = vshll.u32 %v11127_v51, %v9485_v58  ;;  %v5782_v48 = vpop.eup %5781 }
 0x379   :  { %v448_v25 = vor.u32 %v447_v18, %v446_v10  ;;  %v1211_v12 = vshll.u32 %v9581_v46, 30  ;;  %v439_v32 = vor.u32 %v438_v29, %v437_v20  ;;  %v445_v14 = vor.u32 %v444_v21, %v443_v30  ;;  %v5784_v3 = vpop.eup %5783 }
 0x37a   :  { %v449_v42 = vshll.u32 %v11130_v16, %v9485_v58  ;;  %v1040_v45 = vxor.u32 2147483648, %v5782_v48  ;;  %v812_v54 = vand.u32 2147483647, %v811_v43  ;;  %v814_v61 = vcvt.s32.f32 %v807_v62 }
 0x37b   :  { %v442_v4 = vor.u32 %v441_v53, %v440_v49  ;;  %v1037_v6 = vxor.u32 2147483648, %v5784_v3  ;;  %v9600_v35 = vsub.s32 %v1208_v1, %v1211_v12  ;;  %vm455_vm4 = vcmp.lt.s32.totalorder %v9539_v44, 4 }
 0x37c   :  { %v451_v2 = vor.u32 %v450_v28, %v449_v42  ;;  %v1041_v38 = vsel %vm1039_vm14, %v1040_v45, %v5784_v3  ;;  %v815_v24 = vmul.f32 %v814_v61, %v812_v54  ;;  %vm452_vm5 = vcmp.lt.s32.totalorder %v9539_v44, 1 }
 0x37d   :  { %v461_v58 = vsel %vm455_vm4, %v448_v25, 920167782  ;;  %v1038_v22 = vsel %vm1036_vm11, %v5782_v48, %v1037_v6  ;;  %v1214_v36 = vsub.s32 0, %v9600_v35  ;;  %vm454_vm6 = vcmp.lt.s32.totalorder %v9539_v44, 3 }
 0x37e   :  { %v457_v1 = vsel %vm455_vm4, %v445_v14, 2102212464  ;;  %v1042_v11 = vsel %vm1035_vm2, %v1038_v22, %v1041_v38  ;;  %v816_v26 = vxor.u32 2147483648, %v815_v24  ;;  %v460_v27 = vsel %vm452_vm5, %v439_v32, %v442_v4 }
 0x37f   :  { %v462_v29 = vsel %vm454_vm6, %v445_v14, %v461_v58  ;;  %v1043_v21 = vsel %vm1032_vm1, nan, %v1042_v11  ;;  %v5349_v18 = vmin.u32 %v1214_v36, %v9600_v35  ;;  %v464_v62 = vsel %vm452_vm5, %v442_v4, %v445_v14 }
 0x380   :  { %v465_v34 = vsel %vm455_vm4, %v451_v2, 1326507024  ;;  %v3781_v5 = vpack.c.bf16 %v1043_v21, %v9557_v52  ;;  %v817_v53 = vsel %vm734_vm13, %v816_v26, %v815_v24  ;;  %vm453_vm9 = vcmp.lt.s32.totalorder %v9539_v44, 2 }
 0x381   :  { %v466_v10 = vsel %vm454_vm6, %v448_v25, %v465_v34  ;;  %v820_v0 = vsel %vm9590_vm3, %v7878_v37, %v817_v53  ;;  %v1216_v20 = vclz %v5349_v18  ;;  %v463_v30 = vsel %vm453_vm9, %v460_v27, %v462_v29 }
 0x382   :  { %v468_v28 = vshll.u32 %v428_v55, 8  ;;  %v9641_v52 = vsel %vm639_vm0, %v8783_v13, 0  ;;  %3955 = vmatprep.subr.bf16.mxu0 %v3781_v5  ;;  %v456_v43 = vsel %vm452_vm5, %v436_v19, %v439_v32  ;;  %v458_v49 = vsel %vm454_vm6, %v442_v4, %v457_v1 }
 0x383   :  { %v467_v25 = vsel %vm453_vm9, %v464_v62, %v466_v10  ;;  %v9650_v48 = vshrl.u32 %v9421_v57, 5  ;;  %v5350_v12 = vadd.s32 4294967294, %v1216_v20  ;;  %v821_v13 = vsel %vm9590_vm3, 0, %v9563_v9 }
 0x384   :  { %v9652_v55 = vmul.u32.u64.low %v468_v28, %v467_v25  ;;  %v9653_v14 = vmul.u32.u64.high %v468_v28, %v467_v25, %v9652_v55  ;;  %5785 = vcosq.f32 %v820_v0  ;;  %v851_v32 = vsub.s32 32, %v9482_v60 }
 0x385   :  { %v9658_v42 = vmul.u32.u64.low %v468_v28, %v463_v30  ;;  %v9659_v19 = vmul.u32.u64.high %v468_v28, %v463_v30, %v9658_v42  ;;  %v9664_v3 = vand.u32 31, %v9641_v52  ;;  %vm5351_vm7 = vcmp.lt.s32.totalorder %v5350_v12, 0 }
 0x386   :  { %v459_v57 = vsel %vm453_vm9, %v456_v43, %v458_v49  ;;  %5787 = vsinq.f32 %v820_v0  ;;  %vm1150_vm8 = vcmp.lt.s32.totalorder %v8004_v56, 0  ;;  %v1219_v45 = vsel %vm5351_vm7, 0, %v5350_v12 }
 0x387   :  { %v1234_v9 = vsub.s32 4, %v9581_v46  ;;  %v825_v63 = vadd.s32 3, %v821_v13  ;;  %vm9672_vm12 = vcmp.le.f32.partialorder %v1148_v31, 0.7853982  ;;  %v1204_v61 = vadd.s32 %v9528_v7, %v9536_v33 }
 0x388   :  { %v1220_v4 = vsub.s32 32, %v1219_v45  ;;  %v1224_v6 = vsub.s32 4294967266, %v1219_v45  ;;  %v475_v44 = vmul.u32 %v468_v28, %v459_v57  ;;  %vm477_vm10 = vc.u32 %v9653_v14, %v9658_v42 }
 0x389   :  { %v478_v2 = vadd.s32 1, %v9659_v19  ;;  %v836_v38 = vand.u32 2147483647, %v7884_v41  ;;  %v1221_v24 = vshll.u32 %v9600_v35, %v1219_v45  ;;  %v854_v22 = vshrl.u32 %v11127_v51, %v851_v32 }
 0x38a   :  { %v1222_v58 = vshrl.u32 %v1204_v61, %v1220_v4  ;;  %v1225_v31 = vadd.s32 127, %v1224_v6  ;;  %v1235_v7 = vsel %vm1150_vm8, %v1234_v9, %v9581_v46  ;;  %v857_v36 = vshrl.u32 %v11128_v50, %v851_v32 }
 0x38b   :  { %v479_v33 = vsel %vm477_vm10, %v478_v2, %v9659_v19  ;;  %v860_v1 = vshrl.u32 %v11129_v23, %v851_v32  ;;  %v853_v35 = vshll.u32 %v11123_v39, %v9482_v60  ;;  %v856_v29 = vshll.u32 %v11127_v51, %v9482_v60 }
 0x38c   :  { %v1223_v11 = vor.u32 %v1222_v58, %v1221_v24  ;;  %v1226_v26 = vshll.u32 %v1225_v31, 23  ;;  %v480_v27 = vadd.s32 %v479_v33, %v475_v44  ;;  %v859_v21 = vshll.u32 %v11128_v50, %v9482_v60 }
 0x38d   :  { %v862_v46 = vshll.u32 %v11129_v23, %v9482_v60  ;;  %v863_v18 = vshrl.u32 %v11130_v16, %v851_v32  ;;  %v843_v5 = vand.u32 8388607, %v836_v38  ;;  %v855_v53 = vor.u32 %v854_v22, %v853_v35 }
 0x38e   :  { %v1227_v62 = vor.u32 4788187, %v1226_v26  ;;  %v481_v34 = vadd.s32 536870912, %v480_v27  ;;  %v858_v10 = vor.u32 %v857_v36, %v856_v29  ;;  %v861_v0 = vor.u32 %v860_v1, %v859_v21 }
 0x38f   :  { %v864_v20 = vor.u32 %v863_v18, %v862_v46  ;;  %v866_v30 = vshrl.u32 %v11131_v40, %v851_v32  ;;  %v1230_v43 = vcvt.s32.f32 %v1223_v11  ;;  %vm871_vm13 = vcmp.lt.s32.totalorder %v9650_v48, 4 }
 0x390   :  { %v1228_v28 = vand.u32 2147483647, %v1227_v62  ;;  %v9702_v49 = vshrl.u32 %v481_v34, 30  ;;  %v1237_v25 = vsel %vm9672_vm12, 0, %v1235_v7  ;;  %v852_v12 = vshrl.u32 %v11123_v39, %v851_v32 }
 0x391   :  { %v865_v55 = vshll.u32 %v11130_v16, %v9482_v60  ;;  %v877_v13 = vsel %vm871_vm13, %v864_v20, 920167782  ;;  %v5786_v19 = vpop.eup %5785  ;;  %vm868_vm15 = vcmp.lt.s32.totalorder %v9650_v48, 1  ;;  %vm870_vm14 = vcmp.lt.s32.totalorder %v9650_v48, 3 }
 0x392   :  { %v1231_v57 = vmul.f32 %v1230_v43, %v1228_v28  ;;  %v483_v45 = vshll.u32 %v9702_v49, 30  ;;  %v844_v9 = vor.u32 8388608, %v843_v5  ;;  %v876_v4 = vsel %vm868_vm15, %v855_v53, %v858_v10 }
 0x393   :  { %v867_v61 = vor.u32 %v866_v30, %v865_v55  ;;  %v878_v32 = vsel %vm870_vm14, %v861_v0, %v877_v13  ;;  %v5788_v60 = vpop.eup %5787  ;;  %v826_v6 = vand.u32 3, %v825_v63  ;;  %v1241_v2 = vadd.s32 3, %v1237_v25 }
 0x394   :  { %v1232_v44 = vxor.u32 2147483648, %v1231_v57  ;;  %v9719_v24 = vsub.s32 %v480_v27, %v483_v45  ;;  %v832_v58 = vxor.u32 2147483648, %v5786_v19  ;;  %vm869_vm11 = vcmp.lt.s32.totalorder %v9650_v48, 2 }
 0x395   :  { %v872_v31 = vsel %vm868_vm15, %v852_v12, %v855_v53  ;;  %v873_v22 = vsel %vm871_vm13, %v861_v0, 2102212464  ;;  %v879_v63 = vsel %vm869_vm11, %v876_v4, %v878_v32  ;;  %v880_v36 = vsel %vm868_vm15, %v858_v10, %v861_v0 }
 0x396   :  { %v1233_v7 = vsel %vm1150_vm8, %v1232_v44, %v1231_v57  ;;  %v486_v33 = vsub.s32 0, %v9719_v24  ;;  %v829_v1 = vxor.u32 2147483648, %v5788_v60  ;;  %v881_v26 = vsel %vm871_vm13, %v867_v61, 1326507024 }
 0x397   :  { %v1236_v11 = vsel %vm9672_vm12, %v8004_v56, %v1233_v7  ;;  %v884_v27 = vshll.u32 %v844_v9, 8  ;;  %v874_v29 = vsel %vm870_vm14, %v858_v10, %v873_v22  ;;  %v882_v21 = vsel %vm870_vm14, %v864_v20, %v881_v26 }
 0x398   :  { %5789 = vcosq.f32 %v1236_v11  ;;  %v5321_v35 = vmin.u32 %v486_v33, %v9719_v24  ;;  %v883_v46 = vsel %vm869_vm11, %v880_v36, %v882_v21  ;;  %vm1055_vm2 = vcmp.gt.s32.totalorder %v9010_v17, 0 }
 0x399   :  { %5791 = vsinq.f32 %v1236_v11  ;;  %v9745_v18 = vmul.u32.u64.low %v884_v27, %v879_v63  ;;  %v9746_v54 = vmul.u32.u64.high %v884_v27, %v879_v63, %v9745_v18  ;;  %vm828_vm1 = vcmp.eq.s32.totalorder %v826_v6, 0 }
 0x39a   :  { %vm831_vm0 = vcmp.eq.s32.totalorder %v826_v6, 2  ;;  %v488_v62 = vclz %v5321_v35  ;;  %v830_v34 = vsel %vm828_vm1, %v5786_v19, %v829_v1  ;;  %v9753_v0 = vand.u32 3, %v1241_v2 }
 0x39b   :  { %v833_v5 = vsel %vm831_vm0, %v832_v58, %v5788_v60  ;;  %v9750_v53 = vmul.u32.u64.low %v884_v27, %v883_v46  ;;  %v9751_v10 = vmul.u32.u64.high %v884_v27, %v883_v46, %v9750_v53  ;;  %v875_v30 = vsel %vm869_vm11, %v872_v31, %v874_v29 }
 0x39c   :  { %v5322_v20 = vadd.s32 4294967294, %v488_v62  ;;  %v9758_v28 = vsel %vm1055_vm2, %v9010_v17, 0  ;;  %v9761_v43 = vsub.s32 32, %v9664_v3  ;;  %vm827_vm3 = vcmp.lt.s32.totalorder %v826_v6, 2 }
 0x39d   :  { %v894_v25 = vadd.s32 1, %v9746_v54  ;;  %v9765_v12 = vshrl.u32 %v9641_v52, 5  ;;  %vm824_vm4 = vweird.f32 %v7878_v37  ;;  %v834_v55 = vsel %vm827_vm3, %v830_v34, %v833_v5 }
 0x39e   :  { %vm5323_vm5 = vcmp.lt.s32.totalorder %v5322_v20, 0  ;;  %v891_v19 = vmul.u32 %v884_v27, %v875_v30  ;;  %vm893_vm6 = vc.u32 %v9751_v10, %v9745_v18  ;;  %v628_v17 = vand.u32 2147483647, %v7874_v47 }
 0x39f   :  { %v491_v13 = vsel %vm5323_vm5, 0, %v5322_v20  ;;  %vm1244_vm9 = vcmp.eq.s32.totalorder %v9753_v0, 0  ;;  %v476_v48 = vadd.s32 %v9658_v42, %v9653_v14  ;;  %v895_v52 = vsel %vm893_vm6, %v894_v25, %v9746_v54 }
 0x3a0   :  { %v492_v57 = vsub.s32 32, %v491_v13  ;;  %v496_v45 = vsub.s32 4294967266, %v491_v13  ;;  %v835_v9 = vsel %vm824_vm4, nan, %v834_v55  ;;  %vm1243_vm7 = vcmp.lt.s32.totalorder %v9753_v0, 2 }
 0x3a1   :  { %vm1247_vm8 = vcmp.eq.s32.totalorder %v9753_v0, 2  ;;  %v896_v37 = vadd.s32 %v895_v52, %v891_v19  ;;  %v646_v61 = vshrl.u32 %v11127_v51, %v9761_v43  ;;  %vm1240_vm12 = vweird.f32 %v8004_v56  ;;  %v9827_v56 = vld [vmem:[%s10881_s6 + $0x70] sm:$0xff] }
 0x3a2   :  { %v493_v4 = vshll.u32 %v9719_v24, %v491_v13  ;;  %v494_v32 = vshrl.u32 %v476_v48, %v492_v57  ;;  %v497_v60 = vadd.s32 127, %v496_v45  ;;  %v649_v14 = vshrl.u32 %v11128_v50, %v9761_v43  ;;  %3868 = vperm.xlu1 %5651, %v9827_v56  }
 0x3a3   :  { %v897_v42 = vadd.s32 536870912, %v896_v37  ;;  %v635_v6 = vand.u32 8388607, %v628_v17  ;;  %v645_v44 = vshll.u32 %v11123_v39, %v9664_v3  ;;  %v655_v2 = vshrl.u32 %v11130_v16, %v9761_v43 }
 0x3a4   :  { %v495_v58 = vor.u32 %v494_v32, %v493_v4  ;;  %v498_v31 = vshll.u32 %v497_v60, 23  ;;  %v648_v24 = vshll.u32 %v11127_v51, %v9664_v3  ;;  %v652_v22 = vshrl.u32 %v11129_v23, %v9761_v43 }
 0x3a5   :  { %v5790_v7 = vpop.eup %5789  ;;  %v9793_v33 = vshrl.u32 %v897_v42, 30  ;;  %v651_v63 = vshll.u32 %v11128_v50, %v9664_v3  ;;  %v654_v36 = vshll.u32 %v11129_v23, %v9664_v3  ;;  %v658_v1 = vshrl.u32 %v11131_v40, %v9761_v43 }
 0x3a6   :  { %v5792_v11 = vpop.eup %5791  ;;  %v1248_v26 = vxor.u32 2147483648, %v5790_v7  ;;  %v499_v27 = vor.u32 4788187, %v498_v31  ;;  %v647_v35 = vor.u32 %v646_v61, %v645_v44  ;;  %v650_v29 = vor.u32 %v649_v14, %v648_v24 }
 0x3a7   :  { %v1245_v21 = vxor.u32 2147483648, %v5792_v11  ;;  %v899_v46 = vshll.u32 %v9793_v33, 30  ;;  %v656_v54 = vor.u32 %v655_v2, %v654_v36  ;;  %v657_v62 = vshll.u32 %v11130_v16, %v9664_v3 }
 0x3a8   :  { %v1249_v34 = vsel %vm1247_vm8, %v1248_v26, %v5792_v11  ;;  %v500_v5 = vand.u32 2147483647, %v499_v27  ;;  %v502_v53 = vcvt.s32.f32 %v495_v58  ;;  %v653_v20 = vor.u32 %v652_v22, %v651_v63 }
 0x3a9   :  { %v1246_v30 = vsel %vm1244_vm9, %v5790_v7, %v1245_v21  ;;  %v9808_v25 = vsub.s32 %v896_v37, %v899_v46  ;;  %v636_v55 = vor.u32 8388608, %v635_v6  ;;  %v659_v13 = vor.u32 %v658_v1, %v657_v62 }
 0x3aa   :  { %v1250_v19 = vsel %vm1243_vm7, %v1246_v30, %v1249_v34  ;;  %v503_v48 = vmul.f32 %v502_v53, %v500_v5  ;;  %vm660_vm10 = vcmp.lt.s32.totalorder %v9765_v12, 1  ;;  %vm663_vm13 = vcmp.lt.s32.totalorder %v9765_v12, 4 }
 0x3ab   :  { %v1251_v3 = vsel %vm1240_vm12, nan, %v1250_v19  ;;  %v902_v57 = vsub.s32 0, %v9808_v25  ;;  %vm662_vm15 = vcmp.lt.s32.totalorder %v9765_v12, 3  ;;  %v669_v45 = vsel %vm663_vm13, %v656_v54, 920167782 }
 0x3ac   :  { %v3783_v52 = vpack.c.bf16 %v1251_v3, %v835_v9  ;;  %v504_v37 = vxor.u32 2147483648, %v503_v48  ;;  %v668_v0 = vsel %vm660_vm10, %v647_v35, %v650_v29  ;;  %v670_v61 = vsel %vm662_vm15, %v653_v20, %v669_v45 }
 0x3ad   :  { %vm422_vm14 = vcmp.lt.s32.totalorder %v7763_v15, 0  ;;  %v5337_v4 = vmin.u32 %v902_v57, %v9808_v25  ;;  %v672_v32 = vsel %vm660_vm10, %v650_v29, %v653_v20  ;;  %v673_v9 = vsel %vm663_vm13, %v659_v13, 1326507024 }
 0x3ae   :  { %4068 = vmatprep.subr.bf16.mxu1 %v3783_v52  ;;  %v644_v60 = vshrl.u32 %v11123_v39, %v9761_v43  ;;  %vm661_vm11 = vcmp.lt.s32.totalorder %v9765_v12, 2  ;;  %v665_v14 = vsel %vm663_vm13, %v653_v20, 2102212464  ;;  %v674_v42 = vsel %vm662_vm15, %v656_v54, %v673_v9  ;;  %v9881_v54 = vld [vmem:[%s10881_s6 + $0x78] sm:$0xff] }
 0x3af   :  { %v506_v6 = vsub.s32 4, %v9702_v49  ;;  %v904_v44 = vclz %v5337_v4  ;;  %v671_v2 = vsel %vm661_vm11, %v668_v0, %v670_v61  ;;  %v676_v58 = vshll.u32 %v636_v55, 8  ;;  %3873 = vperm.xlu1 %5651, %v9881_v54  }
 0x3b0   :  { %v1058_v31 = vand.u32 31, %v9758_v28  ;;  %v505_v43 = vsel %vm422_vm14, %v504_v37, %v503_v48  ;;  %v664_v24 = vsel %vm660_vm10, %v644_v60, %v647_v35  ;;  %v675_v22 = vsel %vm661_vm11, %v672_v32, %v674_v42 }
 0x3b1   :  { %v5338_v7 = vadd.s32 4294967294, %v904_v44  ;;  %v666_v63 = vsel %vm662_vm15, %v650_v29, %v665_v14  ;;  %v9855_v36 = vmul.u32.u64.low %v676_v58, %v675_v22  ;;  %v9856_v1 = vmul.u32.u64.high %v676_v58, %v675_v22, %v9855_v36 }
 0x3b2   :  { %vm9860_vm2 = vcmp.le.f32.partialorder %v420_v8, 0.7853982  ;;  %v9864_v26 = vmul.u32.u64.low %v676_v58, %v671_v2  ;;  %v9865_v27 = vmul.u32.u64.high %v676_v58, %v671_v2, %v9864_v26  ;;  %v507_v35 = vsel %vm422_vm14, %v506_v6, %v9702_v49 }
 0x3b3   :  { %v508_v29 = vsel %vm9860_vm2, %v7763_v15, %v505_v43  ;;  %vm5339_vm1 = vcmp.lt.s32.totalorder %v5338_v7, 0  ;;  %v9874_v21 = vsub.s32 32, %v1058_v31  ;;  %v667_v8 = vsel %vm661_vm11, %v664_v24, %v666_v63  ;;  %v9943_v24 = vld [vmem:[%s10881_s6 + $0x58] sm:$0xff] }
 0x3b4   :  { %v907_v46 = vsel %vm5339_vm1, 0, %v5338_v7  ;;  %v9884_v62 = vshrl.u32 %v9758_v28, 5  ;;  %v892_v49 = vadd.s32 %v9745_v18, %v9751_v10  ;;  %v509_v53 = vsel %vm9860_vm2, 0, %v507_v35  ;;  %v9897_v28 = vld [vmem:[%s10881_s6 + $0x68] sm:$0xff] }
 0x3b5   :  { %v908_v34 = vsub.s32 32, %v907_v46  ;;  %v912_v5 = vsub.s32 4294967266, %v907_v46  ;;  %5793 = vcosq.f32 %v508_v29  ;;  %vm685_vm0 = vc.u32 %v9856_v1, %v9864_v26  ;;  %3863 = vperm.xlu1 %5651, %v9897_v28  }
 0x3b6   :  { %v686_v12 = vadd.s32 1, %v9865_v27  ;;  %v909_v18 = vshll.u32 %v9808_v25, %v907_v46  ;;  %v683_v30 = vmul.u32 %v676_v58, %v667_v8  ;;  %v1044_v13 = vand.u32 2147483647, %v7983_v59 }
 0x3b7   :  { %v910_v10 = vshrl.u32 %v892_v49, %v908_v34  ;;  %v913_v20 = vadd.s32 127, %v912_v5  ;;  %v1062_v19 = vshrl.u32 %v11127_v51, %v9874_v21  ;;  %v1071_v48 = vshrl.u32 %v11130_v16, %v9874_v21 }
 0x3b8   :  { %v687_v55 = vsel %vm685_vm0, %v686_v12, %v9865_v27  ;;  %v1070_v52 = vshll.u32 %v11129_v23, %v1058_v31  ;;  %5795 = vsinq.f32 %v508_v29  ;;  %v1065_v25 = vshrl.u32 %v11128_v50, %v9874_v21 }
 0x3b9   :  { %v911_v3 = vor.u32 %v910_v10, %v909_v18  ;;  %v914_v57 = vshll.u32 %v913_v20, 23  ;;  %v688_v45 = vadd.s32 %v687_v55, %v683_v30  ;;  %v1068_v37 = vshrl.u32 %v11129_v23, %v9874_v21  ;;  %v9923_v23 = vld [vmem:[%s10881_s6 + $0x50] sm:$0xff] }
 0x3ba   :  { %v1074_v0 = vshrl.u32 %v11131_v40, %v9874_v21  ;;  %v1061_v32 = vshll.u32 %v11123_v39, %v1058_v31  ;;  %v1072_v9 = vor.u32 %v1071_v48, %v1070_v52  ;;  %v1051_v60 = vand.u32 8388607, %v1044_v13  ;;  %v9928_v40 = vld [vmem:[%s10881_s6 + $0x60] sm:$0xff]  ;;  %3848 = vperm.xlu1 %5651, %v9923_v23  }
 0x3bb   :  { %v915_v61 = vor.u32 4788187, %v914_v57  ;;  %v689_v4 = vadd.s32 536870912, %v688_v45  ;;  %v1064_v14 = vshll.u32 %v11127_v51, %v1058_v31  ;;  %v1067_v42 = vshll.u32 %v11128_v50, %v1058_v31  ;;  %3858 = vperm.xlu0 %5652, %v9928_v40  }
 0x3bc   :  { %v1073_v6 = vshll.u32 %v11130_v16, %v1058_v31  ;;  %v918_v2 = vcvt.s32.f32 %v911_v3  ;;  %v1063_v43 = vor.u32 %v1062_v19, %v1061_v32  ;;  %vm1079_vm3 = vcmp.lt.s32.totalorder %v9884_v62, 4  ;;  %v9938_v31 = vld [vmem:[%s10881_s6 + $0x40] sm:$0xff]  ;;  %v9986_v19 = vld [vmem:[%s10881_s6 + $0x30] sm:$0xff] }
 0x3bd   :  { %v916_v44 = vand.u32 2147483647, %v915_v61  ;;  %v9930_v58 = vshrl.u32 %v689_v4, 30  ;;  %v1066_v51 = vor.u32 %v1065_v25, %v1064_v14  ;;  %v1069_v50 = vor.u32 %v1068_v37, %v1067_v42  ;;  %v10009_v25 = vld [vmem:[%s10881_s6 + $0x20] sm:$0xff]  ;;  %v10014_v37 = vld [vmem:[%s10881_s6 + $0x38] sm:$0xff] }
 0x3be   :  { %v1075_v16 = vor.u32 %v1074_v0, %v1073_v6  ;;  %vm838_vm4 = vcmp.lt.s32.totalorder %v7884_v41, 0  ;;  %v1085_v63 = vsel %vm1079_vm3, %v1072_v9, 920167782  ;;  %v513_v36 = vadd.s32 3, %v509_v53  ;;  %3838 = vperm.xlu1 %5651, %v9938_v31  }
 0x3bf   :  { %v919_v22 = vmul.f32 %v918_v2, %v916_v44  ;;  %v691_v7 = vshll.u32 %v9930_v58, 30  ;;  %vm9951_vm5 = vcmp.le.f32.partialorder %v836_v38, 0.7853982  ;;  %v922_v27 = vsub.s32 4, %v9793_v33  ;;  %3853 = vperm.xlu0 %5652, %v9943_v24   ;;  %v10033_v44 = vld [vmem:[%s10881_s6 + $0x10] sm:$0xff]  ;;  %v10038_v2 = vld [vmem:[%s10881_s6 + $0x28] sm:$0xff] }
 0x3c0   :  { %v1052_v35 = vor.u32 8388608, %v1051_v60  ;;  %vm1076_vm6 = vcmp.lt.s32.totalorder %v9884_v62, 1  ;;  %vm1078_vm9 = vcmp.lt.s32.totalorder %v9884_v62, 3  ;;  %v1089_v34 = vsel %vm1079_vm3, %v1075_v16, 1326507024 }
 0x3c1   :  { %v920_v29 = vxor.u32 2147483648, %v919_v22  ;;  %v9956_v46 = vsub.s32 %v688_v45, %v691_v7  ;;  %v1084_v38 = vsel %vm1076_vm6, %v1063_v43, %v1066_v51  ;;  %v1086_v8 = vsel %vm1078_vm9, %v1069_v50, %v1085_v63 }
 0x3c2   :  { %v1088_v49 = vsel %vm1076_vm6, %v1066_v51, %v1069_v50  ;;  %v5794_v5 = vpop.eup %5793  ;;  %v1060_v18 = vshrl.u32 %v11123_v39, %v9874_v21  ;;  %vm1077_vm7 = vcmp.lt.s32.totalorder %v9884_v62, 2  ;;  %v1081_v20 = vsel %vm1079_vm3, %v1069_v50, 2102212464  ;;  %v9991_v39 = vld [vmem:[%s10881_s6 + $0x48] sm:$0xff]  ;;  %3828 = vperm.xlu1 %5651, %v9986_v19  }
 0x3c3   :  { %v921_v53 = vsel %vm838_vm4, %v920_v29, %v919_v22  ;;  %v694_v12 = vsub.s32 0, %v9956_v46  ;;  %v1090_v30 = vsel %vm1078_vm9, %v1072_v9, %v1089_v34  ;;  %v1092_v55 = vshll.u32 %v1052_v35, 8  ;;  %3843 = vperm.xlu0 %5652, %v9991_v39   ;;  %v10056_v35 = vld [vmem:[%s10881_s6 + $0x18] sm:$0xff] }
 0x3c4   :  { %v924_v10 = vsel %vm9951_vm5, %v7884_v41, %v921_v53  ;;  %v1087_v48 = vsel %vm1077_vm7, %v1084_v38, %v1086_v8  ;;  %v1091_v3 = vsel %vm1077_vm7, %v1088_v49, %v1090_v30  ;;  %v923_v57 = vsel %vm838_vm4, %v922_v27, %v9793_v33  ;;  %v10051_v27 = vld [vmem:[%s10881_s6] sm:$0xff] }
 0x3c5   :  { %5797 = vcosq.f32 %v924_v10  ;;  %v5329_v21 = vmin.u32 %v694_v12, %v9956_v46  ;;  %v10003_v45 = vmul.u32.u64.low %v1092_v55, %v1091_v3  ;;  %v10004_v52 = vmul.u32.u64.high %v1092_v55, %v1091_v3, %v10003_v45  ;;  %v5796_v0 = vpop.eup %5795 }
 0x3c6   :  { %5799 = vsinq.f32 %v924_v10  ;;  %v1080_v4 = vsel %vm1076_vm6, %v1060_v18, %v1063_v43  ;;  %v1082_v33 = vsel %vm1078_vm9, %v1066_v51, %v1081_v20  ;;  %v925_v60 = vsel %vm9951_vm5, 0, %v923_v57  ;;  %3818 = vperm.xlu1 %5651, %v10009_v25   ;;  %v10063_v10 = vld [vmem:[%s10881_s6 + $0x8] sm:$0xff] }
 0x3c7   :  { %v696_v61 = vclz %v5329_v21  ;;  %v10020_v32 = vmul.u32.u64.low %v1092_v55, %v1087_v48  ;;  %v10021_v9 = vmul.u32.u64.high %v1092_v55, %v1087_v48, %v10020_v32  ;;  %3833 = vperm.xlu0 %5652, %v10014_v37   ;;  %v514_v42 = vand.u32 3, %v513_v36 }
 0x3c8   :  { %v1083_v6 = vsel %vm1077_vm7, %v1080_v4, %v1082_v33  ;;  %v517_v43 = vxor.u32 2147483648, %v5796_v0  ;;  %v520_v51 = vxor.u32 2147483648, %v5794_v5  ;;  %v929_v50 = vadd.s32 3, %v925_v60 }
 0x3c9   :  { %v5330_v14 = vadd.s32 4294967294, %v696_v61  ;;  %vm1101_vm12 = vc.u32 %v10004_v52, %v10020_v32  ;;  %v1102_v62 = vadd.s32 1, %v10021_v9  ;;  %v1099_v63 = vmul.u32 %v1092_v55, %v1083_v6  ;;  %v10078_v6 = vld [vmem:[%s10877_s2] sm:$0xff]  }
 0x3ca   :  { %3808 = vperm.xlu1 %5651, %v10033_v44   ;;  %vm516_vm10 = vcmp.eq.s32.totalorder %v514_v42, 0  ;;  %vm519_vm13 = vcmp.eq.s32.totalorder %v514_v42, 2  ;;  %v684_v36 = vadd.s32 %v9864_v26, %v9856_v1  ;;  %v930_v34 = vand.u32 3, %v929_v50 }
 0x3cb   :  { %vm5331_vm8 = vcmp.lt.s32.totalorder %v5330_v14, 0  ;;  %3823 = vperm.xlu0 %5652, %v10038_v2   ;;  %v1103_v11 = vsel %vm1101_vm12, %v1102_v62, %v10021_v9  ;;  %v518_v29 = vsel %vm516_vm10, %v5794_v5, %v517_v43  ;;  %v521_v38 = vsel %vm519_vm13, %v520_v51, %v5796_v0 }
 0x3cc   :  { %v699_v16 = vsel %vm5331_vm8, 0, %v5330_v14  ;;  %v1104_v49 = vadd.s32 %v1103_v11, %v1099_v63  ;;  %vm515_vm15 = vcmp.lt.s32.totalorder %v514_v42, 2  ;;  %vm512_vm14 = vweird.f32 %v7763_v15 }
 0x3cd   :  { %v700_v22 = vsub.s32 32, %v699_v16  ;;  %v704_v7 = vsub.s32 4294967266, %v699_v16  ;;  %v522_v18 = vsel %vm515_vm15, %v518_v29, %v521_v38  ;;  %v701_v30 = vshll.u32 %v9956_v46, %v699_v16 }
 0x3ce   :  { %v1105_v26 = vadd.s32 536870912, %v1104_v49  ;;  %3798 = vperm.xlu1 %5651, %v10051_v27   ;;  %vm935_vm11 = vcmp.eq.s32.totalorder %v930_v34, 2  ;;  %vm932_vm2 = vcmp.eq.s32.totalorder %v930_v34, 0  ;;  %v11311_v0 = vmov 1  }
 0x3cf   :  { %v705_v8 = vadd.s32 127, %v704_v7  ;;  %v702_v53 = vshrl.u32 %v684_v36, %v700_v22  ;;  %3813 = vperm.xlu0 %5652, %v10056_v35   ;;  %v523_v61 = vsel %vm512_vm14, nan, %v522_v18  ;;  %vm931_vm1 = vcmp.lt.s32.totalorder %v930_v34, 2  ;;  %v10091_v7 = vld [vmem:[%s10877_s2 + $0x8] sm:$0xff]  }
 0x3d0   :  { %v10066_v21 = vshrl.u32 %v1105_v26, 30  ;;  %vm928_vm0 = vweird.f32 %v7884_v41  ;;  %vm3916_vm3 = vcmask 523264   ;;  %v11312_v62 = vmov 0  }
 0x3d1   :  { %v706_v1 = vshll.u32 %v705_v8, 23  ;;  %v703_v57 = vor.u32 %v702_v53, %v701_v30  ;;  %vm630_vm5 = vcmp.lt.s32.totalorder %v7874_v47, 0  ;;  %v1100_v36 = vadd.s32 %v10020_v32, %v10004_v52 }
 0x3d2   :  { %v5798_v12 = vpop.eup %5797  ;;  %v1107_v45 = vshll.u32 %v10066_v21, 30  ;;  %5653 = vset.pattern.permute.xlu1 %v11311_v0  ;;  %vm10101_vm6 = vcmp.le.f32.partialorder %v628_v17, 0.7853982  ;;  %v714_v26 = vsub.s32 4, %v9930_v58  ;;  %vm1046_vm9 = vcmp.lt.s32.totalorder %v7983_v59, 0 }
 0x3d3   :  { %v5800_v5 = vpop.eup %5799  ;;  %v936_v20 = vxor.u32 2147483648, %v5798_v12  ;;  %v707_v55 = vor.u32 4788187, %v706_v1  ;;  %3803 = vperm.xlu0 %5652, %v10063_v10   ;;  %4336 = vperm.xlu1 %5653, %v9827_v56   ;;  %v710_v14 = vcvt.s32.f32 %v703_v57  ;;  %v10116_v1 = vld [vmem:[%s10877_s2 + $0x10] sm:$0xff]   ;;  %vm10133_vm7 = vcmp.le.f32.partialorder %v1044_v13, 0.7853982 }
 0x3d4   :  { %v933_v48 = vxor.u32 2147483648, %v5800_v5  ;;  %v1108_v33 = vsub.s32 %v1104_v49, %v1107_v45  ;;  %v10145_v45 = vld [vmem:[%s10877_s2 + $0x18] sm:$0xff]   ;;  %vm720_vm15 = vweird.f32 %v7874_v47 }
 0x3d5   :  { %v937_v3 = vsel %vm935_vm11, %v936_v20, %v5800_v5  ;;  %v708_v15 = vand.u32 2147483647, %v707_v55  ;;  %v715_v20 = vsel %vm630_vm5, %v714_v26, %v9930_v58  ;;  %v1130_v55 = vsub.s32 4, %v10066_v21 }
 0x3d6   :  { %v934_v4 = vsel %vm932_vm2, %v5798_v12, %v933_v48  ;;  %v1110_v42 = vsub.s32 0, %v1108_v33  ;;  %v717_v57 = vsel %vm10101_vm6, 0, %v715_v20  ;;  %vm1136_vm2 = vweird.f32 %v7983_v59 }
 0x3d7   :  { %v938_v46 = vsel %vm931_vm1, %v934_v4, %v937_v3  ;;  %5654 = vset.pattern.permute.xlu0 %v11311_v0  ;;  %4328 = vperm.xlu1 %5653, %v9928_v40   ;;  %v711_v41 = vmul.f32 %v710_v14, %v708_v15  ;;  %v1131_v13 = vsel %vm1046_vm9, %v1130_v55, %v10066_v21  ;;  %v721_v0 = vadd.s32 3, %v717_v57  ;;  %v5661_v14 = vld [vmem:[%s10877_s2 + $0x20] sm:$0xff]  }
 0x3d8   :  { %v939_v9 = vsel %vm928_vm0, nan, %v938_v46  ;;  %4340 = vperm.xlu0 %5654, %v9881_v54   ;;  %v5345_v43 = vmin.u32 %v1110_v42, %v1108_v33  ;;  %v1133_v46 = vsel %vm10133_vm7, 0, %v1131_v13  ;;  %v11317_v15 = vmov 2  }
 0x3d9   :  { %v3780_v60 = vpack.c.bf16 %v939_v9, %v523_v61  ;;  %v712_v50 = vxor.u32 2147483648, %v711_v41 }
 0x3da   :  { %v1112_v51 = vclz %v5345_v43 }
 0x3db   :  { %3956 = vmatpush1.bf16.msra.mxu0 %v3780_v60  ;;  %4332 = vperm.xlu1 %5653, %v9897_v28   ;;  %v713_v63 = vsel %vm630_vm5, %v712_v50, %v711_v41  ;;  %v1137_v60 = vadd.s32 3, %v1133_v46 }
 0x3dc   :  { %v5346_v16 = vadd.s32 4294967294, %v1112_v51  ;;  %4320 = vperm.xlu0 %5654, %v9923_v23   ;;  %v716_v53 = vsel %vm10101_vm6, %v7874_v47, %v713_v63  ;;  %v5663_v47 = vld [vmem:[%s10877_s2 + $0x30] sm:$0xff]  }
 0x3dd   :  { %5801 = vcosq.f32 %v716_v53  ;;  %v1138_v43 = vand.u32 3, %v1137_v60 }
 0x3de   :  { %5456 = vmatmul.mubr.msk.bf16.vlgmr.msra.gmra.mxu0 %vm3916_vm3, %v10078_v6  ;;  %vm5347_vm4 = vcmp.lt.s32.totalorder %v5346_v16, 0  ;;  %5803 = vsinq.f32 %v716_v53 }
 0x3df   :  { %3983 = vmatprep.mubr.bf16.mxu0 %v11312_v62  ;;  %v1115_v22 = vsel %vm5347_vm4, 0, %v5346_v16  ;;  %4324 = vperm.xlu1 %5653, %v9943_v24   ;;  %vm1143_vm13 = vcmp.eq.s32.totalorder %v1138_v43, 2  ;;  %vm1140_vm14 = vcmp.eq.s32.totalorder %v1138_v43, 0  ;;  %vm1139_vm11 = vcmp.lt.s32.totalorder %v1138_v43, 2 }
 0x3e0   :  { %v1116_v11 = vsub.s32 32, %v1115_v22  ;;  %v1120_v29 = vsub.s32 4294967266, %v1115_v22  ;;  %4312 = vperm.xlu0 %5654, %v9938_v31   ;;  %v1117_v8 = vshll.u32 %v1108_v33, %v1115_v22  ;;  %v722_v33 = vand.u32 3, %v721_v0 }
 0x3e2   :  { %v1118_v49 = vshrl.u32 %v1100_v36, %v1116_v11  ;;  %v1121_v34 = vadd.s32 127, %v1120_v29  ;;  %vm724_vm8 = vcmp.eq.s32.totalorder %v722_v33, 0  ;;  %vm727_vm12 = vcmp.eq.s32.totalorder %v722_v33, 2 }
 0x3e3   :  { %4316 = vperm.xlu1 %5653, %v9991_v39   ;;  %vm723_vm10 = vcmp.lt.s32.totalorder %v722_v33, 2 }
 0x3e4   :  { %v1119_v52 = vor.u32 %v1118_v49, %v1117_v8  ;;  %v1122_v32 = vshll.u32 %v1121_v34, 23  ;;  %4304 = vperm.xlu0 %5654, %v9986_v19  }
 0x3e6   :  { %5457 = vmatmul.mubr.msk.bf16.gmra.mxu0 %vm3916_vm3, %v10091_v7  ;;  %v1123_v17 = vor.u32 4788187, %v1122_v32  ;;  %v1126_v18 = vcvt.s32.f32 %v1119_v52 }
 0x3e7   :  { %3993 = vmatprep.mubr.bf16.mxu0 %v11312_v62  ;;  %4308 = vperm.xlu1 %5653, %v10014_v37  }
 0x3e8   :  { %v1124_v12 = vand.u32 2147483647, %v1123_v17  ;;  %4296 = vperm.xlu0 %5654, %v10009_v25  }
 0x3ea   :  { %v1127_v5 = vmul.f32 %v1126_v18, %v1124_v12  ;;  %v5802_v61 = vpop.eup %5801 }
 0x3eb   :  { %4300 = vperm.xlu1 %5653, %v10038_v2   ;;  %v5804_v4 = vpop.eup %5803  ;;  %v728_v9 = vxor.u32 2147483648, %v5802_v61 }
 0x3ec   :  { %v1128_v30 = vxor.u32 2147483648, %v1127_v5  ;;  %4288 = vperm.xlu0 %5654, %v10033_v44   ;;  %v725_v21 = vxor.u32 2147483648, %v5804_v4 }
 0x3ed   :  { %v729_v41 = vsel %vm727_vm12, %v728_v9, %v5804_v4 }
 0x3ee   :  { %5458 = vmatmul.mubr.msk.bf16.gmra.mxu0 %vm3916_vm3, %v10116_v1  ;;  %v1129_v3 = vsel %vm1046_vm9, %v1128_v30, %v1127_v5  ;;  %v726_v42 = vsel %vm724_vm8, %v5802_v61, %v725_v21 }
 0x3ef   :  { %4003 = vmatprep.mubr.bf16.mxu0 %v11312_v62  ;;  %v1132_v58 = vsel %vm10133_vm7, %v7983_v59, %v1129_v3  ;;  %4292 = vperm.xlu1 %5653, %v10056_v35   ;;  %v730_v50 = vsel %vm723_vm10, %v726_v42, %v729_v41  ;;  %v5664_v59 = vld [vmem:[%s10877_s2 + $0x38] sm:$0xff]  }
 0x3f0   :  { %5805 = vcosq.f32 %v1132_v58  ;;  %4280 = vperm.xlu0 %5654, %v10051_v27  }
 0x3f1   :  { %5807 = vsinq.f32 %v1132_v58 }
 0x3f3   :  { %4284 = vperm.xlu1 %5653, %v10063_v10  }
 0x3f4   :  { %5655 = vset.pattern.permute.xlu0 %v11317_v15 }
 0x3f5   :  { %4786 = vperm.xlu0 %5655, %v9827_v56  }
 0x3f6   :  { %5459 = vmatmul.mubr.msk.bf16.gmra.mxu0 %vm3916_vm3, %v10145_v45 }
 0x3f7   :  { %4013 = vmatprep.mubr.bf16.mxu0 %v11312_v62  ;;  %5656 = vset.pattern.permute.xlu1 %v11317_v15 }
 0x3f8   :  { %4790 = vperm.xlu1 %5656, %v9881_v54  }
 0x3f9   :  { %4782 = vperm.xlu0 %5655, %v9897_v28   ;;  %v5662_v28 = vld [vmem:[%s10877_s2 + $0x28] sm:$0xff]  }
 0x3fc   :  { %4778 = vperm.xlu1 %5656, %v9928_v40   ;;  %v731_v40 = vsel %vm720_vm15, nan, %v730_v50 }
 0x3fd   :  { %v5806_v56 = vpop.eup %5805  ;;  %4774 = vperm.xlu0 %5655, %v9943_v24  }
 0x3fe   :  { %5460 = vmatmul.mubr.msk.bf16.gmra.mxu0 %vm3916_vm3, %v5661_v14  ;;  %v5808_v51 = vpop.eup %5807  ;;  %v1144_v54 = vxor.u32 2147483648, %v5806_v56 }
 0x3ff   :  { %4023 = vmatprep.mubr.bf16.mxu0 %v11312_v62  ;;  %v1141_v16 = vxor.u32 2147483648, %v5808_v51 }
 0x400   :  { %v1145_v22 = vsel %vm1143_vm13, %v1144_v54, %v5808_v51  ;;  %4770 = vperm.xlu1 %5656, %v9923_v23  }
 0x401   :  { %v1142_v63 = vsel %vm1140_vm14, %v5806_v56, %v1141_v16  ;;  %4766 = vperm.xlu0 %5655, %v9991_v39  }
 0x402   :  { %v1146_v24 = vsel %vm1139_vm11, %v1142_v63, %v1145_v22 }
 0x403   :  { %v1147_v36 = vsel %vm1136_vm2, nan, %v1146_v24 }
 0x404   :  { %v3782_v11 = vpack.c.bf16 %v1147_v36, %v731_v40  ;;  %4762 = vperm.xlu1 %5656, %v9938_v31  }
 0x405   :  { %4758 = vperm.xlu0 %5655, %v10014_v37  }
 0x406   :  { %5461 = vmatmul.mubr.msk.bf16.gmra.mxu0 %vm3916_vm3, %v5662_v28  ;;  %4069 = vmatpush1.bf16.msra.mxu1 %v3782_v11 }
 0x407   :  { %4033 = vmatprep.mubr.bf16.mxu0 %v11312_v62 }
 0x408   :  { %4754 = vperm.xlu1 %5656, %v9986_v19  }
 0x409   :  { %5464 = vmatmul.mubr.msk.bf16.vlgmr.msra.gmra.mxu1 %vm3916_vm3, %v10078_v6  ;;  %4750 = vperm.xlu0 %5655, %v10038_v2  }
 0x40a   :  { %4096 = vmatprep.mubr.bf16.mxu1 %v11312_v62 }
 0x40c   :  { %4746 = vperm.xlu1 %5656, %v10009_v25  }
 0x40d   :  { %4742 = vperm.xlu0 %5655, %v10056_v35  }
 0x40e   :  { %5462 = vmatmul.mubr.msk.bf16.gmra.mxu0 %vm3916_vm3, %v5663_v47 }
 0x40f   :  { %4043 = vmatprep.mubr.bf16.mxu0 %v11312_v62 }
 0x410   :  { %4738 = vperm.xlu1 %5656, %v10033_v44  }
 0x411   :  { %5465 = vmatmul.mubr.msk.bf16.gmra.mxu1 %vm3916_vm3, %v10091_v7  ;;  %4734 = vperm.xlu0 %5655, %v10063_v10  }
 0x412   :  { %4106 = vmatprep.mubr.bf16.mxu1 %v11312_v62 }
 0x414   :  { %4730 = vperm.xlu1 %5656, %v10051_v27  }
 0x416   :  { %5463 = vmatmul.mubr.msk.bf16.gmra.mxu0 %vm3916_vm3, %v5664_v59 }
 0x417   :  { %4423 = vmatprep.mubr.bf16.mxu0 %v11312_v62 }
 0x419   :  { %5466 = vmatmul.mubr.msk.bf16.gmra.mxu1 %vm3916_vm3, %v10116_v1 }
 0x41a   :  { %4116 = vmatprep.mubr.bf16.mxu1 %v11312_v62 }
 0x41d   :  { %v10216_v23 = vpop.permute.xlu1 %3868 }
 0x421   :  { %5467 = vmatmul.mubr.msk.bf16.gmra.mxu1 %vm3916_vm3, %v10145_v45 }
 0x422   :  { %4126 = vmatprep.mubr.bf16.mxu1 %v11312_v62 }
 0x429   :  { %5468 = vmatmul.mubr.msk.bf16.gmra.mxu1 %vm3916_vm3, %v5661_v14 }
 0x42a   :  { %4136 = vmatprep.mubr.bf16.mxu1 %v11312_v62  ;;  %v10218_v31 = vpop.permute.xlu1 %3873 }
 0x430   :  { %v10220_v19 = vpop.permute.xlu1 %3863 }
 0x431   :  { %5469 = vmatmul.mubr.msk.bf16.gmra.mxu1 %vm3916_vm3, %v5662_v28 }
 0x432   :  { %4146 = vmatprep.mubr.bf16.mxu1 %v11312_v62 }
 0x435   :  { %v10224_v25 = vpop.permute.xlu1 %3848 }
 0x436   :  { %v10222_v39 = vpop.permute.xlu0 %3858 }
 0x439   :  { %5470 = vmatmul.mubr.msk.bf16.gmra.mxu1 %vm3916_vm3, %v5663_v47  ;;  %v10228_v44 = vpop.permute.xlu1 %3838 }
 0x43a   :  { %4156 = vmatprep.mubr.bf16.mxu1 %v11312_v62  ;;  %v10226_v37 = vpop.permute.xlu0 %3853 }
 0x43d   :  { %v10232_v27 = vpop.permute.xlu1 %3828 }
 0x43e   :  { %v10230_v2 = vpop.permute.xlu0 %3843 }
 0x441   :  { %5471 = vmatmul.mubr.msk.bf16.gmra.mxu1 %vm3916_vm3, %v5664_v59  ;;  %v10236_v10 = vpop.permute.xlu1 %3818 }
 0x442   :  { %4536 = vmatprep.mubr.bf16.mxu1 %v11312_v62  ;;  %v10234_v35 = vpop.permute.xlu0 %3833 }
 0x445   :  { %v10240_v7 = vpop.permute.xlu1 %3808 }
 0x446   :  { %v10238_v6 = vpop.permute.xlu0 %3823 }
 0x449   :  { %v3799_v38 = vpop.permute.xlu1 %3798 }
 0x44a   :  { %v10242_v29 = vpop.permute.xlu0 %3813 }
 0x44e   :  { %v3804_v34 = vpop.permute.xlu0 %3803 }
 0x49e   :  { %v3975_v8 = vpop.f32.mrf.mxu0 }
 0x49f   :  { %v3976_v53 = vadd.f32 %v3975_v8, %v3799_v38 }
 0x4a0   :  { %v3977_v49 = vpop.f32.mrf.mxu0 }
 0x4a1   :  { %v3978_v32 = vadd.f32 %v3977_v49, %v3799_v38  ;;  %v4167_v26 = vmax.f32 %v3976_v53, 0.0 }
 0x4a2   :  { %v3979_v52 = vpop.f32.mrf.mxu0 }
 0x4a3   :  { %v3980_v17 = vadd.f32 %v3979_v52, %v3804_v34  ;;  %v4168_v20 = vmax.f32 %v3978_v32, 0.0 }
 0x4a4   :  { %v3981_v1 = vpop.f32.mrf.mxu0 }
 0x4a5   :  { %v4171_v12 = vmax.f32 %v3980_v17, 0.0  ;;  %v3982_v18 = vadd.f32 %v3981_v1, %v3804_v34 }
 0x4a6   :  { %v3985_v5 = vpop.f32.mrf.mxu0 }
 0x4a7   :  { %v10244_v30 = vpack.c.bf16 %v4171_v12, %v4167_v26  ;;  %v4172_v55 = vmax.f32 %v3982_v18, 0.0  ;;  %v3986_v57 = vadd.f32 %v3985_v5, %v10240_v7 }
 0x4a8   :  { %v3987_v48 = vpop.f32.mrf.mxu0 }
 0x4a9   :  { %v10246_v3 = vpack.c.bf16 %v4172_v55, %v4168_v20  ;;  %v3988_v45 = vadd.f32 %v3987_v48, %v10240_v7  ;;  %v4175_v61 = vmax.f32 %v3986_v57, 0.0 }
 0x4aa   :  { %v3989_v58 = vpop.f32.mrf.mxu0 }
 0x4ab   :  { %v3990_v13 = vadd.f32 %v3989_v58, %v10242_v29  ;;  %v4176_v33 = vmax.f32 %v3988_v45, 0.0 }
 0x4ac   :  { %v3991_v0 = vpop.f32.mrf.mxu0 }
 0x4ad   :  { %v4179_v4 = vmax.f32 %v3990_v13, 0.0  ;;  %v3992_v46 = vadd.f32 %v3991_v0, %v10242_v29 }
 0x4ae   :  { %v10252_v15 = vpop.f32.mrf.mxu0 }
 0x4af   :  { %v10254_v21 = vpack.c.bf16 %v4179_v4, %v4175_v61  ;;  %v4180_v9 = vmax.f32 %v3992_v46, 0.0 }
 0x4b0   :  { %v10256_v60 = vpop.f32.mrf.mxu0 }
 0x4b1   :  { %v10258_v14 = vpack.c.bf16 %v4180_v9, %v4176_v33 }
 0x4b2   :  { %v10260_v42 = vpop.f32.mrf.mxu0 }
 0x4b4   :  { %v10262_v41 = vpop.f32.mrf.mxu0 }
 0x4b6   :  { %v10264_v43 = vpop.f32.mrf.mxu0 }
 0x4b8   :  { %v10266_v56 = vpop.f32.mrf.mxu0 }
 0x4ba   :  { %v10268_v51 = vpop.f32.mrf.mxu0 }
 0x4bc   :  { %v10270_v50 = vpop.f32.mrf.mxu0 }
 0x4be   :  { %v10272_v54 = vpop.f32.mrf.mxu0 }
 0x4c0   :  { %v10274_v16 = vpop.f32.mrf.mxu0 }
 0x4c2   :  { %v10276_v28 = vpop.f32.mrf.mxu0 }
 0x4c4   :  { %v10278_v22 = vpop.f32.mrf.mxu0 }
 0x4c6   :  { %v10280_v40 = vpop.f32.mrf.mxu0 }
 0x4c8   :  { %v4027_v63 = vpop.f32.mrf.mxu0 }
 0x4c9   :  { %v4088_v36 = vpop.f32.mrf.mxu1 }
 0x4ca   :  { %v4029_v24 = vpop.f32.mrf.mxu0  ;;  %v4089_v8 = vadd.f32 %v4088_v36, %v3799_v38 }
 0x4cb   :  { %v4090_v47 = vpop.f32.mrf.mxu1 }
 0x4cc   :  { %v4031_v11 = vpop.f32.mrf.mxu0  ;;  %v4091_v52 = vadd.f32 %v4090_v47, %v3799_v38  ;;  %v4169_v26 = vmax.f32 %v4089_v8, 0.0 }
 0x4cd   :  { %v4092_v49 = vpop.f32.mrf.mxu1 }
 0x4ce   :  { %v4035_v59 = vpop.f32.mrf.mxu0  ;;  %v4093_v32 = vadd.f32 %v4092_v49, %v3804_v34  ;;  %v4170_v55 = vmax.f32 %v4091_v52, 0.0 }
 0x4cf   :  { %v4094_v17 = vpop.f32.mrf.mxu1 }
 0x4d0   :  { %v4037_v53 = vpop.f32.mrf.mxu0  ;;  %v4173_v12 = vmax.f32 %v4093_v32, 0.0  ;;  %v4095_v18 = vadd.f32 %v4094_v17, %v3804_v34 }
 0x4d1   :  { %v4098_v5 = vpop.f32.mrf.mxu1 }
 0x4d2   :  { %v4039_v1 = vpop.f32.mrf.mxu0  ;;  %v10282_v48 = vpack.c.bf16 %v4173_v12, %v4169_v26  ;;  %v4174_v57 = vmax.f32 %v4095_v18, 0.0  ;;  %v4099_v0 = vadd.f32 %v4098_v5, %v10240_v7 }
 0x4d3   :  { %v4100_v58 = vpop.f32.mrf.mxu1 }
 0x4d4   :  { %v4041_v20 = vpop.f32.mrf.mxu0  ;;  %v10284_v13 = vpack.c.bf16 %v4174_v57, %v4170_v55  ;;  %v4101_v4 = vadd.f32 %v4100_v58, %v10240_v7  ;;  %v4177_v9 = vmax.f32 %v4099_v0, 0.0  ;;  %v4038_v55 = vadd.f32 %v4037_v53, %v10222_v39 }
 0x4d5   :  { %v4102_v61 = vpop.f32.mrf.mxu1  ;;  %v4042_v52 = vadd.f32 %v4041_v20, %v10220_v19  ;;  %v4040_v58 = vadd.f32 %v4039_v1, %v10220_v19  ;;  %v4028_v53 = vadd.f32 %v4027_v63, %v10224_v25 }
 0x4d6   :  { %v4045_v45 = vpop.f32.mrf.mxu0  ;;  %v4103_v46 = vadd.f32 %v4102_v61, %v10242_v29  ;;  %v4178_v26 = vmax.f32 %v4101_v4, 0.0  ;;  %v4032_v61 = vadd.f32 %v4031_v11, %v10226_v37  ;;  %v4022_v11 = vadd.f32 %v10278_v22, %v10230_v2 }
 0x4d7   :  { %v4104_v33 = vpop.f32.mrf.mxu1  ;;  %v4046_v18 = vadd.f32 %v4045_v45, %v10216_v23  ;;  %v4036_v45 = vadd.f32 %v4035_v59, %v10222_v39  ;;  %v4219_v1 = vmax.f32 %v4040_v58, 0.0  ;;  %v4026_v59 = vadd.f32 %v10280_v40, %v10224_v25 }
 0x4d8   :  { %v4047_v38 = vpop.f32.mrf.mxu0  ;;  %v4181_v36 = vmax.f32 %v4103_v46, 0.0  ;;  %v4105_v47 = vadd.f32 %v4104_v33, %v10242_v29  ;;  %v4012_v58 = vadd.f32 %v10270_v50, %v10234_v35  ;;  %v4204_v40 = vmax.f32 %v4022_v11, 0.0 }
 0x4d9   :  { %v10291_v49 = vpop.f32.mrf.mxu1  ;;  %v4048_v32 = vadd.f32 %v4047_v38, %v10216_v23  ;;  %v4220_v38 = vmax.f32 %v4042_v52, 0.0  ;;  %v4223_v33 = vmax.f32 %v4046_v18, 0.0  ;;  %v4212_v52 = vmax.f32 %v4032_v61, 0.0 }
 0x4da   :  { %v4049_v34 = vpop.f32.mrf.mxu0  ;;  %v10295_v12 = vpack.c.bf16 %v4181_v36, %v4177_v9  ;;  %v4182_v7 = vmax.f32 %v4105_v47, 0.0  ;;  %v4216_v9 = vmax.f32 %v4038_v55, 0.0  ;;  %v4030_v47 = vadd.f32 %v4029_v24, %v10226_v37 }
 0x4db   :  { %v4050_v8 = vadd.f32 %v4049_v34, %v10218_v31  ;;  %v10298_v5 = vpop.f32.mrf.mxu1  ;;  %v4224_v4 = vmax.f32 %v4048_v32, 0.0  ;;  %v4018_v24 = vadd.f32 %v10274_v16, %v10228_v44  ;;  %v4020_v18 = vadd.f32 %v10276_v28, %v10230_v2 }
 0x4dc   :  { %v4051_v17 = vpop.f32.mrf.mxu0  ;;  %v10302_v57 = vpack.c.bf16 %v4182_v7, %v4178_v26  ;;  %v4272_v32 = vpack.c.bf16 %v4220_v38, %v4216_v9  ;;  %v4215_v26 = vmax.f32 %v4036_v45, 0.0  ;;  %v4208_v7 = vmax.f32 %v4028_v53, 0.0 }
 0x4dd   :  { %v4052_v29 = vadd.f32 %v4051_v17, %v10218_v31  ;;  %v4227_v20 = vmax.f32 %v4050_v8, 0.0  ;;  %v10305_v0 = vpop.f32.mrf.mxu1  ;;  %v4211_v55 = vmax.f32 %v4030_v47, 0.0  ;;  %v4016_v61 = vadd.f32 %v10272_v54, %v10228_v44 }
 0x4de   :  { %v4271_v22 = vpack.c.bf16 %v4219_v1, %v4215_v26  ;;  %v4207_v38 = vmax.f32 %v4026_v59, 0.0  ;;  %v4008_v16 = vadd.f32 %v10266_v56, %v10232_v27  ;;  %v4200_v28 = vmax.f32 %v4018_v24, 0.0 }
 0x4df   :  { %v4228_v46 = vmax.f32 %v4052_v29, 0.0  ;;  %v10309_v34 = vpop.f32.mrf.mxu1  ;;  %v4275_v8 = vpack.c.bf16 %v4227_v20, %v4223_v33  ;;  %v4268_v20 = vpack.c.bf16 %v4212_v52, %v4208_v7  ;;  %v4203_v45 = vmax.f32 %v4020_v18, 0.0 }
 0x4e0   :  { %v4267_v33 = vpack.c.bf16 %v4211_v55, %v4207_v38  ;;  %v4002_v50 = vadd.f32 %v10262_v41, %v10238_v6  ;;  %v4196_v53 = vmax.f32 %v4012_v58, 0.0  ;;  %v4264_v54 = vpack.c.bf16 %v4204_v40, %v4200_v28  ;;  %v10359_v28 = vld [vmem:[%s10878_s3] sm:$0xff]  }
 0x4e1   :  { %v4276_v36 = vpack.c.bf16 %v4228_v46, %v4224_v4  ;;  %v10313_v17 = vpop.f32.mrf.mxu1  ;;  %v4010_v46 = vadd.f32 %v10268_v51, %v10234_v35  ;;  %v4199_v56 = vmax.f32 %v4016_v61, 0.0  ;;  %v3998_v47 = vadd.f32 %v10256_v60, %v10236_v10 }
 0x4e2   :  { %v4192_v1 = vmax.f32 %v4008_v16, 0.0  ;;  %v4000_v51 = vadd.f32 %v10260_v42, %v10238_v6  ;;  %v4188_v52 = vmax.f32 %v4002_v50, 0.0 }
 0x4e3   :  { %4391 = vmatprep.subr.bf16.mxu0 %v4276_v36  ;;  %v10319_v63 = vpop.f32.mrf.mxu1  ;;  %v4006_v36 = vadd.f32 %v10264_v43, %v10232_v27  ;;  %v4195_v41 = vmax.f32 %v4010_v46, 0.0  ;;  %v4263_v11 = vpack.c.bf16 %v4203_v45, %v4199_v56  ;;  %v3996_v43 = vadd.f32 %v10252_v15, %v10236_v10 }
 0x4e4   :  { %4392 = vmatpush1.bf16.msra.mxu0 %v4275_v8  ;;  %v4184_v24 = vmax.f32 %v3998_v47, 0.0  ;;  %v4187_v7 = vmax.f32 %v4000_v51, 0.0 }
 0x4e5   :  { %4393 = vmatprep.subr.bf16.mxu0 %v4272_v32  ;;  %v10325_v29 = vpop.f32.mrf.mxu1  ;;  %v4260_v32 = vpack.c.bf16 %v4196_v53, %v4192_v1  ;;  %v4191_v26 = vmax.f32 %v4006_v36, 0.0  ;;  %v4183_v58 = vmax.f32 %v3996_v43, 0.0 }
 0x4e6   :  { %v4256_v55 = vpack.c.bf16 %v4188_v52, %v4184_v24 }
 0x4e7   :  { %v10333_v4 = vpop.f32.mrf.mxu1  ;;  %v4259_v18 = vpack.c.bf16 %v4195_v41, %v4191_v26  ;;  %v4255_v40 = vpack.c.bf16 %v4187_v7, %v4183_v58 }
 0x4e8   :  { %4394 = vmatpush1.bf16.msra.mxu0 %v4271_v22 }
 0x4e9   :  { %4395 = vmatprep.subr.bf16.mxu0 %v4268_v20  ;;  %v10339_v9 = vpop.f32.mrf.mxu1 }
 0x4eb   :  { %v10345_v8 = vpop.f32.mrf.mxu1 }
 0x4ec   :  { %4396 = vmatpush1.bf16.msra.mxu0 %v4267_v33 }
 0x4ed   :  { %4397 = vmatprep.subr.bf16.mxu0 %v4264_v54  ;;  %v10349_v59 = vpop.f32.mrf.mxu1 }
 0x4ef   :  { %v4134_v60 = vpop.f32.mrf.mxu1 }
 0x4f0   :  { %4398 = vmatpush1.bf16.msra.mxu0 %v4263_v11 }
 0x4f1   :  { %4399 = vmatprep.subr.bf16.mxu0 %v4260_v32  ;;  %v4138_v22 = vpop.f32.mrf.mxu1 }
 0x4f3   :  { %v4140_v42 = vpop.f32.mrf.mxu1 }
 0x4f4   :  { %4400 = vmatpush1.bf16.msra.mxu0 %v4259_v18  ;;  %v4141_v43 = vadd.f32 %v4140_v42, %v10224_v25  ;;  %v10385_v18 = vld [vmem:[%s10878_s3 + $0x10] sm:$0xff]   ;;  %v4131_v42 = vadd.f32 %v10345_v8, %v10228_v44 }
 0x4f5   :  { %4401 = vmatprep.subr.bf16.mxu0 %v4256_v55  ;;  %v4142_v20 = vpop.f32.mrf.mxu1  ;;  %v4135_v55 = vadd.f32 %v4134_v60, %v10230_v2  ;;  %v4125_v60 = vadd.f32 %v10333_v4, %v10234_v35  ;;  %v5668_v4 = vld [vmem:[%s10878_s3 + $0x18] sm:$0xff]  }
 0x4f7   :  { %v4144_v61 = vpop.f32.mrf.mxu1 }
 0x4f8   :  { %4402 = vmatpush1.bf16.msra.mxu0 %v4255_v40  ;;  %v4145_v51 = vadd.f32 %v4144_v61, %v10226_v37 }
 0x4f9   :  { %4403 = vmatprep.subr.bf16.mxu0 %v10258_v14  ;;  %v4148_v15 = vpop.f32.mrf.mxu1 }
 0x4fa   :  { %v4149_v32 = vadd.f32 %v4148_v15, %v10222_v39  ;;  %v4214_v58 = vmax.f32 %v4145_v51, 0.0 }
 0x4fb   :  { %v4150_v38 = vpop.f32.mrf.mxu1 }
 0x4fc   :  { %4404 = vmatpush1.bf16.msra.mxu0 %v10254_v21  ;;  %v4151_v36 = vadd.f32 %v4150_v38, %v10222_v39  ;;  %v4139_v39 = vadd.f32 %v4138_v22, %v10224_v25  ;;  %v4217_v61 = vmax.f32 %v4149_v32, 0.0  ;;  %v4129_v25 = vadd.f32 %v10339_v9, %v10228_v44 }
 0x4fd   :  { %4405 = vmatprep.subr.bf16.mxu0 %v10246_v3  ;;  %v4152_v16 = vpop.f32.mrf.mxu1  ;;  %v10367_v3 = vld [vmem:[%s10878_s3 + $0x8] sm:$0xff]   ;;  %v4121_v22 = vadd.f32 %v10319_v63, %v10232_v27  ;;  %v4198_v44 = vmax.f32 %v4125_v60, 0.0 }
 0x4fe   :  { %v4153_v47 = vadd.f32 %v4152_v16, %v10220_v19  ;;  %v4218_v26 = vmax.f32 %v4151_v36, 0.0  ;;  %v4206_v16 = vmax.f32 %v4135_v55, 0.0  ;;  %v4209_v8 = vmax.f32 %v4139_v39, 0.0 }
 0x4ff   :  { %v4154_v46 = vpop.f32.mrf.mxu1  ;;  %v4201_v63 = vmax.f32 %v4129_v25, 0.0 }
 0x500   :  { %4406 = vmatpush1.bf16.msra.mxu0 %v10244_v30  ;;  %v4155_v21 = vadd.f32 %v4154_v46, %v10220_v19  ;;  %v4221_v19 = vmax.f32 %v4153_v47, 0.0 }
 0x501   :  { %v4158_v45 = vpop.f32.mrf.mxu1 }
 0x502   :  { %v4159_v30 = vadd.f32 %v4158_v45, %v10216_v23  ;;  %v4222_v41 = vmax.f32 %v4155_v21, 0.0  ;;  %v4273_v38 = vpack.c.bf16 %v4221_v19, %v4217_v61  ;;  %v4119_v21 = vadd.f32 %v10313_v17, %v10232_v27 }
 0x503   :  { %4424 = vmatmul.mubr.bf16.vlgmr.msra.gmra.mxu0 %v10359_v28  ;;  %v4160_v14 = vpop.f32.mrf.mxu1  ;;  %v4109_v27 = vadd.f32 %v10291_v49, %v10236_v10  ;;  %v5671_v49 = vld [vmem:[%s10878_s3 + $0x30] sm:$0xff]  }
 0x504   :  { %4433 = vmatprep.mubr.bf16.mxu0 %v11312_v62  ;;  %v4161_v50 = vadd.f32 %v4160_v14, %v10216_v23  ;;  %v4225_v23 = vmax.f32 %v4159_v30, 0.0  ;;  %v4274_v40 = vpack.c.bf16 %v4222_v41, %v4218_v26  ;;  %v4193_v17 = vmax.f32 %v4119_v21, 0.0 }
 0x505   :  { %v4162_v33 = vpop.f32.mrf.mxu1  ;;  %v4185_v47 = vmax.f32 %v4109_v27, 0.0 }
 0x506   :  { %v4163_v53 = vadd.f32 %v4162_v33, %v10218_v31  ;;  %v4226_v11 = vmax.f32 %v4161_v50, 0.0  ;;  %v4115_v33 = vadd.f32 %v10309_v34, %v10238_v6  ;;  %v4111_v50 = vadd.f32 %v10298_v5, %v10236_v10  ;;  %v5670_v10 = vld [vmem:[%s10878_s3 + $0x28] sm:$0xff]  }
 0x507   :  { %v4164_v54 = vpop.f32.mrf.mxu1 }
 0x508   :  { %v4165_v56 = vadd.f32 %v4164_v54, %v10218_v31  ;;  %v4229_v1 = vmax.f32 %v4163_v53, 0.0  ;;  %v4143_v31 = vadd.f32 %v4142_v20, %v10226_v37  ;;  %v4210_v37 = vmax.f32 %v4141_v43, 0.0 }
 0x509   :  { %v4133_v20 = vadd.f32 %v10349_v59, %v10230_v2  ;;  %v4202_v2 = vmax.f32 %v4131_v42, 0.0  ;;  %v4123_v59 = vadd.f32 %v10325_v29, %v10234_v35  ;;  %v4194_v35 = vmax.f32 %v4121_v22, 0.0 }
 0x50a   :  { %v4230_v52 = vmax.f32 %v4165_v56, 0.0  ;;  %v4277_v7 = vpack.c.bf16 %v4229_v1, %v4225_v23  ;;  %v4213_v15 = vmax.f32 %v4143_v31, 0.0  ;;  %v4270_v46 = vpack.c.bf16 %v4214_v58, %v4210_v37 }
 0x50b   :  { %4434 = vmatmul.mubr.bf16.gmra.mxu0 %v10367_v3  ;;  %v4205_v45 = vmax.f32 %v4133_v20, 0.0  ;;  %v4266_v9 = vpack.c.bf16 %v4206_v16, %v4202_v2  ;;  %v4113_v29 = vadd.f32 %v10305_v0, %v10238_v6  ;;  %v4197_v53 = vmax.f32 %v4123_v59, 0.0  ;;  %v5669_v6 = vld [vmem:[%s10878_s3 + $0x20] sm:$0xff]  }
 0x50c   :  { %4443 = vmatprep.mubr.bf16.mxu0 %v11312_v62  ;;  %v4278_v24 = vpack.c.bf16 %v4230_v52, %v4226_v11  ;;  %v4269_v14 = vpack.c.bf16 %v4213_v15, %v4209_v8  ;;  %v4190_v54 = vmax.f32 %v4115_v33, 0.0  ;;  %v4262_v34 = vpack.c.bf16 %v4198_v44, %v4194_v35 }
 0x50d   :  { %v4265_v30 = vpack.c.bf16 %v4205_v45, %v4201_v63  ;;  %v4186_v36 = vmax.f32 %v4111_v50, 0.0  ;;  %v4189_v5 = vmax.f32 %v4113_v29, 0.0  ;;  %v4261_v56 = vpack.c.bf16 %v4197_v53, %v4193_v17 }
 0x50e   :  { %4504 = vmatprep.subr.bf16.mxu1 %v4278_v24 }
 0x50f   :  { %4505 = vmatpush1.bf16.msra.mxu1 %v4277_v7  ;;  %v4258_v0 = vpack.c.bf16 %v4190_v54, %v4186_v36  ;;  %v4257_v1 = vpack.c.bf16 %v4189_v5, %v4185_v47 }
 0x510   :  { %4506 = vmatprep.subr.bf16.mxu1 %v4274_v40 }
 0x513   :  { %4444 = vmatmul.mubr.bf16.gmra.mxu0 %v10385_v18  ;;  %4507 = vmatpush1.bf16.msra.mxu1 %v4273_v38 }
 0x514   :  { %4453 = vmatprep.mubr.bf16.mxu0 %v11312_v62  ;;  %4508 = vmatprep.subr.bf16.mxu1 %v4270_v46 }
 0x517   :  { %4509 = vmatpush1.bf16.msra.mxu1 %v4269_v14 }
 0x518   :  { %4510 = vmatprep.subr.bf16.mxu1 %v4266_v9 }
 0x51b   :  { %4454 = vmatmul.mubr.bf16.gmra.mxu0 %v5668_v4  ;;  %4511 = vmatpush1.bf16.msra.mxu1 %v4265_v30 }
 0x51c   :  { %4463 = vmatprep.mubr.bf16.mxu0 %v11312_v62  ;;  %4512 = vmatprep.subr.bf16.mxu1 %v4262_v34 }
 0x51f   :  { %4513 = vmatpush1.bf16.msra.mxu1 %v4261_v56 }
 0x520   :  { %4514 = vmatprep.subr.bf16.mxu1 %v4258_v0 }
 0x523   :  { %4464 = vmatmul.mubr.bf16.gmra.mxu0 %v5669_v6  ;;  %4515 = vmatpush1.bf16.msra.mxu1 %v4257_v1 }
 0x524   :  { %4473 = vmatprep.mubr.bf16.mxu0 %v11312_v62  ;;  %4516 = vmatprep.subr.bf16.mxu1 %v10302_v57  ;;  %v10452_v57 = vpop.permute.xlu0 %4340 }
 0x527   :  { %4517 = vmatpush1.bf16.msra.mxu1 %v10295_v12 }
 0x528   :  { %4518 = vmatprep.subr.bf16.mxu1 %v10284_v13  ;;  %v5672_v13 = vld [vmem:[%s10878_s3 + $0x38] sm:$0xff]  }
 0x52b   :  { %4474 = vmatmul.mubr.bf16.gmra.mxu0 %v5670_v10  ;;  %4519 = vmatpush1.bf16.msra.mxu1 %v10282_v48  ;;  %v10448_v48 = vpop.permute.xlu1 %4336 }
 0x52c   :  { %4483 = vmatprep.mubr.bf16.mxu0 %v11312_v62 }
 0x52e   :  { %4537 = vmatmul.mubr.bf16.vlgmr.msra.gmra.mxu1 %v10359_v28 }
 0x52f   :  { %4546 = vmatprep.mubr.bf16.mxu1 %v11312_v62  ;;  %v10450_v12 = vpop.permute.xlu1 %4328 }
 0x533   :  { %4484 = vmatmul.mubr.bf16.gmra.mxu0 %v5671_v49  ;;  %v10454_v28 = vpop.permute.xlu1 %4332 }
 0x534   :  { %4493 = vmatprep.mubr.bf16.mxu0 %v11312_v62 }
 0x536   :  { %4547 = vmatmul.mubr.bf16.gmra.mxu1 %v10367_v3  ;;  %v10456_v3 = vpop.permute.xlu0 %4320 }
 0x537   :  { %4556 = vmatprep.mubr.bf16.mxu1 %v11312_v62  ;;  %v10458_v51 = vpop.permute.xlu1 %4324 }
 0x53a   :  { %v10460_v41 = vpop.permute.xlu0 %4312 }
 0x53b   :  { %4494 = vmatmul.mubr.bf16.gmra.mxu0 %v5672_v13  ;;  %v10462_v11 = vpop.permute.xlu1 %4316 }
 0x53c   :  { %4873 = vmatprep.mubr.bf16.mxu0 %v11312_v62 }
 0x53e   :  { %4557 = vmatmul.mubr.bf16.gmra.mxu1 %v10385_v18  ;;  %v10464_v52 = vpop.permute.xlu0 %4304 }
 0x53f   :  { %4566 = vmatprep.mubr.bf16.mxu1 %v11312_v62  ;;  %v10466_v32 = vpop.permute.xlu1 %4308 }
 0x542   :  { %v10468_v23 = vpop.permute.xlu0 %4296 }
 0x543   :  { %v10470_v43 = vpop.permute.xlu1 %4300 }
 0x546   :  { %4567 = vmatmul.mubr.bf16.gmra.mxu1 %v5668_v4  ;;  %v10472_v26 = vpop.permute.xlu0 %4288 }
 0x547   :  { %4576 = vmatprep.mubr.bf16.mxu1 %v11312_v62  ;;  %v10474_v24 = vpop.permute.xlu1 %4292 }
 0x54a   :  { %v4281_v31 = vpop.permute.xlu0 %4280 }
 0x54b   :  { %v4285_v18 = vpop.permute.xlu1 %4284 }
 0x54e   :  { %4577 = vmatmul.mubr.bf16.gmra.mxu1 %v5669_v6 }
 0x54f   :  { %4586 = vmatprep.mubr.bf16.mxu1 %v11312_v62 }
 0x556   :  { %4587 = vmatmul.mubr.bf16.gmra.mxu1 %v5670_v10 }
 0x557   :  { %4596 = vmatprep.mubr.bf16.mxu1 %v11312_v62 }
 0x55e   :  { %4597 = vmatmul.mubr.bf16.gmra.mxu1 %v5671_v49 }
 0x55f   :  { %4606 = vmatprep.mubr.bf16.mxu1 %v11312_v62 }
 0x566   :  { %4607 = vmatmul.mubr.bf16.gmra.mxu1 %v5672_v13 }
 0x567   :  { %4986 = vmatprep.mubr.bf16.mxu1 %v11312_v62 }
 0x5c3   :  { %v4425_v19 = vpop.f32.mrf.mxu0 }
 0x5c4   :  { %v4426_v55 = vadd.f32 %v4425_v19, %v4281_v31 }
 0x5c5   :  { %v4427_v7 = vpop.f32.mrf.mxu0 }
 0x5c6   :  { %v4428_v40 = vadd.f32 %v4427_v7, %v4281_v31  ;;  %v4617_v42 = vmax.f32 %v4426_v55, 0.0 }
 0x5c7   :  { %v4429_v58 = vpop.f32.mrf.mxu0 }
 0x5c8   :  { %v4430_v39 = vadd.f32 %v4429_v58, %v4285_v18  ;;  %v4618_v38 = vmax.f32 %v4428_v40, 0.0 }
 0x5c9   :  { %v4431_v61 = vpop.f32.mrf.mxu0 }
 0x5ca   :  { %v4621_v37 = vmax.f32 %v4430_v39, 0.0  ;;  %v4432_v20 = vadd.f32 %v4431_v61, %v4285_v18 }
 0x5cb   :  { %v4435_v15 = vpop.f32.mrf.mxu0 }
 0x5cc   :  { %v10476_v60 = vpack.c.bf16 %v4621_v37, %v4617_v42  ;;  %v4622_v16 = vmax.f32 %v4432_v20, 0.0  ;;  %v4436_v8 = vadd.f32 %v4435_v15, %v10472_v26 }
 0x5cd   :  { %v4437_v46 = vpop.f32.mrf.mxu0 }
 0x5ce   :  { %v10478_v25 = vpack.c.bf16 %v4622_v16, %v4618_v38  ;;  %v4438_v2 = vadd.f32 %v4437_v46, %v10472_v26  ;;  %v4625_v14 = vmax.f32 %v4436_v8, 0.0 }
 0x5cf   :  { %v4439_v22 = vpop.f32.mrf.mxu0 }
 0x5d0   :  { %v4440_v59 = vadd.f32 %v4439_v22, %v10474_v24  ;;  %v4626_v9 = vmax.f32 %v4438_v2, 0.0 }
 0x5d1   :  { %v4441_v45 = vpop.f32.mrf.mxu0 }
 0x5d2   :  { %v4629_v4 = vmax.f32 %v4440_v59, 0.0  ;;  %v4442_v33 = vadd.f32 %v4441_v45, %v10474_v24 }
 0x5d3   :  { %v10484_v44 = vpop.f32.mrf.mxu0 }
 0x5d4   :  { %v10486_v21 = vpack.c.bf16 %v4629_v4, %v4625_v14  ;;  %v4630_v63 = vmax.f32 %v4442_v33, 0.0 }
 0x5d5   :  { %v10488_v50 = vpop.f32.mrf.mxu0 }
 0x5d6   :  { %v10490_v35 = vpack.c.bf16 %v4630_v63, %v4626_v9 }
 0x5d7   :  { %v10492_v29 = vpop.f32.mrf.mxu0 }
 0x5d9   :  { %v10494_v53 = vpop.f32.mrf.mxu0 }
 0x5db   :  { %v10496_v30 = vpop.f32.mrf.mxu0 }
 0x5dd   :  { %v10498_v54 = vpop.f32.mrf.mxu0 }
 0x5df   :  { %v10500_v34 = vpop.f32.mrf.mxu0 }
 0x5e1   :  { %v10502_v27 = vpop.f32.mrf.mxu0 }
 0x5e3   :  { %v10504_v17 = vpop.f32.mrf.mxu0 }
 0x5e5   :  { %v10506_v36 = vpop.f32.mrf.mxu0 }
 0x5e7   :  { %v10508_v5 = vpop.f32.mrf.mxu0 }
 0x5e9   :  { %v10510_v56 = vpop.f32.mrf.mxu0 }
 0x5eb   :  { %v10512_v6 = vpop.f32.mrf.mxu0 }
 0x5ed   :  { %v4477_v0 = vpop.f32.mrf.mxu0 }
 0x5ee   :  { %v4538_v1 = vpop.f32.mrf.mxu1 }
 0x5ef   :  { %v4479_v47 = vpop.f32.mrf.mxu0  ;;  %v4539_v13 = vadd.f32 %v4538_v1, %v4281_v31 }
 0x5f0   :  { %v4540_v49 = vpop.f32.mrf.mxu1 }
 0x5f1   :  { %v4481_v10 = vpop.f32.mrf.mxu0  ;;  %v4541_v55 = vadd.f32 %v4540_v49, %v4281_v31  ;;  %v4619_v61 = vmax.f32 %v4539_v13, 0.0 }
 0x5f2   :  { %v4542_v7 = vpop.f32.mrf.mxu1 }
 0x5f3   :  { %v4485_v19 = vpop.f32.mrf.mxu0  ;;  %v4543_v58 = vadd.f32 %v4542_v7, %v4285_v18  ;;  %v4620_v38 = vmax.f32 %v4541_v55, 0.0 }
 0x5f4   :  { %v4544_v39 = vpop.f32.mrf.mxu1 }
 0x5f5   :  { %v4487_v40 = vpop.f32.mrf.mxu0  ;;  %v4623_v42 = vmax.f32 %v4543_v58, 0.0  ;;  %v4545_v37 = vadd.f32 %v4544_v39, %v4285_v18 }
 0x5f6   :  { %v4548_v15 = vpop.f32.mrf.mxu1 }
 0x5f7   :  { %v4489_v20 = vpop.f32.mrf.mxu0  ;;  %v10514_v16 = vpack.c.bf16 %v4623_v42, %v4619_v61  ;;  %v4624_v46 = vmax.f32 %v4545_v37, 0.0  ;;  %v4549_v59 = vadd.f32 %v4548_v15, %v10472_v26 }
 0x5f8   :  { %v4550_v22 = vpop.f32.mrf.mxu1 }
 0x5f9   :  { %v4491_v8 = vpop.f32.mrf.mxu0  ;;  %v10516_v2 = vpack.c.bf16 %v4624_v46, %v4620_v38  ;;  %v4551_v14 = vadd.f32 %v4550_v22, %v10472_v26  ;;  %v4627_v9 = vmax.f32 %v4549_v59, 0.0 }
 0x5fa   :  { %v4552_v31 = vpop.f32.mrf.mxu1  ;;  %v4492_v7 = vadd.f32 %v4491_v8, %v10454_v28  ;;  %v4490_v8 = vadd.f32 %v4489_v20, %v10454_v28 }
 0x5fb   :  { %v4495_v45 = vpop.f32.mrf.mxu0  ;;  %v4553_v4 = vadd.f32 %v4552_v31, %v10474_v24  ;;  %v4628_v39 = vmax.f32 %v4551_v14, 0.0  ;;  %v4482_v31 = vadd.f32 %v4481_v10, %v10458_v51  ;;  %v4472_v10 = vadd.f32 %v10510_v56, %v10462_v11 }
 0x5fc   :  { %v4554_v18 = vpop.f32.mrf.mxu1  ;;  %v4496_v42 = vadd.f32 %v4495_v45, %v10448_v48  ;;  %v4670_v14 = vmax.f32 %v4492_v7, 0.0  ;;  %v4486_v45 = vadd.f32 %v4485_v19, %v10450_v12  ;;  %v4669_v20 = vmax.f32 %v4490_v8, 0.0 }
 0x5fd   :  { %v4497_v33 = vpop.f32.mrf.mxu0  ;;  %v4631_v63 = vmax.f32 %v4553_v4, 0.0  ;;  %v4555_v1 = vadd.f32 %v4554_v18, %v10474_v24  ;;  %v4488_v24 = vadd.f32 %v4487_v40, %v10450_v12  ;;  %v4478_v40 = vadd.f32 %v4477_v0, %v10456_v3 }
 0x5fe   :  { %v10522_v13 = vpop.f32.mrf.mxu1  ;;  %v4498_v55 = vadd.f32 %v4497_v33, %v10448_v48  ;;  %v4673_v18 = vmax.f32 %v4496_v42, 0.0  ;;  %v4662_v7 = vmax.f32 %v4482_v31, 0.0  ;;  %v4476_v19 = vadd.f32 %v10512_v6, %v10456_v3 }
 0x5ff   :  { %v4499_v49 = vpop.f32.mrf.mxu0  ;;  %v10527_v61 = vpack.c.bf16 %v4631_v63, %v4627_v9  ;;  %v4632_v26 = vmax.f32 %v4555_v1, 0.0  ;;  %v4666_v63 = vmax.f32 %v4488_v24, 0.0  ;;  %v4658_v42 = vmax.f32 %v4478_v40, 0.0 }
 0x600   :  { %v4500_v58 = vadd.f32 %v4499_v49, %v10452_v57  ;;  %v10530_v15 = vpop.f32.mrf.mxu1  ;;  %v4674_v4 = vmax.f32 %v4498_v55, 0.0  ;;  %v4480_v49 = vadd.f32 %v4479_v47, %v10458_v51  ;;  %v4468_v47 = vadd.f32 %v10506_v36, %v10460_v41 }
 0x601   :  { %v4501_v37 = vpop.f32.mrf.mxu0  ;;  %v10534_v46 = vpack.c.bf16 %v4632_v26, %v4628_v39  ;;  %v4722_v55 = vpack.c.bf16 %v4670_v14, %v4666_v63  ;;  %v4665_v26 = vmax.f32 %v4486_v45, 0.0  ;;  %v4462_v8 = vadd.f32 %v10502_v27, %v10466_v32 }
 0x602   :  { %v4502_v38 = vadd.f32 %v4501_v37, %v10452_v57  ;;  %v4677_v22 = vmax.f32 %v4500_v58, 0.0  ;;  %v10537_v59 = vpop.f32.mrf.mxu1  ;;  %v4470_v37 = vadd.f32 %v10508_v5, %v10462_v11  ;;  %v4661_v24 = vmax.f32 %v4480_v49, 0.0 }
 0x603   :  { %v4721_v56 = vpack.c.bf16 %v4669_v20, %v4665_v26  ;;  %v4654_v6 = vmax.f32 %v4472_v10, 0.0  ;;  %v4466_v31 = vadd.f32 %v10504_v17, %v10460_v41  ;;  %v4657_v14 = vmax.f32 %v4476_v19, 0.0 }
 0x604   :  { %v4678_v33 = vmax.f32 %v4502_v38, 0.0  ;;  %v10541_v9 = vpop.f32.mrf.mxu1  ;;  %v4725_v58 = vpack.c.bf16 %v4677_v22, %v4673_v18  ;;  %v4718_v22 = vpack.c.bf16 %v4662_v7, %v4658_v42  ;;  %v4458_v36 = vadd.f32 %v10498_v54, %v10464_v52 }
 0x605   :  { %v4650_v5 = vmax.f32 %v4468_v47, 0.0  ;;  %v4653_v45 = vmax.f32 %v4470_v37, 0.0  ;;  %v4717_v18 = vpack.c.bf16 %v4661_v24, %v4657_v14  ;;  %v4452_v27 = vadd.f32 %v10494_v53, %v10470_v43 }
 0x606   :  { %v4726_v1 = vpack.c.bf16 %v4678_v33, %v4674_v4  ;;  %v10545_v39 = vpop.f32.mrf.mxu1  ;;  %v4460_v33 = vadd.f32 %v10500_v34, %v10466_v32  ;;  %v4646_v40 = vmax.f32 %v4462_v8, 0.0  ;;  %v4649_v54 = vmax.f32 %v4466_v31, 0.0 }
 0x607   :  { %v4714_v17 = vpack.c.bf16 %v4654_v6, %v4650_v5  ;;  %v4448_v49 = vadd.f32 %v10488_v50, %v10468_v23  ;;  %v4642_v20 = vmax.f32 %v4458_v36, 0.0  ;;  %v4450_v34 = vadd.f32 %v10492_v29, %v10470_v43  ;;  %v10591_v5 = vld [vmem:[%s10879_s4] sm:$0xff]  }
 0x608   :  { %4841 = vmatprep.subr.bf16.mxu0 %v4726_v1  ;;  %v10551_v0 = vpop.f32.mrf.mxu1  ;;  %v4456_v1 = vadd.f32 %v10496_v30, %v10464_v52  ;;  %v4645_v53 = vmax.f32 %v4460_v33, 0.0  ;;  %v4713_v10 = vpack.c.bf16 %v4653_v45, %v4649_v54  ;;  %v4638_v7 = vmax.f32 %v4452_v27, 0.0 }
 0x609   :  { %4842 = vmatpush1.bf16.msra.mxu0 %v4725_v58  ;;  %v4446_v30 = vadd.f32 %v10484_v44, %v10468_v23  ;;  %v4634_v47 = vmax.f32 %v4448_v49, 0.0  ;;  %v4637_v42 = vmax.f32 %v4450_v34, 0.0 }
 0x60a   :  { %4843 = vmatprep.subr.bf16.mxu0 %v4722_v55  ;;  %v10557_v38 = vpop.f32.mrf.mxu1  ;;  %v4710_v55 = vpack.c.bf16 %v4646_v40, %v4642_v20  ;;  %v4641_v26 = vmax.f32 %v4456_v1, 0.0 }
 0x60b   :  { %v4706_v24 = vpack.c.bf16 %v4638_v7, %v4634_v47  ;;  %v4633_v8 = vmax.f32 %v4446_v30, 0.0 }
 0x60c   :  { %v10565_v4 = vpop.f32.mrf.mxu1  ;;  %v4709_v37 = vpack.c.bf16 %v4645_v53, %v4641_v26 }
 0x60d   :  { %4844 = vmatpush1.bf16.msra.mxu0 %v4721_v56  ;;  %v4705_v6 = vpack.c.bf16 %v4637_v42, %v4633_v8 }
 0x60e   :  { %4845 = vmatprep.subr.bf16.mxu0 %v4718_v22  ;;  %v10571_v63 = vpop.f32.mrf.mxu1 }
 0x610   :  { %v10577_v58 = vpop.f32.mrf.mxu1 }
 0x611   :  { %4846 = vmatpush1.bf16.msra.mxu0 %v4717_v18 }
 0x612   :  { %4847 = vmatprep.subr.bf16.mxu0 %v4714_v17  ;;  %v10581_v19 = vpop.f32.mrf.mxu1 }
 0x614   :  { %v4584_v50 = vpop.f32.mrf.mxu1 }
 0x615   :  { %4848 = vmatpush1.bf16.msra.mxu0 %v4713_v10 }
 0x616   :  { %4849 = vmatprep.subr.bf16.mxu0 %v4710_v55  ;;  %v4588_v56 = vpop.f32.mrf.mxu1 }
 0x618   :  { %v4590_v29 = vpop.f32.mrf.mxu1 }
 0x619   :  { %4850 = vmatpush1.bf16.msra.mxu0 %v4709_v37  ;;  %v4591_v30 = vadd.f32 %v4590_v29, %v10456_v3  ;;  %v10617_v37 = vld [vmem:[%s10879_s4 + $0x10] sm:$0xff]   ;;  %v4581_v29 = vadd.f32 %v10577_v58, %v10460_v41 }
 0x61a   :  { %4851 = vmatprep.subr.bf16.mxu0 %v4706_v24  ;;  %v4592_v22 = vpop.f32.mrf.mxu1  ;;  %v4585_v24 = vadd.f32 %v4584_v50, %v10462_v11  ;;  %v4575_v50 = vadd.f32 %v10565_v4, %v10466_v32  ;;  %v5676_v4 = vld [vmem:[%s10879_s4 + $0x18] sm:$0xff]  }
 0x61c   :  { %v4594_v31 = vpop.f32.mrf.mxu1 }
 0x61d   :  { %4852 = vmatpush1.bf16.msra.mxu0 %v4705_v6  ;;  %v4595_v34 = vadd.f32 %v4594_v31, %v10458_v51 }
 0x61e   :  { %4853 = vmatprep.subr.bf16.mxu0 %v10490_v35  ;;  %v4598_v44 = vpop.f32.mrf.mxu1 }
 0x61f   :  { %v4599_v55 = vadd.f32 %v4598_v44, %v10450_v12  ;;  %v4664_v8 = vmax.f32 %v4595_v34, 0.0 }
 0x620   :  { %v4600_v14 = vpop.f32.mrf.mxu1 }
 0x621   :  { %4854 = vmatpush1.bf16.msra.mxu0 %v10486_v21  ;;  %v4601_v1 = vadd.f32 %v4600_v14, %v10450_v12  ;;  %v4589_v12 = vadd.f32 %v4588_v56, %v10456_v3  ;;  %v4667_v31 = vmax.f32 %v4599_v55, 0.0  ;;  %v4579_v3 = vadd.f32 %v10571_v63, %v10460_v41 }
 0x622   :  { %4855 = vmatprep.subr.bf16.mxu0 %v10478_v25  ;;  %v4602_v36 = vpop.f32.mrf.mxu1  ;;  %v10599_v25 = vld [vmem:[%s10879_s4 + $0x8] sm:$0xff]   ;;  %v4571_v56 = vadd.f32 %v10551_v0, %v10464_v52  ;;  %v4648_v41 = vmax.f32 %v4575_v50, 0.0 }
 0x623   :  { %v4603_v49 = vadd.f32 %v4602_v36, %v10454_v28  ;;  %v4668_v26 = vmax.f32 %v4601_v1, 0.0  ;;  %v4656_v36 = vmax.f32 %v4585_v24, 0.0  ;;  %v4659_v58 = vmax.f32 %v4589_v12, 0.0 }
 0x624   :  { %v4604_v33 = vpop.f32.mrf.mxu1  ;;  %v4651_v0 = vmax.f32 %v4579_v3, 0.0 }
 0x625   :  { %4856 = vmatpush1.bf16.msra.mxu0 %v10476_v60  ;;  %v4605_v21 = vadd.f32 %v4604_v33, %v10454_v28  ;;  %v4671_v28 = vmax.f32 %v4603_v49, 0.0 }
 0x626   :  { %v4608_v45 = vpop.f32.mrf.mxu1 }
 0x627   :  { %v4609_v60 = vadd.f32 %v4608_v45, %v10448_v48  ;;  %v4672_v53 = vmax.f32 %v4605_v21, 0.0  ;;  %v4723_v14 = vpack.c.bf16 %v4671_v28, %v4667_v31  ;;  %v4569_v21 = vadd.f32 %v10545_v39, %v10464_v52 }
 0x628   :  { %4874 = vmatmul.mubr.bf16.vlgmr.msra.gmra.mxu0 %v10591_v5  ;;  %v4610_v35 = vpop.f32.mrf.mxu1  ;;  %v4559_v52 = vadd.f32 %v10522_v13, %v10468_v23  ;;  %v5679_v13 = vld [vmem:[%s10879_s4 + $0x30] sm:$0xff]  }
 0x629   :  { %4883 = vmatprep.mubr.bf16.mxu0 %v11312_v62  ;;  %v4611_v27 = vadd.f32 %v4610_v35, %v10448_v48  ;;  %v4675_v48 = vmax.f32 %v4609_v60, 0.0  ;;  %v4724_v6 = vpack.c.bf16 %v4672_v53, %v4668_v26  ;;  %v4643_v39 = vmax.f32 %v4569_v21, 0.0 }
 0x62a   :  { %v4612_v18 = vpop.f32.mrf.mxu1  ;;  %v4635_v49 = vmax.f32 %v4559_v52, 0.0 }
 0x62b   :  { %v4613_v40 = vadd.f32 %v4612_v18, %v10452_v57  ;;  %v4676_v10 = vmax.f32 %v4611_v27, 0.0  ;;  %v4565_v18 = vadd.f32 %v10541_v9, %v10470_v43  ;;  %v4561_v27 = vadd.f32 %v10530_v15, %v10468_v23  ;;  %v5678_v23 = vld [vmem:[%s10879_s4 + $0x28] sm:$0xff]  }
 0x62c   :  { %v4614_v17 = vpop.f32.mrf.mxu1 }
 0x62d   :  { %v4615_v54 = vadd.f32 %v4614_v17, %v10452_v57  ;;  %v4679_v20 = vmax.f32 %v4613_v40, 0.0  ;;  %v4593_v57 = vadd.f32 %v4592_v22, %v10458_v51  ;;  %v4660_v51 = vmax.f32 %v4591_v30, 0.0 }
 0x62e   :  { %v4583_v22 = vadd.f32 %v10581_v19, %v10462_v11  ;;  %v4652_v11 = vmax.f32 %v4581_v29, 0.0  ;;  %v4573_v19 = vadd.f32 %v10557_v38, %v10466_v32  ;;  %v4644_v32 = vmax.f32 %v4571_v56, 0.0 }
 0x62f   :  { %v4680_v7 = vmax.f32 %v4615_v54, 0.0  ;;  %v4727_v42 = vpack.c.bf16 %v4679_v20, %v4675_v48  ;;  %v4663_v44 = vmax.f32 %v4593_v57, 0.0  ;;  %v4720_v33 = vpack.c.bf16 %v4664_v8, %v4660_v51 }
 0x630   :  { %4884 = vmatmul.mubr.bf16.gmra.mxu0 %v10599_v25  ;;  %v4655_v45 = vmax.f32 %v4583_v22, 0.0  ;;  %v4716_v63 = vpack.c.bf16 %v4656_v36, %v4652_v11  ;;  %v4563_v38 = vadd.f32 %v10537_v59, %v10470_v43  ;;  %v4647_v40 = vmax.f32 %v4573_v19, 0.0  ;;  %v5677_v43 = vld [vmem:[%s10879_s4 + $0x20] sm:$0xff]  }
 0x631   :  { %4893 = vmatprep.mubr.bf16.mxu0 %v11312_v62  ;;  %v4728_v47 = vpack.c.bf16 %v4680_v7, %v4676_v10  ;;  %v4719_v35 = vpack.c.bf16 %v4663_v44, %v4659_v58  ;;  %v4640_v17 = vmax.f32 %v4565_v18, 0.0  ;;  %v4712_v9 = vpack.c.bf16 %v4648_v41, %v4644_v32 }
 0x632   :  { %v4715_v60 = vpack.c.bf16 %v4655_v45, %v4651_v0  ;;  %v4636_v1 = vmax.f32 %v4561_v27, 0.0  ;;  %v4639_v15 = vmax.f32 %v4563_v38, 0.0  ;;  %v4711_v54 = vpack.c.bf16 %v4647_v40, %v4643_v39 }
 0x633   :  { %4954 = vmatprep.subr.bf16.mxu1 %v4728_v47 }
 0x634   :  { %4955 = vmatpush1.bf16.msra.mxu1 %v4727_v42  ;;  %v4708_v59 = vpack.c.bf16 %v4640_v17, %v4636_v1  ;;  %v4707_v20 = vpack.c.bf16 %v4639_v15, %v4635_v49 }
 0x635   :  { %4956 = vmatprep.subr.bf16.mxu1 %v4724_v6 }
 0x638   :  { %4894 = vmatmul.mubr.bf16.gmra.mxu0 %v10617_v37  ;;  %4957 = vmatpush1.bf16.msra.mxu1 %v4723_v14 }
 0x639   :  { %4903 = vmatprep.mubr.bf16.mxu0 %v11312_v62  ;;  %4958 = vmatprep.subr.bf16.mxu1 %v4720_v33 }
 0x63c   :  { %4959 = vmatpush1.bf16.msra.mxu1 %v4719_v35 }
 0x63d   :  { %4960 = vmatprep.subr.bf16.mxu1 %v4716_v63 }
 0x640   :  { %4904 = vmatmul.mubr.bf16.gmra.mxu0 %v5676_v4  ;;  %4961 = vmatpush1.bf16.msra.mxu1 %v4715_v60 }
 0x641   :  { %4913 = vmatprep.mubr.bf16.mxu0 %v11312_v62  ;;  %4962 = vmatprep.subr.bf16.mxu1 %v4712_v9 }
 0x644   :  { %4963 = vmatpush1.bf16.msra.mxu1 %v4711_v54 }
 0x645   :  { %4964 = vmatprep.subr.bf16.mxu1 %v4708_v59 }
 0x648   :  { %4914 = vmatmul.mubr.bf16.gmra.mxu0 %v5677_v43  ;;  %4965 = vmatpush1.bf16.msra.mxu1 %v4707_v20 }
 0x649   :  { %4923 = vmatprep.mubr.bf16.mxu0 %v11312_v62  ;;  %4966 = vmatprep.subr.bf16.mxu1 %v10534_v46 }
 0x64c   :  { %4967 = vmatpush1.bf16.msra.mxu1 %v10527_v61  ;;  %v10682_v61 = vpop.permute.xlu0 %4786 }
 0x64d   :  { %4968 = vmatprep.subr.bf16.mxu1 %v10516_v2  ;;  %v5680_v2 = vld [vmem:[%s10879_s4 + $0x38] sm:$0xff]  }
 0x650   :  { %4924 = vmatmul.mubr.bf16.gmra.mxu0 %v5678_v23  ;;  %4969 = vmatpush1.bf16.msra.mxu1 %v10514_v16  ;;  %v10680_v16 = vpop.permute.xlu1 %4790 }
 0x651   :  { %4933 = vmatprep.mubr.bf16.mxu0 %v11312_v62 }
 0x653   :  { %4987 = vmatmul.mubr.bf16.vlgmr.msra.gmra.mxu1 %v10591_v5  ;;  %v10686_v5 = vpop.permute.xlu0 %4782 }
 0x654   :  { %4996 = vmatprep.mubr.bf16.mxu1 %v11312_v62  ;;  %v10684_v46 = vpop.permute.xlu1 %4778 }
 0x657   :  { %v10690_v34 = vpop.permute.xlu0 %4774 }
 0x658   :  { %4934 = vmatmul.mubr.bf16.gmra.mxu0 %v5679_v13 }
 0x659   :  { %4943 = vmatprep.mubr.bf16.mxu0 %v11312_v62 }
 0x65b   :  { %4997 = vmatmul.mubr.bf16.gmra.mxu1 %v10599_v25  ;;  %v10688_v25 = vpop.permute.xlu1 %4770  ;;  %v10694_v10 = vpop.permute.xlu0 %4766 }
 0x65c   :  { %5006 = vmatprep.mubr.bf16.mxu1 %v11312_v62 }
 0x65f   :  { %v10692_v53 = vpop.permute.xlu1 %4762  ;;  %v10698_v55 = vpop.permute.xlu0 %4758 }
 0x660   :  { %4944 = vmatmul.mubr.bf16.gmra.mxu0 %v5680_v2 }
 0x661   :  { %5198 = vmatprep.mubr.bf16.mxu0 %v11312_v62 }
 0x663   :  { %5007 = vmatmul.mubr.bf16.gmra.mxu1 %v10617_v37  ;;  %v10696_v7 = vpop.permute.xlu1 %4754  ;;  %v10702_v48 = vpop.permute.xlu0 %4750 }
 0x664   :  { %5016 = vmatprep.mubr.bf16.mxu1 %v11312_v62 }
 0x667   :  { %v10706_v26 = vpop.permute.xlu0 %4742 }
 0x66b   :  { %5017 = vmatmul.mubr.bf16.gmra.mxu1 %v5676_v4  ;;  %v4735_v42 = vpop.permute.xlu0 %4734 }
 0x66c   :  { %5026 = vmatprep.mubr.bf16.mxu1 %v11312_v62 }
 0x673   :  { %5027 = vmatmul.mubr.bf16.gmra.mxu1 %v5677_v43 }
 0x674   :  { %5036 = vmatprep.mubr.bf16.mxu1 %v11312_v62 }
 0x67b   :  { %5037 = vmatmul.mubr.bf16.gmra.mxu1 %v5678_v23 }
 0x67c   :  { %5046 = vmatprep.mubr.bf16.mxu1 %v11312_v62 }
 0x683   :  { %5047 = vmatmul.mubr.bf16.gmra.mxu1 %v5679_v13 }
 0x684   :  { %5056 = vmatprep.mubr.bf16.mxu1 %v11312_v62 }
 0x68b   :  { %5057 = vmatmul.mubr.bf16.gmra.mxu1 %v5680_v2 }
 0x68c   :  { %5239 = vmatprep.mubr.bf16.mxu1 %v11312_v62  ;;  %v10700_v62 = vpop.permute.xlu1 %4746 }
 0x690   :  { %v10704_v30 = vpop.permute.xlu1 %4738 }
 0x694   :  { %v4731_v47 = vpop.permute.xlu1 %4730 }
 0x6e8   :  { %v4875_v57 = vpop.f32.mrf.mxu0 }
 0x6e9   :  { %v4876_v37 = vadd.f32 %v4875_v57, %v4731_v47 }
 0x6ea   :  { %v4877_v28 = vpop.f32.mrf.mxu0 }
 0x6eb   :  { %v4878_v8 = vadd.f32 %v4877_v28, %v4731_v47  ;;  %v5067_v31 = vmax.f32 %v4876_v37, 0.0 }
 0x6ec   :  { %v4879_v24 = vpop.f32.mrf.mxu0 }
 0x6ed   :  { %v4880_v6 = vadd.f32 %v4879_v24, %v4735_v42  ;;  %v5068_v44 = vmax.f32 %v4878_v8, 0.0 }
 0x6ee   :  { %v4881_v12 = vpop.f32.mrf.mxu0 }
 0x6ef   :  { %v5071_v29 = vmax.f32 %v4880_v6, 0.0  ;;  %v4882_v51 = vadd.f32 %v4881_v12, %v4735_v42 }
 0x6f0   :  { %v4885_v22 = vpop.f32.mrf.mxu0 }
 0x6f1   :  { %v10708_v14 = vpack.c.bf16 %v5071_v29, %v5067_v31  ;;  %v5072_v50 = vmax.f32 %v4882_v51, 0.0  ;;  %v4886_v3 = vadd.f32 %v4885_v22, %v10704_v30 }
 0x6f2   :  { %v4887_v36 = vpop.f32.mrf.mxu0 }
 0x6f3   :  { %v10710_v33 = vpack.c.bf16 %v5072_v50, %v5068_v44  ;;  %v4888_v56 = vadd.f32 %v4887_v36, %v10704_v30  ;;  %v5075_v45 = vmax.f32 %v4886_v3, 0.0 }
 0x6f4   :  { %v4889_v58 = vpop.f32.mrf.mxu0 }
 0x6f5   :  { %v4890_v11 = vadd.f32 %v4889_v58, %v10706_v26  ;;  %v5076_v41 = vmax.f32 %v4888_v56, 0.0 }
 0x6f6   :  { %v4891_v19 = vpop.f32.mrf.mxu0 }
 0x6f7   :  { %v5079_v35 = vmax.f32 %v4890_v11, 0.0  ;;  %v4892_v4 = vadd.f32 %v4891_v19, %v10706_v26 }
 0x6f8   :  { %v10716_v18 = vpop.f32.mrf.mxu0 }
 0x6f9   :  { %v10718_v63 = vpack.c.bf16 %v5079_v35, %v5075_v45  ;;  %v5080_v21 = vmax.f32 %v4892_v4, 0.0 }
 0x6fa   :  { %v10720_v0 = vpop.f32.mrf.mxu0 }
 0x6fb   :  { %v10722_v27 = vpack.c.bf16 %v5080_v21, %v5076_v41 }
 0x6fc   :  { %v10724_v32 = vpop.f32.mrf.mxu0 }
 0x6fe   :  { %v10726_v38 = vpop.f32.mrf.mxu0 }
 0x700   :  { %v10728_v40 = vpop.f32.mrf.mxu0 }
 0x702   :  { %v10730_v60 = vpop.f32.mrf.mxu0 }
 0x704   :  { %v10732_v17 = vpop.f32.mrf.mxu0 }
 0x706   :  { %v10734_v9 = vpop.f32.mrf.mxu0 }
 0x708   :  { %v10736_v52 = vpop.f32.mrf.mxu0 }
 0x70a   :  { %v10738_v39 = vpop.f32.mrf.mxu0 }
 0x70c   :  { %v10740_v1 = vpop.f32.mrf.mxu0 }
 0x70e   :  { %v10742_v15 = vpop.f32.mrf.mxu0 }
 0x710   :  { %v10744_v54 = vpop.f32.mrf.mxu0 }
 0x712   :  { %v4927_v43 = vpop.f32.mrf.mxu0 }
 0x713   :  { %v4988_v49 = vpop.f32.mrf.mxu1 }
 0x714   :  { %v4929_v59 = vpop.f32.mrf.mxu0  ;;  %v4989_v13 = vadd.f32 %v4988_v49, %v4731_v47 }
 0x715   :  { %v4990_v23 = vpop.f32.mrf.mxu1 }
 0x716   :  { %v4931_v20 = vpop.f32.mrf.mxu0  ;;  %v4991_v28 = vadd.f32 %v4990_v23, %v4731_v47  ;;  %v5069_v6 = vmax.f32 %v4989_v13, 0.0 }
 0x717   :  { %v4992_v57 = vpop.f32.mrf.mxu1 }
 0x718   :  { %v4935_v2 = vpop.f32.mrf.mxu0  ;;  %v4993_v37 = vadd.f32 %v4992_v57, %v4735_v42  ;;  %v5070_v22 = vmax.f32 %v4991_v28, 0.0 }
 0x719   :  { %v4994_v8 = vpop.f32.mrf.mxu1 }
 0x71a   :  { %v4937_v24 = vpop.f32.mrf.mxu0  ;;  %v5073_v12 = vmax.f32 %v4993_v37, 0.0  ;;  %v4995_v31 = vadd.f32 %v4994_v8, %v4735_v42 }
 0x71b   :  { %v4998_v51 = vpop.f32.mrf.mxu1 }
 0x71c   :  { %v4939_v29 = vpop.f32.mrf.mxu0  ;;  %v10746_v44 = vpack.c.bf16 %v5073_v12, %v5069_v6  ;;  %v5074_v50 = vmax.f32 %v4995_v31, 0.0  ;;  %v4999_v56 = vadd.f32 %v4998_v51, %v10704_v30 }
 0x71d   :  { %v5000_v3 = vpop.f32.mrf.mxu1 }
 0x71e   :  { %v4941_v36 = vpop.f32.mrf.mxu0  ;;  %v10748_v58 = vpack.c.bf16 %v5074_v50, %v5070_v22  ;;  %v5001_v19 = vadd.f32 %v5000_v3, %v10704_v30  ;;  %v5077_v4 = vmax.f32 %v4999_v56, 0.0  ;;  %v4940_v50 = vadd.f32 %v4939_v29, %v10686_v5 }
 0x71f   :  { %v5002_v47 = vpop.f32.mrf.mxu1  ;;  %v4942_v13 = vadd.f32 %v4941_v36, %v10686_v5  ;;  %v4932_v56 = vadd.f32 %v4931_v20, %v10690_v34  ;;  %v4922_v20 = vadd.f32 %v10742_v15, %v10694_v10 }
 0x720   :  { %v4945_v11 = vpop.f32.mrf.mxu0  ;;  %v5003_v45 = vadd.f32 %v5002_v47, %v10706_v26  ;;  %v5078_v37 = vmax.f32 %v5001_v19, 0.0  ;;  %v5119_v29 = vmax.f32 %v4940_v50, 0.0 }
 0x721   :  { %v5004_v42 = vpop.f32.mrf.mxu1  ;;  %v4946_v6 = vadd.f32 %v4945_v11, %v10682_v61  ;;  %v5120_v47 = vmax.f32 %v4942_v13, 0.0  ;;  %v4936_v11 = vadd.f32 %v4935_v2, %v10684_v46  ;;  %v5112_v13 = vmax.f32 %v4932_v56, 0.0 }
 0x722   :  { %v4947_v35 = vpop.f32.mrf.mxu0  ;;  %v5081_v41 = vmax.f32 %v5003_v45, 0.0  ;;  %v5005_v21 = vadd.f32 %v5004_v42, %v10706_v26  ;;  %v4938_v26 = vadd.f32 %v4937_v24, %v10684_v46  ;;  %v4928_v24 = vadd.f32 %v4927_v43, %v10688_v25 }
 0x723   :  { %v10754_v23 = vpop.f32.mrf.mxu1  ;;  %v4948_v57 = vadd.f32 %v4947_v35, %v10682_v61  ;;  %v5123_v35 = vmax.f32 %v4946_v6, 0.0  ;;  %v4926_v2 = vadd.f32 %v10744_v54, %v10688_v25  ;;  %v4920_v6 = vadd.f32 %v10740_v1, %v10694_v10 }
 0x724   :  { %v4949_v49 = vpop.f32.mrf.mxu0  ;;  %v10759_v8 = vpack.c.bf16 %v5081_v41, %v5077_v4  ;;  %v5082_v30 = vmax.f32 %v5005_v21, 0.0  ;;  %v5116_v4 = vmax.f32 %v4938_v26, 0.0  ;;  %v4930_v21 = vadd.f32 %v4929_v59, %v10690_v34 }
 0x725   :  { %v4950_v28 = vadd.f32 %v4949_v49, %v10680_v16  ;;  %v10762_v31 = vpop.f32.mrf.mxu1  ;;  %v5124_v19 = vmax.f32 %v4948_v57, 0.0  ;;  %v4918_v59 = vadd.f32 %v10738_v39, %v10692_v53  ;;  %v5104_v54 = vmax.f32 %v4922_v20, 0.0 }
 0x726   :  { %v4951_v12 = vpop.f32.mrf.mxu0  ;;  %v10766_v22 = vpack.c.bf16 %v5082_v30, %v5078_v37  ;;  %v5157_v57 = vpack.c.bf16 %v5120_v47, %v5116_v4  ;;  %v5115_v37 = vmax.f32 %v4936_v11, 0.0  ;;  %v5108_v30 = vmax.f32 %v4928_v24, 0.0 }
 0x727   :  { %v4952_v51 = vadd.f32 %v4951_v12, %v10680_v16  ;;  %v5127_v36 = vmax.f32 %v4950_v28, 0.0  ;;  %v10769_v3 = vpop.f32.mrf.mxu1  ;;  %v5111_v12 = vmax.f32 %v4930_v21, 0.0  ;;  %v5107_v56 = vmax.f32 %v4926_v2, 0.0 }
 0x728   :  { %v5156_v15 = vpack.c.bf16 %v5119_v29, %v5115_v37  ;;  %v5153_v50 = vpack.c.bf16 %v5112_v13, %v5108_v30  ;;  %v4908_v39 = vadd.f32 %v10730_v60, %v10696_v7  ;;  %v5100_v1 = vmax.f32 %v4918_v59, 0.0 }
 0x729   :  { %v5128_v45 = vmax.f32 %v4952_v51, 0.0  ;;  %v10773_v42 = vpop.f32.mrf.mxu1  ;;  %v5160_v49 = vpack.c.bf16 %v5127_v36, %v5123_v35  ;;  %v4912_v51 = vadd.f32 %v10734_v9, %v10698_v55  ;;  %v4916_v36 = vadd.f32 %v10736_v52, %v10692_v53 }
 0x72a   :  { %v5152_v11 = vpack.c.bf16 %v5111_v12, %v5107_v56  ;;  %v4902_v9 = vadd.f32 %v10726_v38, %v10702_v48  ;;  %v5149_v52 = vpack.c.bf16 %v5104_v54, %v5100_v1  ;;  %v4906_v4 = vadd.f32 %v10728_v40, %v10696_v7 }
 0x72b   :  { %v5161_v41 = vpack.c.bf16 %v5128_v45, %v5124_v19  ;;  %v10777_v28 = vpop.f32.mrf.mxu1  ;;  %v4910_v19 = vadd.f32 %v10732_v17, %v10698_v55  ;;  %v5103_v45 = vmax.f32 %v4920_v6, 0.0  ;;  %v5096_v35 = vmax.f32 %v4912_v51, 0.0 }
 0x72c   :  { %v5099_v60 = vmax.f32 %v4916_v36, 0.0  ;;  %v5092_v21 = vmax.f32 %v4908_v39, 0.0  ;;  %v4900_v17 = vadd.f32 %v10724_v32, %v10702_v48  ;;  %v5088_v20 = vmax.f32 %v4902_v9, 0.0  ;;  %v10824_v39 = vld [vmem:[%s10880_s5] sm:$0x1] }
 0x72d   :  { %5166 = vmatprep.subr.bf16.mxu0 %v5161_v41  ;;  %v10783_v43 = vpop.f32.mrf.mxu1  ;;  %v4898_v41 = vadd.f32 %v10720_v0, %v10700_v62  ;;  %v5095_v38 = vmax.f32 %v4910_v19, 0.0  ;;  %v4896_v40 = vadd.f32 %v10716_v18, %v10700_v62  ;;  %v5091_v2 = vmax.f32 %v4906_v4, 0.0 }
 0x72e   :  { %5167 = vmatpush1.bf16.msra.mxu0 %v5160_v49  ;;  %v5148_v49 = vpack.c.bf16 %v5103_v45, %v5099_v60  ;;  %v5145_v13 = vpack.c.bf16 %v5096_v35, %v5092_v21  ;;  %v5087_v59 = vmax.f32 %v4900_v17, 0.0 }
 0x72f   :  { %5168 = vmatprep.subr.bf16.mxu0 %v5157_v57  ;;  %v10789_v26 = vpop.f32.mrf.mxu1  ;;  %v5084_v37 = vmax.f32 %v4898_v41, 0.0  ;;  %v5144_v30 = vpack.c.bf16 %v5095_v38, %v5091_v2 }
 0x731   :  { %v10797_v47 = vpop.f32.mrf.mxu1  ;;  %v5141_v6 = vpack.c.bf16 %v5088_v20, %v5084_v37 }
 0x732   :  { %5169 = vmatpush1.bf16.msra.mxu0 %v5156_v15  ;;  %v5083_v15 = vmax.f32 %v4896_v40, 0.0 }
 0x733   :  { %5170 = vmatprep.subr.bf16.mxu0 %v5153_v50  ;;  %v10803_v24 = vpop.f32.mrf.mxu1 }
 0x734   :  { %v5140_v51 = vpack.c.bf16 %v5087_v59, %v5083_v15 }
 0x735   :  { %v10809_v29 = vpop.f32.mrf.mxu1 }
 0x736   :  { %5171 = vmatpush1.bf16.msra.mxu0 %v5152_v11 }
 0x737   :  { %5172 = vmatprep.subr.bf16.mxu0 %v5149_v52  ;;  %v10813_v57 = vpop.f32.mrf.mxu1 }
 0x739   :  { %v5034_v0 = vpop.f32.mrf.mxu1 }
 0x73a   :  { %5173 = vmatpush1.bf16.msra.mxu0 %v5148_v49 }
 0x73b   :  { %5174 = vmatprep.subr.bf16.mxu0 %v5145_v13  ;;  %v5038_v12 = vpop.f32.mrf.mxu1 }
 0x73d   :  { %v5040_v32 = vpop.f32.mrf.mxu1 }
 0x73e   :  { %5175 = vmatpush1.bf16.msra.mxu0 %v5144_v30  ;;  %v5041_v13 = vadd.f32 %v5040_v32, %v10688_v25  ;;  %v5033_v32 = vadd.f32 %v10813_v57, %v10694_v10 }
 0x73f   :  { %5176 = vmatprep.subr.bf16.mxu0 %v5141_v6  ;;  %v5042_v54 = vpop.f32.mrf.mxu1  ;;  %v5039_v6 = vadd.f32 %v5038_v12, %v10688_v25  ;;  %v5029_v25 = vadd.f32 %v10803_v24, %v10692_v53 }
 0x740   :  { %v5043_v2 = vadd.f32 %v5042_v54, %v10690_v34  ;;  %v5105_v57 = vmax.f32 %v5033_v32, 0.0  ;;  %v11318_v32 = vld [vmem:[#allocation6_spill] sm:$0xff] }
 0x741   :  { %v5044_v50 = vpop.f32.mrf.mxu1  ;;  %v5109_v12 = vmax.f32 %v5039_v6, 0.0  ;;  %v5101_v24 = vmax.f32 %v5029_v25, 0.0 }
 0x742   :  { %5177 = vmatpush1.bf16.msra.mxu0 %v5140_v51  ;;  %v5045_v41 = vadd.f32 %v5044_v50, %v10690_v34  ;;  %v5110_v51 = vmax.f32 %v5041_v13, 0.0  ;;  %v5113_v34 = vmax.f32 %v5043_v2, 0.0 }
 0x743   :  { %5178 = vmatprep.subr.bf16.mxu0 %v10722_v27  ;;  %v5048_v18 = vpop.f32.mrf.mxu1 }
 0x744   :  { %v5049_v49 = vadd.f32 %v5048_v18, %v10684_v46 }
 0x745   :  { %v5050_v36 = vpop.f32.mrf.mxu1 }
 0x746   :  { %5179 = vmatpush1.bf16.msra.mxu0 %v10718_v63  ;;  %v5051_v35 = vadd.f32 %v5050_v36, %v10684_v46  ;;  %v5117_v15 = vmax.f32 %v5049_v49, 0.0  ;;  %v5031_v46 = vadd.f32 %v10809_v29, %v10692_v53  ;;  %v5021_v29 = vadd.f32 %v10783_v43, %v10696_v7 }
 0x747   :  { %5180 = vmatprep.subr.bf16.mxu0 %v10710_v33  ;;  %v5052_v56 = vpop.f32.mrf.mxu1  ;;  %v5019_v53 = vadd.f32 %v10777_v28, %v10696_v7  ;;  %v5011_v43 = vadd.f32 %v10762_v31, %v10700_v62 }
 0x748   :  { %v5053_v4 = vadd.f32 %v5052_v56, %v10686_v5  ;;  %v5118_v40 = vmax.f32 %v5051_v35, 0.0  ;;  %v5102_v36 = vmax.f32 %v5031_v46, 0.0  ;;  %v5154_v56 = vpack.c.bf16 %v5113_v34, %v5109_v12 }
 0x749   :  { %v5054_v1 = vpop.f32.mrf.mxu1  ;;  %v5086_v7 = vmax.f32 %v5011_v43, 0.0 }
 0x74a   :  { %5181 = vmatpush1.bf16.msra.mxu0 %v10708_v14  ;;  %v5055_v11 = vadd.f32 %v5054_v1, %v10686_v5  ;;  %v5121_v37 = vmax.f32 %v5053_v4, 0.0  ;;  %v5114_v5 = vmax.f32 %v5045_v41, 0.0 }
 0x74b   :  { %v5058_v19 = vpop.f32.mrf.mxu1 }
 0x74c   :  { %v5059_v9 = vadd.f32 %v5058_v19, %v10682_v61  ;;  %v5122_v21 = vmax.f32 %v5055_v11, 0.0  ;;  %v5158_v54 = vpack.c.bf16 %v5121_v37, %v5117_v15  ;;  %v5155_v18 = vpack.c.bf16 %v5114_v5, %v5110_v51 }
 0x74d   :  { %5199 = vmatmul.mubr.bf16.vlgmr.msra.gmra.mxu0 %v10824_v39  ;;  %v5060_v45 = vpop.f32.mrf.mxu1  ;;  %v5857_v5 = vmov 1966171168  }
 0x74e   :  { %v5061_v63 = vadd.f32 %v5060_v45, %v10682_v61  ;;  %v5125_v20 = vmax.f32 %v5059_v9, 0.0  ;;  %v5159_v30 = vpack.c.bf16 %v5122_v21, %v5118_v40  ;;  %v5094_v45 = vmax.f32 %v5021_v29, 0.0 }
 0x74f   :  { %v5062_v27 = vpop.f32.mrf.mxu1  ;;  %v11319_v29 = vlaneseq }
 0x750   :  { %v5063_v33 = vadd.f32 %v5062_v27, %v10680_v16  ;;  %v5126_v17 = vmax.f32 %v5061_v63, 0.0  ;;  %v5150_v27 = vpack.c.bf16 %v5105_v57, %v5101_v24 }
 0x751   :  { %v5064_v14 = vpop.f32.mrf.mxu1  ;;  %vm5303_vm1 = vcmp.lt.s32.totalorder %v11319_v29, 512 }
 0x752   :  { %v5065_v52 = vadd.f32 %v5064_v14, %v10680_v16  ;;  %v5129_v60 = vmax.f32 %v5063_v33, 0.0  ;;  %v5035_v16 = vadd.f32 %v5034_v0, %v10694_v10  ;;  %v5025_v0 = vadd.f32 %v10797_v47, %v10698_v55 }
 0x753   :  { %v5023_v10 = vadd.f32 %v10789_v26, %v10698_v55  ;;  %v5015_v47 = vadd.f32 %v10773_v42, %v10702_v48  ;;  %v5013_v55 = vadd.f32 %v10769_v3, %v10702_v48  ;;  %v5009_v42 = vadd.f32 %v10754_v23, %v10700_v62 }
 0x754   :  { %v5130_v38 = vmax.f32 %v5065_v52, 0.0  ;;  %v5162_v59 = vpack.c.bf16 %v5129_v60, %v5125_v20  ;;  %v5106_v50 = vmax.f32 %v5035_v16, 0.0  ;;  %v5098_v1 = vmax.f32 %v5025_v0, 0.0 }
 0x755   :  { %v5097_v26 = vmax.f32 %v5023_v10, 0.0  ;;  %v5090_v11 = vmax.f32 %v5015_v47, 0.0  ;;  %v5093_v33 = vmax.f32 %v5019_v53, 0.0  ;;  %v5089_v28 = vmax.f32 %v5013_v55, 0.0 }
 0x756   :  { %v5163_v61 = vpack.c.bf16 %v5130_v38, %v5126_v17  ;;  %v5151_v19 = vpack.c.bf16 %v5106_v50, %v5102_v36  ;;  %v5147_v63 = vpack.c.bf16 %v5098_v1, %v5094_v45  ;;  %v5085_v31 = vmax.f32 %v5009_v42, 0.0 }
 0x757   :  { %v5146_v9 = vpack.c.bf16 %v5097_v26, %v5093_v33  ;;  %v5143_v14 = vpack.c.bf16 %v5090_v11, %v5086_v7  ;;  %v5165_v52 = vstv %s10882_s7  ;;  %s5858_s7 = smov [#allocation3]  }
 0x758   :  { %5207 = vmatprep.subr.bf16.mxu1 %v5163_v61  ;;  %v5142_v35 = vpack.c.bf16 %v5089_v28, %v5085_v31  ;;  %s5312_s10 = sshll.u32 %s5858_s7, 4  ;;  %s5313_s10 = int_to_ptr.vmem [resolvable:$true] %s5312_s10 }
 0x759   :  { %5208 = vmatpush1.bf16.msra.mxu1 %v5162_v59  ;;  %s5825_s11 = scalar_lea.vmem %s5313_s10, 64  ;;  %p5830_p1 = scmp.lt.s32.totalorder %s5313_s10, %s5313_s10 }
 0x75a   :  { %5209 = vmatprep.subr.bf16.mxu1 %v5159_v30  ;;  %v5279_v30 = vunpack.c.l.s4 %v5857_v5  ;;  %p5826_p0 = scmp.ne.s32.totalorder %s5313_s10, %s5825_s11  ;;  %p5831_p2 = scmp.lt.s32.totalorder %s5825_s11, %s5825_s11 }
 0x75c   :  { %v5280_v6 = vunpack.c.0.s8 %v5279_v30  ;;  %p5832_p3 = por %p5831_p2, %p5830_p1 }
 0x75d   :  { %5210 = vmatpush1.bf16.msra.mxu1 %v5158_v54 }
 0x75e   :  { %5211 = vmatprep.subr.bf16.mxu1 %v5155_v18  ;;  %v5283_v34 = vsub.s32 %v5280_v6, %v11318_v32  ;;  %p5833_p4 = pnand %p5832_p3, %p5826_p0 }
 0x761   :  { %5212 = vmatpush1.bf16.msra.mxu1 %v5154_v56 }
 0x762   :  { %5213 = vmatprep.subr.bf16.mxu1 %v5151_v19 }
 0x765   :  { %5214 = vmatpush1.bf16.msra.mxu1 %v5150_v27 }
 0x766   :  { %5215 = vmatprep.subr.bf16.mxu1 %v5147_v63 }
 0x769   :  { %5216 = vmatpush1.bf16.msra.mxu1 %v5146_v9 }
 0x76a   :  { %5217 = vmatprep.subr.bf16.mxu1 %v5143_v14 }
 0x76d   :  { %5218 = vmatpush1.bf16.msra.mxu1 %v5142_v35 }
 0x76e   :  { %5219 = vmatprep.subr.bf16.mxu1 %v10766_v22 }
 0x771   :  { %5220 = vmatpush1.bf16.msra.mxu1 %v10759_v8 }
 0x772   :  { %5221 = vmatprep.subr.bf16.mxu1 %v10748_v58 }
 0x775   :  { %5222 = vmatpush1.bf16.msra.mxu1 %v10746_v44 }
 0x778   :  { %5240 = vmatmul.mubr.bf16.vlgmr.msra.gmra.mxu1 %v10824_v39 }
 0x80d   :  { %v5200_v62 = vpop.f32.mrf.mxu0 }
 0x80e   :  { %v5201_v60 = vadd.f32 %v5200_v62, %v5165_v52 }
 0x80f   :  { %v5202_v48 = vpop.f32.mrf.mxu0 }
 0x810   :  { %v5203_v4 = vadd.f32 %v5202_v48, %v5165_v52  ;;  %v5488_v22 = vmul.f32 -1.442695, %v5201_v60 }
 0x811   :  { %v5204_v23 = vpop.f32.mrf.mxu0 }
 0x812   :  { %v5489_v41 = vmul.f32 -1.442695, %v5203_v4 }
 0x813   :  { %v5205_v3 = vpop.f32.mrf.mxu0 }
 0x814   :  { %5809 = vpow2.f32 %v5489_v41 }
 0x815   :  { %5811 = vpow2.f32 %v5488_v22 }
 0x821   :  { %v5810_v20 = vpop.eup %5809 }
 0x822   :  { %v5812_v13 = vpop.eup %5811  ;;  %v5261_v40 = vadd.f32 1.0, %v5810_v20 }
 0x823   :  { %v5260_v61 = vadd.f32 1.0, %v5812_v13 }
 0x838   :  { %v5241_v8 = vpop.f32.mrf.mxu1 }
 0x839   :  { %v5242_v58 = vadd.f32 %v5241_v8, %v5165_v52 }
 0x83a   :  { %v5243_v21 = vpop.f32.mrf.mxu1 }
 0x83b   :  { %v5490_v44 = vmul.f32 -1.442695, %v5242_v58  ;;  %v5244_v17 = vadd.f32 %v5243_v21, %v5165_v52 }
 0x83c   :  { %v5245_v39 = vpop.f32.mrf.mxu1 }
 0x83d   :  { %5813 = vpow2.f32 %v5490_v44  ;;  %v5491_v38 = vmul.f32 -1.442695, %v5244_v17 }
 0x83e   :  { %v5246_v49 = vpop.f32.mrf.mxu1 }
 0x83f   :  { %5815 = vpow2.f32 %v5491_v38 }
 0x840   :  { %5817 = vrcp.f32 %v5261_v40 }
 0x841   :  { %5819 = vrcp.f32 %v5260_v61 }
 0x84a   :  { %v5814_v2 = vpop.eup %5813 }
 0x84b   :  { %v5262_v37 = vadd.f32 1.0, %v5814_v2 }
 0x84c   :  { %v5816_v59 = vpop.eup %5815 }
 0x84d   :  { %v5263_v16 = vadd.f32 1.0, %v5816_v59  ;;  %5821 = vrcp.f32 %v5262_v37  ;;  %v5818_v15 = vpop.eup %5817 }
 0x84e   :  { %v5820_v46 = vpop.eup %5819 }
 0x84f   :  { %5823 = vrcp.f32 %v5263_v16  ;;  %v5276_v51 = vcombine.low %v5820_v46, %v5818_v15 }
 0x851   :  { %v5284_v18 = vrot.slane %v5276_v51, %v5283_v34 }
 0x85a   :  { %v5822_v54 = vpop.eup %5821 }
 0x85c   :  { %v5824_v0 = vpop.eup %5823 }
 0x85d   :  { %v5277_v50 = vcombine.low %v5822_v54, %v5824_v0 }
 0x85f   :  { %v5291_v25 = vrot.slane %v5277_v50, %v5283_v34 }
 0x861   :  { %v5292_v12 = vcombine.low %v5284_v18, %v5291_v25 }
 0x863   :  { %v5299_v36 = vrot.slane %v5292_v12, %v5283_v34 }
 0x865   :  { %5305 = vst.msk [vmem:[#allocation3] sm:$0xf] %vm5303_vm1, %v5299_v36 }
 0x866   :  { %5836 = shalt.err (!%p5833_p4)
}
 0x867   :  { %5315 = dma.vmem_to_hbm [thread:$0]  %s5313_s10, 64, %s10883_s8, [#allocation4]  }
 0x868   :  { %5845 = dma.done.wait [#allocation4], 64  }
 0x869   :  { %5846 = vsyncadd [#allocation4], 4294967232 }
 0x86a   :  { %5319 = vsyncpa [#allocation4], 1 }

</bundles_post_ra>
